<compile_context>
chip_gen: v6e
topology: v6e:2x2x1
jax: 0.10.0
libtpu: 0.0.40
codegen_flags: <defaults>
</compile_context>

<pallas_src>
import functools

import jax
import jax.numpy as jnp
from jax.experimental import pallas as pl
from jax.experimental.pallas import tpu as pltpu

IN_XYZ = 63
IN_DIR = 27
HIDDEN = 128


def _mm(a_f32_or_bf16, w_ref):
    """bf16 x bf16 matmul on the MXU with f32 accumulation."""
    return jnp.dot(
        a_f32_or_bf16.astype(jnp.bfloat16),
        w_ref[...],
        preferred_element_type=jnp.float32,
    )


def nerf_kernel(sigma_only, *refs):
    """Fused NeRF MLP forward for one batch tile.

    refs (dense path) = (xyz_ref, dir_ref, 13 weight refs ..., out_ref)
    refs (sigma_only) = (xyz_ref, 10 weight refs ..., out_ref)

    weight order: block1[5],
                  block2 split [w2_xyz(63x128), w2_h(128x128), w2_1, w2_2],
                  ws_fused(128x1),
                  rgb split [wr_h(128x64), wr_d(27x64), wr_1(64x3)]
    All weights are bf16; activations are kept in f32 for elementwise math and
    cast to bf16 only at matmul inputs.
    """
    out_ref = refs[-1]
    if sigma_only:
        xyz_ref = refs[0]
        dir_ref = None
        w = refs[1:-1]
    else:
        xyz_ref = refs[0]
        dir_ref = refs[1]
        w = refs[2:-1]

    b1 = w[0:5]
    w2_xyz, w2_h, w2_1, w2_2 = w[5:9]
    ws_fused = w[9]

    xyz = xyz_ref[...]                      # f32 (block_b, 63)
    xyz_b = xyz.astype(jnp.bfloat16)

    # block1 (all ReLU, including output activation)
    h = xyz_b
    for wi in b1:
        h = jnp.maximum(_mm(h, wi), 0.0).astype(jnp.bfloat16)

    # block2, first layer with skip connection: relu(xyz @ W_xyz + h @ W_h)
    # (equivalent to relu(concat([xyz, h]) @ W), without the lane concat)
    h = jnp.maximum(_mm(xyz_b, w2_xyz) + _mm(h, w2_h), 0.0).astype(jnp.bfloat16)
    for wi in (w2_1, w2_2):
        h = jnp.maximum(_mm(h, wi), 0.0).astype(jnp.bfloat16)

    # sigma head: the two linear layers were fused offline (no activation between)
    sigma = _mm(h, ws_fused)                # f32 (block_b, 1)

    if sigma_only:
        out_ref[...] = sigma
    else:
        wr_h, wr_d, wr_1 = w[10:13]
        dirs_b = dir_ref[...].astype(jnp.bfloat16)
        # relu(h @ W_h2 + dirs @ W_d)  ==  relu(concat([h, dirs]) @ Wr0)
        r = jnp.maximum(_mm(h, wr_h) + _mm(dirs_b, wr_d), 0.0).astype(jnp.bfloat16)
        rgb = jax.nn.sigmoid(_mm(r, wr_1))  # f32 (block_b, 3)
        # direct sub-slice stores instead of a lane concat
        out_ref[:, 0:3] = rgb
        out_ref[:, 3:4] = sigma


def _layer_dims(d_in, d_out, n_neurons, n_hidden):
    dims = [d_in] + [n_neurons] * n_hidden + [d_out]
    return list(zip(dims[:-1], dims[1:]))


def init_params(key):
    """Deterministic synthetic f32 weights with the shapes implied by __init__."""
    specs = (
        _layer_dims(IN_XYZ, HIDDEN, HIDDEN, 4)             # block1: 5 matrices
        + _layer_dims(HIDDEN + IN_XYZ, HIDDEN, HIDDEN, 2)  # block2: 3 matrices
        + _layer_dims(HIDDEN, 1, HIDDEN, 1)                # sigma : 2 matrices
        + _layer_dims(HIDDEN + IN_DIR, 3, HIDDEN // 2, 1)  # rgb   : 2 matrices
    )
    keys = jax.random.split(key, len(specs))
    params = []
    for k, (di, do) in zip(keys, specs):
        w = jax.random.normal(k, (di, do), jnp.float32) * (1.0 / jnp.sqrt(di))
        params.append(w)
    return params


def prepare_params(params):
    """Split / fuse / cast the 12 f32 matrices into the 13 bf16 kernel weights."""
    b1 = [w.astype(jnp.bfloat16) for w in params[0:5]]
    w2_0, w2_1, w2_2 = params[5:8]
    w2_xyz = w2_0[:IN_XYZ].astype(jnp.bfloat16)       # (63, 128)
    w2_h = w2_0[IN_XYZ:].astype(jnp.bfloat16)         # (128, 128)
    # sigma head fused in f32 (no activation between the two matmuls), then bf16
    ws_fused = (params[8] @ params[9]).astype(jnp.bfloat16)   # (128, 1)
    wr_0, wr_1 = params[10:12]
    wr_h = wr_0[:HIDDEN].astype(jnp.bfloat16)         # (128, 64)
    wr_d = wr_0[HIDDEN:].astype(jnp.bfloat16)         # (27, 64)
    return b1 + [
        w2_xyz, w2_h,
        w2_1.astype(jnp.bfloat16), w2_2.astype(jnp.bfloat16),
        ws_fused,
        wr_h, wr_d, wr_1.astype(jnp.bfloat16),
    ]


def nerf_forward(x, params, sigma_only=False, block_b=1024):
    """x: (B, 63+27) for dense path, (B, 63) when sigma_only. Returns f32."""
    B = x.shape[0]
    block_b = min(block_b, B)
    assert B % block_b == 0, "batch must be a multiple of the batch tile"
    out_dim = 1 if sigma_only else 4

    w = prepare_params(params)

    if sigma_only:
        assert x.shape[1] == IN_XYZ, "sigma_only expects a (B, 63) xyz-only input"
        weights = tuple(w[:10])
        inputs = (x,) + weights
        in_specs = [pl.BlockSpec((block_b, IN_XYZ), lambda i: (i, 0))]
    else:
        assert x.shape[1] == IN_XYZ + IN_DIR
        xyz = x[:, :IN_XYZ]
        dirs = x[:, IN_XYZ:]
        weights = tuple(w)
        inputs = (xyz, dirs) + weights
        in_specs = [
            pl.BlockSpec((block_b, IN_XYZ), lambda i: (i, 0)),
            pl.BlockSpec((block_b, IN_DIR), lambda i: (i, 0)),
        ]
    # Weights: whole arrays resident in VMEM (no per-step DMA / double buffering).
    in_specs += [pl.BlockSpec(memory_space=pltpu.MemorySpace.VMEM)] * len(weights)

    out_specs = pl.BlockSpec((block_b, out_dim), lambda i: (i, 0))

    # Advisory cost estimate (f32 flops counted on the fused/split network).
    macs_per_row = (
        IN_XYZ * HIDDEN + 4 * HIDDEN * HIDDEN            # block1
        + (IN_XYZ + HIDDEN) * HIDDEN + 2 * HIDDEN * HIDDEN  # block2 (split skip)
        + HIDDEN * 1                                     # fused sigma head
    )
    if not sigma_only:
        macs_per_row += (HIDDEN + IN_DIR) * (HIDDEN // 2) + (HIDDEN // 2) * 3
    weight_bytes = sum(int(wi.size) * 2 for wi in weights)
    cost = pl.CostEstimate(
        flops=2 * macs_per_row * B,
        transcendentals=(0 if sigma_only else 3 * B),    # sigmoid exp
        bytes_accessed=int(x.size) * 4 + weight_bytes + B * out_dim * 4,
    )

    return pl.pallas_call(
        functools.partial(nerf_kernel, sigma_only),
        out_shape=jax.ShapeDtypeStruct((B, out_dim), jnp.float32),
        grid_spec=pltpu.PrefetchScalarGridSpec(
            num_scalar_prefetch=0,
            grid=(B // block_b,),
            in_specs=in_specs,
            out_specs=out_specs,
        ),
        compiler_params=pltpu.CompilerParams(
            dimension_semantics=("parallel",),
            vmem_limit_bytes=48 * 1024 * 1024,
        ),
        cost_estimate=cost,
    )(*inputs)


def nerf_reference(x, params, sigma_only=False):
    """Pure-JAX reference mirroring the kernel numerics exactly
    (same weight splitting/fusion, bf16 matmul operands, f32 accumulation)."""
    w = prepare_params(params)
    b1 = w[0:5]
    w2_xyz, w2_h, w2_1, w2_2, ws_fused = w[5:10]

    def mm(a, b):
        return jnp.dot(a.astype(jnp.bfloat16), b, preferred_element_type=jnp.float32)

    xyz = x if sigma_only else x[:, :IN_XYZ]
    h = xyz
    for wi in b1:
        h = jnp.maximum(mm(h, wi), 0.0)
    h = jnp.maximum(mm(xyz, w2_xyz) + mm(h, w2_h), 0.0)
    for wi in (w2_1, w2_2):
        h = jnp.maximum(mm(h, wi), 0.0)
    sigma = mm(h, ws_fused)
    if sigma_only:
        return sigma
    wr_h, wr_d, wr_1 = w[10:13]
    dirs = x[:, IN_XYZ:IN_XYZ + IN_DIR]
    r = jnp.maximum(mm(h, wr_h) + mm(dirs, wr_d), 0.0)
    rgb = jax.nn.sigmoid(mm(r, wr_1))
    return jnp.concatenate([rgb, sigma], axis=-1)


if __name__ == "__main__":
    key = jax.random.PRNGKey(0)
    k_param, k_x = jax.random.split(key)

    params = init_params(k_param)

    # block_b=1024 -> grid of 2 blocks (keeps both v7x TensorCores busy).
    B = 2048
    x = jax.random.normal(k_x, (B, IN_XYZ + IN_DIR), jnp.float32)

    # Dense path: rgb + sigma
    out = nerf_forward(x, params, sigma_only=False, block_b=1024)
    out = jax.block_until_ready(out)
    ref = nerf_reference(x, params, sigma_only=False)
    assert out.shape == (B, 4)
    assert jnp.allclose(out, ref, atol=1e-2, rtol=1e-2), "dense path mismatch"

    # sigma_only path: xyz-only input, (B, 1) output
    x_xyz = x[:, :IN_XYZ]
    out_s = nerf_forward(x_xyz, params, sigma_only=True, block_b=1024)
    out_s = jax.block_until_ready(out_s)
    ref_s = nerf_reference(x_xyz, params, sigma_only=True)
    assert out_s.shape == (B, 1)
    assert jnp.allclose(out_s, ref_s, atol=1e-2, rtol=1e-2), "sigma path mismatch"
    assert jnp.allclose(out_s, out[:, 3:4], atol=1e-2, rtol=1e-2), "sigma column mismatch"

    # TODO(synk): optional fp8 weight quantization for v7x MXU (needs per-matrix scales).
    print("KERNEL_OK")
</pallas_src>

<mosaic_0001>
module attributes {stable_mosaic.version = 11 : i64} {
  func.func @nerf_kernel(%arg0: i32, %arg1: memref<1024x63xf32, #tpu.memory_space<vmem>>, %arg2: memref<1024x27xf32, #tpu.memory_space<vmem>>, %arg3: memref<63x128xbf16, #tpu.memory_space<vmem>>, %arg4: memref<128x128xbf16, #tpu.memory_space<vmem>>, %arg5: memref<128x128xbf16, #tpu.memory_space<vmem>>, %arg6: memref<128x128xbf16, #tpu.memory_space<vmem>>, %arg7: memref<128x128xbf16, #tpu.memory_space<vmem>>, %arg8: memref<63x128xbf16, #tpu.memory_space<vmem>>, %arg9: memref<128x128xbf16, #tpu.memory_space<vmem>>, %arg10: memref<128x128xbf16, #tpu.memory_space<vmem>>, %arg11: memref<128x128xbf16, #tpu.memory_space<vmem>>, %arg12: memref<128x1xbf16, #tpu.memory_space<vmem>>, %arg13: memref<128x64xbf16, #tpu.memory_space<vmem>>, %arg14: memref<27x64xbf16, #tpu.memory_space<vmem>>, %arg15: memref<64x3xbf16, #tpu.memory_space<vmem>>, %arg16: memref<1024x4xf32, #tpu.memory_space<vmem>>) attributes {dimension_semantics = [#tpu.dimension_semantics<parallel>], iteration_bounds = array<i64: 2>, scalar_prefetch = 0 : i64, scratch_operands = 0 : i64, tpu.core_type = #tpu.core_type<tc>, window_params = [{transform_indices = @transform_0, window_bounds = array<i64: 1024, 63>}, {transform_indices = @transform_1, window_bounds = array<i64: 1024, 27>}, {pipeline_mode = #tpu.pipeline_mode<synchronous>, transform_indices = @transform_2, window_bounds = array<i64: 63, 128>}, {pipeline_mode = #tpu.pipeline_mode<synchronous>, transform_indices = @transform_3, window_bounds = array<i64: 128, 128>}, {pipeline_mode = #tpu.pipeline_mode<synchronous>, transform_indices = @transform_4, window_bounds = array<i64: 128, 128>}, {pipeline_mode = #tpu.pipeline_mode<synchronous>, transform_indices = @transform_5, window_bounds = array<i64: 128, 128>}, {pipeline_mode = #tpu.pipeline_mode<synchronous>, transform_indices = @transform_6, window_bounds = array<i64: 128, 128>}, {pipeline_mode = #tpu.pipeline_mode<synchronous>, transform_indices = @transform_7, window_bounds = array<i64: 63, 128>}, {pipeline_mode = #tpu.pipeline_mode<synchronous>, transform_indices = @transform_8, window_bounds = array<i64: 128, 128>}, {pipeline_mode = #tpu.pipeline_mode<synchronous>, transform_indices = @transform_9, window_bounds = array<i64: 128, 128>}, {pipeline_mode = #tpu.pipeline_mode<synchronous>, transform_indices = @transform_10, window_bounds = array<i64: 128, 128>}, {pipeline_mode = #tpu.pipeline_mode<synchronous>, transform_indices = @transform_11, window_bounds = array<i64: 128, 1>}, {pipeline_mode = #tpu.pipeline_mode<synchronous>, transform_indices = @transform_12, window_bounds = array<i64: 128, 64>}, {pipeline_mode = #tpu.pipeline_mode<synchronous>, transform_indices = @transform_13, window_bounds = array<i64: 27, 64>}, {pipeline_mode = #tpu.pipeline_mode<synchronous>, transform_indices = @transform_14, window_bounds = array<i64: 64, 3>}, {transform_indices = @transform_15, window_bounds = array<i64: 1024, 4>}]} {
    %c0 = arith.constant 0 : index
    %c0_0 = arith.constant 0 : index
    %0 = vector.load %arg1[%c0, %c0_0] : memref<1024x63xf32, #tpu.memory_space<vmem>>, vector<1024x63xf32>
    %1 = arith.truncf %0 : vector<1024x63xf32> to vector<1024x63xbf16>
    %c0_1 = arith.constant 0 : index
    %c0_2 = arith.constant 0 : index
    %2 = vector.load %arg3[%c0_1, %c0_2] : memref<63x128xbf16, #tpu.memory_space<vmem>>, vector<63x128xbf16>
    %cst = arith.constant dense<0.000000e+00> : vector<1024x128xf32>
    %3 = tpu.matmul %1, %2, %cst {dimension_numbers = #tpu.dot_dimension_numbers<[1], [0], [0], [1], [0, 0, 1, 1], [], []>} : vector<1024x63xbf16>, vector<63x128xbf16>, vector<1024x128xf32> -> vector<1024x128xf32>
    %cst_3 = arith.constant 0.000000e+00 : f32
    %4 = vector.broadcast %cst_3 : f32 to vector<1024x128xf32>
    %5 = arith.maximumf %3, %4 : vector<1024x128xf32>
    %6 = arith.truncf %5 : vector<1024x128xf32> to vector<1024x128xbf16>
    %c0_4 = arith.constant 0 : index
    %c0_5 = arith.constant 0 : index
    %7 = vector.load %arg4[%c0_4, %c0_5] : memref<128x128xbf16, #tpu.memory_space<vmem>>, vector<128x128xbf16>
    %cst_6 = arith.constant dense<0.000000e+00> : vector<1024x128xf32>
    %8 = tpu.matmul %6, %7, %cst_6 {dimension_numbers = #tpu.dot_dimension_numbers<[1], [0], [0], [1], [0, 0, 1, 1], [], []>} : vector<1024x128xbf16>, vector<128x128xbf16>, vector<1024x128xf32> -> vector<1024x128xf32>
    %cst_7 = arith.constant 0.000000e+00 : f32
    %9 = vector.broadcast %cst_7 : f32 to vector<1024x128xf32>
    %10 = arith.maximumf %8, %9 : vector<1024x128xf32>
    %11 = arith.truncf %10 : vector<1024x128xf32> to vector<1024x128xbf16>
    %c0_8 = arith.constant 0 : index
    %c0_9 = arith.constant 0 : index
    %12 = vector.load %arg5[%c0_8, %c0_9] : memref<128x128xbf16, #tpu.memory_space<vmem>>, vector<128x128xbf16>
    %cst_10 = arith.constant dense<0.000000e+00> : vector<1024x128xf32>
    %13 = tpu.matmul %11, %12, %cst_10 {dimension_numbers = #tpu.dot_dimension_numbers<[1], [0], [0], [1], [0, 0, 1, 1], [], []>} : vector<1024x128xbf16>, vector<128x128xbf16>, vector<1024x128xf32> -> vector<1024x128xf32>
    %cst_11 = arith.constant 0.000000e+00 : f32
    %14 = vector.broadcast %cst_11 : f32 to vector<1024x128xf32>
    %15 = arith.maximumf %13, %14 : vector<1024x128xf32>
    %16 = arith.truncf %15 : vector<1024x128xf32> to vector<1024x128xbf16>
    %c0_12 = arith.constant 0 : index
    %c0_13 = arith.constant 0 : index
    %17 = vector.load %arg6[%c0_12, %c0_13] : memref<128x128xbf16, #tpu.memory_space<vmem>>, vector<128x128xbf16>
    %cst_14 = arith.constant dense<0.000000e+00> : vector<1024x128xf32>
    %18 = tpu.matmul %16, %17, %cst_14 {dimension_numbers = #tpu.dot_dimension_numbers<[1], [0], [0], [1], [0, 0, 1, 1], [], []>} : vector<1024x128xbf16>, vector<128x128xbf16>, vector<1024x128xf32> -> vector<1024x128xf32>
    %cst_15 = arith.constant 0.000000e+00 : f32
    %19 = vector.broadcast %cst_15 : f32 to vector<1024x128xf32>
    %20 = arith.maximumf %18, %19 : vector<1024x128xf32>
    %21 = arith.truncf %20 : vector<1024x128xf32> to vector<1024x128xbf16>
    %c0_16 = arith.constant 0 : index
    %c0_17 = arith.constant 0 : index
    %22 = vector.load %arg7[%c0_16, %c0_17] : memref<128x128xbf16, #tpu.memory_space<vmem>>, vector<128x128xbf16>
    %cst_18 = arith.constant dense<0.000000e+00> : vector<1024x128xf32>
    %23 = tpu.matmul %21, %22, %cst_18 {dimension_numbers = #tpu.dot_dimension_numbers<[1], [0], [0], [1], [0, 0, 1, 1], [], []>} : vector<1024x128xbf16>, vector<128x128xbf16>, vector<1024x128xf32> -> vector<1024x128xf32>
    %cst_19 = arith.constant 0.000000e+00 : f32
    %24 = vector.broadcast %cst_19 : f32 to vector<1024x128xf32>
    %25 = arith.maximumf %23, %24 : vector<1024x128xf32>
    %26 = arith.truncf %25 : vector<1024x128xf32> to vector<1024x128xbf16>
    %c0_20 = arith.constant 0 : index
    %c0_21 = arith.constant 0 : index
    %27 = vector.load %arg8[%c0_20, %c0_21] : memref<63x128xbf16, #tpu.memory_space<vmem>>, vector<63x128xbf16>
    %cst_22 = arith.constant dense<0.000000e+00> : vector<1024x128xf32>
    %28 = tpu.matmul %1, %27, %cst_22 {dimension_numbers = #tpu.dot_dimension_numbers<[1], [0], [0], [1], [0, 0, 1, 1], [], []>} : vector<1024x63xbf16>, vector<63x128xbf16>, vector<1024x128xf32> -> vector<1024x128xf32>
    %c0_23 = arith.constant 0 : index
    %c0_24 = arith.constant 0 : index
    %29 = vector.load %arg9[%c0_23, %c0_24] : memref<128x128xbf16, #tpu.memory_space<vmem>>, vector<128x128xbf16>
    %cst_25 = arith.constant dense<0.000000e+00> : vector<1024x128xf32>
    %30 = tpu.matmul %26, %29, %cst_25 {dimension_numbers = #tpu.dot_dimension_numbers<[1], [0], [0], [1], [0, 0, 1, 1], [], []>} : vector<1024x128xbf16>, vector<128x128xbf16>, vector<1024x128xf32> -> vector<1024x128xf32>
    %31 = arith.addf %28, %30 : vector<1024x128xf32>
    %cst_26 = arith.constant 0.000000e+00 : f32
    %32 = vector.broadcast %cst_26 : f32 to vector<1024x128xf32>
    %33 = arith.maximumf %31, %32 : vector<1024x128xf32>
    %34 = arith.truncf %33 : vector<1024x128xf32> to vector<1024x128xbf16>
    %c0_27 = arith.constant 0 : index
    %c0_28 = arith.constant 0 : index
    %35 = vector.load %arg10[%c0_27, %c0_28] : memref<128x128xbf16, #tpu.memory_space<vmem>>, vector<128x128xbf16>
    %cst_29 = arith.constant dense<0.000000e+00> : vector<1024x128xf32>
    %36 = tpu.matmul %34, %35, %cst_29 {dimension_numbers = #tpu.dot_dimension_numbers<[1], [0], [0], [1], [0, 0, 1, 1], [], []>} : vector<1024x128xbf16>, vector<128x128xbf16>, vector<1024x128xf32> -> vector<1024x128xf32>
    %cst_30 = arith.constant 0.000000e+00 : f32
    %37 = vector.broadcast %cst_30 : f32 to vector<1024x128xf32>
    %38 = arith.maximumf %36, %37 : vector<1024x128xf32>
    %39 = arith.truncf %38 : vector<1024x128xf32> to vector<1024x128xbf16>
    %c0_31 = arith.constant 0 : index
    %c0_32 = arith.constant 0 : index
    %40 = vector.load %arg11[%c0_31, %c0_32] : memref<128x128xbf16, #tpu.memory_space<vmem>>, vector<128x128xbf16>
    %cst_33 = arith.constant dense<0.000000e+00> : vector<1024x128xf32>
    %41 = tpu.matmul %39, %40, %cst_33 {dimension_numbers = #tpu.dot_dimension_numbers<[1], [0], [0], [1], [0, 0, 1, 1], [], []>} : vector<1024x128xbf16>, vector<128x128xbf16>, vector<1024x128xf32> -> vector<1024x128xf32>
    %cst_34 = arith.constant 0.000000e+00 : f32
    %42 = vector.broadcast %cst_34 : f32 to vector<1024x128xf32>
    %43 = arith.maximumf %41, %42 : vector<1024x128xf32>
    %44 = arith.truncf %43 : vector<1024x128xf32> to vector<1024x128xbf16>
    %c0_35 = arith.constant 0 : index
    %c0_36 = arith.constant 0 : index
    %45 = vector.load %arg12[%c0_35, %c0_36] : memref<128x1xbf16, #tpu.memory_space<vmem>>, vector<128x1xbf16>
    %cst_37 = arith.constant dense<0.000000e+00> : vector<1024x1xf32>
    %46 = tpu.matmul %44, %45, %cst_37 {dimension_numbers = #tpu.dot_dimension_numbers<[1], [0], [0], [1], [0, 0, 1, 1], [], []>} : vector<1024x128xbf16>, vector<128x1xbf16>, vector<1024x1xf32> -> vector<1024x1xf32>
    %c0_38 = arith.constant 0 : index
    %c0_39 = arith.constant 0 : index
    %47 = vector.load %arg2[%c0_38, %c0_39] : memref<1024x27xf32, #tpu.memory_space<vmem>>, vector<1024x27xf32>
    %48 = arith.truncf %47 : vector<1024x27xf32> to vector<1024x27xbf16>
    %c0_40 = arith.constant 0 : index
    %c0_41 = arith.constant 0 : index
    %49 = vector.load %arg13[%c0_40, %c0_41] : memref<128x64xbf16, #tpu.memory_space<vmem>>, vector<128x64xbf16>
    %cst_42 = arith.constant dense<0.000000e+00> : vector<1024x64xf32>
    %50 = tpu.matmul %44, %49, %cst_42 {dimension_numbers = #tpu.dot_dimension_numbers<[1], [0], [0], [1], [0, 0, 1, 1], [], []>} : vector<1024x128xbf16>, vector<128x64xbf16>, vector<1024x64xf32> -> vector<1024x64xf32>
    %c0_43 = arith.constant 0 : index
    %c0_44 = arith.constant 0 : index
    %51 = vector.load %arg14[%c0_43, %c0_44] : memref<27x64xbf16, #tpu.memory_space<vmem>>, vector<27x64xbf16>
    %cst_45 = arith.constant dense<0.000000e+00> : vector<1024x64xf32>
    %52 = tpu.matmul %48, %51, %cst_45 {dimension_numbers = #tpu.dot_dimension_numbers<[1], [0], [0], [1], [0, 0, 1, 1], [], []>} : vector<1024x27xbf16>, vector<27x64xbf16>, vector<1024x64xf32> -> vector<1024x64xf32>
    %53 = arith.addf %50, %52 : vector<1024x64xf32>
    %cst_46 = arith.constant 0.000000e+00 : f32
    %54 = vector.broadcast %cst_46 : f32 to vector<1024x64xf32>
    %55 = arith.maximumf %53, %54 : vector<1024x64xf32>
    %56 = arith.truncf %55 : vector<1024x64xf32> to vector<1024x64xbf16>
    %c0_47 = arith.constant 0 : index
    %c0_48 = arith.constant 0 : index
    %57 = vector.load %arg15[%c0_47, %c0_48] : memref<64x3xbf16, #tpu.memory_space<vmem>>, vector<64x3xbf16>
    %cst_49 = arith.constant dense<0.000000e+00> : vector<1024x3xf32>
    %58 = tpu.matmul %56, %57, %cst_49 {dimension_numbers = #tpu.dot_dimension_numbers<[1], [0], [0], [1], [0, 0, 1, 1], [], []>} : vector<1024x64xbf16>, vector<64x3xbf16>, vector<1024x3xf32> -> vector<1024x3xf32>
    %59 = arith.negf %58 : vector<1024x3xf32>
    %60 = math.exp %59 : vector<1024x3xf32>
    %cst_50 = arith.constant 1.000000e+00 : f32
    %61 = vector.broadcast %cst_50 : f32 to vector<1024x3xf32>
    %62 = arith.addf %61, %60 : vector<1024x3xf32>
    %63 = arith.divf %61, %62 : vector<1024x3xf32>
    %c0_51 = arith.constant 0 : index
    %c0_52 = arith.constant 0 : index
    %64 = vector.load %arg16[%c0_51, %c0_52] : memref<1024x4xf32, #tpu.memory_space<vmem>>, vector<1024x3xf32>
    tpu.vector_store %arg16[%c0_51, %c0_52], %63 {strides = array<i32>} : memref<1024x4xf32, #tpu.memory_space<vmem>>, vector<1024x3xf32>,
    %c0_53 = arith.constant 0 : index
    %c3 = arith.constant 3 : index
    %65 = vector.load %arg16[%c0_53, %c3] : memref<1024x4xf32, #tpu.memory_space<vmem>>, vector<1024x1xf32>
    tpu.vector_store %arg16[%c0_53, %c3], %46 {strides = array<i32>} : memref<1024x4xf32, #tpu.memory_space<vmem>>, vector<1024x1xf32>,
    return
  }
  func.func @transform_0(%arg0: i32) -> (i32, i32) {
    %c0_i32 = arith.constant 0 : i32
    %c0_i32_0 = arith.constant 0 : i32
    return %arg0, %c0_i32 : i32, i32
  }
  func.func @transform_1(%arg0: i32) -> (i32, i32) {
    %c0_i32 = arith.constant 0 : i32
    %c0_i32_0 = arith.constant 0 : i32
    return %arg0, %c0_i32 : i32, i32
  }
  func.func @transform_2(%arg0: i32) -> (i32, i32) {
    %c0_i32 = arith.constant 0 : i32
    %c0_i32_0 = arith.constant 0 : i32
    %c0_i32_1 = arith.constant 0 : i32
    return %c0_i32, %c0_i32_0 : i32, i32
  }
  func.func @transform_3(%arg0: i32) -> (i32, i32) {
    %c0_i32 = arith.constant 0 : i32
    %c0_i32_0 = arith.constant 0 : i32
    %c0_i32_1 = arith.constant 0 : i32
    return %c0_i32, %c0_i32_0 : i32, i32
  }
  func.func @transform_4(%arg0: i32) -> (i32, i32) {
    %c0_i32 = arith.constant 0 : i32
    %c0_i32_0 = arith.constant 0 : i32
    %c0_i32_1 = arith.constant 0 : i32
    return %c0_i32, %c0_i32_0 : i32, i32
  }
  func.func @transform_5(%arg0: i32) -> (i32, i32) {
    %c0_i32 = arith.constant 0 : i32
    %c0_i32_0 = arith.constant 0 : i32
    %c0_i32_1 = arith.constant 0 : i32
    return %c0_i32, %c0_i32_0 : i32, i32
  }
  func.func @transform_6(%arg0: i32) -> (i32, i32) {
    %c0_i32 = arith.constant 0 : i32
    %c0_i32_0 = arith.constant 0 : i32
    %c0_i32_1 = arith.constant 0 : i32
    return %c0_i32, %c0_i32_0 : i32, i32
  }
  func.func @transform_7(%arg0: i32) -> (i32, i32) {
    %c0_i32 = arith.constant 0 : i32
    %c0_i32_0 = arith.constant 0 : i32
    %c0_i32_1 = arith.constant 0 : i32
    return %c0_i32, %c0_i32_0 : i32, i32
  }
  func.func @transform_8(%arg0: i32) -> (i32, i32) {
    %c0_i32 = arith.constant 0 : i32
    %c0_i32_0 = arith.constant 0 : i32
    %c0_i32_1 = arith.constant 0 : i32
    return %c0_i32, %c0_i32_0 : i32, i32
  }
  func.func @transform_9(%arg0: i32) -> (i32, i32) {
    %c0_i32 = arith.constant 0 : i32
    %c0_i32_0 = arith.constant 0 : i32
    %c0_i32_1 = arith.constant 0 : i32
    return %c0_i32, %c0_i32_0 : i32, i32
  }
  func.func @transform_10(%arg0: i32) -> (i32, i32) {
    %c0_i32 = arith.constant 0 : i32
    %c0_i32_0 = arith.constant 0 : i32
    %c0_i32_1 = arith.constant 0 : i32
    return %c0_i32, %c0_i32_0 : i32, i32
  }
  func.func @transform_11(%arg0: i32) -> (i32, i32) {
    %c0_i32 = arith.constant 0 : i32
    %c0_i32_0 = arith.constant 0 : i32
    %c0_i32_1 = arith.constant 0 : i32
    return %c0_i32, %c0_i32_0 : i32, i32
  }
  func.func @transform_12(%arg0: i32) -> (i32, i32) {
    %c0_i32 = arith.constant 0 : i32
    %c0_i32_0 = arith.constant 0 : i32
    %c0_i32_1 = arith.constant 0 : i32
    return %c0_i32, %c0_i32_0 : i32, i32
  }
  func.func @transform_13(%arg0: i32) -> (i32, i32) {
    %c0_i32 = arith.constant 0 : i32
    %c0_i32_0 = arith.constant 0 : i32
    %c0_i32_1 = arith.constant 0 : i32
    return %c0_i32, %c0_i32_0 : i32, i32
  }
  func.func @transform_14(%arg0: i32) -> (i32, i32) {
    %c0_i32 = arith.constant 0 : i32
    %c0_i32_0 = arith.constant 0 : i32
    %c0_i32_1 = arith.constant 0 : i32
    return %c0_i32, %c0_i32_0 : i32, i32
  }
  func.func @transform_15(%arg0: i32) -> (i32, i32) {
    %c0_i32 = arith.constant 0 : i32
    %c0_i32_0 = arith.constant 0 : i32
    return %arg0, %c0_i32 : i32, i32
  }
}

</mosaic_0001>

<bundles_post_ra>
// kernel: tpu_custom_call.1
= control target key start
LH: loop header
LB: loop body
LE: loop exit
PB: predicated region body
PF: predicated region fallthrough
CT: control target
= control target key end

     0   :  { %s16548_s18 = smov 0   ;;  %s19824_s0 = inlined_call_operand.vmem [shape: f32[2048,63], index: 0, kind: input, shape index: {}]   ;;  %s19825_s1 = inlined_call_operand.vmem [shape: f32[2048,27], index: 1, kind: input, shape index: {}]   ;;  %s19826_s2 = inlined_call_operand.vmem [shape: bf16[63,128], index: 2, kind: input, shape index: {}]   ;;  %s19827_s3 = inlined_call_operand.vmem [shape: bf16[128,128], index: 3, kind: input, shape index: {}]   ;;  %s19828_s4 = inlined_call_operand.vmem [shape: bf16[128,128], index: 4, kind: input, shape index: {}]   ;;  %s19829_s5 = inlined_call_operand.vmem [shape: bf16[128,128], index: 5, kind: input, shape index: {}]   ;;  %s19830_s6 = inlined_call_operand.vmem [shape: bf16[128,128], index: 6, kind: input, shape index: {}]   ;;  %s19831_s7 = inlined_call_operand.vmem [shape: bf16[63,128], index: 7, kind: input, shape index: {}]   ;;  %s19832_s8 = inlined_call_operand.vmem [shape: bf16[128,128], index: 8, kind: input, shape index: {}]   ;;  %s19833_s9 = inlined_call_operand.vmem [shape: bf16[128,128], index: 9, kind: input, shape index: {}]   ;;  %s19834_s10 = inlined_call_operand.vmem [shape: bf16[128,128], index: 10, kind: input, shape index: {}]   ;;  %s19835_s11 = inlined_call_operand.vmem [shape: bf16[128,1], index: 11, kind: input, shape index: {}]   ;;  %s19836_s12 = inlined_call_operand.vmem [shape: bf16[128,64], index: 12, kind: input, shape index: {}]   ;;  %s19837_s13 = inlined_call_operand.vmem [shape: bf16[27,64], index: 13, kind: input, shape index: {}]   ;;  %s19838_s14 = inlined_call_operand.vmem [shape: bf16[64,3], index: 14, kind: input, shape index: {}]   ;;  %s19839_s15 = inlined_call_operand.vmem [shape: f32[2048,4], index: 15, kind: output, shape index: {}]  }
   0x1 LB: > { %s12605_s19 = sadd.s32 4294967295, %s16464_s18   ;;  %p12609_p0 = scmp.ge.s32.totalorder %s16464_s18, 1  ;;  %s16464_s18 = sphi %s16548_s18, %s25_s18  }
   0x2   : > { %p449_p1 = scmp.lt.s32.totalorder %s16464_s18, 3 }
   0x4   : > { %p450_p2 = pnand %p12609_p0, %p449_p1 }
   0x6   : > { %453 = sbr.rel (%p450_p2) target bundleno = 2665 (0xa69), region = 80 }
   0xb   : > { %v15860_v0 = vld [vmem:[%s19826_s2 + $0x18] sm:$0xff]   ;;  %vm937_vm0 = vcmask 1046528   ;;  %vm938_vm1 = vcmask 1047552   ;;  %v19840_v1 = vmov 65535   ;;  %v15861_v5 = vld [vmem:[%s19826_s2 + $0x10] sm:$0xff]   ;;  %s12610_s24 = sshll.u32 %s12605_s19, 7 }
   0xc   : > { %v939_v2 = vsel %vm937_vm0, 4294967295, %v19840_v1  ;;  %p503_p3 = scmp.lt.s32.totalorder %s12610_s24, 255  ;;  %v15862_v6 = vld [vmem:[%s19826_s2 + $0x8] sm:$0xff]   ;;  %vm744_vm2 = vcmask 515072   ;;  %v15863_v9 = vld [vmem:[%s19826_s2] sm:$0xff]   ;;  %v15864_v15 = vld [vmem:[%s19827_s3 + $0x38] sm:$0xff]  }
   0xd   : > { %v16560_v3 = vsel %vm938_vm1, %v939_v2, 0  ;;  %v15865_v29 = vld [vmem:[%s19827_s3 + $0x30] sm:$0xff]   ;;  %v15866_v38 = vld [vmem:[%s19827_s3 + $0x28] sm:$0xff]   ;;  %v15867_v57 = vld [vmem:[%s19827_s3 + $0x20] sm:$0xff]   ;;  %vm8892_vm3 = vcmask 1044480   ;;  %vm8893_vm4 = vcmask 1045504  }
   0xe   : > { %v942_v4 = vand.u32 %v15860_v0, %v16560_v3  ;;  %s20212_s24 = smov (!%p503_p3, %s12610_s24), 255  ;;  %v15868_v62 = vld [vmem:[%s19827_s3 + $0x18] sm:$0xff]   ;;  %vm8699_vm5 = vcmask 220160   ;;  %vm10261_vm6 = vcmask 523264   ;;  %vm11767_vm7 = vcmask 23552  }
   0xf   : > { %s16569_s27 = sshll.u32 %s20212_s24, 3  ;;  %vm12408_vm8 = vcmask 31768  }
  0x10   : > { %14006 = vmatprep.subr.bf16.mxu0 %v942_v4  ;;  %15842 = vmatprep.subr.bf16.mxu1 %v942_v4  ;;  %s16575_s30 = scalar_lea.vmem %s19824_s0, %s16569_s27  ;;  %s17971_s20 = scalar_lea.vmem %s19825_s1, %s16569_s27 }
  0x11   : > { %14007 = vmatpush3.bf16.msra.mxu0 %v942_v4  ;;  %15846 = vmatpush3.bf16.msra.mxu1 %v942_v4  ;;  %v521_v7 = vld [vmem:[%s16575_s30] sm:$0xff]  ;;  %v522_v8 = vld [vmem:[%s16575_s30 + $0x8] sm:$0xff]  ;;  %v523_v11 = vld [vmem:[%s16575_s30 + $0x10] sm:$0xff]  ;;  %s19024_s21 = scalar_lea.vmem %s19839_s15, %s16569_s27 }
  0x12   : > { %14008 = vmatprep.subr.bf16.mxu0 %v15861_v5  ;;  %15843 = vmatprep.subr.bf16.mxu1 %v15861_v5  ;;  %v16582_v10 = vpack.c.bf16 %v522_v8, %v521_v7  ;;  %v524_v12 = vld [vmem:[%s16575_s30 + $0x18] sm:$0xff]  ;;  %v525_v13 = vld [vmem:[%s16575_s30 + $0x20] sm:$0xff]  ;;  %v526_v14 = vld [vmem:[%s16575_s30 + $0x28] sm:$0xff] }
  0x13   : > { %v16593_v16 = vpack.c.bf16 %v524_v12, %v523_v11  ;;  %v16595_v17 = vpack.c.bf16 %v526_v14, %v525_v13  ;;  %v527_v18 = vld [vmem:[%s16575_s30 + $0x30] sm:$0xff]  ;;  %v528_v19 = vld [vmem:[%s16575_s30 + $0x38] sm:$0xff]  ;;  %v585_v20 = vld [vmem:[%s16575_s30 + $0x200] sm:$0xff] }
  0x14   : > { %14014 = vmatprep.mubr.msk.bf16.mxu0 %vm744_vm2, %v16582_v10  ;;  %v586_v21 = vld [vmem:[%s16575_s30 + $0x208] sm:$0xff]  ;;  %v587_v22 = vld [vmem:[%s16575_s30 + $0x210] sm:$0xff]  ;;  %v529_v23 = vld [vmem:[%s16575_s30 + $0x40] sm:$0xff]  ;;  %v16617_v30 = vpack.c.bf16 %v528_v19, %v527_v18 }
  0x15   : > { %14009 = vmatpush3.bf16.msra.mxu0 %v15861_v5  ;;  %15847 = vmatpush3.bf16.msra.mxu1 %v15861_v5  ;;  %19922 = vst [vmem:[#allocation2_spill] sm:$0xff] %v16593_v16  ;;  %19923 = vst [vmem:[#allocation3_spill] sm:$0xff] %v16595_v17  ;;  %v530_v24 = vld [vmem:[%s16575_s30 + $0x48] sm:$0xff]  ;;  %v16608_v25 = vpack.c.bf16 %v586_v21, %v585_v20  ;;  %v588_v26 = vld [vmem:[%s16575_s30 + $0x218] sm:$0xff] }
  0x16   : > { %14010 = vmatprep.subr.bf16.mxu0 %v15862_v6  ;;  %15844 = vmatprep.subr.bf16.mxu1 %v15862_v6  ;;  %v16611_v27 = vpack.c.bf16 %v588_v26, %v587_v22  ;;  %v589_v28 = vld [vmem:[%s16575_s30 + $0x220] sm:$0xff]  ;;  %19926 = vst [vmem:[#allocation6_spill] sm:$0xff] %v16617_v30  ;;  %v590_v31 = vld [vmem:[%s16575_s30 + $0x228] sm:$0xff]  ;;  %v16622_v32 = vpack.c.bf16 %v530_v24, %v529_v23  ;;  %v591_v34 = vld [vmem:[%s16575_s30 + $0x230] sm:$0xff] }
  0x17   : > { %19924 = vst [vmem:[#allocation4_spill] sm:$0xff] %v16608_v25  ;;  %14078 = vmatprep.mubr.msk.bf16.mxu1 %vm744_vm2, %v16608_v25  ;;  %v16626_v33 = vpack.c.bf16 %v590_v31, %v589_v28  ;;  %v592_v35 = vld [vmem:[%s16575_s30 + $0x238] sm:$0xff]  ;;  %v593_v36 = vld [vmem:[%s16575_s30 + $0x240] sm:$0xff]  ;;  %v594_v37 = vld [vmem:[%s16575_s30 + $0x248] sm:$0xff] }
  0x18   : > { %19925 = vst [vmem:[#allocation5_spill] sm:$0xff] %v16611_v27  ;;  %19927 = vst [vmem:[#allocation7_spill] sm:$0xff] %v16622_v32  ;;  %v531_v39 = vld [vmem:[%s16575_s30 + $0x50] sm:$0xff]  ;;  %v532_v40 = vld [vmem:[%s16575_s30 + $0x58] sm:$0xff]  ;;  %v16643_v41 = vpack.c.bf16 %v592_v35, %v591_v34  ;;  %v16647_v44 = vpack.c.bf16 %v594_v37, %v593_v36 }
  0x19   : > { %14011 = vmatpush3.bf16.msra.mxu0 %v15862_v6  ;;  %15848 = vmatpush3.bf16.msra.mxu1 %v15862_v6  ;;  %19928 = vst [vmem:[#allocation8_spill] sm:$0xff] %v16626_v33  ;;  %v533_v42 = vld [vmem:[%s16575_s30 + $0x60] sm:$0xff]  ;;  %v534_v43 = vld [vmem:[%s16575_s30 + $0x68] sm:$0xff]  ;;  %v16649_v45 = vpack.c.bf16 %v532_v40, %v531_v39  ;;  %v595_v47 = vld [vmem:[%s16575_s30 + $0x250] sm:$0xff] }
  0x1a   : > { %14012 = vmatprep.subr.bf16.mxu0 %v15863_v9  ;;  %15845 = vmatprep.subr.bf16.mxu1 %v15863_v9  ;;  %19929 = vst [vmem:[#allocation9_spill] sm:$0xff] %v16643_v41  ;;  %19930 = vst [vmem:[#allocation10_spill] sm:$0xff] %v16647_v44  ;;  %v16651_v46 = vpack.c.bf16 %v534_v43, %v533_v42  ;;  %v596_v48 = vld [vmem:[%s16575_s30 + $0x258] sm:$0xff]  ;;  %v597_v49 = vld [vmem:[%s16575_s30 + $0x260] sm:$0xff] }
  0x1b   : > { %19931 = vst [vmem:[#allocation11_spill] sm:$0xff] %v16649_v45  ;;  %v598_v50 = vld [vmem:[%s16575_s30 + $0x268] sm:$0xff]  ;;  %v535_v51 = vld [vmem:[%s16575_s30 + $0x70] sm:$0xff]  ;;  %v536_v52 = vld [vmem:[%s16575_s30 + $0x78] sm:$0xff]  ;;  %v16667_v53 = vpack.c.bf16 %v596_v48, %v595_v47 }
  0x1c   : > { %19932 = vst [vmem:[#allocation12_spill] sm:$0xff] %v16651_v46  ;;  %v537_v54 = vld [vmem:[%s16575_s30 + $0x80] sm:$0xff]  ;;  %v538_v55 = vld [vmem:[%s16575_s30 + $0x88] sm:$0xff]  ;;  %v16671_v56 = vpack.c.bf16 %v598_v50, %v597_v49  ;;  %v16676_v58 = vpack.c.bf16 %v536_v52, %v535_v51  ;;  %v599_v60 = vld [vmem:[%s16575_s30 + $0x270] sm:$0xff] }
  0x1d   : > { %14013 = vmatpush3.bf16.msra.mxu0 %v15863_v9  ;;  %15849 = vmatpush3.bf16.msra.mxu1 %v15863_v9  ;;  %19933 = vst [vmem:[#allocation13_spill] sm:$0xff] %v16667_v53  ;;  %v16678_v59 = vpack.c.bf16 %v538_v55, %v537_v54  ;;  %v600_v61 = vld [vmem:[%s16575_s30 + $0x278] sm:$0xff]  ;;  %v601_v63 = vld [vmem:[%s16575_s30 + $0x280] sm:$0xff]  ;;  %v602_v0 = vld [vmem:[%s16575_s30 + $0x288] sm:$0xff] }
  0x1e   : > { %14142 = vmatprep.subr.bf16.mxu1 %v15864_v15  ;;  %19934 = vst [vmem:[#allocation14_spill] sm:$0xff] %v16671_v56  ;;  %19935 = vst [vmem:[#allocation15_spill] sm:$0xff] %v16676_v58  ;;  %v539_v2 = vld [vmem:[%s16575_s30 + $0x90] sm:$0xff]  ;;  %v540_v4 = vld [vmem:[%s16575_s30 + $0x98] sm:$0xff]  ;;  %v16697_v5 = vpack.c.bf16 %v600_v61, %v599_v60  ;;  %v16704_v9 = vpack.c.bf16 %v602_v0, %v601_v63 }
  0x1f   : > { %19936 = vst [vmem:[#allocation16_spill] sm:$0xff] %v16678_v59  ;;  %v15869_v6 = vld [vmem:[%s19827_s3 + $0x10] sm:$0xff]   ;;  %v541_v7 = vld [vmem:[%s16575_s30 + $0xa0] sm:$0xff]  ;;  %v542_v8 = vld [vmem:[%s16575_s30 + $0xa8] sm:$0xff]  ;;  %v16706_v11 = vpack.c.bf16 %v540_v4, %v539_v2 }
  0x20   : > { %14015 = vmatmul.mubr.msk.bf16.vlgmr.msra.gmra.mxu0 %vm744_vm2, %v16593_v16  ;;  %14079 = vmatmul.mubr.msk.bf16.vlgmr.msra.gmra.mxu1 %vm744_vm2, %v16611_v27  ;;  %19937 = vst [vmem:[#allocation17_spill] sm:$0xff] %v16697_v5  ;;  %19938 = vst [vmem:[#allocation18_spill] sm:$0xff] %v16704_v9  ;;  %v15870_v12 = vld [vmem:[%s19827_s3 + $0x8] sm:$0xff]   ;;  %v16711_v13 = vpack.c.bf16 %v542_v8, %v541_v7  ;;  %v603_v14 = vld [vmem:[%s16575_s30 + $0x290] sm:$0xff] }
  0x21   : > { %14018 = vmatprep.mubr.msk.bf16.mxu0 %vm744_vm2, %v16595_v17  ;;  %14143 = vmatpush3.bf16.msra.mxu1 %v15864_v15  ;;  %19939 = vst [vmem:[#allocation19_spill] sm:$0xff] %v16706_v11  ;;  %v604_v15 = vld [vmem:[%s16575_s30 + $0x298] sm:$0xff]  ;;  %v605_v18 = vld [vmem:[%s16575_s30 + $0x2a0] sm:$0xff]  ;;  %v606_v19 = vld [vmem:[%s16575_s30 + $0x2a8] sm:$0xff] }
  0x22   : > { %14082 = vmatprep.mubr.msk.bf16.mxu1 %vm744_vm2, %v16626_v33  ;;  %14144 = vmatprep.subr.bf16.mxu1 %v15865_v29  ;;  %19940 = vst [vmem:[#allocation20_spill] sm:$0xff] %v16711_v13  ;;  %v15871_v20 = vld [vmem:[%s19827_s3] sm:$0xff]   ;;  %v543_v21 = vld [vmem:[%s16575_s30 + $0xb0] sm:$0xff]  ;;  %v544_v22 = vld [vmem:[%s16575_s30 + $0xb8] sm:$0xff]  ;;  %v16732_v26 = vpack.c.bf16 %v604_v15, %v603_v14  ;;  %v16734_v28 = vpack.c.bf16 %v606_v19, %v605_v18 }
  0x23   : > { %v545_v23 = vld [vmem:[%s16575_s30 + $0xc0] sm:$0xff]  ;;  %v546_v24 = vld [vmem:[%s16575_s30 + $0xc8] sm:$0xff]  ;;  %v607_v31 = vld [vmem:[%s16575_s30 + $0x2b0] sm:$0xff] }
  0x24   : > { %19941 = vst [vmem:[#allocation21_spill] sm:$0xff] %v16732_v26  ;;  %19942 = vst [vmem:[#allocation22_spill] sm:$0xff] %v16734_v28  ;;  %v608_v34 = vld [vmem:[%s16575_s30 + $0x2b8] sm:$0xff]  ;;  %v16740_v35 = vpack.c.bf16 %v546_v24, %v545_v23  ;;  %v609_v36 = vld [vmem:[%s16575_s30 + $0x2c0] sm:$0xff] }
  0x25   : > { %14145 = vmatpush3.bf16.msra.mxu1 %v15865_v29  ;;  %v16736_v29 = vpack.c.bf16 %v544_v22, %v543_v21  ;;  %v610_v37 = vld [vmem:[%s16575_s30 + $0x2c8] sm:$0xff]  ;;  %v548_v39 = vld [vmem:[%s16575_s30 + $0xd8] sm:$0xff]  ;;  %v549_v40 = vld [vmem:[%s16575_s30 + $0xe0] sm:$0xff]  ;;  %v16756_v43 = vpack.c.bf16 %v608_v34, %v607_v31 }
  0x26   : > { %14146 = vmatprep.subr.bf16.mxu1 %v15866_v38  ;;  %19944 = vst [vmem:[#allocation24_spill] sm:$0xff] %v16740_v35  ;;  %v550_v42 = vld [vmem:[%s16575_s30 + $0xe8] sm:$0xff]  ;;  %v16758_v47 = vpack.c.bf16 %v610_v37, %v609_v36  ;;  %v611_v49 = vld [vmem:[%s16575_s30 + $0x2d0] sm:$0xff]  ;;  %v612_v50 = vld [vmem:[%s16575_s30 + $0x2d8] sm:$0xff] }
  0x27   : > { %19943 = vst [vmem:[#allocation23_spill] sm:$0xff] %v16736_v29  ;;  %19945 = vst [vmem:[#allocation25_spill] sm:$0xff] %v16756_v43  ;;  %v16764_v51 = vpack.c.bf16 %v550_v42, %v549_v40  ;;  %v613_v52 = vld [vmem:[%s16575_s30 + $0x2e0] sm:$0xff]  ;;  %v614_v54 = vld [vmem:[%s16575_s30 + $0x2e8] sm:$0xff] }
  0x28   : > { %14019 = vmatmul.mubr.msk.bf16.gmra.mxu0 %vm744_vm2, %v16617_v30  ;;  %14083 = vmatmul.mubr.msk.bf16.gmra.mxu1 %vm744_vm2, %v16643_v41  ;;  %19946 = vst [vmem:[#allocation26_spill] sm:$0xff] %v16758_v47  ;;  %v551_v55 = vld [vmem:[%s16575_s30 + $0xf0] sm:$0xff]  ;;  %v553_v60 = vld [vmem:[%s16575_s30 + $0x100] sm:$0xff]  ;;  %v554_v61 = vld [vmem:[%s16575_s30 + $0x108] sm:$0xff]  ;;  %v16782_v63 = vpack.c.bf16 %v614_v54, %v613_v52 }
  0x29   : > { %14022 = vmatprep.mubr.msk.bf16.mxu0 %vm744_vm2, %v16622_v32  ;;  %14086 = vmatprep.mubr.msk.bf16.mxu1 %vm744_vm2, %v16647_v44  ;;  %19948 = vst [vmem:[#allocation28_spill] sm:$0xff] %v16764_v51  ;;  %v615_v2 = vld [vmem:[%s16575_s30 + $0x2f0] sm:$0xff]  ;;  %v616_v4 = vld [vmem:[%s16575_s30 + $0x2f8] sm:$0xff]  ;;  %v617_v7 = vld [vmem:[%s16575_s30 + $0x300] sm:$0xff] }
  0x2a   : > { %14147 = vmatpush3.bf16.msra.mxu1 %v15866_v38  ;;  %v547_v38 = vld [vmem:[%s16575_s30 + $0xd0] sm:$0xff]  ;;  %19950 = vst [vmem:[#allocation30_spill] sm:$0xff] %v16782_v63  ;;  %v618_v8 = vld [vmem:[%s16575_s30 + $0x308] sm:$0xff]  ;;  %v556_v14 = vld [vmem:[%s16575_s30 + $0x118] sm:$0xff]  ;;  %v16804_v19 = vpack.c.bf16 %v616_v4, %v615_v2 }
  0x2b   : > { %14148 = vmatprep.subr.bf16.mxu1 %v15867_v57  ;;  %v16760_v48 = vpack.c.bf16 %v548_v39, %v547_v38  ;;  %v557_v15 = vld [vmem:[%s16575_s30 + $0x120] sm:$0xff]  ;;  %v558_v18 = vld [vmem:[%s16575_s30 + $0x128] sm:$0xff]  ;;  %v619_v22 = vld [vmem:[%s16575_s30 + $0x310] sm:$0xff] }
  0x2c   : > { %19953 = vst [vmem:[#allocation33_spill] sm:$0xff] %v16804_v19  ;;  %v620_v23 = vld [vmem:[%s16575_s30 + $0x318] sm:$0xff]  ;;  %v16812_v24 = vpack.c.bf16 %v558_v18, %v557_v15  ;;  %v621_v31 = vld [vmem:[%s16575_s30 + $0x320] sm:$0xff]  ;;  %v622_v34 = vld [vmem:[%s16575_s30 + $0x328] sm:$0xff] }
  0x2d   : > { %19947 = vst [vmem:[#allocation27_spill] sm:$0xff] %v16760_v48  ;;  %v559_v36 = vld [vmem:[%s16575_s30 + $0x130] sm:$0xff]  ;;  %v560_v37 = vld [vmem:[%s16575_s30 + $0x138] sm:$0xff]  ;;  %v561_v38 = vld [vmem:[%s16575_s30 + $0x140] sm:$0xff]  ;;  %v16828_v40 = vpack.c.bf16 %v620_v23, %v619_v22  ;;  %v16830_v42 = vpack.c.bf16 %v622_v34, %v621_v31 }
  0x2e   : > { %14149 = vmatpush3.bf16.msra.mxu1 %v15867_v57  ;;  %v552_v57 = vld [vmem:[%s16575_s30 + $0xf8] sm:$0xff]  ;;  %19956 = vst [vmem:[#allocation36_spill] sm:$0xff] %v16812_v24  ;;  %v562_v39 = vld [vmem:[%s16575_s30 + $0x148] sm:$0xff]  ;;  %v565_v2 = vld [vmem:[%s16575_s30 + $0x160] sm:$0xff] }
  0x2f   : > { %14150 = vmatprep.subr.bf16.mxu1 %v15868_v62  ;;  %v16784_v0 = vpack.c.bf16 %v552_v57, %v551_v55  ;;  %19957 = vst [vmem:[#allocation37_spill] sm:$0xff] %v16828_v40  ;;  %19958 = vst [vmem:[#allocation38_spill] sm:$0xff] %v16830_v42  ;;  %v624_v52 = vld [vmem:[%s16575_s30 + $0x338] sm:$0xff]  ;;  %v16836_v54 = vpack.c.bf16 %v562_v39, %v561_v38  ;;  %v625_v55 = vld [vmem:[%s16575_s30 + $0x340] sm:$0xff] }
  0x30   : > { %14023 = vmatmul.mubr.msk.bf16.gmra.mxu0 %vm744_vm2, %v16649_v45  ;;  %14087 = vmatmul.mubr.msk.bf16.gmra.mxu1 %vm744_vm2, %v16667_v53  ;;  %v626_v57 = vld [vmem:[%s16575_s30 + $0x348] sm:$0xff]  ;;  %v628_v15 = vld [vmem:[%s16575_s30 + $0x358] sm:$0xff]  ;;  %v629_v22 = vld [vmem:[%s16575_s30 + $0x360] sm:$0xff] }
  0x31   : > { %14026 = vmatprep.mubr.msk.bf16.mxu0 %vm744_vm2, %v16651_v46  ;;  %14090 = vmatprep.mubr.msk.bf16.mxu1 %vm744_vm2, %v16671_v56  ;;  %19951 = vst [vmem:[#allocation31_spill] sm:$0xff] %v16784_v0  ;;  %19960 = vst [vmem:[#allocation40_spill] sm:$0xff] %v16836_v54  ;;  %v566_v4 = vld [vmem:[%s16575_s30 + $0x168] sm:$0xff]  ;;  %v567_v31 = vld [vmem:[%s16575_s30 + $0x170] sm:$0xff] }
  0x32   : > { %14151 = vmatpush3.bf16.msra.mxu1 %v15868_v62  ;;  %v16780_v62 = vpack.c.bf16 %v612_v50, %v611_v49  ;;  %v16832_v49 = vpack.c.bf16 %v560_v37, %v559_v36  ;;  %v623_v50 = vld [vmem:[%s16575_s30 + $0x330] sm:$0xff]  ;;  %v16860_v18 = vpack.c.bf16 %v566_v4, %v565_v2  ;;  %v630_v23 = vld [vmem:[%s16575_s30 + $0x368] sm:$0xff]  ;;  %v568_v34 = vld [vmem:[%s16575_s30 + $0x178] sm:$0xff] }
  0x33   : > { %14152 = vmatprep.subr.bf16.mxu1 %v15869_v6  ;;  %v569_v36 = vld [vmem:[%s16575_s30 + $0x180] sm:$0xff]  ;;  %v570_v38 = vld [vmem:[%s16575_s30 + $0x188] sm:$0xff]  ;;  %v16878_v39 = vpack.c.bf16 %v630_v23, %v629_v22  ;;  %v571_v2 = vld [vmem:[%s16575_s30 + $0x190] sm:$0xff] }
  0x34   : > { %19949 = vst [vmem:[#allocation29_spill] sm:$0xff] %v16780_v62  ;;  %19959 = vst [vmem:[#allocation39_spill] sm:$0xff] %v16832_v49  ;;  %v572_v4 = vld [vmem:[%s16575_s30 + $0x198] sm:$0xff]  ;;  %v574_v22 = vld [vmem:[%s16575_s30 + $0x1a8] sm:$0xff] }
  0x35   : > { %19964 = vst [vmem:[#allocation44_spill] sm:$0xff] %v16860_v18  ;;  %19966 = vst [vmem:[#allocation46_spill] sm:$0xff] %v16878_v39 }
  0x36   : > { %14153 = vmatpush3.bf16.msra.mxu1 %v15869_v6  ;;  %v16788_v6 = vpack.c.bf16 %v554_v61, %v553_v60  ;;  %v563_v60 = vld [vmem:[%s16575_s30 + $0x150] sm:$0xff]  ;;  %v564_v61 = vld [vmem:[%s16575_s30 + $0x158] sm:$0xff] }
  0x37   : > { %14154 = vmatprep.subr.bf16.mxu1 %v15870_v12 }
  0x38   : > { %14027 = vmatmul.mubr.msk.bf16.gmra.mxu0 %vm744_vm2, %v16676_v58  ;;  %14091 = vmatmul.mubr.msk.bf16.gmra.mxu1 %vm744_vm2, %v16697_v5  ;;  %19952 = vst [vmem:[#allocation32_spill] sm:$0xff] %v16788_v6 }
  0x39   : > { %14030 = vmatprep.mubr.msk.bf16.mxu0 %vm744_vm2, %v16678_v59  ;;  %14094 = vmatprep.mubr.msk.bf16.mxu1 %vm744_vm2, %v16704_v9 }
  0x3a   : > { %14155 = vmatpush3.bf16.msra.mxu1 %v15870_v12  ;;  %v555_v12 = vld [vmem:[%s16575_s30 + $0x110] sm:$0xff] }
  0x3b   : > { %14156 = vmatprep.subr.bf16.mxu1 %v15871_v20  ;;  %v16808_v21 = vpack.c.bf16 %v556_v14, %v555_v12  ;;  %v16856_v12 = vpack.c.bf16 %v564_v61, %v563_v60  ;;  %v627_v14 = vld [vmem:[%s16575_s30 + $0x350] sm:$0xff]  ;;  %v633_v60 = vld [vmem:[%s16575_s30 + $0x380] sm:$0xff]  ;;  %v634_v61 = vld [vmem:[%s16575_s30 + $0x388] sm:$0xff] }
  0x3c   : > { %v16875_v37 = vpack.c.bf16 %v628_v15, %v627_v14  ;;  %v573_v15 = vld [vmem:[%s16575_s30 + $0x1a0] sm:$0xff]  ;;  %v16902_v23 = vpack.c.bf16 %v634_v61, %v633_v60  ;;  %v575_v60 = vld [vmem:[%s16575_s30 + $0x1b0] sm:$0xff]  ;;  %v576_v61 = vld [vmem:[%s16575_s30 + $0x1b8] sm:$0xff] }
  0x3d   : > { %19955 = vst [vmem:[#allocation35_spill] sm:$0xff] %v16808_v21  ;;  %19963 = vst [vmem:[#allocation43_spill] sm:$0xff] %v16856_v12  ;;  %v16928_v1 = vpack.c.bf16 %v576_v61, %v575_v60  ;;  %v581_v61 = vld [vmem:[%s16575_s30 + $0x1e0] sm:$0xff] }
  0x3e   : > { %14157 = vmatpush3.bf16.msra.mxu1 %v15871_v20  ;;  %v16806_v20 = vpack.c.bf16 %v618_v8, %v617_v7  ;;  %v16852_v7 = vpack.c.bf16 %v624_v52, %v623_v50  ;;  %v16854_v8 = vpack.c.bf16 %v626_v57, %v625_v55  ;;  %19965 = vst [vmem:[#allocation45_spill] sm:$0xff] %v16875_v37  ;;  %v631_v55 = vld [vmem:[%s16575_s30 + $0x370] sm:$0xff]  ;;  %v632_v57 = vld [vmem:[%s16575_s30 + $0x378] sm:$0xff]  ;;  %19970 = vst [vmem:[#allocation50_spill] sm:$0xff] %v16902_v23 }
  0x3f   : > { %v16880_v50 = vpack.c.bf16 %v568_v34, %v567_v31  ;;  %v16882_v52 = vpack.c.bf16 %v570_v38, %v569_v36  ;;  %v16898_v14 = vpack.c.bf16 %v632_v57, %v631_v55  ;;  %v16904_v31 = vpack.c.bf16 %v572_v4, %v571_v2  ;;  %v635_v36 = vld [vmem:[%s16575_s30 + $0x390] sm:$0xff]  ;;  %v636_v38 = vld [vmem:[%s16575_s30 + $0x398] sm:$0xff]  ;;  %v637_v55 = vld [vmem:[%s16575_s30 + $0x3a0] sm:$0xff]  ;;  %19975 = vst [vmem:[#allocation55_spill] sm:$0xff] %v16928_v1 }
  0x40   : > { %14031 = vmatmul.mubr.msk.bf16.gmra.mxu0 %vm744_vm2, %v16706_v11  ;;  %14095 = vmatmul.mubr.msk.bf16.gmra.mxu1 %vm744_vm2, %v16732_v26  ;;  %19954 = vst [vmem:[#allocation34_spill] sm:$0xff] %v16806_v20  ;;  %19961 = vst [vmem:[#allocation41_spill] sm:$0xff] %v16852_v7  ;;  %v16906_v34 = vpack.c.bf16 %v574_v22, %v573_v15  ;;  %v638_v57 = vld [vmem:[%s16575_s30 + $0x3a8] sm:$0xff]  ;;  %v16922_v2 = vpack.c.bf16 %v636_v38, %v635_v36  ;;  %v577_v4 = vld [vmem:[%s16575_s30 + $0x1c0] sm:$0xff] }
  0x41   : > { %14034 = vmatprep.mubr.msk.bf16.mxu0 %vm744_vm2, %v16711_v13  ;;  %14098 = vmatprep.mubr.msk.bf16.mxu1 %vm744_vm2, %v16734_v28  ;;  %19962 = vst [vmem:[#allocation42_spill] sm:$0xff] %v16854_v8  ;;  %19967 = vst [vmem:[#allocation47_spill] sm:$0xff] %v16880_v50  ;;  %v578_v15 = vld [vmem:[%s16575_s30 + $0x1c8] sm:$0xff]  ;;  %v16926_v22 = vpack.c.bf16 %v638_v57, %v637_v55  ;;  %v640_v36 = vld [vmem:[%s16575_s30 + $0x3b8] sm:$0xff] }
  0x42   : > { %19968 = vst [vmem:[#allocation48_spill] sm:$0xff] %v16882_v52  ;;  %19969 = vst [vmem:[#allocation49_spill] sm:$0xff] %v16898_v14  ;;  %v641_v38 = vld [vmem:[%s16575_s30 + $0x3c0] sm:$0xff]  ;;  %v579_v55 = vld [vmem:[%s16575_s30 + $0x1d0] sm:$0xff] }
  0x43   : > { %19971 = vst [vmem:[#allocation51_spill] sm:$0xff] %v16904_v31  ;;  %19972 = vst [vmem:[#allocation52_spill] sm:$0xff] %v16906_v34  ;;  %v580_v57 = vld [vmem:[%s16575_s30 + $0x1d8] sm:$0xff] }
  0x44   : > { %19973 = vst [vmem:[#allocation53_spill] sm:$0xff] %v16922_v2  ;;  %19974 = vst [vmem:[#allocation54_spill] sm:$0xff] %v16926_v22 }
  0x48   : > { %14035 = vmatmul.mubr.msk.bf16.gmra.mxu0 %vm744_vm2, %v16736_v29  ;;  %14099 = vmatmul.mubr.msk.bf16.gmra.mxu1 %vm744_vm2, %v16756_v43 }
  0x49   : > { %14038 = vmatprep.mubr.msk.bf16.mxu0 %vm744_vm2, %v16740_v35  ;;  %14102 = vmatprep.mubr.msk.bf16.mxu1 %vm744_vm2, %v16758_v47 }
  0x50   : > { %14039 = vmatmul.mubr.msk.bf16.gmra.mxu0 %vm744_vm2, %v16760_v48  ;;  %14103 = vmatmul.mubr.msk.bf16.gmra.mxu1 %vm744_vm2, %v16780_v62 }
  0x51   : > { %14042 = vmatprep.mubr.msk.bf16.mxu0 %vm744_vm2, %v16764_v51  ;;  %14106 = vmatprep.mubr.msk.bf16.mxu1 %vm744_vm2, %v16782_v63 }
  0x58   : > { %14043 = vmatmul.mubr.msk.bf16.gmra.mxu0 %vm744_vm2, %v16784_v0  ;;  %14107 = vmatmul.mubr.msk.bf16.gmra.mxu1 %vm744_vm2, %v16804_v19 }
  0x59   : > { %14046 = vmatprep.mubr.msk.bf16.mxu0 %vm744_vm2, %v16788_v6  ;;  %14110 = vmatprep.mubr.msk.bf16.mxu1 %vm744_vm2, %v16806_v20 }
  0x60   : > { %14047 = vmatmul.mubr.msk.bf16.gmra.mxu0 %vm744_vm2, %v16808_v21  ;;  %14111 = vmatmul.mubr.msk.bf16.gmra.mxu1 %vm744_vm2, %v16828_v40 }
  0x61   : > { %14050 = vmatprep.mubr.msk.bf16.mxu0 %vm744_vm2, %v16812_v24  ;;  %14114 = vmatprep.mubr.msk.bf16.mxu1 %vm744_vm2, %v16830_v42 }
  0x68   : > { %14051 = vmatmul.mubr.msk.bf16.gmra.mxu0 %vm744_vm2, %v16832_v49  ;;  %14115 = vmatmul.mubr.msk.bf16.gmra.mxu1 %vm744_vm2, %v16852_v7 }
  0x69   : > { %14054 = vmatprep.mubr.msk.bf16.mxu0 %vm744_vm2, %v16836_v54  ;;  %14118 = vmatprep.mubr.msk.bf16.mxu1 %vm744_vm2, %v16854_v8  ;;  %v644_v8 = vld [vmem:[%s16575_s30 + $0x3d8] sm:$0xff] }
  0x70   : > { %14055 = vmatmul.mubr.msk.bf16.gmra.mxu0 %vm744_vm2, %v16856_v12  ;;  %14119 = vmatmul.mubr.msk.bf16.gmra.mxu1 %vm744_vm2, %v16875_v37  ;;  %v643_v37 = vld [vmem:[%s16575_s30 + $0x3d0] sm:$0xff] }
  0x71   : > { %14058 = vmatprep.mubr.msk.bf16.mxu0 %vm744_vm2, %v16860_v18  ;;  %14122 = vmatprep.mubr.msk.bf16.mxu1 %vm744_vm2, %v16878_v39  ;;  %v642_v39 = vld [vmem:[%s16575_s30 + $0x3c8] sm:$0xff] }
  0x78   : > { %14059 = vmatmul.mubr.msk.bf16.gmra.mxu0 %vm744_vm2, %v16880_v50  ;;  %14123 = vmatmul.mubr.msk.bf16.gmra.mxu1 %vm744_vm2, %v16898_v14  ;;  %v639_v14 = vld [vmem:[%s16575_s30 + $0x3b0] sm:$0xff] }
  0x79   : > { %14062 = vmatprep.mubr.msk.bf16.mxu0 %vm744_vm2, %v16882_v52  ;;  %14126 = vmatprep.mubr.msk.bf16.mxu1 %vm744_vm2, %v16902_v23  ;;  %v16930_v23 = vpack.c.bf16 %v578_v15, %v577_v4  ;;  %v16946_v60 = vpack.c.bf16 %v640_v36, %v639_v14  ;;  %v582_v4 = vld [vmem:[%s16575_s30 + $0x1e8] sm:$0xff]  ;;  %v16950_v15 = vpack.c.bf16 %v642_v39, %v641_v38  ;;  %v645_v14 = vld [vmem:[%s16575_s30 + $0x3e0] sm:$0xff]  ;;  %v583_v39 = vld [vmem:[%s16575_s30 + $0x1f0] sm:$0xff] }
  0x7a   : > { %v646_v36 = vld [vmem:[%s16575_s30 + $0x3e8] sm:$0xff]  ;;  %v584_v38 = vld [vmem:[%s16575_s30 + $0x1f8] sm:$0xff] }
  0x7b   : > { %19976 = vst [vmem:[#allocation56_spill] sm:$0xff] %v16930_v23  ;;  %19977 = vst [vmem:[#allocation57_spill] sm:$0xff] %v16946_v60 }
  0x7c   : > { %19978 = vst [vmem:[#allocation58_spill] sm:$0xff] %v16950_v15 }
  0x80   : > { %14063 = vmatmul.mubr.msk.bf16.gmra.mxu0 %vm744_vm2, %v16904_v31  ;;  %14127 = vmatmul.mubr.msk.bf16.gmra.mxu1 %vm744_vm2, %v16922_v2  ;;  %v16954_v2 = vpack.c.bf16 %v582_v4, %v581_v61  ;;  %v16974_v61 = vpack.c.bf16 %v584_v38, %v583_v39  ;;  %v647_v4 = vld [vmem:[%s16575_s30 + $0x3f0] sm:$0xff] }
  0x81   : > { %14066 = vmatprep.mubr.msk.bf16.mxu0 %vm744_vm2, %v16906_v34  ;;  %14130 = vmatprep.mubr.msk.bf16.mxu1 %vm744_vm2, %v16926_v22  ;;  %v16952_v22 = vpack.c.bf16 %v580_v57, %v579_v55  ;;  %v16970_v55 = vpack.c.bf16 %v644_v8, %v643_v37  ;;  %v16972_v57 = vpack.c.bf16 %v646_v36, %v645_v14  ;;  %v15872_v8 = vld [vmem:[%s19828_s4 + $0x38] sm:$0xff]   ;;  %v15873_v37 = vld [vmem:[%s19828_s4 + $0x30] sm:$0xff]  }
  0x82   : > { %19980 = vst [vmem:[#allocation60_spill] sm:$0xff] %v16954_v2  ;;  %19983 = vst [vmem:[#allocation63_spill] sm:$0xff] %v16974_v61  ;;  %14286 = vmatprep.subr.bf16.mxu0 %v15872_v8 }
  0x83   : > { %19979 = vst [vmem:[#allocation59_spill] sm:$0xff] %v16952_v22  ;;  %19981 = vst [vmem:[#allocation61_spill] sm:$0xff] %v16970_v55  ;;  %14287 = vmatpush3.bf16.msra.mxu0 %v15872_v8 }
  0x84   : > { %19982 = vst [vmem:[#allocation62_spill] sm:$0xff] %v16972_v57  ;;  %14288 = vmatprep.subr.bf16.mxu0 %v15873_v37 }
  0x87   : > { %14289 = vmatpush3.bf16.msra.mxu0 %v15873_v37 }
  0x88   : > { %14067 = vmatmul.mubr.msk.bf16.gmra.mxu0 %vm744_vm2, %v16928_v1  ;;  %14131 = vmatmul.mubr.msk.bf16.gmra.mxu1 %vm744_vm2, %v16946_v60 }
  0x89   : > { %14070 = vmatprep.mubr.msk.bf16.mxu0 %vm744_vm2, %v16930_v23  ;;  %14134 = vmatprep.mubr.msk.bf16.mxu1 %vm744_vm2, %v16950_v15  ;;  %v648_v15 = vld [vmem:[%s16575_s30 + $0x3f8] sm:$0xff]  ;;  %s16467_s30 = smov 3  }
  0x8a   : > { %v16984_v60 = vpack.c.bf16 %v648_v15, %v647_v4  ;;  %v15874_v15 = vld [vmem:[%s19828_s4 + $0x28] sm:$0xff]   ;;  %v15875_v4 = vld [vmem:[%s19828_s4 + $0x20] sm:$0xff]  }
  0x8b   : > { %14290 = vmatprep.subr.bf16.mxu0 %v15874_v15 }
  0x8c   : > { %19984 = vst [vmem:[#allocation64_spill] sm:$0xff] %v16984_v60  ;;  %14291 = vmatpush3.bf16.msra.mxu0 %v15874_v15 }
  0x8d   : > { %14292 = vmatprep.subr.bf16.mxu0 %v15875_v4 }
  0x90   : > { %14071 = vmatmul.mubr.msk.bf16.gmra.mxu0 %vm744_vm2, %v16952_v22  ;;  %14135 = vmatmul.mubr.msk.bf16.gmra.mxu1 %vm744_vm2, %v16970_v55 }
  0x91   : > { %14074 = vmatprep.mubr.msk.bf16.mxu0 %vm744_vm2, %v16954_v2  ;;  %14138 = vmatprep.mubr.msk.bf16.mxu1 %vm744_vm2, %v16972_v57 }
  0x92   : > { %14293 = vmatpush3.bf16.msra.mxu0 %v15875_v4 }
  0x98   : > { %14075 = vmatmul.mubr.msk.bf16.gmra.mxu0 %vm744_vm2, %v16974_v61  ;;  %14139 = vmatmul.mubr.msk.bf16.gmra.mxu1 %vm744_vm2, %v16984_v60 }
  0xe0   : > { %v14016_v14 = vpop.f32.mrf.mxu0  ;;  %v16997_v38 = vpop.f32.mrf.mxu1 }
  0xe1   : > { %v1491_v7 = vmax.f32 %v14016_v14, 0.0 }
  0xe2   : > { %v978_v36 = vpop.f32.mrf.mxu0  ;;  %v17002_v37 = vpop.f32.mrf.mxu1 }
  0xe3   : > { %v1489_v57 = vmax.f32 %v978_v36, 0.0 }
  0xe4   : > { %v14017_v39 = vpop.f32.mrf.mxu0  ;;  %v17004_v40 = vpop.f32.mrf.mxu1 }
  0xe5   : > { %v1492_v8 = vmax.f32 %v14017_v39, 0.0 }
  0xe6   : > { %v981_v60 = vpop.f32.mrf.mxu0  ;;  %v17006_v63 = vpop.f32.mrf.mxu1 }
  0xe7   : > { %v1490_v55 = vmax.f32 %v981_v60, 0.0  ;;  %v1618_v20 = vpack.c.bf16 %v1492_v8, %v1491_v7 }
  0xe8   : > { %v14020_v42 = vpop.f32.mrf.mxu0  ;;  %v17008_v39 = vpop.f32.mrf.mxu1 }
  0xe9   : > { %v1617_v15 = vpack.c.bf16 %v1490_v55, %v1489_v57  ;;  %v1495_v14 = vmax.f32 %v14020_v42, 0.0 }
  0xea   : > { %v994_v19 = vpop.f32.mrf.mxu0  ;;  %v17010_v28 = vpop.f32.mrf.mxu1 }
  0xeb   : > { %14158 = vmatprep.mubr.bf16.mxu1 %v1617_v15  ;;  %v1493_v47 = vmax.f32 %v994_v19, 0.0 }
  0xec   : > { %v14021_v62 = vpop.f32.mrf.mxu0  ;;  %14159 = vmatmul.mubr.bf16.vlgmr.msra.gmra.mxu1 %v1618_v20  ;;  %v17012_v57 = vpop.f32.mrf.mxu1 }
  0xed   : > { %v1496_v36 = vmax.f32 %v14021_v62, 0.0  ;;  %v15876_v62 = vld [vmem:[%s19828_s4 + $0x18] sm:$0xff]  }
  0xee   : > { %v997_v60 = vpop.f32.mrf.mxu0  ;;  %v17014_v15 = vpop.f32.mrf.mxu1  ;;  %14294 = vmatprep.subr.bf16.mxu0 %v15876_v62 }
  0xef   : > { %v1494_v43 = vmax.f32 %v997_v60, 0.0  ;;  %v1620_v7 = vpack.c.bf16 %v1496_v36, %v1495_v14  ;;  %14295 = vmatpush3.bf16.msra.mxu0 %v15876_v62 }
  0xf0   : > { %v14024_v4 = vpop.f32.mrf.mxu0  ;;  %v17016_v20 = vpop.f32.mrf.mxu1 }
  0xf1   : > { %v1619_v55 = vpack.c.bf16 %v1494_v43, %v1493_v47  ;;  %v1499_v47 = vmax.f32 %v14024_v4, 0.0 }
  0xf2   : > { %v1010_v8 = vpop.f32.mrf.mxu0  ;;  %v17021_v43 = vpop.f32.mrf.mxu1 }
  0xf3   : > { %14162 = vmatprep.mubr.bf16.mxu1 %v1619_v55  ;;  %v1497_v42 = vmax.f32 %v1010_v8, 0.0  ;;  %v15877_v8 = vld [vmem:[%s19829_s5 + $0x38] sm:$0xff]  }
  0xf4   : > { %v14025_v26 = vpop.f32.mrf.mxu0  ;;  %14163 = vmatmul.mubr.bf16.gmra.mxu1 %v1620_v7  ;;  %v17023_v55 = vpop.f32.mrf.mxu1  ;;  %14430 = vmatprep.subr.bf16.mxu1 %v15877_v8 }
  0xf5   : > { %v1500_v19 = vmax.f32 %v14025_v26, 0.0  ;;  %14431 = vmatpush3.bf16.msra.mxu1 %v15877_v8 }
  0xf6   : > { %v1013_v60 = vpop.f32.mrf.mxu0  ;;  %v17025_v56 = vpop.f32.mrf.mxu1 }
  0xf7   : > { %v1498_v9 = vmax.f32 %v1013_v60, 0.0  ;;  %v1622_v7 = vpack.c.bf16 %v1500_v19, %v1499_v47 }
  0xf8   : > { %v14028_v36 = vpop.f32.mrf.mxu0  ;;  %v17027_v26 = vpop.f32.mrf.mxu1 }
  0xf9   : > { %v1621_v14 = vpack.c.bf16 %v1498_v9, %v1497_v42  ;;  %v1503_v19 = vmax.f32 %v14028_v36, 0.0 }
  0xfa   : > { %v1026_v5 = vpop.f32.mrf.mxu0  ;;  %v17032_v9 = vpop.f32.mrf.mxu1 }
  0xfb   : > { %14166 = vmatprep.mubr.bf16.mxu1 %v1621_v14  ;;  %v1501_v44 = vmax.f32 %v1026_v5, 0.0  ;;  %v15878_v5 = vld [vmem:[%s19828_s4 + $0x10] sm:$0xff]  }
  0xfc   : > { %v14029_v53 = vpop.f32.mrf.mxu0  ;;  %14167 = vmatmul.mubr.bf16.gmra.mxu1 %v1622_v7  ;;  %v17034_v14 = vpop.f32.mrf.mxu1  ;;  %14296 = vmatprep.subr.bf16.mxu0 %v15878_v5 }
  0xfd   : > { %v1504_v60 = vmax.f32 %v14029_v53, 0.0  ;;  %14297 = vmatpush3.bf16.msra.mxu0 %v15878_v5 }
  0xfe   : > { %v1029_v4 = vpop.f32.mrf.mxu0  ;;  %v17036_v33 = vpop.f32.mrf.mxu1 }
  0xff   : > { %v1502_v62 = vmax.f32 %v1029_v4, 0.0  ;;  %v1624_v7 = vpack.c.bf16 %v1504_v60, %v1503_v19 }
 0x100   : > { %v14032_v42 = vpop.f32.mrf.mxu0  ;;  %v17038_v53 = vpop.f32.mrf.mxu1 }
 0x101   : > { %v1623_v47 = vpack.c.bf16 %v1502_v62, %v1501_v44  ;;  %v1507_v60 = vmax.f32 %v14032_v42, 0.0 }
 0x102   : > { %v1042_v41 = vpop.f32.mrf.mxu0  ;;  %v17043_v44 = vpop.f32.mrf.mxu1 }
 0x103   : > { %14170 = vmatprep.mubr.bf16.mxu1 %v1623_v47  ;;  %v1505_v25 = vmax.f32 %v1042_v41, 0.0 }
 0x104   : > { %v14033_v27 = vpop.f32.mrf.mxu0  ;;  %14171 = vmatmul.mubr.bf16.gmra.mxu1 %v1624_v7  ;;  %v17045_v47 = vpop.f32.mrf.mxu1 }
 0x105   : > { %v1508_v4 = vmax.f32 %v14033_v27, 0.0 }
 0x106   : > { %v1045_v36 = vpop.f32.mrf.mxu0  ;;  %v17047_v2 = vpop.f32.mrf.mxu1 }
 0x107   : > { %v1506_v8 = vmax.f32 %v1045_v36, 0.0  ;;  %v1626_v7 = vpack.c.bf16 %v1508_v4, %v1507_v60 }
 0x108   : > { %v14036_v62 = vpop.f32.mrf.mxu0  ;;  %v17049_v27 = vpop.f32.mrf.mxu1 }
 0x109   : > { %v1625_v19 = vpack.c.bf16 %v1506_v8, %v1505_v25  ;;  %v1511_v42 = vmax.f32 %v14036_v62, 0.0 }
 0x10a   : > { %v1058_v61 = vpop.f32.mrf.mxu0  ;;  %v17051_v34 = vpop.f32.mrf.mxu1 }
 0x10b   : > { %14174 = vmatprep.mubr.bf16.mxu1 %v1625_v19  ;;  %v1509_v23 = vmax.f32 %v1058_v61, 0.0 }
 0x10c   : > { %v14037_v22 = vpop.f32.mrf.mxu0  ;;  %14175 = vmatmul.mubr.bf16.gmra.mxu1 %v1626_v7  ;;  %v17053_v8 = vpop.f32.mrf.mxu1 }
 0x10d   : > { %v1512_v41 = vmax.f32 %v14037_v22, 0.0  ;;  %v15879_v22 = vld [vmem:[%s19828_s4 + $0x8] sm:$0xff]  }
 0x10e   : > { %v1061_v36 = vpop.f32.mrf.mxu0  ;;  %v17055_v19 = vpop.f32.mrf.mxu1  ;;  %14298 = vmatprep.subr.bf16.mxu0 %v15879_v22 }
 0x10f   : > { %v1510_v1 = vmax.f32 %v1061_v36, 0.0  ;;  %v1628_v4 = vpack.c.bf16 %v1512_v41, %v1511_v42  ;;  %14299 = vmatpush3.bf16.msra.mxu0 %v15879_v22 }
 0x110   : > { %v14040_v5 = vpop.f32.mrf.mxu0  ;;  %v17057_v7 = vpop.f32.mrf.mxu1 }
 0x111   : > { %v1627_v25 = vpack.c.bf16 %v1510_v1, %v1509_v23  ;;  %v1515_v23 = vmax.f32 %v14040_v5, 0.0 }
 0x112   : > { %v1074_v60 = vpop.f32.mrf.mxu0  ;;  %v17062_v1 = vpop.f32.mrf.mxu1 }
 0x113   : > { %14178 = vmatprep.mubr.bf16.mxu1 %v1627_v25  ;;  %v1513_v62 = vmax.f32 %v1074_v60, 0.0 }
 0x114   : > { %v14041_v31 = vpop.f32.mrf.mxu0  ;;  %14179 = vmatmul.mubr.bf16.gmra.mxu1 %v1628_v4  ;;  %v17064_v25 = vpop.f32.mrf.mxu1 }
 0x115   : > { %v1516_v61 = vmax.f32 %v14041_v31, 0.0  ;;  %v15880_v31 = vld [vmem:[%s19829_s5 + $0x30] sm:$0xff]  }
 0x116   : > { %v1077_v36 = vpop.f32.mrf.mxu0  ;;  %v17066_v18 = vpop.f32.mrf.mxu1  ;;  %14432 = vmatprep.subr.bf16.mxu1 %v15880_v31 }
 0x117   : > { %v1514_v52 = vmax.f32 %v1077_v36, 0.0  ;;  %v1630_v4 = vpack.c.bf16 %v1516_v61, %v1515_v23  ;;  %14433 = vmatpush3.bf16.msra.mxu1 %v15880_v31 }
 0x118   : > { %v14044_v41 = vpop.f32.mrf.mxu0  ;;  %v17071_v54 = vpop.f32.mrf.mxu1 }
 0x119   : > { %v1629_v42 = vpack.c.bf16 %v1514_v52, %v1513_v62  ;;  %v1519_v52 = vmax.f32 %v14044_v41, 0.0 }
 0x11a   : > { %v1090_v50 = vpop.f32.mrf.mxu0  ;;  %v17073_v49 = vpop.f32.mrf.mxu1 }
 0x11b   : > { %14182 = vmatprep.mubr.bf16.mxu1 %v1629_v42  ;;  %v1517_v5 = vmax.f32 %v1090_v50, 0.0 }
 0x11c   : > { %v14045_v12 = vpop.f32.mrf.mxu0  ;;  %14183 = vmatmul.mubr.bf16.gmra.mxu1 %v1630_v4  ;;  %v17078_v50 = vpop.f32.mrf.mxu1 }
 0x11d   : > { %v1520_v60 = vmax.f32 %v14045_v12, 0.0  ;;  %v15881_v12 = vld [vmem:[%s19828_s4] sm:$0xff]  }
 0x11e   : > { %v1093_v36 = vpop.f32.mrf.mxu0  ;;  %14300 = vmatprep.subr.bf16.mxu0 %v15881_v12 }
 0x11f   : > { %v1518_v22 = vmax.f32 %v1093_v36, 0.0  ;;  %v1632_v23 = vpack.c.bf16 %v1520_v60, %v1519_v52  ;;  %14301 = vmatpush3.bf16.msra.mxu0 %v15881_v12 }
 0x120   : > { %v14048_v62 = vpop.f32.mrf.mxu0 }
 0x121   : > { %v1631_v61 = vpack.c.bf16 %v1518_v22, %v1517_v5  ;;  %v1523_v31 = vmax.f32 %v14048_v62, 0.0 }
 0x122   : > { %v1106_v42 = vpop.f32.mrf.mxu0 }
 0x123   : > { %14186 = vmatprep.mubr.bf16.mxu1 %v1631_v61  ;;  %v1521_v36 = vmax.f32 %v1106_v42, 0.0  ;;  %v17080_v61 = vpop.f32.mrf.mxu1 }
 0x124   : > { %v14049_v4 = vpop.f32.mrf.mxu0  ;;  %14187 = vmatmul.mubr.bf16.gmra.mxu1 %v1632_v23 }
 0x125   : > { %v1524_v24 = vmax.f32 %v14049_v4, 0.0  ;;  %v17082_v4 = vpop.f32.mrf.mxu1 }
 0x126   : > { %v1109_v21 = vpop.f32.mrf.mxu0 }
 0x127   : > { %v1522_v41 = vmax.f32 %v1109_v21, 0.0  ;;  %v1634_v22 = vpack.c.bf16 %v1524_v24, %v1523_v31  ;;  %v17084_v12 = vpop.f32.mrf.mxu1 }
 0x128   : > { %v14052_v5 = vpop.f32.mrf.mxu0 }
 0x129   : > { %v1633_v60 = vpack.c.bf16 %v1522_v41, %v1521_v36  ;;  %v1527_v42 = vmax.f32 %v14052_v5, 0.0  ;;  %v17086_v31 = vpop.f32.mrf.mxu1 }
 0x12a   : > { %v1122_v52 = vpop.f32.mrf.mxu0 }
 0x12b   : > { %14190 = vmatprep.mubr.bf16.mxu1 %v1633_v60  ;;  %v1525_v51 = vmax.f32 %v1122_v52, 0.0  ;;  %v17088_v11 = vpop.f32.mrf.mxu1 }
 0x12c   : > { %v14053_v23 = vpop.f32.mrf.mxu0  ;;  %14191 = vmatmul.mubr.bf16.gmra.mxu1 %v1634_v22 }
 0x12d   : > { %v1528_v6 = vmax.f32 %v14053_v23, 0.0 }
 0x12e   : > { %v1125_v0 = vpop.f32.mrf.mxu0 }
 0x12f   : > { %v1526_v48 = vmax.f32 %v1125_v0, 0.0  ;;  %v1636_v62 = vpack.c.bf16 %v1528_v6, %v1527_v42  ;;  %v17090_v6 = vpop.f32.mrf.mxu1 }
 0x130   : > { %v14056_v21 = vpop.f32.mrf.mxu0 }
 0x131   : > { %v1635_v35 = vpack.c.bf16 %v1526_v48, %v1525_v51  ;;  %v1531_v23 = vmax.f32 %v14056_v21, 0.0  ;;  %v17092_v58 = vpop.f32.mrf.mxu1 }
 0x132   : > { %v1138_v29 = vpop.f32.mrf.mxu0 }
 0x133   : > { %14194 = vmatprep.mubr.bf16.mxu1 %v1635_v35  ;;  %v1529_v60 = vmax.f32 %v1138_v29, 0.0 }
 0x134   : > { %v14057_v24 = vpop.f32.mrf.mxu0  ;;  %14195 = vmatmul.mubr.bf16.gmra.mxu1 %v1636_v62 }
 0x135   : > { %v1532_v36 = vmax.f32 %v14057_v24, 0.0 }
 0x136   : > { %v1141_v41 = vpop.f32.mrf.mxu0 }
 0x137   : > { %v1530_v22 = vmax.f32 %v1141_v41, 0.0  ;;  %v1638_v0 = vpack.c.bf16 %v1532_v36, %v1531_v23 }
 0x138   : > { %v14060_v13 = vpop.f32.mrf.mxu0 }
 0x139   : > { %v1637_v52 = vpack.c.bf16 %v1530_v22, %v1529_v60  ;;  %v1535_v24 = vmax.f32 %v14060_v13, 0.0  ;;  %v15882_v60 = vld [vmem:[%s19829_s5 + $0x28] sm:$0xff]  }
 0x13a   : > { %v1154_v5 = vpop.f32.mrf.mxu0  ;;  %14434 = vmatprep.subr.bf16.mxu1 %v15882_v60 }
 0x13b   : > { %14198 = vmatprep.mubr.bf16.mxu1 %v1637_v52  ;;  %v1533_v42 = vmax.f32 %v1154_v5, 0.0  ;;  %v17097_v52 = vpop.f32.mrf.mxu1  ;;  %14435 = vmatpush3.bf16.msra.mxu1 %v15882_v60 }
 0x13c   : > { %v14061_v48 = vpop.f32.mrf.mxu0  ;;  %14199 = vmatmul.mubr.bf16.gmra.mxu1 %v1638_v0 }
 0x13d   : > { %v1536_v51 = vmax.f32 %v14061_v48, 0.0 }
 0x13e   : > { %v1157_v35 = vpop.f32.mrf.mxu0 }
 0x13f   : > { %v1534_v62 = vmax.f32 %v1157_v35, 0.0  ;;  %v1640_v41 = vpack.c.bf16 %v1536_v51, %v1535_v24 }
 0x140   : > { %v14064_v59 = vpop.f32.mrf.mxu0 }
 0x141   : > { %v1639_v29 = vpack.c.bf16 %v1534_v62, %v1533_v42  ;;  %v1539_v13 = vmax.f32 %v14064_v59, 0.0  ;;  %v17099_v62 = vpop.f32.mrf.mxu1 }
 0x142   : > { %v1170_v21 = vpop.f32.mrf.mxu0 }
 0x143   : > { %14202 = vmatprep.mubr.bf16.mxu1 %v1639_v29  ;;  %v1537_v0 = vmax.f32 %v1170_v21, 0.0 }
 0x144   : > { %v14065_v36 = vpop.f32.mrf.mxu0  ;;  %14203 = vmatmul.mubr.bf16.gmra.mxu1 %v1640_v41 }
 0x145   : > { %v1540_v22 = vmax.f32 %v14065_v36, 0.0  ;;  %v17101_v36 = vpop.f32.mrf.mxu1 }
 0x146   : > { %v1173_v23 = vpop.f32.mrf.mxu0 }
 0x147   : > { %v1538_v5 = vmax.f32 %v1173_v23, 0.0  ;;  %v1642_v35 = vpack.c.bf16 %v1540_v22, %v1539_v13  ;;  %v17103_v60 = vpop.f32.mrf.mxu1 }
 0x148   : > { %v14068_v48 = vpop.f32.mrf.mxu0 }
 0x149   : > { %v1641_v51 = vpack.c.bf16 %v1538_v5, %v1537_v0  ;;  %v1543_v21 = vmax.f32 %v14068_v48, 0.0  ;;  %v17105_v13 = vpop.f32.mrf.mxu1 }
 0x14a   : > { %v1186_v42 = vpop.f32.mrf.mxu0 }
 0x14b   : > { %14206 = vmatprep.mubr.bf16.mxu1 %v1641_v51  ;;  %v1541_v46 = vmax.f32 %v1186_v42, 0.0  ;;  %v17107_v16 = vpop.f32.mrf.mxu1 }
 0x14c   : > { %v14069_v24 = vpop.f32.mrf.mxu0  ;;  %14207 = vmatmul.mubr.bf16.gmra.mxu1 %v1642_v35 }
 0x14d   : > { %v1544_v29 = vmax.f32 %v14069_v24, 0.0 }
 0x14e   : > { %v1189_v41 = vpop.f32.mrf.mxu0 }
 0x14f   : > { %v1542_v45 = vmax.f32 %v1189_v41, 0.0  ;;  %v1644_v59 = vpack.c.bf16 %v1544_v29, %v1543_v21  ;;  %v17109_v29 = vpop.f32.mrf.mxu1  ;;  %v1553_v21 = vmax.f32 %v17002_v37, 0.0  ;;  %v1556_v37 = vmax.f32 %v17004_v40, 0.0 }
 0x150   : > { %v14072_v23 = vpop.f32.mrf.mxu0  ;;  %v1561_v40 = vmax.f32 %v17021_v43, 0.0 }
 0x151   : > { %v1643_v32 = vpack.c.bf16 %v1542_v45, %v1541_v46  ;;  %v1547_v24 = vmax.f32 %v14072_v23, 0.0 }
 0x152   : > { %v1202_v30 = vpop.f32.mrf.mxu0 }
 0x153   : > { %14210 = vmatprep.mubr.bf16.mxu1 %v1643_v32  ;;  %v1545_v51 = vmax.f32 %v1202_v30, 0.0 }
 0x154   : > { %v14073_v22 = vpop.f32.mrf.mxu0  ;;  %14211 = vmatmul.mubr.bf16.gmra.mxu1 %v1644_v59  ;;  %v1554_v59 = vmax.f32 %v17006_v63, 0.0 }
 0x155   : > { %v1548_v0 = vmax.f32 %v14073_v22, 0.0 }
 0x156   : > { %v1205_v5 = vpop.f32.mrf.mxu0 }
 0x157   : > { %v1546_v35 = vmax.f32 %v1205_v5, 0.0  ;;  %v1646_v41 = vpack.c.bf16 %v1548_v0, %v1547_v24  ;;  %v17113_v0 = vpop.f32.mrf.mxu1  ;;  %v15883_v24 = vld [vmem:[%s19829_s5 + $0x20] sm:$0xff]  }
 0x158   : > { %v14076_v17 = vpop.f32.mrf.mxu0  ;;  %14436 = vmatprep.subr.bf16.mxu1 %v15883_v24 }
 0x159   : > { %v1645_v42 = vpack.c.bf16 %v1546_v35, %v1545_v51  ;;  %v1551_v23 = vmax.f32 %v14076_v17, 0.0  ;;  %v1649_v35 = vpack.c.bf16 %v1554_v59, %v1553_v21  ;;  %v17120_v63 = vpop.f32.mrf.mxu1  ;;  %v1557_v17 = vmax.f32 %v17010_v28, 0.0  ;;  %14437 = vmatpush3.bf16.msra.mxu1 %v15883_v24 }
 0x15a   : > { %v1218_v48 = vpop.f32.mrf.mxu0  ;;  %v1562_v28 = vmax.f32 %v17025_v56, 0.0  ;;  %v1568_v24 = vmax.f32 %v17034_v14, 0.0  ;;  %v1572_v14 = vmax.f32 %v17045_v47, 0.0  ;;  %v1577_v47 = vmax.f32 %v17062_v1, 0.0 }
 0x15b   : > { %14214 = vmatprep.mubr.bf16.mxu1 %v1645_v42  ;;  %v1549_v30 = vmax.f32 %v1218_v48, 0.0  ;;  %v1555_v42 = vmax.f32 %v16997_v38, 0.0  ;;  %v1560_v38 = vmax.f32 %v17012_v57, 0.0  ;;  %v1566_v57 = vmax.f32 %v17036_v33, 0.0 }
 0x15c   : > { %v14077_v45 = vpop.f32.mrf.mxu0  ;;  %14215 = vmatmul.mubr.bf16.gmra.mxu1 %v1646_v41  ;;  %v1558_v41 = vmax.f32 %v17014_v15, 0.0 }
 0x15d   : > { %v1552_v46 = vmax.f32 %v14077_v45, 0.0  ;;  %v1650_v48 = vpack.c.bf16 %v1556_v37, %v1555_v42  ;;  %v17124_v45 = vpop.f32.mrf.mxu1 }
 0x15e   : > { %v1221_v32 = vpop.f32.mrf.mxu0 }
 0x15f   : > { %v1550_v22 = vmax.f32 %v1221_v32, 0.0  ;;  %v1648_v51 = vpack.c.bf16 %v1552_v46, %v1551_v23  ;;  %v1651_v46 = vpack.c.bf16 %v1558_v41, %v1557_v17  ;;  %v1559_v32 = vmax.f32 %v17008_v39, 0.0  ;;  %v17128_v21 = vpop.f32.mrf.mxu1  ;;  %v15884_v17 = vld [vmem:[%s19829_s5 + $0x18] sm:$0xff]  }
 0x160   : > { %v1564_v23 = vmax.f32 %v17023_v55, 0.0  ;;  %v1565_v39 = vmax.f32 %v17032_v9, 0.0  ;;  %v1570_v55 = vmax.f32 %v17047_v2, 0.0  ;;  %v1574_v2 = vmax.f32 %v17055_v19, 0.0  ;;  %14438 = vmatprep.subr.bf16.mxu1 %v15884_v17 }
 0x161   : > { %v1647_v5 = vpack.c.bf16 %v1550_v22, %v1549_v30  ;;  %v1652_v59 = vpack.c.bf16 %v1560_v38, %v1559_v32  ;;  %v17132_v15 = vpop.f32.mrf.mxu1  ;;  %v1653_v30 = vpack.c.bf16 %v1562_v28, %v1561_v40  ;;  %v1563_v22 = vmax.f32 %v17016_v20, 0.0  ;;  %14439 = vmatpush3.bf16.msra.mxu1 %v15884_v17 }
 0x162   : > { %v1655_v56 = vpack.c.bf16 %v1566_v57, %v1565_v39  ;;  %v1569_v20 = vmax.f32 %v17043_v44, 0.0  ;;  %v1573_v44 = vmax.f32 %v17051_v34, 0.0  ;;  %v1575_v38 = vmax.f32 %v17049_v27, 0.0 }
 0x163   : > { %14218 = vmatprep.mubr.bf16.mxu1 %v1647_v5  ;;  %v17136_v5 = vpop.f32.mrf.mxu1  ;;  %v1578_v34 = vmax.f32 %v17066_v18, 0.0  ;;  %v1581_v27 = vmax.f32 %v17073_v49, 0.0  ;;  %v1583_v57 = vmax.f32 %v17071_v54, 0.0  ;;  %v1587_v54 = vmax.f32 %v17082_v4, 0.0 }
 0x164   : > { %14219 = vmatmul.mubr.bf16.gmra.mxu1 %v1648_v51  ;;  %v1654_v51 = vpack.c.bf16 %v1564_v23, %v1563_v22  ;;  %v1657_v33 = vpack.c.bf16 %v1570_v55, %v1569_v20  ;;  %v1659_v32 = vpack.c.bf16 %v1574_v2, %v1573_v44  ;;  %v1580_v22 = vmax.f32 %v17064_v25, 0.0 }
 0x165   : > { %14222 = vmatprep.mubr.bf16.mxu1 %v1649_v35  ;;  %v17140_v43 = vpop.f32.mrf.mxu1  ;;  %v1567_v35 = vmax.f32 %v17027_v26, 0.0  ;;  %v1571_v26 = vmax.f32 %v17038_v53, 0.0  ;;  %v1576_v53 = vmax.f32 %v17053_v8, 0.0  ;;  %v1582_v8 = vmax.f32 %v17080_v61, 0.0 }
 0x166   : > { %v1586_v25 = vmax.f32 %v17088_v11, 0.0  ;;  %v1590_v11 = vmax.f32 %v17099_v62, 0.0  ;;  %v1592_v4 = vmax.f32 %v17097_v52, 0.0  ;;  %v1596_v52 = vmax.f32 %v17105_v13, 0.0 }
 0x167   : > { %v17144_v42 = vpop.f32.mrf.mxu1  ;;  %v1656_v37 = vpack.c.bf16 %v1568_v24, %v1567_v35  ;;  %v1660_v28 = vpack.c.bf16 %v1576_v53, %v1575_v38  ;;  %v1663_v18 = vpack.c.bf16 %v1582_v8, %v1581_v27  ;;  %v15885_v24 = vld [vmem:[%s19829_s5 + $0x10] sm:$0xff]   ;;  %v1599_v13 = vmax.f32 %v17109_v29, 0.0 }
 0x168   : > { %14440 = vmatprep.subr.bf16.mxu1 %v15885_v24 }
 0x169   : > { %v17148_v9 = vpop.f32.mrf.mxu1  ;;  %14441 = vmatpush3.bf16.msra.mxu1 %v15885_v24  ;;  %v1602_v24 = vmax.f32 %v17140_v43, 0.0  ;;  %v1604_v43 = vmax.f32 %v17136_v5, 0.0 }
 0x16b   : > { %v17155_v41 = vpop.f32.mrf.mxu1 }
 0x16c   : > { %14223 = vmatmul.mubr.bf16.gmra.mxu1 %v1650_v48  ;;  %v1658_v48 = vpack.c.bf16 %v1572_v14, %v1571_v26  ;;  %v1591_v26 = vmax.f32 %v17090_v6, 0.0  ;;  %v1593_v14 = vmax.f32 %v17103_v60, 0.0  ;;  %v1595_v6 = vmax.f32 %v17101_v36, 0.0 }
 0x16d   : > { %14226 = vmatprep.mubr.bf16.mxu1 %v1651_v46  ;;  %v17159_v46 = vpop.f32.mrf.mxu1 }
 0x16e   : > { %v1668_v62 = vpack.c.bf16 %v1592_v4, %v1591_v26  ;;  %v1670_v27 = vpack.c.bf16 %v1596_v52, %v1595_v6 }
 0x16f   : > { %v17163_v40 = vpop.f32.mrf.mxu1 }
 0x171   : > { %v17167_v19 = vpop.f32.mrf.mxu1 }
 0x172   : > { %v1609_v52 = vmax.f32 %v17167_v19, 0.0 }
 0x173   : > { %v17171_v23 = vpop.f32.mrf.mxu1 }
 0x174   : > { %14227 = vmatmul.mubr.bf16.gmra.mxu1 %v1652_v59  ;;  %v1661_v59 = vpack.c.bf16 %v1578_v34, %v1577_v47 }
 0x175   : > { %14230 = vmatprep.mubr.bf16.mxu1 %v1653_v30  ;;  %v1579_v30 = vmax.f32 %v17057_v7, 0.0  ;;  %v17175_v1 = vpop.f32.mrf.mxu1  ;;  %v1585_v7 = vmax.f32 %v17084_v12, 0.0  ;;  %v1589_v12 = vmax.f32 %v17092_v58, 0.0  ;;  %v1594_v58 = vmax.f32 %v17107_v16, 0.0 }
 0x176   : > { %v1597_v16 = vmax.f32 %v17113_v0, 0.0  ;;  %v1600_v0 = vmax.f32 %v17120_v63, 0.0  ;;  %v15886_v63 = vld [vmem:[%s19829_s5 + $0x8] sm:$0xff]  }
 0x177   : > { %v1662_v39 = vpack.c.bf16 %v1580_v22, %v1579_v30  ;;  %v1665_v61 = vpack.c.bf16 %v1586_v25, %v1585_v7  ;;  %v1598_v30 = vmax.f32 %v17124_v45, 0.0  ;;  %14442 = vmatprep.subr.bf16.mxu1 %v15886_v63 }
 0x178   : > { %14443 = vmatpush3.bf16.msra.mxu1 %v15886_v63 }
 0x17c   : > { %14231 = vmatmul.mubr.bf16.gmra.mxu1 %v1654_v51  ;;  %v1584_v51 = vmax.f32 %v17078_v50, 0.0  ;;  %v1588_v50 = vmax.f32 %v17086_v31, 0.0 }
 0x17d   : > { %14234 = vmatprep.mubr.bf16.mxu1 %v1655_v56  ;;  %v17179_v56 = vpop.f32.mrf.mxu1 }
 0x17e   : > { %v1664_v35 = vpack.c.bf16 %v1584_v51, %v1583_v57  ;;  %v1666_v55 = vpack.c.bf16 %v1588_v50, %v1587_v54  ;;  %v1672_v50 = vpack.c.bf16 %v1600_v0, %v1599_v13 }
 0x17f   : > { %v17183_v49 = vpop.f32.mrf.mxu1 }
 0x181   : > { %v17190_v20 = vpop.f32.mrf.mxu1 }
 0x184   : > { %14235 = vmatmul.mubr.bf16.gmra.mxu1 %v1656_v37  ;;  %v17194_v37 = vpop.f32.mrf.mxu1 }
 0x185   : > { %14238 = vmatprep.mubr.bf16.mxu1 %v1657_v33  ;;  %v1667_v33 = vpack.c.bf16 %v1590_v11, %v1589_v12 }
 0x18c   : > { %14239 = vmatmul.mubr.bf16.gmra.mxu1 %v1658_v48 }
 0x18d   : > { %14242 = vmatprep.mubr.bf16.mxu1 %v1659_v32  ;;  %v1669_v32 = vpack.c.bf16 %v1594_v58, %v1593_v14  ;;  %v1605_v58 = vmax.f32 %v17148_v9, 0.0  ;;  %v1607_v9 = vmax.f32 %v17144_v42, 0.0 }
 0x194   : > { %14243 = vmatmul.mubr.bf16.gmra.mxu1 %v1660_v28 }
 0x195   : > { %14246 = vmatprep.mubr.bf16.mxu1 %v1661_v59 }
 0x19c   : > { %14247 = vmatmul.mubr.bf16.gmra.mxu1 %v1662_v39 }
 0x19d   : > { %14250 = vmatprep.mubr.bf16.mxu1 %v1663_v18  ;;  %v1671_v18 = vpack.c.bf16 %v1598_v30, %v1597_v16 }
 0x1a4   : > { %14251 = vmatmul.mubr.bf16.gmra.mxu1 %v1664_v35 }
 0x1a5   : > { %14254 = vmatprep.mubr.bf16.mxu1 %v1665_v61  ;;  %v1601_v61 = vmax.f32 %v17132_v15, 0.0  ;;  %v1603_v15 = vmax.f32 %v17128_v21, 0.0 }
 0x1ac   : > { %v14160_v17 = vpop.f32.mrf.mxu1  ;;  %14255 = vmatmul.mubr.bf16.gmra.mxu1 %v1666_v55  ;;  %v1673_v55 = vpack.c.bf16 %v1602_v24, %v1601_v61 }
 0x1ad   : > { %14258 = vmatprep.mubr.bf16.mxu1 %v1667_v33  ;;  %v2292_v47 = vmax.f32 %v14160_v17, 0.0 }
 0x1ae   : > { %v1779_v31 = vpop.f32.mrf.mxu1 }
 0x1af   : > { %v2290_v38 = vmax.f32 %v1779_v31, 0.0 }
 0x1b0   : > { %v14161_v44 = vpop.f32.mrf.mxu1 }
 0x1b1   : > { %v2293_v2 = vmax.f32 %v14161_v44, 0.0  ;;  %v1606_v44 = vmax.f32 %v17159_v46, 0.0  ;;  %v1608_v46 = vmax.f32 %v17155_v41, 0.0 }
 0x1b2   : > { %v1782_v48 = vpop.f32.mrf.mxu1 }
 0x1b3   : > { %v2291_v53 = vmax.f32 %v1782_v48, 0.0  ;;  %v2419_v59 = vpack.c.bf16 %v2293_v2, %v2292_v47  ;;  %v1674_v2 = vpack.c.bf16 %v1604_v43, %v1603_v15  ;;  %v1676_v30 = vpack.c.bf16 %v1608_v46, %v1607_v9 }
 0x1b4   : > { %v14164_v34 = vpop.f32.mrf.mxu1  ;;  %14259 = vmatmul.mubr.bf16.gmra.mxu1 %v1668_v62 }
 0x1b5   : > { %v2418_v28 = vpack.c.bf16 %v2291_v53, %v2290_v38  ;;  %14262 = vmatprep.mubr.bf16.mxu1 %v1669_v32  ;;  %v2296_v7 = vmax.f32 %v14164_v34, 0.0  ;;  %v1675_v38 = vpack.c.bf16 %v1606_v44, %v1605_v58 }
 0x1b6   : > { %v1795_v60 = vpop.f32.mrf.mxu1 }
 0x1b7   : > { %14302 = vmatprep.mubr.bf16.mxu0 %v2418_v28  ;;  %v2294_v57 = vmax.f32 %v1795_v60, 0.0  ;;  %v15887_v60 = vld [vmem:[%s19830_s6 + $0x38] sm:$0xff]  }
 0x1b8   : > { %v14165_v22 = vpop.f32.mrf.mxu1  ;;  %14303 = vmatmul.mubr.bf16.vlgmr.msra.gmra.mxu0 %v2419_v59  ;;  %v1610_v59 = vmax.f32 %v17175_v1, 0.0  ;;  %14574 = vmatprep.subr.bf16.mxu0 %v15887_v60  ;;  %v1611_v1 = vmax.f32 %v17163_v40, 0.0 }
 0x1b9   : > { %v2297_v8 = vmax.f32 %v14165_v22, 0.0  ;;  %14575 = vmatpush3.bf16.msra.mxu0 %v15887_v60 }
 0x1ba   : > { %v1798_v39 = vpop.f32.mrf.mxu1  ;;  %v1677_v42 = vpack.c.bf16 %v1610_v59, %v1609_v52 }
 0x1bb   : > { %v2295_v51 = vmax.f32 %v1798_v39, 0.0  ;;  %v2421_v35 = vpack.c.bf16 %v2297_v8, %v2296_v7 }
 0x1bc   : > { %v14168_v25 = vpop.f32.mrf.mxu1  ;;  %14263 = vmatmul.mubr.bf16.gmra.mxu1 %v1670_v27 }
 0x1bd   : > { %v2420_v36 = vpack.c.bf16 %v2295_v51, %v2294_v57  ;;  %14266 = vmatprep.mubr.bf16.mxu1 %v1671_v18  ;;  %v2300_v26 = vmax.f32 %v14168_v25, 0.0  ;;  %v1612_v57 = vmax.f32 %v17171_v23, 0.0  ;;  %v1613_v25 = vmax.f32 %v17183_v49, 0.0 }
 0x1be   : > { %v1811_v45 = vpop.f32.mrf.mxu1  ;;  %v1615_v23 = vmax.f32 %v17179_v56, 0.0  ;;  %v1616_v49 = vmax.f32 %v17190_v20, 0.0  ;;  %v15888_v56 = vld [vmem:[%s19829_s5] sm:$0xff]  }
 0x1bf   : > { %14306 = vmatprep.mubr.bf16.mxu0 %v2420_v36  ;;  %v2298_v33 = vmax.f32 %v1811_v45, 0.0  ;;  %v1614_v36 = vmax.f32 %v17194_v37, 0.0  ;;  %v1678_v0 = vpack.c.bf16 %v1612_v57, %v1611_v1  ;;  %14444 = vmatprep.subr.bf16.mxu1 %v15888_v56 }
 0x1c0   : > { %v14169_v54 = vpop.f32.mrf.mxu1  ;;  %14307 = vmatmul.mubr.bf16.gmra.mxu0 %v2421_v35  ;;  %14445 = vmatpush3.bf16.msra.mxu1 %v15888_v56 }
 0x1c1   : > { %v2301_v12 = vmax.f32 %v14169_v54, 0.0  ;;  %v1679_v61 = vpack.c.bf16 %v1614_v36, %v1613_v25 }
 0x1c2   : > { %v1814_v11 = vpop.f32.mrf.mxu1 }
 0x1c3   : > { %v2299_v17 = vmax.f32 %v1814_v11, 0.0  ;;  %v2423_v31 = vpack.c.bf16 %v2301_v12, %v2300_v26 }
 0x1c4   : > { %v14172_v4 = vpop.f32.mrf.mxu1  ;;  %14267 = vmatmul.mubr.bf16.gmra.mxu1 %v1672_v50 }
 0x1c5   : > { %v2422_v29 = vpack.c.bf16 %v2299_v17, %v2298_v33  ;;  %14270 = vmatprep.mubr.bf16.mxu1 %v1673_v55  ;;  %v2304_v21 = vmax.f32 %v14172_v4, 0.0  ;;  %v1680_v33 = vpack.c.bf16 %v1616_v49, %v1615_v23 }
 0x1c6   : > { %v1827_v14 = vpop.f32.mrf.mxu1 }
 0x1c7   : > { %14310 = vmatprep.mubr.bf16.mxu0 %v2422_v29  ;;  %v2302_v53 = vmax.f32 %v1827_v14, 0.0 }
 0x1c8   : > { %v14173_v62 = vpop.f32.mrf.mxu1  ;;  %14311 = vmatmul.mubr.bf16.gmra.mxu0 %v2423_v31 }
 0x1c9   : > { %v2305_v48 = vmax.f32 %v14173_v62, 0.0 }
 0x1ca   : > { %v1830_v32 = vpop.f32.mrf.mxu1 }
 0x1cb   : > { %v2303_v47 = vmax.f32 %v1830_v32, 0.0  ;;  %v2425_v28 = vpack.c.bf16 %v2305_v48, %v2304_v21  ;;  %v15889_v21 = vld [vmem:[%s19830_s6 + $0x30] sm:$0xff]  }
 0x1cc   : > { %v14176_v34 = vpop.f32.mrf.mxu1  ;;  %14271 = vmatmul.mubr.bf16.gmra.mxu1 %v1674_v2  ;;  %14576 = vmatprep.subr.bf16.mxu0 %v15889_v21 }
 0x1cd   : > { %v2424_v5 = vpack.c.bf16 %v2303_v47, %v2302_v53  ;;  %14274 = vmatprep.mubr.bf16.mxu1 %v1675_v38  ;;  %v2308_v39 = vmax.f32 %v14176_v34, 0.0  ;;  %14577 = vmatpush3.bf16.msra.mxu0 %v15889_v21 }
 0x1ce   : > { %v1843_v6 = vpop.f32.mrf.mxu1 }
 0x1cf   : > { %14314 = vmatprep.mubr.bf16.mxu0 %v2424_v5  ;;  %v2306_v41 = vmax.f32 %v1843_v6, 0.0 }
 0x1d0   : > { %v14177_v16 = vpop.f32.mrf.mxu1  ;;  %14315 = vmatmul.mubr.bf16.gmra.mxu0 %v2425_v28 }
 0x1d1   : > { %v2309_v22 = vmax.f32 %v14177_v16, 0.0 }
 0x1d2   : > { %v1846_v27 = vpop.f32.mrf.mxu1 }
 0x1d3   : > { %v2307_v8 = vmax.f32 %v1846_v27, 0.0  ;;  %v2427_v51 = vpack.c.bf16 %v2309_v22, %v2308_v39 }
 0x1d4   : > { %v14180_v18 = vpop.f32.mrf.mxu1  ;;  %14275 = vmatmul.mubr.bf16.gmra.mxu1 %v1676_v30 }
 0x1d5   : > { %v2426_v19 = vpack.c.bf16 %v2307_v8, %v2306_v41  ;;  %14278 = vmatprep.mubr.bf16.mxu1 %v1677_v42  ;;  %v2312_v50 = vmax.f32 %v14180_v18, 0.0 }
 0x1d6   : > { %v1859_v7 = vpop.f32.mrf.mxu1 }
 0x1d7   : > { %14318 = vmatprep.mubr.bf16.mxu0 %v2426_v19  ;;  %v2310_v24 = vmax.f32 %v1859_v7, 0.0 }
 0x1d8   : > { %v14181_v13 = vpop.f32.mrf.mxu1  ;;  %14319 = vmatmul.mubr.bf16.gmra.mxu0 %v2427_v51 }
 0x1d9   : > { %v2313_v35 = vmax.f32 %v14181_v13, 0.0 }
 0x1da   : > { %v1862_v45 = vpop.f32.mrf.mxu1 }
 0x1db   : > { %v2311_v54 = vmax.f32 %v1862_v45, 0.0  ;;  %v2429_v11 = vpack.c.bf16 %v2313_v35, %v2312_v50 }
 0x1dc   : > { %v14184_v12 = vpop.f32.mrf.mxu1  ;;  %14279 = vmatmul.mubr.bf16.gmra.mxu1 %v1678_v0 }
 0x1dd   : > { %v2428_v40 = vpack.c.bf16 %v2311_v54, %v2310_v24  ;;  %14282 = vmatprep.mubr.bf16.mxu1 %v1679_v61  ;;  %v2316_v63 = vmax.f32 %v14184_v12, 0.0 }
 0x1de   : > { %v1875_v37 = vpop.f32.mrf.mxu1 }
 0x1df   : > { %14322 = vmatprep.mubr.bf16.mxu0 %v2428_v40  ;;  %v2314_v4 = vmax.f32 %v1875_v37, 0.0 }
 0x1e0   : > { %v14185_v55 = vpop.f32.mrf.mxu1  ;;  %14323 = vmatmul.mubr.bf16.gmra.mxu0 %v2429_v11 }
 0x1e1   : > { %v2317_v17 = vmax.f32 %v14185_v55, 0.0 }
 0x1e2   : > { %v1878_v26 = vpop.f32.mrf.mxu1 }
 0x1e3   : > { %v2315_v29 = vmax.f32 %v1878_v26, 0.0  ;;  %v2431_v31 = vpack.c.bf16 %v2317_v17, %v2316_v63  ;;  %v15890_v17 = vld [vmem:[%s19830_s6 + $0x28] sm:$0xff]  }
 0x1e4   : > { %v14188_v15 = vpop.f32.mrf.mxu1  ;;  %14283 = vmatmul.mubr.bf16.gmra.mxu1 %v1680_v33  ;;  %14578 = vmatprep.subr.bf16.mxu0 %v15890_v17 }
 0x1e5   : > { %v2430_v43 = vpack.c.bf16 %v2315_v29, %v2314_v4  ;;  %v2320_v48 = vmax.f32 %v14188_v15, 0.0  ;;  %14579 = vmatpush3.bf16.msra.mxu0 %v15890_v17 }
 0x1e6   : > { %v1891_v20 = vpop.f32.mrf.mxu1 }
 0x1e7   : > { %14326 = vmatprep.mubr.bf16.mxu0 %v2430_v43  ;;  %v2318_v62 = vmax.f32 %v1891_v20, 0.0 }
 0x1e8   : > { %v14189_v14 = vpop.f32.mrf.mxu1  ;;  %14327 = vmatmul.mubr.bf16.gmra.mxu0 %v2431_v31 }
 0x1e9   : > { %v2321_v58 = vmax.f32 %v14189_v14, 0.0 }
 0x1ea   : > { %v1894_v44 = vpop.f32.mrf.mxu1 }
 0x1eb   : > { %v2319_v2 = vmax.f32 %v1894_v44, 0.0  ;;  %v2433_v53 = vpack.c.bf16 %v2321_v58, %v2320_v48 }
 0x1ec   : > { %v14192_v32 = vpop.f32.mrf.mxu1 }
 0x1ed   : > { %v2432_v38 = vpack.c.bf16 %v2319_v2, %v2318_v62  ;;  %v2324_v6 = vmax.f32 %v14192_v32, 0.0 }
 0x1ee   : > { %v1907_v47 = vpop.f32.mrf.mxu1 }
 0x1ef   : > { %14330 = vmatprep.mubr.bf16.mxu0 %v2432_v38  ;;  %v2322_v46 = vmax.f32 %v1907_v47, 0.0 }
 0x1f0   : > { %v14193_v34 = vpop.f32.mrf.mxu1  ;;  %14331 = vmatmul.mubr.bf16.gmra.mxu0 %v2433_v53 }
 0x1f1   : > { %v2325_v5 = vmax.f32 %v14193_v34, 0.0 }
 0x1f2   : > { %v1910_v9 = vpop.f32.mrf.mxu1 }
 0x1f3   : > { %v2323_v28 = vmax.f32 %v1910_v9, 0.0  ;;  %v2435_v60 = vpack.c.bf16 %v2325_v5, %v2324_v6 }
 0x1f4   : > { %v14196_v52 = vpop.f32.mrf.mxu1 }
 0x1f5   : > { %v2434_v59 = vpack.c.bf16 %v2323_v28, %v2322_v46  ;;  %v2328_v8 = vmax.f32 %v14196_v52, 0.0 }
 0x1f6   : > { %v1923_v16 = vpop.f32.mrf.mxu1 }
 0x1f7   : > { %14334 = vmatprep.mubr.bf16.mxu0 %v2434_v59  ;;  %v2326_v42 = vmax.f32 %v1923_v16, 0.0 }
 0x1f8   : > { %v14197_v30 = vpop.f32.mrf.mxu1  ;;  %14335 = vmatmul.mubr.bf16.gmra.mxu0 %v2435_v60 }
 0x1f9   : > { %v2329_v22 = vmax.f32 %v14197_v30, 0.0 }
 0x1fa   : > { %v1926_v27 = vpop.f32.mrf.mxu1 }
 0x1fb   : > { %v2327_v41 = vmax.f32 %v1926_v27, 0.0  ;;  %v2437_v19 = vpack.c.bf16 %v2329_v22, %v2328_v8 }
 0x1fc   : > { %v14200_v39 = vpop.f32.mrf.mxu1 }
 0x1fd   : > { %v2436_v18 = vpack.c.bf16 %v2327_v41, %v2326_v42  ;;  %v2332_v13 = vmax.f32 %v14200_v39, 0.0 }
 0x1fe   : > { %v1939_v1 = vpop.f32.mrf.mxu1 }
 0x1ff   : > { %14338 = vmatprep.mubr.bf16.mxu0 %v2436_v18  ;;  %v2330_v25 = vmax.f32 %v1939_v1, 0.0 }
 0x200   : > { %v14201_v57 = vpop.f32.mrf.mxu1  ;;  %14339 = vmatmul.mubr.bf16.gmra.mxu0 %v2437_v19 }
 0x201   : > { %v2333_v51 = vmax.f32 %v14201_v57, 0.0  ;;  %v15891_v57 = vld [vmem:[%s19830_s6 + $0x20] sm:$0xff]  }
 0x202   : > { %v1942_v7 = vpop.f32.mrf.mxu1  ;;  %14580 = vmatprep.subr.bf16.mxu0 %v15891_v57 }
 0x203   : > { %v2331_v36 = vmax.f32 %v1942_v7, 0.0  ;;  %v2439_v45 = vpack.c.bf16 %v2333_v51, %v2332_v13  ;;  %14581 = vmatpush3.bf16.msra.mxu0 %v15891_v57 }
 0x204   : > { %v14204_v0 = vpop.f32.mrf.mxu1 }
 0x205   : > { %v2438_v35 = vpack.c.bf16 %v2331_v36, %v2330_v25  ;;  %v2336_v23 = vmax.f32 %v14204_v0, 0.0 }
 0x206   : > { %v1955_v61 = vpop.f32.mrf.mxu1 }
 0x207   : > { %14342 = vmatprep.mubr.bf16.mxu0 %v2438_v35  ;;  %v2334_v12 = vmax.f32 %v1955_v61, 0.0 }
 0x208   : > { %v14205_v24 = vpop.f32.mrf.mxu1  ;;  %14343 = vmatmul.mubr.bf16.gmra.mxu0 %v2439_v45 }
 0x209   : > { %v2337_v54 = vmax.f32 %v14205_v24, 0.0 }
 0x20a   : > { %v1958_v50 = vpop.f32.mrf.mxu1 }
 0x20b   : > { %v2335_v40 = vmax.f32 %v1958_v50, 0.0  ;;  %v2441_v37 = vpack.c.bf16 %v2337_v54, %v2336_v23 }
 0x20c   : > { %v14208_v49 = vpop.f32.mrf.mxu1 }
 0x20d   : > { %v2440_v11 = vpack.c.bf16 %v2335_v40, %v2334_v12  ;;  %v2340_v15 = vmax.f32 %v14208_v49, 0.0 }
 0x20e   : > { %v1971_v55 = vpop.f32.mrf.mxu1 }
 0x20f   : > { %14346 = vmatprep.mubr.bf16.mxu0 %v2440_v11  ;;  %v2338_v29 = vmax.f32 %v1971_v55, 0.0 }
 0x210   : > { %v14209_v33 = vpop.f32.mrf.mxu1  ;;  %14347 = vmatmul.mubr.bf16.gmra.mxu0 %v2441_v37 }
 0x211   : > { %v2341_v26 = vmax.f32 %v14209_v33, 0.0 }
 0x212   : > { %v1974_v4 = vpop.f32.mrf.mxu1 }
 0x213   : > { %v2339_v63 = vmax.f32 %v1974_v4, 0.0  ;;  %v2443_v31 = vpack.c.bf16 %v2341_v26, %v2340_v15 }
 0x214   : > { %v14212_v43 = vpop.f32.mrf.mxu1 }
 0x215   : > { %v2442_v56 = vpack.c.bf16 %v2339_v63, %v2338_v29  ;;  %v2344_v48 = vmax.f32 %v14212_v43, 0.0 }
 0x216   : > { %v1987_v20 = vpop.f32.mrf.mxu1 }
 0x217   : > { %14350 = vmatprep.mubr.bf16.mxu0 %v2442_v56  ;;  %v2342_v62 = vmax.f32 %v1987_v20, 0.0 }
 0x218   : > { %v14213_v14 = vpop.f32.mrf.mxu1  ;;  %14351 = vmatmul.mubr.bf16.gmra.mxu0 %v2443_v31 }
 0x219   : > { %v2345_v58 = vmax.f32 %v14213_v14, 0.0 }
 0x21a   : > { %v1990_v44 = vpop.f32.mrf.mxu1 }
 0x21b   : > { %v2343_v2 = vmax.f32 %v1990_v44, 0.0  ;;  %v2445_v53 = vpack.c.bf16 %v2345_v58, %v2344_v48 }
 0x21c   : > { %v14216_v32 = vpop.f32.mrf.mxu1 }
 0x21d   : > { %v2444_v38 = vpack.c.bf16 %v2343_v2, %v2342_v62  ;;  %v2348_v28 = vmax.f32 %v14216_v32, 0.0 }
 0x21e   : > { %v2003_v47 = vpop.f32.mrf.mxu1 }
 0x21f   : > { %14354 = vmatprep.mubr.bf16.mxu0 %v2444_v38  ;;  %v2346_v9 = vmax.f32 %v2003_v47, 0.0 }
 0x220   : > { %v14217_v21 = vpop.f32.mrf.mxu1  ;;  %14355 = vmatmul.mubr.bf16.gmra.mxu0 %v2445_v53 }
 0x221   : > { %v2349_v34 = vmax.f32 %v14217_v21, 0.0  ;;  %v15892_v21 = vld [vmem:[%s19830_s6 + $0x18] sm:$0xff]  }
 0x222   : > { %v2006_v5 = vpop.f32.mrf.mxu1  ;;  %14582 = vmatprep.subr.bf16.mxu0 %v15892_v21 }
 0x223   : > { %v2347_v46 = vmax.f32 %v2006_v5, 0.0  ;;  %v2447_v59 = vpack.c.bf16 %v2349_v34, %v2348_v28  ;;  %14583 = vmatpush3.bf16.msra.mxu0 %v15892_v21 }
 0x224   : > { %v14220_v6 = vpop.f32.mrf.mxu1 }
 0x225   : > { %v2446_v52 = vpack.c.bf16 %v2347_v46, %v2346_v9  ;;  %v2352_v41 = vmax.f32 %v14220_v6, 0.0 }
 0x226   : > { %v2019_v60 = vpop.f32.mrf.mxu1 }
 0x227   : > { %14358 = vmatprep.mubr.bf16.mxu0 %v2446_v52  ;;  %v2350_v27 = vmax.f32 %v2019_v60, 0.0 }
 0x228   : > { %v14221_v16 = vpop.f32.mrf.mxu1  ;;  %14359 = vmatmul.mubr.bf16.gmra.mxu0 %v2447_v59 }
 0x229   : > { %v2353_v30 = vmax.f32 %v14221_v16, 0.0 }
 0x22a   : > { %v2022_v22 = vpop.f32.mrf.mxu1 }
 0x22b   : > { %v2351_v42 = vmax.f32 %v2022_v22, 0.0  ;;  %v2449_v18 = vpack.c.bf16 %v2353_v30, %v2352_v41 }
 0x22c   : > { %v14224_v8 = vpop.f32.mrf.mxu1 }
 0x22d   : > { %v2448_v39 = vpack.c.bf16 %v2351_v42, %v2350_v27  ;;  %v2356_v13 = vmax.f32 %v14224_v8, 0.0 }
 0x22e   : > { %v2035_v19 = vpop.f32.mrf.mxu1 }
 0x22f   : > { %14362 = vmatprep.mubr.bf16.mxu0 %v2448_v39  ;;  %v2354_v25 = vmax.f32 %v2035_v19, 0.0 }
 0x230   : > { %v14225_v1 = vpop.f32.mrf.mxu1  ;;  %14363 = vmatmul.mubr.bf16.gmra.mxu0 %v2449_v18 }
 0x231   : > { %v2357_v51 = vmax.f32 %v14225_v1, 0.0 }
 0x232   : > { %v2038_v7 = vpop.f32.mrf.mxu1 }
 0x233   : > { %v2355_v36 = vmax.f32 %v2038_v7, 0.0  ;;  %v2451_v45 = vpack.c.bf16 %v2357_v51, %v2356_v13 }
 0x234   : > { %v14228_v0 = vpop.f32.mrf.mxu1 }
 0x235   : > { %v2450_v35 = vpack.c.bf16 %v2355_v36, %v2354_v25  ;;  %v2360_v23 = vmax.f32 %v14228_v0, 0.0 }
 0x236   : > { %v2051_v61 = vpop.f32.mrf.mxu1 }
 0x237   : > { %14366 = vmatprep.mubr.bf16.mxu0 %v2450_v35  ;;  %v2358_v12 = vmax.f32 %v2051_v61, 0.0 }
 0x238   : > { %v14229_v24 = vpop.f32.mrf.mxu1  ;;  %14367 = vmatmul.mubr.bf16.gmra.mxu0 %v2451_v45 }
 0x239   : > { %v2361_v54 = vmax.f32 %v14229_v24, 0.0 }
 0x23a   : > { %v2054_v50 = vpop.f32.mrf.mxu1 }
 0x23b   : > { %v2359_v40 = vmax.f32 %v2054_v50, 0.0  ;;  %v2453_v37 = vpack.c.bf16 %v2361_v54, %v2360_v23 }
 0x23c   : > { %v14232_v49 = vpop.f32.mrf.mxu1 }
 0x23d   : > { %v2452_v11 = vpack.c.bf16 %v2359_v40, %v2358_v12  ;;  %v2364_v63 = vmax.f32 %v14232_v49, 0.0 }
 0x23e   : > { %v2067_v55 = vpop.f32.mrf.mxu1 }
 0x23f   : > { %14370 = vmatprep.mubr.bf16.mxu0 %v2452_v11  ;;  %v2362_v4 = vmax.f32 %v2067_v55, 0.0 }
 0x240   : > { %v14233_v33 = vpop.f32.mrf.mxu1  ;;  %14371 = vmatmul.mubr.bf16.gmra.mxu0 %v2453_v37 }
 0x241   : > { %v2365_v17 = vmax.f32 %v14233_v33, 0.0  ;;  %v15893_v33 = vld [vmem:[%s19830_s6 + $0x10] sm:$0xff]  }
 0x242   : > { %v2070_v26 = vpop.f32.mrf.mxu1  ;;  %14584 = vmatprep.subr.bf16.mxu0 %v15893_v33 }
 0x243   : > { %v2363_v29 = vmax.f32 %v2070_v26, 0.0  ;;  %v2455_v56 = vpack.c.bf16 %v2365_v17, %v2364_v63  ;;  %14585 = vmatpush3.bf16.msra.mxu0 %v15893_v33 }
 0x244   : > { %v14236_v15 = vpop.f32.mrf.mxu1 }
 0x245   : > { %v2454_v43 = vpack.c.bf16 %v2363_v29, %v2362_v4  ;;  %v2368_v2 = vmax.f32 %v14236_v15, 0.0 }
 0x246   : > { %v2083_v31 = vpop.f32.mrf.mxu1 }
 0x247   : > { %14374 = vmatprep.mubr.bf16.mxu0 %v2454_v43  ;;  %v2366_v44 = vmax.f32 %v2083_v31, 0.0 }
 0x248   : > { %v14237_v20 = vpop.f32.mrf.mxu1  ;;  %14375 = vmatmul.mubr.bf16.gmra.mxu0 %v2455_v56 }
 0x249   : > { %v2369_v14 = vmax.f32 %v14237_v20, 0.0 }
 0x24a   : > { %v2086_v58 = vpop.f32.mrf.mxu1 }
 0x24b   : > { %v2367_v62 = vmax.f32 %v2086_v58, 0.0  ;;  %v2457_v38 = vpack.c.bf16 %v2369_v14, %v2368_v2 }
 0x24c   : > { %v14240_v48 = vpop.f32.mrf.mxu1 }
 0x24d   : > { %v2456_v32 = vpack.c.bf16 %v2367_v62, %v2366_v44  ;;  %v2372_v28 = vmax.f32 %v14240_v48, 0.0 }
 0x24e   : > { %v2099_v53 = vpop.f32.mrf.mxu1 }
 0x24f   : > { %14378 = vmatprep.mubr.bf16.mxu0 %v2456_v32  ;;  %v2370_v9 = vmax.f32 %v2099_v53, 0.0 }
 0x250   : > { %v14241_v47 = vpop.f32.mrf.mxu1  ;;  %14379 = vmatmul.mubr.bf16.gmra.mxu0 %v2457_v38 }
 0x251   : > { %v2373_v34 = vmax.f32 %v14241_v47, 0.0 }
 0x252   : > { %v2102_v5 = vpop.f32.mrf.mxu1 }
 0x253   : > { %v2371_v46 = vmax.f32 %v2102_v5, 0.0  ;;  %v2459_v59 = vpack.c.bf16 %v2373_v34, %v2372_v28 }
 0x254   : > { %v14244_v6 = vpop.f32.mrf.mxu1 }
 0x255   : > { %v2458_v52 = vpack.c.bf16 %v2371_v46, %v2370_v9  ;;  %v2376_v41 = vmax.f32 %v14244_v6, 0.0 }
 0x256   : > { %v2115_v60 = vpop.f32.mrf.mxu1 }
 0x257   : > { %14382 = vmatprep.mubr.bf16.mxu0 %v2458_v52  ;;  %v2374_v27 = vmax.f32 %v2115_v60, 0.0 }
 0x258   : > { %v14245_v16 = vpop.f32.mrf.mxu1  ;;  %14383 = vmatmul.mubr.bf16.gmra.mxu0 %v2459_v59 }
 0x259   : > { %v2377_v30 = vmax.f32 %v14245_v16, 0.0 }
 0x25a   : > { %v2118_v22 = vpop.f32.mrf.mxu1 }
 0x25b   : > { %v2375_v42 = vmax.f32 %v2118_v22, 0.0  ;;  %v2461_v18 = vpack.c.bf16 %v2377_v30, %v2376_v41 }
 0x25c   : > { %v14248_v8 = vpop.f32.mrf.mxu1 }
 0x25d   : > { %v2460_v39 = vpack.c.bf16 %v2375_v42, %v2374_v27  ;;  %v2380_v36 = vmax.f32 %v14248_v8, 0.0 }
 0x25e   : > { %v2131_v19 = vpop.f32.mrf.mxu1 }
 0x25f   : > { %14386 = vmatprep.mubr.bf16.mxu0 %v2460_v39  ;;  %v2378_v7 = vmax.f32 %v2131_v19, 0.0 }
 0x260   : > { %v14249_v1 = vpop.f32.mrf.mxu1  ;;  %14387 = vmatmul.mubr.bf16.gmra.mxu0 %v2461_v18 }
 0x261   : > { %v2381_v57 = vmax.f32 %v14249_v1, 0.0 }
 0x262   : > { %v2134_v51 = vpop.f32.mrf.mxu1 }
 0x263   : > { %v2379_v25 = vmax.f32 %v2134_v51, 0.0  ;;  %v2463_v35 = vpack.c.bf16 %v2381_v57, %v2380_v36 }
 0x264   : > { %v14252_v13 = vpop.f32.mrf.mxu1 }
 0x265   : > { %v2462_v0 = vpack.c.bf16 %v2379_v25, %v2378_v7  ;;  %v2384_v40 = vmax.f32 %v14252_v13, 0.0 }
 0x266   : > { %v2147_v45 = vpop.f32.mrf.mxu1 }
 0x267   : > { %14390 = vmatprep.mubr.bf16.mxu0 %v2462_v0  ;;  %v2382_v50 = vmax.f32 %v2147_v45, 0.0 }
 0x268   : > { %v14253_v61 = vpop.f32.mrf.mxu1  ;;  %14391 = vmatmul.mubr.bf16.gmra.mxu0 %v2463_v35 }
 0x269   : > { %v2385_v24 = vmax.f32 %v14253_v61, 0.0 }
 0x26a   : > { %v2150_v54 = vpop.f32.mrf.mxu1 }
 0x26b   : > { %v2383_v12 = vmax.f32 %v2150_v54, 0.0  ;;  %v2465_v11 = vpack.c.bf16 %v2385_v24, %v2384_v40 }
 0x26c   : > { %v14256_v23 = vpop.f32.mrf.mxu1 }
 0x26d   : > { %v2464_v49 = vpack.c.bf16 %v2383_v12, %v2382_v50  ;;  %v2388_v63 = vmax.f32 %v14256_v23, 0.0 }
 0x26e   : > { %v2163_v37 = vpop.f32.mrf.mxu1 }
 0x26f   : > { %14394 = vmatprep.mubr.bf16.mxu0 %v2464_v49  ;;  %v2386_v4 = vmax.f32 %v2163_v37, 0.0 }
 0x270   : > { %v14257_v55 = vpop.f32.mrf.mxu1  ;;  %14395 = vmatmul.mubr.bf16.gmra.mxu0 %v2465_v11 }
 0x271   : > { %v2389_v17 = vmax.f32 %v14257_v55, 0.0 }
 0x272   : > { %v2166_v26 = vpop.f32.mrf.mxu1 }
 0x273   : > { %v2387_v29 = vmax.f32 %v2166_v26, 0.0  ;;  %v2467_v56 = vpack.c.bf16 %v2389_v17, %v2388_v63 }
 0x274   : > { %v14260_v15 = vpop.f32.mrf.mxu1 }
 0x275   : > { %v2466_v43 = vpack.c.bf16 %v2387_v29, %v2386_v4  ;;  %v2392_v32 = vmax.f32 %v14260_v15, 0.0 }
 0x276   : > { %v2179_v31 = vpop.f32.mrf.mxu1 }
 0x277   : > { %14398 = vmatprep.mubr.bf16.mxu0 %v2466_v43  ;;  %v2390_v2 = vmax.f32 %v2179_v31, 0.0  ;;  %v15894_v31 = vld [vmem:[%s19830_s6 + $0x8] sm:$0xff]  }
 0x278   : > { %v14261_v20 = vpop.f32.mrf.mxu1  ;;  %v14304_v14 = vpop.f32.mrf.mxu0  ;;  %14399 = vmatmul.mubr.bf16.gmra.mxu0 %v2467_v56  ;;  %14586 = vmatprep.subr.bf16.mxu0 %v15894_v31 }
 0x279   : > { %v2393_v58 = vmax.f32 %v14261_v20, 0.0  ;;  %v3093_v6 = vmax.f32 %v14304_v14, 0.0  ;;  %14587 = vmatpush3.bf16.msra.mxu0 %v15894_v31 }
 0x27a   : > { %v2182_v44 = vpop.f32.mrf.mxu1  ;;  %v2580_v62 = vpop.f32.mrf.mxu0 }
 0x27b   : > { %v2391_v48 = vmax.f32 %v2182_v44, 0.0  ;;  %v2469_v21 = vpack.c.bf16 %v2393_v58, %v2392_v32  ;;  %v3091_v46 = vmax.f32 %v2580_v62, 0.0 }
 0x27c   : > { %v14264_v38 = vpop.f32.mrf.mxu1  ;;  %v14305_v53 = vpop.f32.mrf.mxu0 }
 0x27d   : > { %v2468_v47 = vpack.c.bf16 %v2391_v48, %v2390_v2  ;;  %v3094_v34 = vmax.f32 %v14305_v53, 0.0  ;;  %v2396_v8 = vmax.f32 %v14264_v38, 0.0 }
 0x27e   : > { %v2195_v5 = vpop.f32.mrf.mxu1  ;;  %v2583_v9 = vpop.f32.mrf.mxu0 }
 0x27f   : > { %v3092_v28 = vmax.f32 %v2583_v9, 0.0  ;;  %14402 = vmatprep.mubr.bf16.mxu0 %v2468_v47  ;;  %v3220_v16 = vpack.c.bf16 %v3094_v34, %v3093_v6  ;;  %v2394_v42 = vmax.f32 %v2195_v5, 0.0 }
 0x280   : > { %v14265_v52 = vpop.f32.mrf.mxu1  ;;  %v14308_v59 = vpop.f32.mrf.mxu0  ;;  %14403 = vmatmul.mubr.bf16.gmra.mxu0 %v2469_v21 }
 0x281   : > { %v3219_v60 = vpack.c.bf16 %v3092_v28, %v3091_v46  ;;  %v2397_v30 = vmax.f32 %v14265_v52, 0.0  ;;  %v3097_v13 = vmax.f32 %v14308_v59, 0.0 }
 0x282   : > { %v2198_v22 = vpop.f32.mrf.mxu1  ;;  %v2596_v27 = vpop.f32.mrf.mxu0 }
 0x283   : > { %v2395_v41 = vmax.f32 %v2198_v22, 0.0  ;;  %14446 = vmatprep.mubr.bf16.mxu1 %v3219_v60  ;;  %v2471_v1 = vpack.c.bf16 %v2397_v30, %v2396_v8  ;;  %v3095_v25 = vmax.f32 %v2596_v27, 0.0 }
 0x284   : > { %v14268_v39 = vpop.f32.mrf.mxu1  ;;  %v14309_v18 = vpop.f32.mrf.mxu0  ;;  %14447 = vmatmul.mubr.bf16.vlgmr.msra.gmra.mxu1 %v3220_v16 }
 0x285   : > { %v2470_v19 = vpack.c.bf16 %v2395_v41, %v2394_v42  ;;  %v3098_v57 = vmax.f32 %v14309_v18, 0.0  ;;  %v2400_v23 = vmax.f32 %v14268_v39, 0.0 }
 0x286   : > { %v2211_v51 = vpop.f32.mrf.mxu1  ;;  %v2599_v7 = vpop.f32.mrf.mxu0 }
 0x287   : > { %v3096_v36 = vmax.f32 %v2599_v7, 0.0  ;;  %14406 = vmatprep.mubr.bf16.mxu0 %v2470_v19  ;;  %v3222_v61 = vpack.c.bf16 %v3098_v57, %v3097_v13  ;;  %v2398_v12 = vmax.f32 %v2211_v51, 0.0 }
 0x288   : > { %v14269_v0 = vpop.f32.mrf.mxu1  ;;  %v14312_v35 = vpop.f32.mrf.mxu0  ;;  %14407 = vmatmul.mubr.bf16.gmra.mxu0 %v2471_v1 }
 0x289   : > { %v3221_v45 = vpack.c.bf16 %v3096_v36, %v3095_v25  ;;  %v2401_v24 = vmax.f32 %v14269_v0, 0.0  ;;  %v3101_v63 = vmax.f32 %v14312_v35, 0.0  ;;  %v15895_v36 = vld [vmem:[%s19832_s8 + $0x38] sm:$0xff]  }
 0x28a   : > { %v2214_v54 = vpop.f32.mrf.mxu1  ;;  %v2612_v50 = vpop.f32.mrf.mxu0  ;;  %14718 = vmatprep.subr.bf16.mxu1 %v15895_v36 }
 0x28b   : > { %v2399_v40 = vmax.f32 %v2214_v54, 0.0  ;;  %14450 = vmatprep.mubr.bf16.mxu1 %v3221_v45  ;;  %v2473_v55 = vpack.c.bf16 %v2401_v24, %v2400_v23  ;;  %v3099_v4 = vmax.f32 %v2612_v50, 0.0  ;;  %14719 = vmatpush3.bf16.msra.mxu1 %v15895_v36 }
 0x28c   : > { %v14272_v49 = vpop.f32.mrf.mxu1  ;;  %v14313_v11 = vpop.f32.mrf.mxu0  ;;  %14451 = vmatmul.mubr.bf16.gmra.mxu1 %v3222_v61 }
 0x28d   : > { %v2472_v37 = vpack.c.bf16 %v2399_v40, %v2398_v12  ;;  %v3102_v33 = vmax.f32 %v14313_v11, 0.0  ;;  %v2404_v48 = vmax.f32 %v14272_v49, 0.0 }
 0x28e   : > { %v2227_v17 = vpop.f32.mrf.mxu1  ;;  %v2615_v26 = vpop.f32.mrf.mxu0 }
 0x28f   : > { %v3100_v29 = vmax.f32 %v2615_v26, 0.0  ;;  %14410 = vmatprep.mubr.bf16.mxu0 %v2472_v37  ;;  %v3224_v20 = vpack.c.bf16 %v3102_v33, %v3101_v63  ;;  %v2402_v62 = vmax.f32 %v2227_v17, 0.0 }
 0x290   : > { %v14273_v15 = vpop.f32.mrf.mxu1  ;;  %v14316_v43 = vpop.f32.mrf.mxu0  ;;  %14411 = vmatmul.mubr.bf16.gmra.mxu0 %v2473_v55 }
 0x291   : > { %v3223_v56 = vpack.c.bf16 %v3100_v29, %v3099_v4  ;;  %v2405_v14 = vmax.f32 %v14273_v15, 0.0  ;;  %v3105_v28 = vmax.f32 %v14316_v43, 0.0 }
 0x292   : > { %v2230_v58 = vpop.f32.mrf.mxu1  ;;  %v2628_v44 = vpop.f32.mrf.mxu0 }
 0x293   : > { %v2403_v2 = vmax.f32 %v2230_v58, 0.0  ;;  %14454 = vmatprep.mubr.bf16.mxu1 %v3223_v56  ;;  %v2475_v47 = vpack.c.bf16 %v2405_v14, %v2404_v48  ;;  %v3103_v9 = vmax.f32 %v2628_v44, 0.0 }
 0x294   : > { %v14276_v32 = vpop.f32.mrf.mxu1  ;;  %v14317_v38 = vpop.f32.mrf.mxu0  ;;  %14455 = vmatmul.mubr.bf16.gmra.mxu1 %v3224_v20 }
 0x295   : > { %v2474_v53 = vpack.c.bf16 %v2403_v2, %v2402_v62  ;;  %v3106_v21 = vmax.f32 %v14317_v38, 0.0  ;;  %v2408_v41 = vmax.f32 %v14276_v32, 0.0 }
 0x296   : > { %v2243_v34 = vpop.f32.mrf.mxu1  ;;  %v2631_v5 = vpop.f32.mrf.mxu0 }
 0x297   : > { %v3104_v46 = vmax.f32 %v2631_v5, 0.0  ;;  %14414 = vmatprep.mubr.bf16.mxu0 %v2474_v53  ;;  %v3226_v60 = vpack.c.bf16 %v3106_v21, %v3105_v28  ;;  %v2406_v27 = vmax.f32 %v2243_v34, 0.0  ;;  %v15896_v28 = vld [vmem:[%s19830_s6] sm:$0xff]  }
 0x298   : > { %v14277_v6 = vpop.f32.mrf.mxu1  ;;  %v14320_v52 = vpop.f32.mrf.mxu0  ;;  %14415 = vmatmul.mubr.bf16.gmra.mxu0 %v2475_v47  ;;  %14588 = vmatprep.subr.bf16.mxu0 %v15896_v28 }
 0x299   : > { %v3225_v59 = vpack.c.bf16 %v3104_v46, %v3103_v9  ;;  %v2409_v16 = vmax.f32 %v14277_v6, 0.0  ;;  %v3109_v13 = vmax.f32 %v14320_v52, 0.0  ;;  %14589 = vmatpush3.bf16.msra.mxu0 %v15896_v28 }
 0x29a   : > { %v2246_v30 = vpop.f32.mrf.mxu1  ;;  %v2644_v22 = vpop.f32.mrf.mxu0 }
 0x29b   : > { %v2407_v42 = vmax.f32 %v2246_v30, 0.0  ;;  %14458 = vmatprep.mubr.bf16.mxu1 %v3225_v59  ;;  %v2477_v19 = vpack.c.bf16 %v2409_v16, %v2408_v41  ;;  %v3107_v7 = vmax.f32 %v2644_v22, 0.0 }
 0x29c   : > { %v14280_v8 = vpop.f32.mrf.mxu1  ;;  %v14321_v39 = vpop.f32.mrf.mxu0  ;;  %14459 = vmatmul.mubr.bf16.gmra.mxu1 %v3226_v60 }
 0x29d   : > { %v2476_v18 = vpack.c.bf16 %v2407_v42, %v2406_v27  ;;  %v3110_v1 = vmax.f32 %v14321_v39, 0.0  ;;  %v2412_v23 = vmax.f32 %v14280_v8, 0.0 }
 0x29e   : > { %v2259_v57 = vpop.f32.mrf.mxu1  ;;  %v2647_v51 = vpop.f32.mrf.mxu0 }
 0x29f   : > { %v3108_v25 = vmax.f32 %v2647_v51, 0.0  ;;  %14418 = vmatprep.mubr.bf16.mxu0 %v2476_v18  ;;  %v3228_v61 = vpack.c.bf16 %v3110_v1, %v3109_v13  ;;  %v2410_v12 = vmax.f32 %v2259_v57, 0.0 }
 0x2a0   : > { %v14281_v0 = vpop.f32.mrf.mxu1  ;;  %v14324_v35 = vpop.f32.mrf.mxu0  ;;  %14419 = vmatmul.mubr.bf16.gmra.mxu0 %v2477_v19 }
 0x2a1   : > { %v3227_v45 = vpack.c.bf16 %v3108_v25, %v3107_v7  ;;  %v2413_v24 = vmax.f32 %v14281_v0, 0.0  ;;  %v3113_v63 = vmax.f32 %v14324_v35, 0.0  ;;  %v15897_v7 = vld [vmem:[%s19832_s8 + $0x30] sm:$0xff]  }
 0x2a2   : > { %v2262_v54 = vpop.f32.mrf.mxu1  ;;  %v2660_v50 = vpop.f32.mrf.mxu0  ;;  %14720 = vmatprep.subr.bf16.mxu1 %v15897_v7 }
 0x2a3   : > { %v2411_v40 = vmax.f32 %v2262_v54, 0.0  ;;  %14462 = vmatprep.mubr.bf16.mxu1 %v3227_v45  ;;  %v2479_v55 = vpack.c.bf16 %v2413_v24, %v2412_v23  ;;  %v3111_v4 = vmax.f32 %v2660_v50, 0.0  ;;  %14721 = vmatpush3.bf16.msra.mxu1 %v15897_v7 }
 0x2a4   : > { %v14284_v49 = vpop.f32.mrf.mxu1  ;;  %v14325_v11 = vpop.f32.mrf.mxu0  ;;  %14463 = vmatmul.mubr.bf16.gmra.mxu1 %v3228_v61 }
 0x2a5   : > { %v2478_v37 = vpack.c.bf16 %v2411_v40, %v2410_v12  ;;  %v3114_v33 = vmax.f32 %v14325_v11, 0.0  ;;  %v2416_v2 = vmax.f32 %v14284_v49, 0.0 }
 0x2a6   : > { %v2275_v17 = vpop.f32.mrf.mxu1  ;;  %v2663_v26 = vpop.f32.mrf.mxu0 }
 0x2a7   : > { %v3112_v29 = vmax.f32 %v2663_v26, 0.0  ;;  %14422 = vmatprep.mubr.bf16.mxu0 %v2478_v37  ;;  %v3230_v31 = vpack.c.bf16 %v3114_v33, %v3113_v63  ;;  %v2414_v44 = vmax.f32 %v2275_v17, 0.0 }
 0x2a8   : > { %v14285_v15 = vpop.f32.mrf.mxu1  ;;  %v14328_v43 = vpop.f32.mrf.mxu0  ;;  %14423 = vmatmul.mubr.bf16.gmra.mxu0 %v2479_v55 }
 0x2a9   : > { %v3229_v56 = vpack.c.bf16 %v3112_v29, %v3111_v4  ;;  %v2417_v20 = vmax.f32 %v14285_v15, 0.0  ;;  %v3117_v5 = vmax.f32 %v14328_v43, 0.0  ;;  %v15898_v15 = vld [vmem:[%s19831_s7 + $0x18] sm:$0xff]  }
 0x2aa   : > { %v2278_v14 = vpop.f32.mrf.mxu1  ;;  %v2676_v58 = vpop.f32.mrf.mxu0 }
 0x2ab   : > { %v2415_v62 = vmax.f32 %v2278_v14, 0.0  ;;  %14466 = vmatprep.mubr.bf16.mxu1 %v3229_v56  ;;  %v2481_v38 = vpack.c.bf16 %v2417_v20, %v2416_v2  ;;  %v3115_v21 = vmax.f32 %v2676_v58, 0.0 }
 0x2ac   : > { %v14329_v48 = vpop.f32.mrf.mxu0  ;;  %14467 = vmatmul.mubr.bf16.gmra.mxu1 %v3230_v31  ;;  %v17262_v31 = vand.u32 %v15898_v15, %v16560_v3 }
 0x2ad   : > { %v2480_v32 = vpack.c.bf16 %v2415_v62, %v2414_v44  ;;  %v3118_v53 = vmax.f32 %v14329_v48, 0.0 }
 0x2ae   : > { %v2679_v47 = vpop.f32.mrf.mxu0  ;;  %14862 = vmatprep.subr.bf16.mxu0 %v17262_v31 }
 0x2af   : > { %v3116_v34 = vmax.f32 %v2679_v47, 0.0  ;;  %14426 = vmatprep.mubr.bf16.mxu0 %v2480_v32  ;;  %v3232_v6 = vpack.c.bf16 %v3118_v53, %v3117_v5 }
 0x2b0   : > { %v14332_v9 = vpop.f32.mrf.mxu0  ;;  %14427 = vmatmul.mubr.bf16.gmra.mxu0 %v2481_v38 }
 0x2b1   : > { %v3231_v46 = vpack.c.bf16 %v3116_v34, %v3115_v21  ;;  %v3121_v27 = vmax.f32 %v14332_v9, 0.0  ;;  %v15899_v9 = vld [vmem:[%s19832_s8 + $0x28] sm:$0xff]  }
 0x2b2   : > { %v2692_v52 = vpop.f32.mrf.mxu0  ;;  %14722 = vmatprep.subr.bf16.mxu1 %v15899_v9 }
 0x2b3   : > { %14470 = vmatprep.mubr.bf16.mxu1 %v3231_v46  ;;  %v3119_v30 = vmax.f32 %v2692_v52, 0.0  ;;  %14723 = vmatpush3.bf16.msra.mxu1 %v15899_v9 }
 0x2b4   : > { %v14333_v59 = vpop.f32.mrf.mxu0  ;;  %14471 = vmatmul.mubr.bf16.gmra.mxu1 %v3232_v6 }
 0x2b5   : > { %v3122_v60 = vmax.f32 %v14333_v59, 0.0 }
 0x2b6   : > { %v2695_v16 = vpop.f32.mrf.mxu0 }
 0x2b7   : > { %v3120_v22 = vmax.f32 %v2695_v16, 0.0  ;;  %v3234_v8 = vpack.c.bf16 %v3122_v60, %v3121_v27 }
 0x2b8   : > { %v14336_v42 = vpop.f32.mrf.mxu0 }
 0x2b9   : > { %v3233_v41 = vpack.c.bf16 %v3120_v22, %v3119_v30  ;;  %v3125_v25 = vmax.f32 %v14336_v42, 0.0 }
 0x2ba   : > { %v2708_v39 = vpop.f32.mrf.mxu0 }
 0x2bb   : > { %14474 = vmatprep.mubr.bf16.mxu1 %v3233_v41  ;;  %v3123_v57 = vmax.f32 %v2708_v39, 0.0 }
 0x2bc   : > { %v14337_v18 = vpop.f32.mrf.mxu0  ;;  %14475 = vmatmul.mubr.bf16.gmra.mxu1 %v3234_v8 }
 0x2bd   : > { %v3126_v19 = vmax.f32 %v14337_v18, 0.0 }
 0x2be   : > { %v2711_v1 = vpop.f32.mrf.mxu0 }
 0x2bf   : > { %v3124_v51 = vmax.f32 %v2711_v1, 0.0  ;;  %v3236_v0 = vpack.c.bf16 %v3126_v19, %v3125_v25 }
 0x2c0   : > { %v14340_v36 = vpop.f32.mrf.mxu0 }
 0x2c1   : > { %v3235_v13 = vpack.c.bf16 %v3124_v51, %v3123_v57  ;;  %v3129_v12 = vmax.f32 %v14340_v36, 0.0 }
 0x2c2   : > { %v2724_v35 = vpop.f32.mrf.mxu0 }
 0x2c3   : > { %14478 = vmatprep.mubr.bf16.mxu1 %v3235_v13  ;;  %v3127_v54 = vmax.f32 %v2724_v35, 0.0 }
 0x2c4   : > { %v14341_v45 = vpop.f32.mrf.mxu0  ;;  %14479 = vmatmul.mubr.bf16.gmra.mxu1 %v3236_v0 }
 0x2c5   : > { %v3130_v61 = vmax.f32 %v14341_v45, 0.0 }
 0x2c6   : > { %v2727_v24 = vpop.f32.mrf.mxu0 }
 0x2c7   : > { %v3128_v50 = vmax.f32 %v2727_v24, 0.0  ;;  %v3238_v49 = vpack.c.bf16 %v3130_v61, %v3129_v12 }
 0x2c8   : > { %v14344_v40 = vpop.f32.mrf.mxu0 }
 0x2c9   : > { %v3237_v23 = vpack.c.bf16 %v3128_v50, %v3127_v54  ;;  %v3133_v4 = vmax.f32 %v14344_v40, 0.0 }
 0x2ca   : > { %v2740_v11 = vpop.f32.mrf.mxu0 }
 0x2cb   : > { %14482 = vmatprep.mubr.bf16.mxu1 %v3237_v23  ;;  %v3131_v17 = vmax.f32 %v2740_v11, 0.0 }
 0x2cc   : > { %v14345_v37 = vpop.f32.mrf.mxu0  ;;  %14483 = vmatmul.mubr.bf16.gmra.mxu1 %v3238_v49 }
 0x2cd   : > { %v3134_v55 = vmax.f32 %v14345_v37, 0.0 }
 0x2ce   : > { %v2743_v33 = vpop.f32.mrf.mxu0 }
 0x2cf   : > { %v3132_v26 = vmax.f32 %v2743_v33, 0.0  ;;  %v3240_v43 = vpack.c.bf16 %v3134_v55, %v3133_v4  ;;  %v15900_v55 = vld [vmem:[%s19832_s8 + $0x20] sm:$0xff]  }
 0x2d0   : > { %v14348_v29 = vpop.f32.mrf.mxu0  ;;  %14724 = vmatprep.subr.bf16.mxu1 %v15900_v55 }
 0x2d1   : > { %v3239_v63 = vpack.c.bf16 %v3132_v26, %v3131_v17  ;;  %v3137_v2 = vmax.f32 %v14348_v29, 0.0  ;;  %14725 = vmatpush3.bf16.msra.mxu1 %v15900_v55 }
 0x2d2   : > { %v2756_v56 = vpop.f32.mrf.mxu0 }
 0x2d3   : > { %14486 = vmatprep.mubr.bf16.mxu1 %v3239_v63  ;;  %v3135_v44 = vmax.f32 %v2756_v56, 0.0 }
 0x2d4   : > { %v14349_v20 = vpop.f32.mrf.mxu0  ;;  %14487 = vmatmul.mubr.bf16.gmra.mxu1 %v3240_v43 }
 0x2d5   : > { %v3138_v14 = vmax.f32 %v14349_v20, 0.0 }
 0x2d6   : > { %v2759_v58 = vpop.f32.mrf.mxu0 }
 0x2d7   : > { %v3136_v62 = vmax.f32 %v2759_v58, 0.0  ;;  %v3242_v38 = vpack.c.bf16 %v3138_v14, %v3137_v2 }
 0x2d8   : > { %v14352_v48 = vpop.f32.mrf.mxu0 }
 0x2d9   : > { %v3241_v32 = vpack.c.bf16 %v3136_v62, %v3135_v44  ;;  %v3141_v46 = vmax.f32 %v14352_v48, 0.0 }
 0x2da   : > { %v2772_v53 = vpop.f32.mrf.mxu0 }
 0x2db   : > { %14490 = vmatprep.mubr.bf16.mxu1 %v3241_v32  ;;  %v3139_v3 = vmax.f32 %v2772_v53, 0.0 }
 0x2dc   : > { %v14353_v47 = vpop.f32.mrf.mxu0  ;;  %14491 = vmatmul.mubr.bf16.gmra.mxu1 %v3242_v38 }
 0x2dd   : > { %v3142_v21 = vmax.f32 %v14353_v47, 0.0 }
 0x2de   : > { %v2775_v34 = vpop.f32.mrf.mxu0 }
 0x2df   : > { %v3140_v5 = vmax.f32 %v2775_v34, 0.0  ;;  %v3244_v52 = vpack.c.bf16 %v3142_v21, %v3141_v46 }
 0x2e0   : > { %v14356_v28 = vpop.f32.mrf.mxu0 }
 0x2e1   : > { %v3243_v6 = vpack.c.bf16 %v3140_v5, %v3139_v3  ;;  %v3145_v42 = vmax.f32 %v14356_v28, 0.0 }
 0x2e2   : > { %v2788_v59 = vpop.f32.mrf.mxu0 }
 0x2e3   : > { %14494 = vmatprep.mubr.bf16.mxu1 %v3243_v6  ;;  %v3143_v22 = vmax.f32 %v2788_v59, 0.0 }
 0x2e4   : > { %v14357_v60 = vpop.f32.mrf.mxu0  ;;  %14495 = vmatmul.mubr.bf16.gmra.mxu1 %v3244_v52 }
 0x2e5   : > { %v3146_v16 = vmax.f32 %v14357_v60, 0.0 }
 0x2e6   : > { %v2791_v30 = vpop.f32.mrf.mxu0 }
 0x2e7   : > { %v3144_v27 = vmax.f32 %v2791_v30, 0.0  ;;  %v3246_v39 = vpack.c.bf16 %v3146_v16, %v3145_v42 }
 0x2e8   : > { %v14360_v41 = vpop.f32.mrf.mxu0 }
 0x2e9   : > { %v3245_v8 = vpack.c.bf16 %v3144_v27, %v3143_v22  ;;  %v3149_v25 = vmax.f32 %v14360_v41, 0.0 }
 0x2ea   : > { %v2804_v18 = vpop.f32.mrf.mxu0 }
 0x2eb   : > { %14498 = vmatprep.mubr.bf16.mxu1 %v3245_v8  ;;  %v3147_v51 = vmax.f32 %v2804_v18, 0.0 }
 0x2ec   : > { %v14361_v19 = vpop.f32.mrf.mxu0  ;;  %14499 = vmatmul.mubr.bf16.gmra.mxu1 %v3246_v39 }
 0x2ed   : > { %v3150_v1 = vmax.f32 %v14361_v19, 0.0  ;;  %v15902_v19 = vld [vmem:[%s19832_s8 + $0x18] sm:$0xff]  }
 0x2ee   : > { %v2807_v57 = vpop.f32.mrf.mxu0  ;;  %14726 = vmatprep.subr.bf16.mxu1 %v15902_v19 }
 0x2ef   : > { %v3148_v7 = vmax.f32 %v2807_v57, 0.0  ;;  %v3248_v0 = vpack.c.bf16 %v3150_v1, %v3149_v25  ;;  %14727 = vmatpush3.bf16.msra.mxu1 %v15902_v19 }
 0x2f0   : > { %v14364_v36 = vpop.f32.mrf.mxu0 }
 0x2f1   : > { %v3247_v13 = vpack.c.bf16 %v3148_v7, %v3147_v51  ;;  %v3153_v12 = vmax.f32 %v14364_v36, 0.0 }
 0x2f2   : > { %v2820_v35 = vpop.f32.mrf.mxu0 }
 0x2f3   : > { %14502 = vmatprep.mubr.bf16.mxu1 %v3247_v13  ;;  %v3151_v54 = vmax.f32 %v2820_v35, 0.0 }
 0x2f4   : > { %v14365_v45 = vpop.f32.mrf.mxu0  ;;  %14503 = vmatmul.mubr.bf16.gmra.mxu1 %v3248_v0 }
 0x2f5   : > { %v3154_v61 = vmax.f32 %v14365_v45, 0.0 }
 0x2f6   : > { %v2823_v24 = vpop.f32.mrf.mxu0 }
 0x2f7   : > { %v3152_v50 = vmax.f32 %v2823_v24, 0.0  ;;  %v3250_v49 = vpack.c.bf16 %v3154_v61, %v3153_v12 }
 0x2f8   : > { %v14368_v40 = vpop.f32.mrf.mxu0 }
 0x2f9   : > { %v3249_v23 = vpack.c.bf16 %v3152_v50, %v3151_v54  ;;  %v3157_v29 = vmax.f32 %v14368_v40, 0.0 }
 0x2fa   : > { %v2836_v11 = vpop.f32.mrf.mxu0 }
 0x2fb   : > { %14506 = vmatprep.mubr.bf16.mxu1 %v3249_v23  ;;  %v3155_v26 = vmax.f32 %v2836_v11, 0.0 }
 0x2fc   : > { %v14369_v37 = vpop.f32.mrf.mxu0  ;;  %14507 = vmatmul.mubr.bf16.gmra.mxu1 %v3250_v49 }
 0x2fd   : > { %v3158_v33 = vmax.f32 %v14369_v37, 0.0 }
 0x2fe   : > { %v2839_v17 = vpop.f32.mrf.mxu0 }
 0x2ff   : > { %v3156_v4 = vmax.f32 %v2839_v17, 0.0  ;;  %v3252_v43 = vpack.c.bf16 %v3158_v33, %v3157_v29 }
 0x300   : > { %v14372_v63 = vpop.f32.mrf.mxu0 }
 0x301   : > { %v3251_v15 = vpack.c.bf16 %v3156_v4, %v3155_v26  ;;  %v3161_v2 = vmax.f32 %v14372_v63, 0.0 }
 0x302   : > { %v2852_v56 = vpop.f32.mrf.mxu0 }
 0x303   : > { %14510 = vmatprep.mubr.bf16.mxu1 %v3251_v15  ;;  %v3159_v44 = vmax.f32 %v2852_v56, 0.0 }
 0x304   : > { %v14373_v20 = vpop.f32.mrf.mxu0  ;;  %14511 = vmatmul.mubr.bf16.gmra.mxu1 %v3252_v43 }
 0x305   : > { %v3162_v14 = vmax.f32 %v14373_v20, 0.0 }
 0x306   : > { %v2855_v58 = vpop.f32.mrf.mxu0 }
 0x307   : > { %v3160_v62 = vmax.f32 %v2855_v58, 0.0  ;;  %v3254_v38 = vpack.c.bf16 %v3162_v14, %v3161_v2 }
 0x308   : > { %v14376_v48 = vpop.f32.mrf.mxu0 }
 0x309   : > { %v3253_v32 = vpack.c.bf16 %v3160_v62, %v3159_v44  ;;  %v3165_v9 = vmax.f32 %v14376_v48, 0.0 }
 0x30a   : > { %v2868_v53 = vpop.f32.mrf.mxu0 }
 0x30b   : > { %14514 = vmatprep.mubr.bf16.mxu1 %v3253_v32  ;;  %v3163_v3 = vmax.f32 %v2868_v53, 0.0 }
 0x30c   : > { %v14377_v47 = vpop.f32.mrf.mxu0  ;;  %14515 = vmatmul.mubr.bf16.gmra.mxu1 %v3254_v38 }
 0x30d   : > { %v3166_v21 = vmax.f32 %v14377_v47, 0.0  ;;  %v15903_v47 = vld [vmem:[%s19832_s8 + $0x10] sm:$0xff]  }
 0x30e   : > { %v2871_v34 = vpop.f32.mrf.mxu0  ;;  %14728 = vmatprep.subr.bf16.mxu1 %v15903_v47 }
 0x30f   : > { %v3164_v5 = vmax.f32 %v2871_v34, 0.0  ;;  %v3256_v6 = vpack.c.bf16 %v3166_v21, %v3165_v9  ;;  %14729 = vmatpush3.bf16.msra.mxu1 %v15903_v47 }
 0x310   : > { %v14380_v46 = vpop.f32.mrf.mxu0 }
 0x311   : > { %v3255_v28 = vpack.c.bf16 %v3164_v5, %v3163_v3  ;;  %v3169_v27 = vmax.f32 %v14380_v46, 0.0 }
 0x312   : > { %v2884_v52 = vpop.f32.mrf.mxu0 }
 0x313   : > { %14518 = vmatprep.mubr.bf16.mxu1 %v3255_v28  ;;  %v3167_v30 = vmax.f32 %v2884_v52, 0.0 }
 0x314   : > { %v14381_v59 = vpop.f32.mrf.mxu0  ;;  %14519 = vmatmul.mubr.bf16.gmra.mxu1 %v3256_v6 }
 0x315   : > { %v3170_v60 = vmax.f32 %v14381_v59, 0.0 }
 0x316   : > { %v2887_v16 = vpop.f32.mrf.mxu0 }
 0x317   : > { %v3168_v22 = vmax.f32 %v2887_v16, 0.0  ;;  %v3258_v8 = vpack.c.bf16 %v3170_v60, %v3169_v27 }
 0x318   : > { %v14384_v42 = vpop.f32.mrf.mxu0 }
 0x319   : > { %v3257_v41 = vpack.c.bf16 %v3168_v22, %v3167_v30  ;;  %v3173_v25 = vmax.f32 %v14384_v42, 0.0 }
 0x31a   : > { %v2900_v39 = vpop.f32.mrf.mxu0 }
 0x31b   : > { %14522 = vmatprep.mubr.bf16.mxu1 %v3257_v41  ;;  %v3171_v51 = vmax.f32 %v2900_v39, 0.0 }
 0x31c   : > { %v14385_v18 = vpop.f32.mrf.mxu0  ;;  %14523 = vmatmul.mubr.bf16.gmra.mxu1 %v3258_v8 }
 0x31d   : > { %v3174_v1 = vmax.f32 %v14385_v18, 0.0 }
 0x31e   : > { %v2903_v57 = vpop.f32.mrf.mxu0 }
 0x31f   : > { %v3172_v7 = vmax.f32 %v2903_v57, 0.0  ;;  %v3260_v0 = vpack.c.bf16 %v3174_v1, %v3173_v25 }
 0x320   : > { %v14388_v36 = vpop.f32.mrf.mxu0 }
 0x321   : > { %v3259_v13 = vpack.c.bf16 %v3172_v7, %v3171_v51  ;;  %v3177_v12 = vmax.f32 %v14388_v36, 0.0 }
 0x322   : > { %v2916_v35 = vpop.f32.mrf.mxu0 }
 0x323   : > { %14526 = vmatprep.mubr.bf16.mxu1 %v3259_v13  ;;  %v3175_v54 = vmax.f32 %v2916_v35, 0.0 }
 0x324   : > { %v14389_v45 = vpop.f32.mrf.mxu0  ;;  %14527 = vmatmul.mubr.bf16.gmra.mxu1 %v3260_v0 }
 0x325   : > { %v3178_v61 = vmax.f32 %v14389_v45, 0.0 }
 0x326   : > { %v2919_v24 = vpop.f32.mrf.mxu0 }
 0x327   : > { %v3176_v50 = vmax.f32 %v2919_v24, 0.0  ;;  %v3262_v49 = vpack.c.bf16 %v3178_v61, %v3177_v12 }
 0x328   : > { %v14392_v40 = vpop.f32.mrf.mxu0 }
 0x329   : > { %v3261_v23 = vpack.c.bf16 %v3176_v50, %v3175_v54  ;;  %v3181_v4 = vmax.f32 %v14392_v40, 0.0  ;;  %v15901_v50 = vld [vmem:[%s19831_s7 + $0x10] sm:$0xff]  }
 0x32a   : > { %v2932_v11 = vpop.f32.mrf.mxu0 }
 0x32b   : > { %14530 = vmatprep.mubr.bf16.mxu1 %v3261_v23  ;;  %v3179_v17 = vmax.f32 %v2932_v11, 0.0 }
 0x32c   : > { %v14393_v37 = vpop.f32.mrf.mxu0  ;;  %14531 = vmatmul.mubr.bf16.gmra.mxu1 %v3262_v49 }
 0x32d   : > { %v3182_v55 = vmax.f32 %v14393_v37, 0.0 }
 0x32e   : > { %v2935_v33 = vpop.f32.mrf.mxu0 }
 0x32f   : > { %v3180_v26 = vmax.f32 %v2935_v33, 0.0  ;;  %v3264_v15 = vpack.c.bf16 %v3182_v55, %v3181_v4  ;;  %v15904_v4 = vld [vmem:[%s19831_s7 + $0x8] sm:$0xff]  }
 0x330   : > { %v14396_v29 = vpop.f32.mrf.mxu0 }
 0x331   : > { %v3263_v63 = vpack.c.bf16 %v3180_v26, %v3179_v17  ;;  %v3185_v62 = vmax.f32 %v14396_v29, 0.0 }
 0x332   : > { %v2948_v43 = vpop.f32.mrf.mxu0 }
 0x333   : > { %14534 = vmatprep.mubr.bf16.mxu1 %v3263_v63  ;;  %v3183_v58 = vmax.f32 %v2948_v43, 0.0 }
 0x334   : > { %v14397_v56 = vpop.f32.mrf.mxu0  ;;  %14535 = vmatmul.mubr.bf16.gmra.mxu1 %v3264_v15 }
 0x335   : > { %v3186_v20 = vmax.f32 %v14397_v56, 0.0 }
 0x336   : > { %v2951_v14 = vpop.f32.mrf.mxu0 }
 0x337   : > { %v3184_v44 = vmax.f32 %v2951_v14, 0.0  ;;  %v3266_v32 = vpack.c.bf16 %v3186_v20, %v3185_v62 }
 0x338   : > { %v14400_v2 = vpop.f32.mrf.mxu0 }
 0x339   : > { %v3265_v48 = vpack.c.bf16 %v3184_v44, %v3183_v58  ;;  %v3189_v9 = vmax.f32 %v14400_v2, 0.0 }
 0x33a   : > { %v2964_v38 = vpop.f32.mrf.mxu0 }
 0x33b   : > { %14538 = vmatprep.mubr.bf16.mxu1 %v3265_v48  ;;  %v3187_v3 = vmax.f32 %v2964_v38, 0.0 }
 0x33c   : > { %v14401_v53 = vpop.f32.mrf.mxu0  ;;  %14539 = vmatmul.mubr.bf16.gmra.mxu1 %v3266_v32 }
 0x33d   : > { %v3190_v21 = vmax.f32 %v14401_v53, 0.0 }
 0x33e   : > { %v2967_v34 = vpop.f32.mrf.mxu0 }
 0x33f   : > { %v3188_v5 = vmax.f32 %v2967_v34, 0.0  ;;  %v3268_v6 = vpack.c.bf16 %v3190_v21, %v3189_v9 }
 0x340   : > { %v14404_v46 = vpop.f32.mrf.mxu0 }
 0x341   : > { %v3267_v28 = vpack.c.bf16 %v3188_v5, %v3187_v3  ;;  %v3193_v41 = vmax.f32 %v14404_v46, 0.0 }
 0x342   : > { %v2980_v52 = vpop.f32.mrf.mxu0 }
 0x343   : > { %14542 = vmatprep.mubr.bf16.mxu1 %v3267_v28  ;;  %v3191_v27 = vmax.f32 %v2980_v52, 0.0 }
 0x344   : > { %v14405_v59 = vpop.f32.mrf.mxu0  ;;  %v14448_v60 = vpop.f32.mrf.mxu1  ;;  %14543 = vmatmul.mubr.bf16.gmra.mxu1 %v3268_v6 }
 0x345   : > { %v3194_v16 = vmax.f32 %v14405_v59, 0.0  ;;  %v3894_v36 = vmax.f32 %v14448_v60, 0.0  ;;  %v15905_v59 = vld [vmem:[%s19832_s8 + $0x8] sm:$0xff]  }
 0x346   : > { %v2983_v30 = vpop.f32.mrf.mxu0  ;;  %v3381_v22 = vpop.f32.mrf.mxu1  ;;  %14730 = vmatprep.subr.bf16.mxu1 %v15905_v59 }
 0x347   : > { %v3192_v42 = vmax.f32 %v2983_v30, 0.0  ;;  %v3270_v19 = vpack.c.bf16 %v3194_v16, %v3193_v41  ;;  %v3892_v7 = vmax.f32 %v3381_v22, 0.0  ;;  %14731 = vmatpush3.bf16.msra.mxu1 %v15905_v59 }
 0x348   : > { %v14408_v8 = vpop.f32.mrf.mxu0  ;;  %v14449_v39 = vpop.f32.mrf.mxu1 }
 0x349   : > { %v3269_v18 = vpack.c.bf16 %v3192_v42, %v3191_v27  ;;  %v3895_v1 = vmax.f32 %v14449_v39, 0.0  ;;  %v3197_v23 = vmax.f32 %v14408_v8, 0.0 }
 0x34a   : > { %v2996_v57 = vpop.f32.mrf.mxu0  ;;  %v3384_v51 = vpop.f32.mrf.mxu1 }
 0x34b   : > { %v3893_v25 = vmax.f32 %v3384_v51, 0.0  ;;  %14546 = vmatprep.mubr.bf16.mxu1 %v3269_v18  ;;  %v4021_v45 = vpack.c.bf16 %v3895_v1, %v3894_v36  ;;  %v3195_v12 = vmax.f32 %v2996_v57, 0.0 }
 0x34c   : > { %v14409_v13 = vpop.f32.mrf.mxu0  ;;  %v14452_v0 = vpop.f32.mrf.mxu1  ;;  %14547 = vmatmul.mubr.bf16.gmra.mxu1 %v3270_v19 }
 0x34d   : > { %v4020_v35 = vpack.c.bf16 %v3893_v25, %v3892_v7  ;;  %v3198_v61 = vmax.f32 %v14409_v13, 0.0  ;;  %v3898_v15 = vmax.f32 %v14452_v0, 0.0 }
 0x34e   : > { %v2999_v24 = vpop.f32.mrf.mxu0  ;;  %v3397_v54 = vpop.f32.mrf.mxu1 }
 0x34f   : > { %v3196_v40 = vmax.f32 %v2999_v24, 0.0  ;;  %14590 = vmatprep.mubr.bf16.mxu0 %v4020_v35  ;;  %v3272_v55 = vpack.c.bf16 %v3198_v61, %v3197_v23  ;;  %v3896_v29 = vmax.f32 %v3397_v54, 0.0 }
 0x350   : > { %v14412_v49 = vpop.f32.mrf.mxu0  ;;  %v14453_v11 = vpop.f32.mrf.mxu1  ;;  %14591 = vmatmul.mubr.bf16.vlgmr.msra.gmra.mxu0 %v4021_v45 }
 0x351   : > { %v3271_v37 = vpack.c.bf16 %v3196_v40, %v3195_v12  ;;  %14863 = vmatpush3.bf16.msra.mxu0 %v17262_v31  ;;  %v3899_v33 = vmax.f32 %v14453_v11, 0.0  ;;  %v3201_v48 = vmax.f32 %v14412_v49, 0.0 }
 0x352   : > { %v3012_v17 = vpop.f32.mrf.mxu0  ;;  %v3400_v26 = vpop.f32.mrf.mxu1  ;;  %14864 = vmatprep.subr.bf16.mxu0 %v15901_v50 }
 0x353   : > { %v3897_v63 = vmax.f32 %v3400_v26, 0.0  ;;  %14550 = vmatprep.mubr.bf16.mxu1 %v3271_v37  ;;  %v4023_v14 = vpack.c.bf16 %v3899_v33, %v3898_v15  ;;  %v3199_v62 = vmax.f32 %v3012_v17, 0.0 }
 0x354   : > { %v14413_v43 = vpop.f32.mrf.mxu0  ;;  %v14456_v56 = vpop.f32.mrf.mxu1  ;;  %14551 = vmatmul.mubr.bf16.gmra.mxu1 %v3272_v55 }
 0x355   : > { %v4022_v20 = vpack.c.bf16 %v3897_v63, %v3896_v29  ;;  %14865 = vmatpush3.bf16.msra.mxu0 %v15901_v50  ;;  %v3202_v31 = vmax.f32 %v14413_v43, 0.0  ;;  %v3902_v46 = vmax.f32 %v14456_v56, 0.0 }
 0x356   : > { %v3015_v58 = vpop.f32.mrf.mxu0  ;;  %v3413_v44 = vpop.f32.mrf.mxu1  ;;  %14866 = vmatprep.subr.bf16.mxu0 %v15904_v4 }
 0x357   : > { %v3200_v2 = vmax.f32 %v3015_v58, 0.0  ;;  %14594 = vmatprep.mubr.bf16.mxu0 %v4022_v20  ;;  %v3274_v47 = vpack.c.bf16 %v3202_v31, %v3201_v48  ;;  %v3900_v5 = vmax.f32 %v3413_v44, 0.0 }
 0x358   : > { %v14416_v32 = vpop.f32.mrf.mxu0  ;;  %v14457_v38 = vpop.f32.mrf.mxu1  ;;  %14595 = vmatmul.mubr.bf16.gmra.mxu0 %v4023_v14 }
 0x359   : > { %v3273_v53 = vpack.c.bf16 %v3200_v2, %v3199_v62  ;;  %14867 = vmatpush3.bf16.msra.mxu0 %v15904_v4  ;;  %v3903_v21 = vmax.f32 %v14457_v38, 0.0  ;;  %v3205_v41 = vmax.f32 %v14416_v32, 0.0 }
 0x35a   : > { %v3028_v34 = vpop.f32.mrf.mxu0  ;;  %v3416_v3 = vpop.f32.mrf.mxu1 }
 0x35b   : > { %v3901_v9 = vmax.f32 %v3416_v3, 0.0  ;;  %14554 = vmatprep.mubr.bf16.mxu1 %v3273_v53  ;;  %v4025_v60 = vpack.c.bf16 %v3903_v21, %v3902_v46  ;;  %v3203_v27 = vmax.f32 %v3028_v34, 0.0 }
 0x35c   : > { %v14417_v28 = vpop.f32.mrf.mxu0  ;;  %v14460_v6 = vpop.f32.mrf.mxu1  ;;  %14555 = vmatmul.mubr.bf16.gmra.mxu1 %v3274_v47 }
 0x35d   : > { %v4024_v52 = vpack.c.bf16 %v3901_v9, %v3900_v5  ;;  %v3206_v16 = vmax.f32 %v14417_v28, 0.0  ;;  %v3906_v36 = vmax.f32 %v14460_v6, 0.0 }
 0x35e   : > { %v3031_v30 = vpop.f32.mrf.mxu0  ;;  %v3429_v22 = vpop.f32.mrf.mxu1 }
 0x35f   : > { %v3204_v42 = vmax.f32 %v3031_v30, 0.0  ;;  %14598 = vmatprep.mubr.bf16.mxu0 %v4024_v52  ;;  %v3276_v19 = vpack.c.bf16 %v3206_v16, %v3205_v41  ;;  %v3904_v7 = vmax.f32 %v3429_v22, 0.0 }
 0x360   : > { %v14420_v8 = vpop.f32.mrf.mxu0  ;;  %v14461_v39 = vpop.f32.mrf.mxu1  ;;  %14599 = vmatmul.mubr.bf16.gmra.mxu0 %v4025_v60 }
 0x361   : > { %v3275_v18 = vpack.c.bf16 %v3204_v42, %v3203_v27  ;;  %v3907_v1 = vmax.f32 %v14461_v39, 0.0  ;;  %v3209_v40 = vmax.f32 %v14420_v8, 0.0 }
 0x362   : > { %v3044_v57 = vpop.f32.mrf.mxu0  ;;  %v3432_v51 = vpop.f32.mrf.mxu1 }
 0x363   : > { %v3905_v25 = vmax.f32 %v3432_v51, 0.0  ;;  %14558 = vmatprep.mubr.bf16.mxu1 %v3275_v18  ;;  %v4027_v45 = vpack.c.bf16 %v3907_v1, %v3906_v36  ;;  %v3207_v50 = vmax.f32 %v3044_v57, 0.0 }
 0x364   : > { %v14421_v13 = vpop.f32.mrf.mxu0  ;;  %v14464_v0 = vpop.f32.mrf.mxu1  ;;  %14559 = vmatmul.mubr.bf16.gmra.mxu1 %v3276_v19 }
 0x365   : > { %v4026_v35 = vpack.c.bf16 %v3905_v25, %v3904_v7  ;;  %v3210_v61 = vmax.f32 %v14421_v13, 0.0  ;;  %v3910_v29 = vmax.f32 %v14464_v0, 0.0  ;;  %v15906_v7 = vld [vmem:[%s19832_s8] sm:$0xff]  }
 0x366   : > { %v3047_v24 = vpop.f32.mrf.mxu0  ;;  %v3445_v54 = vpop.f32.mrf.mxu1  ;;  %14732 = vmatprep.subr.bf16.mxu1 %v15906_v7 }
 0x367   : > { %v3208_v12 = vmax.f32 %v3047_v24, 0.0  ;;  %14602 = vmatprep.mubr.bf16.mxu0 %v4026_v35  ;;  %v3278_v37 = vpack.c.bf16 %v3210_v61, %v3209_v40  ;;  %v3908_v26 = vmax.f32 %v3445_v54, 0.0  ;;  %14733 = vmatpush3.bf16.msra.mxu1 %v15906_v7 }
 0x368   : > { %v14424_v23 = vpop.f32.mrf.mxu0  ;;  %v14465_v49 = vpop.f32.mrf.mxu1  ;;  %14603 = vmatmul.mubr.bf16.gmra.mxu0 %v4027_v45 }
 0x369   : > { %v3277_v11 = vpack.c.bf16 %v3208_v12, %v3207_v50  ;;  %v3911_v55 = vmax.f32 %v14465_v49, 0.0  ;;  %v3213_v62 = vmax.f32 %v14424_v23, 0.0 }
 0x36a   : > { %v3060_v33 = vpop.f32.mrf.mxu0  ;;  %v3448_v17 = vpop.f32.mrf.mxu1 }
 0x36b   : > { %v3909_v4 = vmax.f32 %v3448_v17, 0.0  ;;  %14562 = vmatprep.mubr.bf16.mxu1 %v3277_v11  ;;  %v4029_v56 = vpack.c.bf16 %v3911_v55, %v3910_v29  ;;  %v3211_v58 = vmax.f32 %v3060_v33, 0.0 }
 0x36c   : > { %v14425_v63 = vpop.f32.mrf.mxu0  ;;  %v14468_v15 = vpop.f32.mrf.mxu1  ;;  %14563 = vmatmul.mubr.bf16.gmra.mxu1 %v3278_v37 }
 0x36d   : > { %v4028_v43 = vpack.c.bf16 %v3909_v4, %v3908_v26  ;;  %v3214_v20 = vmax.f32 %v14425_v63, 0.0  ;;  %v3914_v5 = vmax.f32 %v14468_v15, 0.0  ;;  %v15907_v63 = vld [vmem:[%s19831_s7] sm:$0xff]  }
 0x36e   : > { %v3063_v14 = vpop.f32.mrf.mxu0  ;;  %v3461_v31 = vpop.f32.mrf.mxu1  ;;  %14868 = vmatprep.subr.bf16.mxu0 %v15907_v63 }
 0x36f   : > { %v3212_v44 = vmax.f32 %v3063_v14, 0.0  ;;  %14606 = vmatprep.mubr.bf16.mxu0 %v4028_v43  ;;  %v3280_v38 = vpack.c.bf16 %v3214_v20, %v3213_v62  ;;  %v3912_v34 = vmax.f32 %v3461_v31, 0.0  ;;  %14869 = vmatpush3.bf16.msra.mxu0 %v15907_v63 }
 0x370   : > { %v14428_v2 = vpop.f32.mrf.mxu0  ;;  %v14469_v48 = vpop.f32.mrf.mxu1  ;;  %14607 = vmatmul.mubr.bf16.gmra.mxu0 %v4029_v56 }
 0x371   : > { %v3279_v32 = vpack.c.bf16 %v3212_v44, %v3211_v58  ;;  %v3915_v53 = vmax.f32 %v14469_v48, 0.0  ;;  %v3217_v22 = vmax.f32 %v14428_v2, 0.0 }
 0x372   : > { %v3076_v47 = vpop.f32.mrf.mxu0  ;;  %v3464_v21 = vpop.f32.mrf.mxu1 }
 0x373   : > { %v3913_v3 = vmax.f32 %v3464_v21, 0.0  ;;  %14566 = vmatprep.mubr.bf16.mxu1 %v3279_v32  ;;  %v4031_v6 = vpack.c.bf16 %v3915_v53, %v3914_v5  ;;  %v3215_v16 = vmax.f32 %v3076_v47, 0.0 }
 0x374   : > { %v14429_v9 = vpop.f32.mrf.mxu0  ;;  %v14472_v46 = vpop.f32.mrf.mxu1  ;;  %14567 = vmatmul.mubr.bf16.gmra.mxu1 %v3280_v38 }
 0x375   : > { %v4030_v28 = vpack.c.bf16 %v3913_v3, %v3912_v34  ;;  %v3218_v52 = vmax.f32 %v14429_v9, 0.0  ;;  %v3918_v1 = vmax.f32 %v14472_v46, 0.0  ;;  %v17296_v46 = vld [vmem:[%s19833_s9 + $0x38] sm:$0xff]  }
 0x376   : > { %v3079_v59 = vpop.f32.mrf.mxu0  ;;  %v3477_v60 = vpop.f32.mrf.mxu1  ;;  %14998 = vmatprep.subr.bf16.mxu1 %v17296_v46 }
 0x377   : > { %v3216_v30 = vmax.f32 %v3079_v59, 0.0  ;;  %14610 = vmatprep.mubr.bf16.mxu0 %v4030_v28  ;;  %v3282_v41 = vpack.c.bf16 %v3218_v52, %v3217_v22  ;;  %v3916_v18 = vmax.f32 %v3477_v60, 0.0 }
 0x378   : > { %v14473_v27 = vpop.f32.mrf.mxu1  ;;  %14611 = vmatmul.mubr.bf16.gmra.mxu0 %v4031_v6 }
 0x379   : > { %v3281_v42 = vpack.c.bf16 %v3216_v30, %v3215_v16  ;;  %v3919_v8 = vmax.f32 %v14473_v27, 0.0 }
 0x37a   : > { %v3480_v39 = vpop.f32.mrf.mxu1 }
 0x37b   : > { %v3917_v19 = vmax.f32 %v3480_v39, 0.0  ;;  %14570 = vmatprep.mubr.bf16.mxu1 %v3281_v42  ;;  %v4033_v25 = vpack.c.bf16 %v3919_v8, %v3918_v1 }
 0x37c   : > { %v14476_v57 = vpop.f32.mrf.mxu1  ;;  %14571 = vmatmul.mubr.bf16.gmra.mxu1 %v3282_v41 }
 0x37d   : > { %v4032_v51 = vpack.c.bf16 %v3917_v19, %v3916_v18  ;;  %v3922_v24 = vmax.f32 %v14476_v57, 0.0 }
 0x37e   : > { %v3493_v36 = vpop.f32.mrf.mxu1 }
 0x37f   : > { %14614 = vmatprep.mubr.bf16.mxu0 %v4032_v51  ;;  %v3920_v45 = vmax.f32 %v3493_v36, 0.0 }
 0x380   : > { %v14477_v13 = vpop.f32.mrf.mxu1  ;;  %14615 = vmatmul.mubr.bf16.gmra.mxu0 %v4033_v25 }
 0x381   : > { %v3923_v0 = vmax.f32 %v14477_v13, 0.0 }
 0x382   : > { %v3496_v35 = vpop.f32.mrf.mxu1 }
 0x383   : > { %v3921_v61 = vmax.f32 %v3496_v35, 0.0  ;;  %v4035_v12 = vpack.c.bf16 %v3923_v0, %v3922_v24 }
 0x384   : > { %v14480_v54 = vpop.f32.mrf.mxu1 }
 0x385   : > { %v4034_v50 = vpack.c.bf16 %v3921_v61, %v3920_v45  ;;  %v3926_v33 = vmax.f32 %v14480_v54, 0.0 }
 0x386   : > { %v3509_v40 = vpop.f32.mrf.mxu1 }
 0x387   : > { %14618 = vmatprep.mubr.bf16.mxu0 %v4034_v50  ;;  %v3924_v37 = vmax.f32 %v3509_v40, 0.0 }
 0x388   : > { %v14481_v23 = vpop.f32.mrf.mxu1  ;;  %14619 = vmatmul.mubr.bf16.gmra.mxu0 %v4035_v12 }
 0x389   : > { %v3927_v49 = vmax.f32 %v14481_v23, 0.0 }
 0x38a   : > { %v3512_v11 = vpop.f32.mrf.mxu1 }
 0x38b   : > { %v3925_v55 = vmax.f32 %v3512_v11, 0.0  ;;  %v4037_v4 = vpack.c.bf16 %v3927_v49, %v3926_v33 }
 0x38c   : > { %v14484_v17 = vpop.f32.mrf.mxu1 }
 0x38d   : > { %v4036_v26 = vpack.c.bf16 %v3925_v55, %v3924_v37  ;;  %v3930_v31 = vmax.f32 %v14484_v17, 0.0 }
 0x38e   : > { %v3525_v29 = vpop.f32.mrf.mxu1 }
 0x38f   : > { %14622 = vmatprep.mubr.bf16.mxu0 %v4036_v26  ;;  %v3928_v20 = vmax.f32 %v3525_v29, 0.0 }
 0x390   : > { %v14485_v15 = vpop.f32.mrf.mxu1  ;;  %14623 = vmatmul.mubr.bf16.gmra.mxu0 %v4037_v4 }
 0x391   : > { %v3931_v43 = vmax.f32 %v14485_v15, 0.0 }
 0x392   : > { %v3528_v56 = vpop.f32.mrf.mxu1 }
 0x393   : > { %v3929_v14 = vmax.f32 %v3528_v56, 0.0  ;;  %v4039_v62 = vpack.c.bf16 %v3931_v43, %v3930_v31 }
 0x394   : > { %v14488_v58 = vpop.f32.mrf.mxu1 }
 0x395   : > { %v4038_v44 = vpack.c.bf16 %v3929_v14, %v3928_v20  ;;  %v3934_v21 = vmax.f32 %v14488_v58, 0.0 }
 0x396   : > { %v3541_v2 = vpop.f32.mrf.mxu1 }
 0x397   : > { %14626 = vmatprep.mubr.bf16.mxu0 %v4038_v44  ;;  %v3932_v53 = vmax.f32 %v3541_v2, 0.0 }
 0x398   : > { %v14489_v48 = vpop.f32.mrf.mxu1  ;;  %14627 = vmatmul.mubr.bf16.gmra.mxu0 %v4039_v62 }
 0x399   : > { %v3935_v32 = vmax.f32 %v14489_v48, 0.0 }
 0x39a   : > { %v3544_v38 = vpop.f32.mrf.mxu1 }
 0x39b   : > { %v3933_v47 = vmax.f32 %v3544_v38, 0.0  ;;  %v4041_v5 = vpack.c.bf16 %v3935_v32, %v3934_v21 }
 0x39c   : > { %v14492_v34 = vpop.f32.mrf.mxu1 }
 0x39d   : > { %v4040_v3 = vpack.c.bf16 %v3933_v47, %v3932_v53  ;;  %v3938_v16 = vmax.f32 %v14492_v34, 0.0 }
 0x39e   : > { %v3557_v9 = vpop.f32.mrf.mxu1 }
 0x39f   : > { %14630 = vmatprep.mubr.bf16.mxu0 %v4040_v3  ;;  %v3936_v59 = vmax.f32 %v3557_v9, 0.0 }
 0x3a0   : > { %v14493_v28 = vpop.f32.mrf.mxu1  ;;  %14631 = vmatmul.mubr.bf16.gmra.mxu0 %v4041_v5 }
 0x3a1   : > { %v3939_v6 = vmax.f32 %v14493_v28, 0.0 }
 0x3a2   : > { %v3560_v52 = vpop.f32.mrf.mxu1 }
 0x3a3   : > { %v3937_v60 = vmax.f32 %v3560_v52, 0.0  ;;  %v4043_v27 = vpack.c.bf16 %v3939_v6, %v3938_v16 }
 0x3a4   : > { %v14496_v30 = vpop.f32.mrf.mxu1 }
 0x3a5   : > { %v4042_v22 = vpack.c.bf16 %v3937_v60, %v3936_v59  ;;  %v3942_v1 = vmax.f32 %v14496_v30, 0.0 }
 0x3a6   : > { %v3573_v42 = vpop.f32.mrf.mxu1 }
 0x3a7   : > { %14634 = vmatprep.mubr.bf16.mxu0 %v4042_v22  ;;  %v3940_v18 = vmax.f32 %v3573_v42, 0.0 }
 0x3a8   : > { %v14497_v41 = vpop.f32.mrf.mxu1  ;;  %14635 = vmatmul.mubr.bf16.gmra.mxu0 %v4043_v27 }
 0x3a9   : > { %v3943_v8 = vmax.f32 %v14497_v41, 0.0 }
 0x3aa   : > { %v3576_v39 = vpop.f32.mrf.mxu1 }
 0x3ab   : > { %v3941_v19 = vmax.f32 %v3576_v39, 0.0  ;;  %v4045_v7 = vpack.c.bf16 %v3943_v8, %v3942_v1 }
 0x3ac   : > { %v14500_v57 = vpop.f32.mrf.mxu1 }
 0x3ad   : > { %v4044_v51 = vpack.c.bf16 %v3941_v19, %v3940_v18  ;;  %v3946_v61 = vmax.f32 %v14500_v57, 0.0 }
 0x3ae   : > { %v3589_v25 = vpop.f32.mrf.mxu1 }
 0x3af   : > { %14638 = vmatprep.mubr.bf16.mxu0 %v4044_v51  ;;  %v3944_v35 = vmax.f32 %v3589_v25, 0.0 }
 0x3b0   : > { %v14501_v36 = vpop.f32.mrf.mxu1  ;;  %14639 = vmatmul.mubr.bf16.gmra.mxu0 %v4045_v7 }
 0x3b1   : > { %v3947_v13 = vmax.f32 %v14501_v36, 0.0 }
 0x3b2   : > { %v3592_v0 = vpop.f32.mrf.mxu1 }
 0x3b3   : > { %v3945_v45 = vmax.f32 %v3592_v0, 0.0  ;;  %v4047_v50 = vpack.c.bf16 %v3947_v13, %v3946_v61 }
 0x3b4   : > { %v14504_v24 = vpop.f32.mrf.mxu1 }
 0x3b5   : > { %v4046_v54 = vpack.c.bf16 %v3945_v45, %v3944_v35  ;;  %v3950_v55 = vmax.f32 %v14504_v24, 0.0 }
 0x3b6   : > { %v3605_v12 = vpop.f32.mrf.mxu1 }
 0x3b7   : > { %14642 = vmatprep.mubr.bf16.mxu0 %v4046_v54  ;;  %v3948_v11 = vmax.f32 %v3605_v12, 0.0 }
 0x3b8   : > { %v14505_v40 = vpop.f32.mrf.mxu1  ;;  %14643 = vmatmul.mubr.bf16.gmra.mxu0 %v4047_v50 }
 0x3b9   : > { %v3951_v23 = vmax.f32 %v14505_v40, 0.0 }
 0x3ba   : > { %v3608_v49 = vpop.f32.mrf.mxu1 }
 0x3bb   : > { %v3949_v37 = vmax.f32 %v3608_v49, 0.0  ;;  %v4049_v26 = vpack.c.bf16 %v3951_v23, %v3950_v55 }
 0x3bc   : > { %v14508_v33 = vpop.f32.mrf.mxu1 }
 0x3bd   : > { %v4048_v17 = vpack.c.bf16 %v3949_v37, %v3948_v11  ;;  %v3954_v20 = vmax.f32 %v14508_v33, 0.0 }
 0x3be   : > { %v3621_v4 = vpop.f32.mrf.mxu1 }
 0x3bf   : > { %14646 = vmatprep.mubr.bf16.mxu0 %v4048_v17  ;;  %v3952_v43 = vmax.f32 %v3621_v4, 0.0 }
 0x3c0   : > { %v14509_v29 = vpop.f32.mrf.mxu1  ;;  %14647 = vmatmul.mubr.bf16.gmra.mxu0 %v4049_v26 }
 0x3c1   : > { %v3955_v63 = vmax.f32 %v14509_v29, 0.0 }
 0x3c2   : > { %v3624_v15 = vpop.f32.mrf.mxu1 }
 0x3c3   : > { %v3953_v56 = vmax.f32 %v3624_v15, 0.0  ;;  %v4051_v58 = vpack.c.bf16 %v3955_v63, %v3954_v20 }
 0x3c4   : > { %v14512_v14 = vpop.f32.mrf.mxu1 }
 0x3c5   : > { %v4050_v31 = vpack.c.bf16 %v3953_v56, %v3952_v43  ;;  %v3958_v53 = vmax.f32 %v14512_v14, 0.0 }
 0x3c6   : > { %v3637_v44 = vpop.f32.mrf.mxu1 }
 0x3c7   : > { %14650 = vmatprep.mubr.bf16.mxu0 %v4050_v31  ;;  %v3956_v32 = vmax.f32 %v3637_v44, 0.0 }
 0x3c8   : > { %v14513_v62 = vpop.f32.mrf.mxu1  ;;  %14651 = vmatmul.mubr.bf16.gmra.mxu0 %v4051_v58 }
 0x3c9   : > { %v3959_v2 = vmax.f32 %v14513_v62, 0.0 }
 0x3ca   : > { %v3640_v48 = vpop.f32.mrf.mxu1 }
 0x3cb   : > { %v3957_v38 = vmax.f32 %v3640_v48, 0.0  ;;  %v4053_v34 = vpack.c.bf16 %v3959_v2, %v3958_v53 }
 0x3cc   : > { %v14516_v47 = vpop.f32.mrf.mxu1 }
 0x3cd   : > { %v4052_v21 = vpack.c.bf16 %v3957_v38, %v3956_v32  ;;  %v3962_v59 = vmax.f32 %v14516_v47, 0.0 }
 0x3ce   : > { %v3653_v3 = vpop.f32.mrf.mxu1 }
 0x3cf   : > { %14654 = vmatprep.mubr.bf16.mxu0 %v4052_v21  ;;  %v3960_v6 = vmax.f32 %v3653_v3, 0.0 }
 0x3d0   : > { %v14517_v5 = vpop.f32.mrf.mxu1  ;;  %14655 = vmatmul.mubr.bf16.gmra.mxu0 %v4053_v34 }
 0x3d1   : > { %v3963_v9 = vmax.f32 %v14517_v5, 0.0 }
 0x3d2   : > { %v3656_v28 = vpop.f32.mrf.mxu1 }
 0x3d3   : > { %v3961_v52 = vmax.f32 %v3656_v28, 0.0  ;;  %v4055_v30 = vpack.c.bf16 %v3963_v9, %v3962_v59 }
 0x3d4   : > { %v14520_v60 = vpop.f32.mrf.mxu1 }
 0x3d5   : > { %v4054_v16 = vpack.c.bf16 %v3961_v52, %v3960_v6  ;;  %v3966_v18 = vmax.f32 %v14520_v60, 0.0 }
 0x3d6   : > { %v3669_v22 = vpop.f32.mrf.mxu1 }
 0x3d7   : > { %14658 = vmatprep.mubr.bf16.mxu0 %v4054_v16  ;;  %v3964_v8 = vmax.f32 %v3669_v22, 0.0 }
 0x3d8   : > { %v14521_v27 = vpop.f32.mrf.mxu1  ;;  %14659 = vmatmul.mubr.bf16.gmra.mxu0 %v4055_v30 }
 0x3d9   : > { %v3967_v42 = vmax.f32 %v14521_v27, 0.0 }
 0x3da   : > { %v3672_v41 = vpop.f32.mrf.mxu1 }
 0x3db   : > { %v3965_v39 = vmax.f32 %v3672_v41, 0.0  ;;  %v4057_v57 = vpack.c.bf16 %v3967_v42, %v3966_v18 }
 0x3dc   : > { %v14524_v19 = vpop.f32.mrf.mxu1 }
 0x3dd   : > { %v4056_v1 = vpack.c.bf16 %v3965_v39, %v3964_v8  ;;  %v3970_v35 = vmax.f32 %v14524_v19, 0.0 }
 0x3de   : > { %v3685_v51 = vpop.f32.mrf.mxu1 }
 0x3df   : > { %14662 = vmatprep.mubr.bf16.mxu0 %v4056_v1  ;;  %v3968_v13 = vmax.f32 %v3685_v51, 0.0 }
 0x3e0   : > { %v14525_v7 = vpop.f32.mrf.mxu1  ;;  %14663 = vmatmul.mubr.bf16.gmra.mxu0 %v4057_v57 }
 0x3e1   : > { %v3971_v25 = vmax.f32 %v14525_v7, 0.0 }
 0x3e2   : > { %v3688_v36 = vpop.f32.mrf.mxu1 }
 0x3e3   : > { %v3969_v0 = vmax.f32 %v3688_v36, 0.0  ;;  %v4059_v24 = vpack.c.bf16 %v3971_v25, %v3970_v35 }
 0x3e4   : > { %v14528_v45 = vpop.f32.mrf.mxu1 }
 0x3e5   : > { %v4058_v61 = vpack.c.bf16 %v3969_v0, %v3968_v13  ;;  %v3974_v11 = vmax.f32 %v14528_v45, 0.0 }
 0x3e6   : > { %v3701_v54 = vpop.f32.mrf.mxu1 }
 0x3e7   : > { %14666 = vmatprep.mubr.bf16.mxu0 %v4058_v61  ;;  %v3972_v23 = vmax.f32 %v3701_v54, 0.0 }
 0x3e8   : > { %v14529_v50 = vpop.f32.mrf.mxu1  ;;  %14667 = vmatmul.mubr.bf16.gmra.mxu0 %v4059_v24 }
 0x3e9   : > { %v3975_v12 = vmax.f32 %v14529_v50, 0.0 }
 0x3ea   : > { %v3704_v40 = vpop.f32.mrf.mxu1 }
 0x3eb   : > { %v3973_v49 = vmax.f32 %v3704_v40, 0.0  ;;  %v4061_v33 = vpack.c.bf16 %v3975_v12, %v3974_v11 }
 0x3ec   : > { %v14532_v37 = vpop.f32.mrf.mxu1 }
 0x3ed   : > { %v4060_v55 = vpack.c.bf16 %v3973_v49, %v3972_v23  ;;  %v3978_v43 = vmax.f32 %v14532_v37, 0.0 }
 0x3ee   : > { %v3717_v17 = vpop.f32.mrf.mxu1 }
 0x3ef   : > { %14670 = vmatprep.mubr.bf16.mxu0 %v4060_v55  ;;  %v3976_v63 = vmax.f32 %v3717_v17, 0.0 }
 0x3f0   : > { %v14533_v26 = vpop.f32.mrf.mxu1  ;;  %14671 = vmatmul.mubr.bf16.gmra.mxu0 %v4061_v33 }
 0x3f1   : > { %v3979_v4 = vmax.f32 %v14533_v26, 0.0 }
 0x3f2   : > { %v3720_v29 = vpop.f32.mrf.mxu1 }
 0x3f3   : > { %v3977_v15 = vmax.f32 %v3720_v29, 0.0  ;;  %v4063_v14 = vpack.c.bf16 %v3979_v4, %v3978_v43 }
 0x3f4   : > { %v14536_v56 = vpop.f32.mrf.mxu1 }
 0x3f5   : > { %v4062_v20 = vpack.c.bf16 %v3977_v15, %v3976_v63  ;;  %v3982_v32 = vmax.f32 %v14536_v56, 0.0  ;;  %v15909_v63 = vld [vmem:[%s19833_s9 + $0x30] sm:$0xff]  }
 0x3f6   : > { %v3733_v31 = vpop.f32.mrf.mxu1 }
 0x3f7   : > { %14674 = vmatprep.mubr.bf16.mxu0 %v4062_v20  ;;  %v3980_v2 = vmax.f32 %v3733_v31, 0.0 }
 0x3f8   : > { %v14537_v58 = vpop.f32.mrf.mxu1  ;;  %14675 = vmatmul.mubr.bf16.gmra.mxu0 %v4063_v14 }
 0x3f9   : > { %v3983_v44 = vmax.f32 %v14537_v58, 0.0 }
 0x3fa   : > { %v3736_v62 = vpop.f32.mrf.mxu1 }
 0x3fb   : > { %v3981_v48 = vmax.f32 %v3736_v62, 0.0  ;;  %v4065_v47 = vpack.c.bf16 %v3983_v44, %v3982_v32 }
 0x3fc   : > { %v14540_v38 = vpop.f32.mrf.mxu1 }
 0x3fd   : > { %v4064_v53 = vpack.c.bf16 %v3981_v48, %v3980_v2  ;;  %v3986_v6 = vmax.f32 %v14540_v38, 0.0  ;;  %v15910_v48 = vld [vmem:[%s19833_s9 + $0x28] sm:$0xff]  }
 0x3fe   : > { %v3749_v21 = vpop.f32.mrf.mxu1 }
 0x3ff   : > { %14678 = vmatprep.mubr.bf16.mxu0 %v4064_v53  ;;  %v3984_v9 = vmax.f32 %v3749_v21, 0.0 }
 0x400   : > { %v14541_v34 = vpop.f32.mrf.mxu1  ;;  %14679 = vmatmul.mubr.bf16.gmra.mxu0 %v4065_v47 }
 0x401   : > { %v3987_v3 = vmax.f32 %v14541_v34, 0.0 }
 0x402   : > { %v3752_v5 = vpop.f32.mrf.mxu1 }
 0x403   : > { %v3985_v28 = vmax.f32 %v3752_v5, 0.0  ;;  %v4067_v60 = vpack.c.bf16 %v3987_v3, %v3986_v6 }
 0x404   : > { %v14544_v52 = vpop.f32.mrf.mxu1 }
 0x405   : > { %v4066_v59 = vpack.c.bf16 %v3985_v28, %v3984_v9  ;;  %v3990_v8 = vmax.f32 %v14544_v52, 0.0  ;;  %v15911_v28 = vld [vmem:[%s19833_s9 + $0x20] sm:$0xff]  }
 0x406   : > { %v3765_v16 = vpop.f32.mrf.mxu1 }
 0x407   : > { %14682 = vmatprep.mubr.bf16.mxu0 %v4066_v59  ;;  %v3988_v42 = vmax.f32 %v3765_v16, 0.0 }
 0x408   : > { %v14545_v30 = vpop.f32.mrf.mxu1  ;;  %14683 = vmatmul.mubr.bf16.gmra.mxu0 %v4067_v60 }
 0x409   : > { %v3991_v22 = vmax.f32 %v14545_v30, 0.0 }
 0x40a   : > { %v3768_v27 = vpop.f32.mrf.mxu1 }
 0x40b   : > { %v3989_v41 = vmax.f32 %v3768_v27, 0.0  ;;  %v4069_v19 = vpack.c.bf16 %v3991_v22, %v3990_v8  ;;  %v15912_v8 = vld [vmem:[%s19833_s9 + $0x18] sm:$0xff]  }
 0x40c   : > { %v14548_v39 = vpop.f32.mrf.mxu1 }
 0x40d   : > { %v4068_v18 = vpack.c.bf16 %v3989_v41, %v3988_v42  ;;  %v3994_v35 = vmax.f32 %v14548_v39, 0.0 }
 0x40e   : > { %v3781_v1 = vpop.f32.mrf.mxu1 }
 0x40f   : > { %14686 = vmatprep.mubr.bf16.mxu0 %v4068_v18  ;;  %v3992_v13 = vmax.f32 %v3781_v1, 0.0 }
 0x410   : > { %v14549_v57 = vpop.f32.mrf.mxu1  ;;  %v14592_v51 = vpop.f32.mrf.mxu0  ;;  %14687 = vmatmul.mubr.bf16.gmra.mxu0 %v4069_v19 }
 0x411   : > { %v3995_v7 = vmax.f32 %v14549_v57, 0.0  ;;  %v4695_v11 = vmax.f32 %v14592_v51, 0.0 }
 0x412   : > { %v3784_v25 = vpop.f32.mrf.mxu1  ;;  %v4182_v36 = vpop.f32.mrf.mxu0 }
 0x413   : > { %v3993_v0 = vmax.f32 %v3784_v25, 0.0  ;;  %v4071_v54 = vpack.c.bf16 %v3995_v7, %v3994_v35  ;;  %v4693_v23 = vmax.f32 %v4182_v36, 0.0 }
 0x414   : > { %v14552_v45 = vpop.f32.mrf.mxu1  ;;  %v14593_v61 = vpop.f32.mrf.mxu0 }
 0x415   : > { %v4070_v24 = vpack.c.bf16 %v3993_v0, %v3992_v13  ;;  %v4696_v50 = vmax.f32 %v14593_v61, 0.0  ;;  %v3998_v56 = vmax.f32 %v14552_v45, 0.0 }
 0x416   : > { %v3797_v12 = vpop.f32.mrf.mxu1  ;;  %v4185_v40 = vpop.f32.mrf.mxu0 }
 0x417   : > { %v4694_v49 = vmax.f32 %v4185_v40, 0.0  ;;  %14690 = vmatprep.mubr.bf16.mxu0 %v4070_v24  ;;  %v4822_v17 = vpack.c.bf16 %v4696_v50, %v4695_v11  ;;  %v3996_v15 = vmax.f32 %v3797_v12, 0.0 }
 0x418   : > { %v14553_v37 = vpop.f32.mrf.mxu1  ;;  %v14596_v55 = vpop.f32.mrf.mxu0  ;;  %14691 = vmatmul.mubr.bf16.gmra.mxu0 %v4071_v54 }
 0x419   : > { %v4821_v33 = vpack.c.bf16 %v4694_v49, %v4693_v23  ;;  %v3999_v26 = vmax.f32 %v14553_v37, 0.0  ;;  %v4699_v53 = vmax.f32 %v14596_v55, 0.0 }
 0x41a   : > { %v3800_v4 = vpop.f32.mrf.mxu1  ;;  %v4198_v29 = vpop.f32.mrf.mxu0 }
 0x41b   : > { %v3997_v43 = vmax.f32 %v3800_v4, 0.0  ;;  %14734 = vmatprep.mubr.bf16.mxu1 %v4821_v33  ;;  %v4073_v58 = vpack.c.bf16 %v3999_v26, %v3998_v56  ;;  %v4697_v32 = vmax.f32 %v4198_v29, 0.0 }
 0x41c   : > { %v14556_v20 = vpop.f32.mrf.mxu1  ;;  %v14597_v14 = vpop.f32.mrf.mxu0  ;;  %14735 = vmatmul.mubr.bf16.vlgmr.msra.gmra.mxu1 %v4822_v17 }
 0x41d   : > { %v4072_v31 = vpack.c.bf16 %v3997_v43, %v3996_v15  ;;  %14999 = vmatpush3.bf16.msra.mxu1 %v17296_v46  ;;  %v4700_v44 = vmax.f32 %v14597_v14, 0.0  ;;  %v4002_v59 = vmax.f32 %v14556_v20, 0.0 }
 0x41e   : > { %v3813_v62 = vpop.f32.mrf.mxu1  ;;  %v4201_v2 = vpop.f32.mrf.mxu0  ;;  %15000 = vmatprep.subr.bf16.mxu1 %v15909_v63 }
 0x41f   : > { %v4698_v38 = vmax.f32 %v4201_v2, 0.0  ;;  %14694 = vmatprep.mubr.bf16.mxu0 %v4072_v31  ;;  %v4824_v3 = vpack.c.bf16 %v4700_v44, %v4699_v53  ;;  %v4000_v6 = vmax.f32 %v3813_v62, 0.0 }
 0x420   : > { %v14557_v47 = vpop.f32.mrf.mxu1  ;;  %v14600_v21 = vpop.f32.mrf.mxu0  ;;  %14695 = vmatmul.mubr.bf16.gmra.mxu0 %v4073_v58 }
 0x421   : > { %v4823_v34 = vpack.c.bf16 %v4698_v38, %v4697_v32  ;;  %15001 = vmatpush3.bf16.msra.mxu1 %v15909_v63  ;;  %v4003_v46 = vmax.f32 %v14557_v47, 0.0  ;;  %v4703_v19 = vmax.f32 %v14600_v21, 0.0 }
 0x422   : > { %v3816_v5 = vpop.f32.mrf.mxu1  ;;  %v4214_v9 = vpop.f32.mrf.mxu0  ;;  %15002 = vmatprep.subr.bf16.mxu1 %v15910_v48 }
 0x423   : > { %v4001_v52 = vmax.f32 %v3816_v5, 0.0  ;;  %14738 = vmatprep.mubr.bf16.mxu1 %v4823_v34  ;;  %v4075_v22 = vpack.c.bf16 %v4003_v46, %v4002_v59  ;;  %v4701_v39 = vmax.f32 %v4214_v9, 0.0 }
 0x424   : > { %v14560_v60 = vpop.f32.mrf.mxu1  ;;  %v14601_v16 = vpop.f32.mrf.mxu0  ;;  %14739 = vmatmul.mubr.bf16.gmra.mxu1 %v4824_v3 }
 0x425   : > { %v4074_v30 = vpack.c.bf16 %v4001_v52, %v4000_v6  ;;  %15003 = vmatpush3.bf16.msra.mxu1 %v15910_v48  ;;  %v4704_v27 = vmax.f32 %v14601_v16, 0.0  ;;  %v4006_v45 = vmax.f32 %v14560_v60, 0.0 }
 0x426   : > { %v3829_v42 = vpop.f32.mrf.mxu1  ;;  %v4217_v41 = vpop.f32.mrf.mxu0  ;;  %15004 = vmatprep.subr.bf16.mxu1 %v15911_v28 }
 0x427   : > { %v4702_v18 = vmax.f32 %v4217_v41, 0.0  ;;  %14698 = vmatprep.mubr.bf16.mxu0 %v4074_v30  ;;  %v4826_v7 = vpack.c.bf16 %v4704_v27, %v4703_v19  ;;  %v4004_v0 = vmax.f32 %v3829_v42, 0.0 }
 0x428   : > { %v14561_v1 = vpop.f32.mrf.mxu1  ;;  %v14604_v57 = vpop.f32.mrf.mxu0  ;;  %14699 = vmatmul.mubr.bf16.gmra.mxu0 %v4075_v22 }
 0x429   : > { %v4825_v51 = vpack.c.bf16 %v4702_v18, %v4701_v39  ;;  %15005 = vmatpush3.bf16.msra.mxu1 %v15911_v28  ;;  %v4007_v25 = vmax.f32 %v14561_v1, 0.0  ;;  %v4707_v37 = vmax.f32 %v14604_v57, 0.0 }
 0x42a   : > { %v3832_v36 = vpop.f32.mrf.mxu1  ;;  %v4230_v13 = vpop.f32.mrf.mxu0  ;;  %15006 = vmatprep.subr.bf16.mxu1 %v15912_v8 }
 0x42b   : > { %v4005_v35 = vmax.f32 %v3832_v36, 0.0  ;;  %14742 = vmatprep.mubr.bf16.mxu1 %v4825_v51  ;;  %v4077_v50 = vpack.c.bf16 %v4007_v25, %v4006_v45  ;;  %v4705_v49 = vmax.f32 %v4230_v13, 0.0 }
 0x42c   : > { %v14564_v61 = vpop.f32.mrf.mxu1  ;;  %v14605_v24 = vpop.f32.mrf.mxu0  ;;  %14743 = vmatmul.mubr.bf16.gmra.mxu1 %v4826_v7 }
 0x42d   : > { %v4076_v54 = vpack.c.bf16 %v4005_v35, %v4004_v0  ;;  %15007 = vmatpush3.bf16.msra.mxu1 %v15912_v8  ;;  %v4708_v12 = vmax.f32 %v14605_v24, 0.0  ;;  %v4010_v56 = vmax.f32 %v14564_v61, 0.0  ;;  %v15913_v8 = vld [vmem:[%s19833_s9 + $0x10] sm:$0xff]  }
 0x42e   : > { %v3845_v40 = vpop.f32.mrf.mxu1  ;;  %v4233_v23 = vpop.f32.mrf.mxu0  ;;  %15008 = vmatprep.subr.bf16.mxu1 %v15913_v8 }
 0x42f   : > { %v4706_v11 = vmax.f32 %v4233_v23, 0.0  ;;  %14702 = vmatprep.mubr.bf16.mxu0 %v4076_v54  ;;  %v4828_v26 = vpack.c.bf16 %v4708_v12, %v4707_v37  ;;  %v4008_v15 = vmax.f32 %v3845_v40, 0.0 }
 0x430   : > { %v14565_v55 = vpop.f32.mrf.mxu1  ;;  %v14608_v33 = vpop.f32.mrf.mxu0  ;;  %14703 = vmatmul.mubr.bf16.gmra.mxu0 %v4077_v50 }
 0x431   : > { %v4827_v17 = vpack.c.bf16 %v4706_v11, %v4705_v49  ;;  %v4011_v4 = vmax.f32 %v14565_v55, 0.0  ;;  %v4711_v38 = vmax.f32 %v14608_v33, 0.0  ;;  %15009 = vmatpush3.bf16.msra.mxu1 %v15913_v8 }
 0x432   : > { %v3848_v29 = vpop.f32.mrf.mxu1  ;;  %v4246_v63 = vpop.f32.mrf.mxu0 }
 0x433   : > { %v4009_v43 = vmax.f32 %v3848_v29, 0.0  ;;  %14746 = vmatprep.mubr.bf16.mxu1 %v4827_v17  ;;  %v4079_v58 = vpack.c.bf16 %v4011_v4, %v4010_v56  ;;  %v4709_v48 = vmax.f32 %v4246_v63, 0.0  ;;  %v19986_v56 = vld [vmem:[#allocation3_spill] sm:$0xff] }
 0x434   : > { %v14568_v20 = vpop.f32.mrf.mxu1  ;;  %v14609_v14 = vpop.f32.mrf.mxu0  ;;  %14747 = vmatmul.mubr.bf16.gmra.mxu1 %v4828_v26 }
 0x435   : > { %v4078_v31 = vpack.c.bf16 %v4009_v43, %v4008_v15  ;;  %v4712_v44 = vmax.f32 %v14609_v14, 0.0  ;;  %v4014_v6 = vmax.f32 %v14568_v20, 0.0  ;;  %v19985_v15 = vld [vmem:[#allocation2_spill] sm:$0xff] }
 0x436   : > { %v3861_v62 = vpop.f32.mrf.mxu1  ;;  %v4249_v2 = vpop.f32.mrf.mxu0 }
 0x437   : > { %v4710_v32 = vmax.f32 %v4249_v2, 0.0  ;;  %14706 = vmatprep.mubr.bf16.mxu0 %v4078_v31  ;;  %v4830_v34 = vpack.c.bf16 %v4712_v44, %v4711_v38  ;;  %v4012_v9 = vmax.f32 %v3861_v62, 0.0 }
 0x438   : > { %v14569_v53 = vpop.f32.mrf.mxu1  ;;  %v14612_v47 = vpop.f32.mrf.mxu0  ;;  %14707 = vmatmul.mubr.bf16.gmra.mxu0 %v4079_v58 }
 0x439   : > { %v4829_v21 = vpack.c.bf16 %v4710_v32, %v4709_v48  ;;  %v4015_v3 = vmax.f32 %v14569_v53, 0.0  ;;  %v4715_v39 = vmax.f32 %v14612_v47, 0.0  ;;  %v19987_v32 = vld [vmem:[#allocation6_spill] sm:$0xff]  ;;  %v19988_v53 = vld [vmem:[#allocation7_spill] sm:$0xff] }
 0x43a   : > { %v3864_v46 = vpop.f32.mrf.mxu1  ;;  %v4262_v5 = vpop.f32.mrf.mxu0 }
 0x43b   : > { %v4013_v28 = vmax.f32 %v3864_v46, 0.0  ;;  %14750 = vmatprep.mubr.bf16.mxu1 %v4829_v21  ;;  %v4081_v16 = vpack.c.bf16 %v4015_v3, %v4014_v6  ;;  %v4713_v42 = vmax.f32 %v4262_v5, 0.0 }
 0x43c   : > { %v14572_v52 = vpop.f32.mrf.mxu1  ;;  %v14613_v59 = vpop.f32.mrf.mxu0  ;;  %14751 = vmatmul.mubr.bf16.gmra.mxu1 %v4830_v34 }
 0x43d   : > { %v4080_v60 = vpack.c.bf16 %v4013_v28, %v4012_v9  ;;  %v4716_v30 = vmax.f32 %v14613_v59, 0.0  ;;  %v4018_v0 = vmax.f32 %v14572_v52, 0.0  ;;  %v15914_v28 = vld [vmem:[%s19833_s9 + $0x8] sm:$0xff]  }
 0x43e   : > { %v3877_v22 = vpop.f32.mrf.mxu1  ;;  %v4265_v27 = vpop.f32.mrf.mxu0  ;;  %v19989_v59 = vld [vmem:[#allocation11_spill] sm:$0xff]  ;;  %15010 = vmatprep.subr.bf16.mxu1 %v15914_v28 }
 0x43f   : > { %v4714_v41 = vmax.f32 %v4265_v27, 0.0  ;;  %14710 = vmatprep.mubr.bf16.mxu0 %v4080_v60  ;;  %v4832_v57 = vpack.c.bf16 %v4716_v30, %v4715_v39  ;;  %v4016_v36 = vmax.f32 %v3877_v22, 0.0  ;;  %15011 = vmatpush3.bf16.msra.mxu1 %v15914_v28 }
 0x440   : > { %v14573_v18 = vpop.f32.mrf.mxu1  ;;  %v14616_v19 = vpop.f32.mrf.mxu0  ;;  %14711 = vmatmul.mubr.bf16.gmra.mxu0 %v4081_v16  ;;  %v19990_v16 = vld [vmem:[#allocation12_spill] sm:$0xff] }
 0x441   : > { %v4831_v1 = vpack.c.bf16 %v4714_v41, %v4713_v42  ;;  %v4019_v51 = vmax.f32 %v14573_v18, 0.0  ;;  %v4719_v40 = vmax.f32 %v14616_v19, 0.0 }
 0x442   : > { %v3880_v7 = vpop.f32.mrf.mxu1  ;;  %v4278_v25 = vpop.f32.mrf.mxu0 }
 0x443   : > { %v4017_v13 = vmax.f32 %v3880_v7, 0.0  ;;  %14754 = vmatprep.mubr.bf16.mxu1 %v4831_v1  ;;  %v4083_v61 = vpack.c.bf16 %v4019_v51, %v4018_v0  ;;  %v4717_v50 = vmax.f32 %v4278_v25, 0.0  ;;  %v19991_v1 = vld [vmem:[#allocation15_spill] sm:$0xff]  ;;  %v19992_v51 = vld [vmem:[#allocation16_spill] sm:$0xff]  ;;  %v15915_v7 = vld [vmem:[%s19834_s10 + $0x38] sm:$0xff]  }
 0x444   : > { %v14617_v35 = vpop.f32.mrf.mxu0  ;;  %14755 = vmatmul.mubr.bf16.gmra.mxu1 %v4832_v57  ;;  %15142 = vmatprep.subr.bf16.mxu0 %v15915_v7 }
 0x445   : > { %v4082_v45 = vpack.c.bf16 %v4017_v13, %v4016_v36  ;;  %v4720_v24 = vmax.f32 %v14617_v35, 0.0 }
 0x446   : > { %v4281_v54 = vpop.f32.mrf.mxu0 }
 0x447   : > { %v4718_v12 = vmax.f32 %v4281_v54, 0.0  ;;  %14714 = vmatprep.mubr.bf16.mxu0 %v4082_v45  ;;  %v4834_v11 = vpack.c.bf16 %v4720_v24, %v4719_v40  ;;  %v19994_v40 = vld [vmem:[#allocation20_spill] sm:$0xff] }
 0x448   : > { %v14620_v23 = vpop.f32.mrf.mxu0  ;;  %14715 = vmatmul.mubr.bf16.gmra.mxu0 %v4083_v61 }
 0x449   : > { %v4833_v49 = vpack.c.bf16 %v4718_v12, %v4717_v50  ;;  %14870 = vmatprep.mubr.msk.bf16.mxu0 %vm744_vm2, %v16582_v10  ;;  %v4723_v29 = vmax.f32 %v14620_v23, 0.0  ;;  %v19993_v50 = vld [vmem:[#allocation19_spill] sm:$0xff] }
 0x44a   : > { %v4294_v37 = vpop.f32.mrf.mxu0 }
 0x44b   : > { %14758 = vmatprep.mubr.bf16.mxu1 %v4833_v49  ;;  %v4721_v26 = vmax.f32 %v4294_v37, 0.0 }
 0x44c   : > { %v14621_v55 = vpop.f32.mrf.mxu0  ;;  %14759 = vmatmul.mubr.bf16.gmra.mxu1 %v4834_v11 }
 0x44d   : > { %v4724_v33 = vmax.f32 %v14621_v55, 0.0 }
 0x44e   : > { %v4297_v17 = vpop.f32.mrf.mxu0 }
 0x44f   : > { %v4722_v4 = vmax.f32 %v4297_v17, 0.0  ;;  %v4836_v20 = vpack.c.bf16 %v4724_v33, %v4723_v29  ;;  %v19995_v29 = vld [vmem:[#allocation23_spill] sm:$0xff] }
 0x450   : > { %v14624_v63 = vpop.f32.mrf.mxu0  ;;  %14871 = vmatmul.mubr.msk.bf16.vlgmr.msra.gmra.mxu0 %vm744_vm2, %v19985_v15  ;;  %v19996_v15 = vld [vmem:[#allocation24_spill] sm:$0xff] }
 0x451   : > { %v4835_v43 = vpack.c.bf16 %v4722_v4, %v4721_v26  ;;  %14874 = vmatprep.mubr.msk.bf16.mxu0 %vm744_vm2, %v19986_v56  ;;  %v4727_v2 = vmax.f32 %v14624_v63, 0.0  ;;  %15143 = vmatpush3.bf16.msra.mxu0 %v15915_v7 }
 0x452   : > { %v4310_v10 = vpop.f32.mrf.mxu0 }
 0x453   : > { %14762 = vmatprep.mubr.bf16.mxu1 %v4835_v43  ;;  %v4725_v44 = vmax.f32 %v4310_v10, 0.0 }
 0x454   : > { %v14625_v14 = vpop.f32.mrf.mxu0  ;;  %14763 = vmatmul.mubr.bf16.gmra.mxu1 %v4836_v20 }
 0x455   : > { %v4728_v31 = vmax.f32 %v14625_v14, 0.0 }
 0x456   : > { %v4313_v58 = vpop.f32.mrf.mxu0 }
 0x457   : > { %v4726_v62 = vmax.f32 %v4313_v58, 0.0  ;;  %v4838_v47 = vpack.c.bf16 %v4728_v31, %v4727_v2 }
 0x458   : > { %v14628_v48 = vpop.f32.mrf.mxu0  ;;  %14875 = vmatmul.mubr.msk.bf16.gmra.mxu0 %vm744_vm2, %v19987_v32 }
 0x459   : > { %v4837_v38 = vpack.c.bf16 %v4726_v62, %v4725_v44  ;;  %14878 = vmatprep.mubr.msk.bf16.mxu0 %vm744_vm2, %v19988_v53  ;;  %v4731_v6 = vmax.f32 %v14628_v48, 0.0  ;;  %v15916_v44 = vld [vmem:[%s19833_s9] sm:$0xff]   ;;  %v19997_v48 = vld [vmem:[#allocation27_spill] sm:$0xff] }
 0x45a   : > { %v4326_v21 = vpop.f32.mrf.mxu0  ;;  %15012 = vmatprep.subr.bf16.mxu1 %v15916_v44 }
 0x45b   : > { %14766 = vmatprep.mubr.bf16.mxu1 %v4837_v38  ;;  %v4729_v5 = vmax.f32 %v4326_v21, 0.0  ;;  %v19998_v38 = vld [vmem:[#allocation28_spill] sm:$0xff]  ;;  %15013 = vmatpush3.bf16.msra.mxu1 %v15916_v44  ;;  %v20007_v44 = vld [vmem:[#allocation47_spill] sm:$0xff] }
 0x45c   : > { %v14629_v34 = vpop.f32.mrf.mxu0  ;;  %14767 = vmatmul.mubr.bf16.gmra.mxu1 %v4838_v47 }
 0x45d   : > { %v4732_v3 = vmax.f32 %v14629_v34, 0.0 }
 0x45e   : > { %v4329_v46 = vpop.f32.mrf.mxu0 }
 0x45f   : > { %v4730_v9 = vmax.f32 %v4329_v46, 0.0  ;;  %v4840_v30 = vpack.c.bf16 %v4732_v3, %v4731_v6  ;;  %v19999_v6 = vld [vmem:[#allocation31_spill] sm:$0xff] }
 0x460   : > { %v14632_v52 = vpop.f32.mrf.mxu0  ;;  %14879 = vmatmul.mubr.msk.bf16.gmra.mxu0 %vm744_vm2, %v19989_v59  ;;  %v20000_v59 = vld [vmem:[#allocation32_spill] sm:$0xff] }
 0x461   : > { %v4839_v60 = vpack.c.bf16 %v4730_v9, %v4729_v5  ;;  %14882 = vmatprep.mubr.msk.bf16.mxu0 %vm744_vm2, %v19990_v16  ;;  %v4735_v18 = vmax.f32 %v14632_v52, 0.0 }
 0x462   : > { %v4342_v22 = vpop.f32.mrf.mxu0 }
 0x463   : > { %14770 = vmatprep.mubr.bf16.mxu1 %v4839_v60  ;;  %v4733_v8 = vmax.f32 %v4342_v22, 0.0  ;;  %v15917_v60 = vld [vmem:[%s19834_s10 + $0x30] sm:$0xff]  }
 0x464   : > { %v14633_v27 = vpop.f32.mrf.mxu0  ;;  %14771 = vmatmul.mubr.bf16.gmra.mxu1 %v4840_v30  ;;  %15144 = vmatprep.subr.bf16.mxu0 %v15917_v60 }
 0x465   : > { %v4736_v42 = vmax.f32 %v14633_v27, 0.0  ;;  %15145 = vmatpush3.bf16.msra.mxu0 %v15917_v60 }
 0x466   : > { %v4345_v41 = vpop.f32.mrf.mxu0 }
 0x467   : > { %v4734_v39 = vmax.f32 %v4345_v41, 0.0  ;;  %v4842_v25 = vpack.c.bf16 %v4736_v42, %v4735_v18 }
 0x468   : > { %v14636_v19 = vpop.f32.mrf.mxu0  ;;  %14883 = vmatmul.mubr.msk.bf16.gmra.mxu0 %vm744_vm2, %v19991_v1 }
 0x469   : > { %v4841_v57 = vpack.c.bf16 %v4734_v39, %v4733_v8  ;;  %14886 = vmatprep.mubr.msk.bf16.mxu0 %vm744_vm2, %v19992_v51  ;;  %v4739_v24 = vmax.f32 %v14636_v19, 0.0  ;;  %v20001_v19 = vld [vmem:[#allocation35_spill] sm:$0xff] }
 0x46a   : > { %v4358_v36 = vpop.f32.mrf.mxu0 }
 0x46b   : > { %14774 = vmatprep.mubr.bf16.mxu1 %v4841_v57  ;;  %v4737_v45 = vmax.f32 %v4358_v36, 0.0  ;;  %v20002_v57 = vld [vmem:[#allocation36_spill] sm:$0xff] }
 0x46c   : > { %v14637_v13 = vpop.f32.mrf.mxu0  ;;  %14775 = vmatmul.mubr.bf16.gmra.mxu1 %v4842_v25 }
 0x46d   : > { %v4740_v0 = vmax.f32 %v14637_v13, 0.0 }
 0x46e   : > { %v4361_v35 = vpop.f32.mrf.mxu0 }
 0x46f   : > { %v4738_v61 = vmax.f32 %v4361_v35, 0.0  ;;  %v4844_v23 = vpack.c.bf16 %v4740_v0, %v4739_v24  ;;  %v20003_v24 = vld [vmem:[#allocation39_spill] sm:$0xff] }
 0x470   : > { %v14640_v54 = vpop.f32.mrf.mxu0  ;;  %14887 = vmatmul.mubr.msk.bf16.gmra.mxu0 %vm744_vm2, %v19993_v50  ;;  %v20004_v50 = vld [vmem:[#allocation40_spill] sm:$0xff] }
 0x471   : > { %v4843_v12 = vpack.c.bf16 %v4738_v61, %v4737_v45  ;;  %14890 = vmatprep.mubr.msk.bf16.mxu0 %vm744_vm2, %v19994_v40  ;;  %v4743_v26 = vmax.f32 %v14640_v54, 0.0 }
 0x472   : > { %v4374_v49 = vpop.f32.mrf.mxu0 }
 0x473   : > { %14778 = vmatprep.mubr.bf16.mxu1 %v4843_v12  ;;  %v4741_v33 = vmax.f32 %v4374_v49, 0.0 }
 0x474   : > { %v14641_v11 = vpop.f32.mrf.mxu0  ;;  %14779 = vmatmul.mubr.bf16.gmra.mxu1 %v4844_v23 }
 0x475   : > { %v4744_v37 = vmax.f32 %v14641_v11, 0.0 }
 0x476   : > { %v4377_v55 = vpop.f32.mrf.mxu0 }
 0x477   : > { %v4742_v17 = vmax.f32 %v4377_v55, 0.0  ;;  %v4846_v43 = vpack.c.bf16 %v4744_v37, %v4743_v26  ;;  %v20005_v26 = vld [vmem:[#allocation43_spill] sm:$0xff] }
 0x478   : > { %v14644_v4 = vpop.f32.mrf.mxu0  ;;  %14891 = vmatmul.mubr.msk.bf16.gmra.mxu0 %vm744_vm2, %v19995_v29  ;;  %v20006_v29 = vld [vmem:[#allocation44_spill] sm:$0xff] }
 0x479   : > { %v4845_v63 = vpack.c.bf16 %v4742_v17, %v4741_v33  ;;  %14894 = vmatprep.mubr.msk.bf16.mxu0 %vm744_vm2, %v19996_v15  ;;  %v4747_v62 = vmax.f32 %v14644_v4, 0.0 }
 0x47a   : > { %v4390_v56 = vpop.f32.mrf.mxu0 }
 0x47b   : > { %14782 = vmatprep.mubr.bf16.mxu1 %v4845_v63  ;;  %v4745_v31 = vmax.f32 %v4390_v56, 0.0 }
 0x47c   : > { %v14645_v20 = vpop.f32.mrf.mxu0  ;;  %14783 = vmatmul.mubr.bf16.gmra.mxu1 %v4846_v43 }
 0x47d   : > { %v4748_v10 = vmax.f32 %v14645_v20, 0.0 }
 0x47e   : > { %v4393_v14 = vpop.f32.mrf.mxu0 }
 0x47f   : > { %v4746_v58 = vmax.f32 %v4393_v14, 0.0  ;;  %v4848_v53 = vpack.c.bf16 %v4748_v10, %v4747_v62 }
 0x480   : > { %v14648_v2 = vpop.f32.mrf.mxu0  ;;  %14895 = vmatmul.mubr.msk.bf16.gmra.mxu0 %vm744_vm2, %v19997_v48 }
 0x481   : > { %v4847_v32 = vpack.c.bf16 %v4746_v58, %v4745_v31  ;;  %14898 = vmatprep.mubr.msk.bf16.mxu0 %vm744_vm2, %v19998_v38  ;;  %v4751_v9 = vmax.f32 %v14648_v2, 0.0  ;;  %v20008_v2 = vld [vmem:[#allocation48_spill] sm:$0xff]  ;;  %v15918_v38 = vld [vmem:[%s19834_s10 + $0x28] sm:$0xff]  }
 0x482   : > { %v4406_v47 = vpop.f32.mrf.mxu0  ;;  %15146 = vmatprep.subr.bf16.mxu0 %v15918_v38 }
 0x483   : > { %14786 = vmatprep.mubr.bf16.mxu1 %v4847_v32  ;;  %v4749_v46 = vmax.f32 %v4406_v47, 0.0  ;;  %15147 = vmatpush3.bf16.msra.mxu0 %v15918_v38 }
 0x484   : > { %v14649_v21 = vpop.f32.mrf.mxu0  ;;  %14787 = vmatmul.mubr.bf16.gmra.mxu1 %v4848_v53 }
 0x485   : > { %v4752_v34 = vmax.f32 %v14649_v21, 0.0 }
 0x486   : > { %v4409_v3 = vpop.f32.mrf.mxu0 }
 0x487   : > { %v4750_v5 = vmax.f32 %v4409_v3, 0.0  ;;  %v4850_v16 = vpack.c.bf16 %v4752_v34, %v4751_v9  ;;  %v20009_v9 = vld [vmem:[#allocation51_spill] sm:$0xff] }
 0x488   : > { %v14652_v28 = vpop.f32.mrf.mxu0  ;;  %14899 = vmatmul.mubr.msk.bf16.gmra.mxu0 %vm744_vm2, %v19999_v6  ;;  %v20010_v6 = vld [vmem:[#allocation52_spill] sm:$0xff] }
 0x489   : > { %v4849_v52 = vpack.c.bf16 %v4750_v5, %v4749_v46  ;;  %14902 = vmatprep.mubr.msk.bf16.mxu0 %vm744_vm2, %v20000_v59  ;;  %v4755_v39 = vmax.f32 %v14652_v28, 0.0 }
 0x48a   : > { %v4422_v30 = vpop.f32.mrf.mxu0 }
 0x48b   : > { %14790 = vmatprep.mubr.bf16.mxu1 %v4849_v52  ;;  %v4753_v41 = vmax.f32 %v4422_v30, 0.0 }
 0x48c   : > { %v14653_v22 = vpop.f32.mrf.mxu0  ;;  %14791 = vmatmul.mubr.bf16.gmra.mxu1 %v4850_v16 }
 0x48d   : > { %v4756_v27 = vmax.f32 %v14653_v22, 0.0 }
 0x48e   : > { %v4425_v42 = vpop.f32.mrf.mxu0 }
 0x48f   : > { %v4754_v8 = vmax.f32 %v4425_v42, 0.0  ;;  %v4852_v51 = vpack.c.bf16 %v4756_v27, %v4755_v39 }
 0x490   : > { %v14656_v18 = vpop.f32.mrf.mxu0  ;;  %14903 = vmatmul.mubr.msk.bf16.gmra.mxu0 %vm744_vm2, %v20001_v19 }
 0x491   : > { %v4851_v1 = vpack.c.bf16 %v4754_v8, %v4753_v41  ;;  %14906 = vmatprep.mubr.msk.bf16.mxu0 %vm744_vm2, %v20002_v57  ;;  %v4759_v45 = vmax.f32 %v14656_v18, 0.0  ;;  %v20011_v8 = vld [vmem:[#allocation55_spill] sm:$0xff]  ;;  %v20012_v18 = vld [vmem:[#allocation56_spill] sm:$0xff] }
 0x492   : > { %v4438_v7 = vpop.f32.mrf.mxu0 }
 0x493   : > { %14794 = vmatprep.mubr.bf16.mxu1 %v4851_v1  ;;  %v4757_v0 = vmax.f32 %v4438_v7, 0.0 }
 0x494   : > { %v14657_v25 = vpop.f32.mrf.mxu0  ;;  %14795 = vmatmul.mubr.bf16.gmra.mxu1 %v4852_v51 }
 0x495   : > { %v4760_v36 = vmax.f32 %v14657_v25, 0.0 }
 0x496   : > { %v4441_v13 = vpop.f32.mrf.mxu0 }
 0x497   : > { %v4758_v35 = vmax.f32 %v4441_v13, 0.0  ;;  %v4854_v12 = vpack.c.bf16 %v4760_v36, %v4759_v45 }
 0x498   : > { %v14660_v61 = vpop.f32.mrf.mxu0  ;;  %14907 = vmatmul.mubr.msk.bf16.gmra.mxu0 %vm744_vm2, %v20003_v24 }
 0x499   : > { %v4853_v54 = vpack.c.bf16 %v4758_v35, %v4757_v0  ;;  %14910 = vmatprep.mubr.msk.bf16.mxu0 %vm744_vm2, %v20004_v50  ;;  %v4763_v33 = vmax.f32 %v14660_v61, 0.0  ;;  %v20013_v35 = vld [vmem:[#allocation59_spill] sm:$0xff]  ;;  %v20014_v61 = vld [vmem:[#allocation60_spill] sm:$0xff] }
 0x49a   : > { %v4454_v40 = vpop.f32.mrf.mxu0 }
 0x49b   : > { %14798 = vmatprep.mubr.bf16.mxu1 %v4853_v54  ;;  %v4761_v37 = vmax.f32 %v4454_v40, 0.0 }
 0x49c   : > { %v14661_v23 = vpop.f32.mrf.mxu0  ;;  %14799 = vmatmul.mubr.bf16.gmra.mxu1 %v4854_v12 }
 0x49d   : > { %v4764_v49 = vmax.f32 %v14661_v23, 0.0 }
 0x49e   : > { %v4457_v11 = vpop.f32.mrf.mxu0 }
 0x49f   : > { %v4762_v55 = vmax.f32 %v4457_v11, 0.0  ;;  %v4856_v63 = vpack.c.bf16 %v4764_v49, %v4763_v33 }
 0x4a0   : > { %v14664_v17 = vpop.f32.mrf.mxu0  ;;  %14911 = vmatmul.mubr.msk.bf16.gmra.mxu0 %vm744_vm2, %v20005_v26 }
 0x4a1   : > { %v4855_v4 = vpack.c.bf16 %v4762_v55, %v4761_v37  ;;  %14914 = vmatprep.mubr.msk.bf16.mxu0 %vm744_vm2, %v20006_v29  ;;  %v4767_v31 = vmax.f32 %v14664_v17, 0.0  ;;  %v20015_v55 = vld [vmem:[#allocation63_spill] sm:$0xff]  ;;  %v20016_v17 = vld [vmem:[#allocation4_spill] sm:$0xff]  ;;  %v15919_v29 = vld [vmem:[%s19834_s10 + $0x20] sm:$0xff]  }
 0x4a2   : > { %v4470_v15 = vpop.f32.mrf.mxu0  ;;  %15148 = vmatprep.subr.bf16.mxu0 %v15919_v29 }
 0x4a3   : > { %14802 = vmatprep.mubr.bf16.mxu1 %v4855_v4  ;;  %v4765_v10 = vmax.f32 %v4470_v15, 0.0  ;;  %15149 = vmatpush3.bf16.msra.mxu0 %v15919_v29 }
 0x4a4   : > { %v14665_v43 = vpop.f32.mrf.mxu0  ;;  %14803 = vmatmul.mubr.bf16.gmra.mxu1 %v4856_v63 }
 0x4a5   : > { %v4768_v56 = vmax.f32 %v14665_v43, 0.0 }
 0x4a6   : > { %v4473_v20 = vpop.f32.mrf.mxu0 }
 0x4a7   : > { %v4766_v14 = vmax.f32 %v4473_v20, 0.0  ;;  %v4858_v48 = vpack.c.bf16 %v4768_v56, %v4767_v31  ;;  %v20017_v31 = vld [vmem:[#allocation5_spill] sm:$0xff] }
 0x4a8   : > { %v14668_v58 = vpop.f32.mrf.mxu0  ;;  %14915 = vmatmul.mubr.msk.bf16.gmra.mxu0 %vm744_vm2, %v20007_v44  ;;  %v20018_v44 = vld [vmem:[#allocation8_spill] sm:$0xff] }
 0x4a9   : > { %v4857_v62 = vpack.c.bf16 %v4766_v14, %v4765_v10  ;;  %14918 = vmatprep.mubr.msk.bf16.mxu0 %vm744_vm2, %v20008_v2  ;;  %v4771_v46 = vmax.f32 %v14668_v58, 0.0 }
 0x4aa   : > { %v4486_v32 = vpop.f32.mrf.mxu0 }
 0x4ab   : > { %14806 = vmatprep.mubr.bf16.mxu1 %v4857_v62  ;;  %v4769_v34 = vmax.f32 %v4486_v32, 0.0 }
 0x4ac   : > { %v14669_v53 = vpop.f32.mrf.mxu0  ;;  %14807 = vmatmul.mubr.bf16.gmra.mxu1 %v4858_v48 }
 0x4ad   : > { %v4772_v47 = vmax.f32 %v14669_v53, 0.0 }
 0x4ae   : > { %v4489_v21 = vpop.f32.mrf.mxu0 }
 0x4af   : > { %v4770_v3 = vmax.f32 %v4489_v21, 0.0  ;;  %v4860_v52 = vpack.c.bf16 %v4772_v47, %v4771_v46 }
 0x4b0   : > { %v14672_v5 = vpop.f32.mrf.mxu0  ;;  %14919 = vmatmul.mubr.msk.bf16.gmra.mxu0 %vm744_vm2, %v20009_v9 }
 0x4b1   : > { %v4859_v28 = vpack.c.bf16 %v4770_v3, %v4769_v34  ;;  %14922 = vmatprep.mubr.msk.bf16.mxu0 %vm744_vm2, %v20010_v6  ;;  %v4775_v42 = vmax.f32 %v14672_v5, 0.0  ;;  %v20019_v3 = vld [vmem:[#allocation9_spill] sm:$0xff]  ;;  %v20020_v5 = vld [vmem:[#allocation10_spill] sm:$0xff] }
 0x4b2   : > { %v4502_v59 = vpop.f32.mrf.mxu0 }
 0x4b3   : > { %14810 = vmatprep.mubr.bf16.mxu1 %v4859_v28  ;;  %v4773_v22 = vmax.f32 %v4502_v59, 0.0 }
 0x4b4   : > { %v14673_v60 = vpop.f32.mrf.mxu0  ;;  %14811 = vmatmul.mubr.bf16.gmra.mxu1 %v4860_v52 }
 0x4b5   : > { %v4776_v16 = vmax.f32 %v14673_v60, 0.0 }
 0x4b6   : > { %v4505_v30 = vpop.f32.mrf.mxu0 }
 0x4b7   : > { %v4774_v27 = vmax.f32 %v4505_v30, 0.0  ;;  %v4862_v19 = vpack.c.bf16 %v4776_v16, %v4775_v42 }
 0x4b8   : > { %v14676_v41 = vpop.f32.mrf.mxu0  ;;  %14923 = vmatmul.mubr.msk.bf16.gmra.mxu0 %vm744_vm2, %v20011_v8  ;;  %v20021_v8 = vld [vmem:[#allocation13_spill] sm:$0xff] }
 0x4b9   : > { %v4861_v39 = vpack.c.bf16 %v4774_v27, %v4773_v22  ;;  %14926 = vmatprep.mubr.msk.bf16.mxu0 %vm744_vm2, %v20012_v18  ;;  %v4779_v13 = vmax.f32 %v14676_v41, 0.0  ;;  %v20022_v18 = vld [vmem:[#allocation14_spill] sm:$0xff] }
 0x4ba   : > { %v4518_v1 = vpop.f32.mrf.mxu0 }
 0x4bb   : > { %14814 = vmatprep.mubr.bf16.mxu1 %v4861_v39  ;;  %v4777_v25 = vmax.f32 %v4518_v1, 0.0 }
 0x4bc   : > { %v14677_v57 = vpop.f32.mrf.mxu0  ;;  %14815 = vmatmul.mubr.bf16.gmra.mxu1 %v4862_v19 }
 0x4bd   : > { %v4780_v51 = vmax.f32 %v14677_v57, 0.0 }
 0x4be   : > { %v4521_v7 = vpop.f32.mrf.mxu0 }
 0x4bf   : > { %v4778_v36 = vmax.f32 %v4521_v7, 0.0  ;;  %v4864_v24 = vpack.c.bf16 %v4780_v51, %v4779_v13 }
 0x4c0   : > { %v14680_v0 = vpop.f32.mrf.mxu0  ;;  %14927 = vmatmul.mubr.msk.bf16.gmra.mxu0 %vm744_vm2, %v20013_v35 }
 0x4c1   : > { %v4863_v45 = vpack.c.bf16 %v4778_v36, %v4777_v25  ;;  %14930 = vmatprep.mubr.msk.bf16.mxu0 %vm744_vm2, %v20014_v61  ;;  %v4783_v11 = vmax.f32 %v14680_v0, 0.0 }
 0x4c2   : > { %v4534_v54 = vpop.f32.mrf.mxu0 }
 0x4c3   : > { %14818 = vmatprep.mubr.bf16.mxu1 %v4863_v45  ;;  %v4781_v23 = vmax.f32 %v4534_v54, 0.0  ;;  %v20023_v54 = vld [vmem:[#allocation17_spill] sm:$0xff] }
 0x4c4   : > { %v14681_v50 = vpop.f32.mrf.mxu0  ;;  %14819 = vmatmul.mubr.bf16.gmra.mxu1 %v4864_v24 }
 0x4c5   : > { %v4784_v12 = vmax.f32 %v14681_v50, 0.0 }
 0x4c6   : > { %v4537_v40 = vpop.f32.mrf.mxu0 }
 0x4c7   : > { %v4782_v49 = vmax.f32 %v4537_v40, 0.0  ;;  %v4866_v26 = vpack.c.bf16 %v4784_v12, %v4783_v11  ;;  %v20024_v12 = vld [vmem:[#allocation18_spill] sm:$0xff]  ;;  %v15920_v11 = vld [vmem:[%s19834_s10 + $0x18] sm:$0xff]  }
 0x4c8   : > { %v14684_v37 = vpop.f32.mrf.mxu0  ;;  %14931 = vmatmul.mubr.msk.bf16.gmra.mxu0 %vm744_vm2, %v20015_v55  ;;  %15150 = vmatprep.subr.bf16.mxu0 %v15920_v11 }
 0x4c9   : > { %v4865_v33 = vpack.c.bf16 %v4782_v49, %v4781_v23  ;;  %14934 = vmatprep.mubr.msk.bf16.mxu0 %vm744_vm2, %v20016_v17  ;;  %v4787_v10 = vmax.f32 %v14684_v37, 0.0  ;;  %15151 = vmatpush3.bf16.msra.mxu0 %v15920_v11 }
 0x4ca   : > { %v4550_v4 = vpop.f32.mrf.mxu0 }
 0x4cb   : > { %14822 = vmatprep.mubr.bf16.mxu1 %v4865_v33  ;;  %v4785_v56 = vmax.f32 %v4550_v4, 0.0 }
 0x4cc   : > { %v14685_v63 = vpop.f32.mrf.mxu0  ;;  %14823 = vmatmul.mubr.bf16.gmra.mxu1 %v4866_v26 }
 0x4cd   : > { %v4788_v15 = vmax.f32 %v14685_v63, 0.0 }
 0x4ce   : > { %v4553_v43 = vpop.f32.mrf.mxu0 }
 0x4cf   : > { %v4786_v20 = vmax.f32 %v4553_v43, 0.0  ;;  %v4868_v62 = vpack.c.bf16 %v4788_v15, %v4787_v10  ;;  %v20026_v10 = vld [vmem:[#allocation22_spill] sm:$0xff] }
 0x4d0   : > { %v14688_v14 = vpop.f32.mrf.mxu0  ;;  %14935 = vmatmul.mubr.msk.bf16.gmra.mxu0 %vm744_vm2, %v20017_v31 }
 0x4d1   : > { %v4867_v58 = vpack.c.bf16 %v4786_v20, %v4785_v56  ;;  %14938 = vmatprep.mubr.msk.bf16.mxu0 %vm744_vm2, %v20018_v44  ;;  %v4791_v21 = vmax.f32 %v14688_v14, 0.0  ;;  %v20025_v56 = vld [vmem:[#allocation21_spill] sm:$0xff] }
 0x4d2   : > { %v4566_v2 = vpop.f32.mrf.mxu0 }
 0x4d3   : > { %14826 = vmatprep.mubr.bf16.mxu1 %v4867_v58  ;;  %v4789_v53 = vmax.f32 %v4566_v2, 0.0 }
 0x4d4   : > { %v14689_v48 = vpop.f32.mrf.mxu0  ;;  %14827 = vmatmul.mubr.bf16.gmra.mxu1 %v4868_v62 }
 0x4d5   : > { %v4792_v32 = vmax.f32 %v14689_v48, 0.0 }
 0x4d6   : > { %v4569_v38 = vpop.f32.mrf.mxu0 }
 0x4d7   : > { %v4790_v47 = vmax.f32 %v4569_v38, 0.0  ;;  %v4870_v9 = vpack.c.bf16 %v4792_v32, %v4791_v21 }
 0x4d8   : > { %v14692_v34 = vpop.f32.mrf.mxu0  ;;  %14939 = vmatmul.mubr.msk.bf16.gmra.mxu0 %vm744_vm2, %v20019_v3  ;;  %v20027_v3 = vld [vmem:[#allocation25_spill] sm:$0xff] }
 0x4d9   : > { %v4869_v46 = vpack.c.bf16 %v4790_v47, %v4789_v53  ;;  %14942 = vmatprep.mubr.msk.bf16.mxu0 %vm744_vm2, %v20020_v5  ;;  %v4795_v27 = vmax.f32 %v14692_v34, 0.0  ;;  %v20028_v5 = vld [vmem:[#allocation26_spill] sm:$0xff] }
 0x4da   : > { %v4582_v28 = vpop.f32.mrf.mxu0 }
 0x4db   : > { %14830 = vmatprep.mubr.bf16.mxu1 %v4869_v46  ;;  %v4793_v30 = vmax.f32 %v4582_v28, 0.0 }
 0x4dc   : > { %v14693_v6 = vpop.f32.mrf.mxu0  ;;  %v17407_v52 = vpop.f32.mrf.mxu1  ;;  %14831 = vmatmul.mubr.bf16.gmra.mxu1 %v4870_v9 }
 0x4dd   : > { %v4796_v59 = vmax.f32 %v14693_v6, 0.0 }
 0x4de   : > { %v4585_v60 = vpop.f32.mrf.mxu0  ;;  %v17409_v16 = vpop.f32.mrf.mxu1 }
 0x4df   : > { %v4794_v22 = vmax.f32 %v4585_v60, 0.0  ;;  %v4872_v19 = vpack.c.bf16 %v4796_v59, %v4795_v27 }
 0x4e0   : > { %v14696_v42 = vpop.f32.mrf.mxu0  ;;  %v17411_v41 = vpop.f32.mrf.mxu1  ;;  %14943 = vmatmul.mubr.msk.bf16.gmra.mxu0 %vm744_vm2, %v20021_v8 }
 0x4e1   : > { %v4871_v39 = vpack.c.bf16 %v4794_v22, %v4793_v30  ;;  %14946 = vmatprep.mubr.msk.bf16.mxu0 %vm744_vm2, %v20022_v18  ;;  %v4799_v45 = vmax.f32 %v14696_v42, 0.0 }
 0x4e2   : > { %v4598_v1 = vpop.f32.mrf.mxu0  ;;  %v17417_v57 = vpop.f32.mrf.mxu1 }
 0x4e3   : > { %14834 = vmatprep.mubr.bf16.mxu1 %v4871_v39  ;;  %v4797_v0 = vmax.f32 %v4598_v1, 0.0  ;;  %v20029_v1 = vld [vmem:[#allocation29_spill] sm:$0xff] }
 0x4e4   : > { %v14697_v51 = vpop.f32.mrf.mxu0  ;;  %v17419_v7 = vpop.f32.mrf.mxu1  ;;  %14835 = vmatmul.mubr.bf16.gmra.mxu1 %v4872_v19 }
 0x4e5   : > { %v4800_v25 = vmax.f32 %v14697_v51, 0.0 }
 0x4e6   : > { %v4601_v36 = vpop.f32.mrf.mxu0  ;;  %v17421_v13 = vpop.f32.mrf.mxu1 }
 0x4e7   : > { %v4798_v35 = vmax.f32 %v4601_v36, 0.0  ;;  %v4874_v40 = vpack.c.bf16 %v4800_v25, %v4799_v45  ;;  %v20030_v25 = vld [vmem:[#allocation30_spill] sm:$0xff] }
 0x4e8   : > { %v14700_v61 = vpop.f32.mrf.mxu0  ;;  %v17423_v24 = vpop.f32.mrf.mxu1  ;;  %14947 = vmatmul.mubr.msk.bf16.gmra.mxu0 %vm744_vm2, %v20023_v54 }
 0x4e9   : > { %v4873_v50 = vpack.c.bf16 %v4798_v35, %v4797_v0  ;;  %14950 = vmatprep.mubr.msk.bf16.mxu0 %vm744_vm2, %v20024_v12  ;;  %v4803_v63 = vmax.f32 %v14700_v61, 0.0 }
 0x4ea   : > { %v4614_v23 = vpop.f32.mrf.mxu0  ;;  %v17429_v49 = vpop.f32.mrf.mxu1 }
 0x4eb   : > { %14838 = vmatprep.mubr.bf16.mxu1 %v4873_v50  ;;  %v4801_v4 = vmax.f32 %v4614_v23, 0.0 }
 0x4ec   : > { %v14701_v37 = vpop.f32.mrf.mxu0  ;;  %v17434_v55 = vpop.f32.mrf.mxu1  ;;  %14839 = vmatmul.mubr.bf16.gmra.mxu1 %v4874_v40 }
 0x4ed   : > { %v4804_v33 = vmax.f32 %v14701_v37, 0.0 }
 0x4ee   : > { %v4617_v17 = vpop.f32.mrf.mxu0  ;;  %v17436_v26 = vpop.f32.mrf.mxu1 }
 0x4ef   : > { %v4802_v29 = vmax.f32 %v4617_v17, 0.0  ;;  %v4876_v14 = vpack.c.bf16 %v4804_v33, %v4803_v63  ;;  %v20031_v17 = vld [vmem:[#allocation33_spill] sm:$0xff] }
 0x4f0   : > { %v14704_v15 = vpop.f32.mrf.mxu0  ;;  %v17438_v43 = vpop.f32.mrf.mxu1  ;;  %14951 = vmatmul.mubr.msk.bf16.gmra.mxu0 %vm744_vm2, %v20025_v56 }
 0x4f1   : > { %v4875_v20 = vpack.c.bf16 %v4802_v29, %v4801_v4  ;;  %14954 = vmatprep.mubr.msk.bf16.mxu0 %vm744_vm2, %v20026_v10  ;;  %v4807_v47 = vmax.f32 %v14704_v15, 0.0  ;;  %v20032_v29 = vld [vmem:[#allocation34_spill] sm:$0xff] }
 0x4f2   : > { %v4630_v31 = vpop.f32.mrf.mxu0  ;;  %v17444_v58 = vpop.f32.mrf.mxu1 }
 0x4f3   : > { %14842 = vmatprep.mubr.bf16.mxu1 %v4875_v20  ;;  %v4805_v38 = vmax.f32 %v4630_v31, 0.0  ;;  %v15921_v20 = vld [vmem:[%s19834_s10 + $0x10] sm:$0xff]  }
 0x4f4   : > { %v14705_v44 = vpop.f32.mrf.mxu0  ;;  %v17446_v62 = vpop.f32.mrf.mxu1  ;;  %14843 = vmatmul.mubr.bf16.gmra.mxu1 %v4876_v14  ;;  %15152 = vmatprep.subr.bf16.mxu0 %v15921_v20 }
 0x4f5   : > { %v4808_v2 = vmax.f32 %v14705_v44, 0.0  ;;  %15153 = vmatpush3.bf16.msra.mxu0 %v15921_v20 }
 0x4f6   : > { %v4633_v48 = vpop.f32.mrf.mxu0  ;;  %v17448_v32 = vpop.f32.mrf.mxu1 }
 0x4f7   : > { %v4806_v53 = vmax.f32 %v4633_v48, 0.0  ;;  %v4878_v9 = vpack.c.bf16 %v4808_v2, %v4807_v47 }
 0x4f8   : > { %v14708_v21 = vpop.f32.mrf.mxu0  ;;  %v17450_v34 = vpop.f32.mrf.mxu1  ;;  %14955 = vmatmul.mubr.msk.bf16.gmra.mxu0 %vm744_vm2, %v20027_v3  ;;  %v20033_v3 = vld [vmem:[#allocation37_spill] sm:$0xff] }
 0x4f9   : > { %v4877_v46 = vpack.c.bf16 %v4806_v53, %v4805_v38  ;;  %14958 = vmatprep.mubr.msk.bf16.mxu0 %vm744_vm2, %v20028_v5  ;;  %v4811_v39 = vmax.f32 %v14708_v21, 0.0  ;;  %v20034_v5 = vld [vmem:[#allocation38_spill] sm:$0xff] }
 0x4fa   : > { %v4646_v28 = vpop.f32.mrf.mxu0  ;;  %v17456_v6 = vpop.f32.mrf.mxu1 }
 0x4fb   : > { %14846 = vmatprep.mubr.bf16.mxu1 %v4877_v46  ;;  %v4809_v42 = vmax.f32 %v4646_v28, 0.0 }
 0x4fc   : > { %v14709_v59 = vpop.f32.mrf.mxu0  ;;  %v17458_v60 = vpop.f32.mrf.mxu1  ;;  %14847 = vmatmul.mubr.bf16.gmra.mxu1 %v4878_v9 }
 0x4fd   : > { %v4812_v30 = vmax.f32 %v14709_v59, 0.0 }
 0x4fe   : > { %v4649_v22 = vpop.f32.mrf.mxu0  ;;  %v17460_v27 = vpop.f32.mrf.mxu1 }
 0x4ff   : > { %v4810_v8 = vmax.f32 %v4649_v22, 0.0  ;;  %v4880_v36 = vpack.c.bf16 %v4812_v30, %v4811_v39 }
 0x500   : > { %v14712_v18 = vpop.f32.mrf.mxu0  ;;  %v17462_v19 = vpop.f32.mrf.mxu1  ;;  %14959 = vmatmul.mubr.msk.bf16.gmra.mxu0 %vm744_vm2, %v20029_v1 }
 0x501   : > { %v4879_v51 = vpack.c.bf16 %v4810_v8, %v4809_v42  ;;  %14962 = vmatprep.mubr.msk.bf16.mxu0 %vm744_vm2, %v20030_v25  ;;  %v4815_v11 = vmax.f32 %v14712_v18, 0.0 }
 0x502   : > { %v4662_v0 = vpop.f32.mrf.mxu0  ;;  %v17468_v35 = vpop.f32.mrf.mxu1 }
 0x503   : > { %14850 = vmatprep.mubr.bf16.mxu1 %v4879_v51  ;;  %v4813_v40 = vmax.f32 %v4662_v0, 0.0 }
 0x504   : > { %v14713_v45 = vpop.f32.mrf.mxu0  ;;  %v17470_v61 = vpop.f32.mrf.mxu1  ;;  %14851 = vmatmul.mubr.bf16.gmra.mxu1 %v4880_v36 }
 0x505   : > { %v4816_v54 = vmax.f32 %v14713_v45, 0.0  ;;  %v20035_v45 = vld [vmem:[#allocation41_spill] sm:$0xff] }
 0x506   : > { %v4665_v50 = vpop.f32.mrf.mxu0  ;;  %v17472_v12 = vpop.f32.mrf.mxu1 }
 0x507   : > { %v4814_v23 = vmax.f32 %v4665_v50, 0.0  ;;  %v4882_v63 = vpack.c.bf16 %v4816_v54, %v4815_v11 }
 0x508   : > { %v14716_v37 = vpop.f32.mrf.mxu0  ;;  %v17474_v33 = vpop.f32.mrf.mxu1  ;;  %14963 = vmatmul.mubr.msk.bf16.gmra.mxu0 %vm744_vm2, %v20031_v17 }
 0x509   : > { %v4881_v4 = vpack.c.bf16 %v4814_v23, %v4813_v40  ;;  %14966 = vmatprep.mubr.msk.bf16.mxu0 %vm744_vm2, %v20032_v29  ;;  %v4819_v53 = vmax.f32 %v14716_v37, 0.0  ;;  %v20036_v40 = vld [vmem:[#allocation42_spill] sm:$0xff] }
 0x50a   : > { %v4678_v15 = vpop.f32.mrf.mxu0  ;;  %v17480_v56 = vpop.f32.mrf.mxu1 }
 0x50b   : > { %14854 = vmatprep.mubr.bf16.mxu1 %v4881_v4  ;;  %v4817_v48 = vmax.f32 %v4678_v15, 0.0 }
 0x50c   : > { %v14717_v10 = vpop.f32.mrf.mxu0  ;;  %v17485_v14 = vpop.f32.mrf.mxu1  ;;  %14855 = vmatmul.mubr.bf16.gmra.mxu1 %v4882_v63 }
 0x50d   : > { %v4820_v31 = vmax.f32 %v14717_v10, 0.0 }
 0x50e   : > { %v4681_v44 = vpop.f32.mrf.mxu0  ;;  %v17487_v2 = vpop.f32.mrf.mxu1 }
 0x50f   : > { %v4818_v38 = vmax.f32 %v4681_v44, 0.0  ;;  %v4884_v9 = vpack.c.bf16 %v4820_v31, %v4819_v53  ;;  %v20038_v53 = vld [vmem:[#allocation46_spill] sm:$0xff] }
 0x510   : > { %v17489_v47 = vpop.f32.mrf.mxu1  ;;  %v14872_v21 = vpop.f32.mrf.mxu0  ;;  %14967 = vmatmul.mubr.msk.bf16.gmra.mxu0 %vm744_vm2, %v20033_v3 }
 0x511   : > { %v4883_v46 = vpack.c.bf16 %v4818_v38, %v4817_v48  ;;  %14970 = vmatprep.mubr.msk.bf16.mxu0 %vm744_vm2, %v20034_v5  ;;  %v5571_v39 = vadd.f32 %v14872_v21, %v17407_v52  ;;  %v20037_v48 = vld [vmem:[#allocation45_spill] sm:$0xff] }
 0x512   : > { %v17495_v28 = vpop.f32.mrf.mxu1  ;;  %v5562_v59 = vpop.f32.mrf.mxu0 }
 0x513   : > { %14858 = vmatprep.mubr.bf16.mxu1 %v4883_v46  ;;  %v5563_v42 = vadd.f32 %v5562_v59, %v17409_v16  ;;  %v6075_v16 = vmax.f32 %v5571_v39, 0.0 }
 0x514   : > { %v17497_v30 = vpop.f32.mrf.mxu1  ;;  %14859 = vmatmul.mubr.bf16.gmra.mxu1 %v4884_v9  ;;  %v14873_v22 = vpop.f32.mrf.mxu0 }
 0x515   : > { %v5574_v8 = vadd.f32 %v14873_v22, %v17411_v41  ;;  %v6073_v54 = vmax.f32 %v5563_v42, 0.0 }
 0x516   : > { %v17502_v18 = vpop.f32.mrf.mxu1  ;;  %v5565_v1 = vpop.f32.mrf.mxu0 }
 0x517   : > { %v5566_v51 = vadd.f32 %v5565_v1, %v17417_v57  ;;  %v6076_v25 = vmax.f32 %v5574_v8, 0.0 }
 0x518   : > { %v17505_v36 = vpop.f32.mrf.mxu1  ;;  %v14876_v0 = vpop.f32.mrf.mxu0  ;;  %14971 = vmatmul.mubr.msk.bf16.gmra.mxu0 %vm744_vm2, %v20035_v45 }
 0x519   : > { %v6074_v50 = vmax.f32 %v5566_v51, 0.0  ;;  %14974 = vmatprep.mubr.msk.bf16.mxu0 %vm744_vm2, %v20036_v40  ;;  %v6202_v11 = vpack.c.bf16 %v6076_v25, %v6075_v16  ;;  %v5587_v29 = vadd.f32 %v14876_v0, %v17419_v7  ;;  %v20039_v0 = vld [vmem:[#allocation49_spill] sm:$0xff] }
 0x51a   : > { %v17511_v41 = vpop.f32.mrf.mxu1  ;;  %v5578_v52 = vpop.f32.mrf.mxu0 }
 0x51b   : > { %v6201_v23 = vpack.c.bf16 %v6074_v50, %v6073_v54  ;;  %v5579_v17 = vadd.f32 %v5578_v52, %v17421_v13  ;;  %v20040_v54 = vld [vmem:[#allocation50_spill] sm:$0xff] }
 0x51c   : > { %v17513_v37 = vpop.f32.mrf.mxu1  ;;  %v14877_v57 = vpop.f32.mrf.mxu0 }
 0x51d   : > { %v5590_v4 = vadd.f32 %v14877_v57, %v17423_v24  ;;  %15014 = vmatprep.mubr.bf16.mxu1 %v6201_v23  ;;  %v6077_v38 = vmax.f32 %v5579_v17, 0.0  ;;  %v6079_v24 = vmax.f32 %v5587_v29, 0.0 }
 0x51e   : > { %v17518_v63 = vpop.f32.mrf.mxu1  ;;  %v5581_v15 = vpop.f32.mrf.mxu0  ;;  %15015 = vmatmul.mubr.bf16.vlgmr.msra.gmra.mxu1 %v6202_v11 }
 0x51f   : > { %v5582_v20 = vadd.f32 %v5581_v15, %v17429_v49  ;;  %v6080_v10 = vmax.f32 %v5590_v4, 0.0 }
 0x520   : > { %v17521_v31 = vpop.f32.mrf.mxu1  ;;  %v14880_v44 = vpop.f32.mrf.mxu0  ;;  %14975 = vmatmul.mubr.msk.bf16.gmra.mxu0 %vm744_vm2, %v20037_v48  ;;  %v20041_v48 = vld [vmem:[#allocation53_spill] sm:$0xff] }
 0x521   : > { %v6078_v13 = vmax.f32 %v5582_v20, 0.0  ;;  %14978 = vmatprep.mubr.msk.bf16.mxu0 %vm744_vm2, %v20038_v53  ;;  %v6204_v46 = vpack.c.bf16 %v6080_v10, %v6079_v24  ;;  %v5603_v22 = vadd.f32 %v14880_v44, %v17434_v55 }
 0x522   : > { %v17527_v7 = vpop.f32.mrf.mxu1  ;;  %v5594_v21 = vpop.f32.mrf.mxu0 }
 0x523   : > { %v6203_v3 = vpack.c.bf16 %v6078_v13, %v6077_v38  ;;  %v5595_v9 = vadd.f32 %v5594_v21, %v17436_v26  ;;  %v20042_v38 = vld [vmem:[#allocation54_spill] sm:$0xff] }
 0x524   : > { %v17529_v5 = vpop.f32.mrf.mxu1  ;;  %v14881_v49 = vpop.f32.mrf.mxu0 }
 0x525   : > { %v5606_v59 = vadd.f32 %v14881_v49, %v17438_v43  ;;  %15018 = vmatprep.mubr.bf16.mxu1 %v6203_v3  ;;  %v6081_v45 = vmax.f32 %v5595_v9, 0.0  ;;  %v6083_v43 = vmax.f32 %v5603_v22, 0.0 }
 0x526   : > { %v17534_v42 = vpop.f32.mrf.mxu1  ;;  %v5597_v8 = vpop.f32.mrf.mxu0  ;;  %15019 = vmatmul.mubr.bf16.gmra.mxu1 %v6204_v46 }
 0x527   : > { %v5598_v39 = vadd.f32 %v5597_v8, %v17444_v58  ;;  %v6084_v1 = vmax.f32 %v5606_v59, 0.0  ;;  %v15922_v58 = vld [vmem:[%s19834_s10 + $0x8] sm:$0xff]  }
 0x528   : > { %v17537_v51 = vpop.f32.mrf.mxu1  ;;  %v14884_v25 = vpop.f32.mrf.mxu0  ;;  %14979 = vmatmul.mubr.msk.bf16.gmra.mxu0 %vm744_vm2, %v20039_v0  ;;  %15154 = vmatprep.subr.bf16.mxu0 %v15922_v58  ;;  %v20043_v0 = vld [vmem:[#allocation57_spill] sm:$0xff] }
 0x529   : > { %v6082_v26 = vmax.f32 %v5598_v39, 0.0  ;;  %14982 = vmatprep.mubr.msk.bf16.mxu0 %vm744_vm2, %v20040_v54  ;;  %v6206_v16 = vpack.c.bf16 %v6084_v1, %v6083_v43  ;;  %v5619_v17 = vadd.f32 %v14884_v25, %v17446_v62  ;;  %15155 = vmatpush3.bf16.msra.mxu0 %v15922_v58 }
 0x52a   : > { %v17543_v55 = vpop.f32.mrf.mxu1  ;;  %v5610_v50 = vpop.f32.mrf.mxu0 }
 0x52b   : > { %v6205_v40 = vpack.c.bf16 %v6082_v26, %v6081_v45  ;;  %v5611_v11 = vadd.f32 %v5610_v50, %v17448_v32  ;;  %v6087_v62 = vmax.f32 %v5619_v17, 0.0  ;;  %v20044_v26 = vld [vmem:[#allocation58_spill] sm:$0xff] }
 0x52c   : > { %v17548_v52 = vpop.f32.mrf.mxu1  ;;  %v14885_v23 = vpop.f32.mrf.mxu0 }
 0x52d   : > { %v5622_v57 = vadd.f32 %v14885_v23, %v17450_v34  ;;  %15022 = vmatprep.mubr.bf16.mxu1 %v6205_v40  ;;  %v6085_v32 = vmax.f32 %v5611_v11, 0.0 }
 0x52e   : > { %v17553_v4 = vpop.f32.mrf.mxu1  ;;  %v5613_v29 = vpop.f32.mrf.mxu0  ;;  %15023 = vmatmul.mubr.bf16.gmra.mxu1 %v6206_v16 }
 0x52f   : > { %v5614_v15 = vadd.f32 %v5613_v29, %v17456_v6  ;;  %v6088_v20 = vmax.f32 %v5622_v57, 0.0 }
 0x530   : > { %v17556_v10 = vpop.f32.mrf.mxu1  ;;  %v14888_v44 = vpop.f32.mrf.mxu0  ;;  %14983 = vmatmul.mubr.msk.bf16.gmra.mxu0 %vm744_vm2, %v20041_v48  ;;  %v20045_v48 = vld [vmem:[#allocation61_spill] sm:$0xff] }
 0x531   : > { %v6086_v34 = vmax.f32 %v5614_v15, 0.0  ;;  %14986 = vmatprep.mubr.msk.bf16.mxu0 %vm744_vm2, %v20042_v38  ;;  %v6208_v21 = vpack.c.bf16 %v6088_v20, %v6087_v62  ;;  %v5635_v9 = vadd.f32 %v14888_v44, %v17458_v60  ;;  %v15923_v60 = vld [vmem:[%s19835_s11 + $0x38] sm:$0xff]  }
 0x532   : > { %v17562_v13 = vpop.f32.mrf.mxu1  ;;  %v5626_v53 = vpop.f32.mrf.mxu0  ;;  %15286 = vmatprep.subr.bf16.mxu1 %v15923_v60 }
 0x533   : > { %v6207_v24 = vpack.c.bf16 %v6086_v34, %v6085_v32  ;;  %v5627_v46 = vadd.f32 %v5626_v53, %v17460_v27  ;;  %15287 = vmatpush3.bf16.msra.mxu1 %v15923_v60  ;;  %v20046_v34 = vld [vmem:[#allocation62_spill] sm:$0xff] }
 0x534   : > { %v17564_v3 = vpop.f32.mrf.mxu1  ;;  %v14889_v6 = vpop.f32.mrf.mxu0  ;;  %v15924_v60 = vld [vmem:[%s19834_s10] sm:$0xff]  }
 0x535   : > { %v5638_v49 = vadd.f32 %v14889_v6, %v17462_v19  ;;  %15026 = vmatprep.mubr.bf16.mxu1 %v6207_v24  ;;  %v6089_v45 = vmax.f32 %v5627_v46, 0.0  ;;  %v6091_v19 = vmax.f32 %v5635_v9, 0.0  ;;  %15156 = vmatprep.subr.bf16.mxu0 %v15924_v60 }
 0x536   : > { %v17569_v59 = vpop.f32.mrf.mxu1  ;;  %v5629_v22 = vpop.f32.mrf.mxu0  ;;  %15027 = vmatmul.mubr.bf16.gmra.mxu1 %v6208_v21  ;;  %15157 = vmatpush3.bf16.msra.mxu0 %v15924_v60 }
 0x537   : > { %v5630_v8 = vadd.f32 %v5629_v22, %v17468_v35  ;;  %v6092_v39 = vmax.f32 %v5638_v49, 0.0 }
 0x538   : > { %v17572_v1 = vpop.f32.mrf.mxu1  ;;  %v14892_v25 = vpop.f32.mrf.mxu0  ;;  %14987 = vmatmul.mubr.msk.bf16.gmra.mxu0 %vm744_vm2, %v20043_v0  ;;  %v20047_v0 = vld [vmem:[#allocation64_spill] sm:$0xff] }
 0x539   : > { %v6090_v27 = vmax.f32 %v5630_v8, 0.0  ;;  %14990 = vmatprep.mubr.msk.bf16.mxu0 %vm744_vm2, %v20044_v26  ;;  %v6210_v50 = vpack.c.bf16 %v6092_v39, %v6091_v19  ;;  %v5651_v11 = vadd.f32 %v14892_v25, %v17470_v61 }
 0x53a   : > { %v17581_v54 = vpop.f32.mrf.mxu1  ;;  %v5642_v35 = vpop.f32.mrf.mxu0 }
 0x53b   : > { %v6209_v43 = vpack.c.bf16 %v6090_v27, %v6089_v45  ;;  %v5643_v16 = vadd.f32 %v5642_v35, %v17472_v12 }
 0x53c   : > { %v17583_v40 = vpop.f32.mrf.mxu1  ;;  %v14893_v58 = vpop.f32.mrf.mxu0 }
 0x53d   : > { %v5654_v23 = vadd.f32 %v14893_v58, %v17474_v33  ;;  %15030 = vmatprep.mubr.bf16.mxu1 %v6209_v43  ;;  %v6093_v32 = vmax.f32 %v5643_v16, 0.0  ;;  %v6095_v33 = vmax.f32 %v5651_v11, 0.0 }
 0x53e   : > { %v17588_v57 = vpop.f32.mrf.mxu1  ;;  %v5645_v17 = vpop.f32.mrf.mxu0  ;;  %15031 = vmatmul.mubr.bf16.gmra.mxu1 %v6210_v50 }
 0x53f   : > { %v5646_v29 = vadd.f32 %v5645_v17, %v17480_v56  ;;  %v6096_v15 = vmax.f32 %v5654_v23, 0.0 }
 0x540   : > { %v17591_v20 = vpop.f32.mrf.mxu1  ;;  %v14896_v44 = vpop.f32.mrf.mxu0  ;;  %14991 = vmatmul.mubr.msk.bf16.gmra.mxu0 %vm744_vm2, %v20045_v48 }
 0x541   : > { %v6094_v12 = vmax.f32 %v5646_v29, 0.0  ;;  %14994 = vmatprep.mubr.msk.bf16.mxu0 %vm744_vm2, %v20046_v34  ;;  %v6212_v53 = vpack.c.bf16 %v6096_v15, %v6095_v33  ;;  %v5667_v46 = vadd.f32 %v14896_v44, %v17485_v14 }
 0x542   : > { %v17597_v61 = vpop.f32.mrf.mxu1  ;;  %v5658_v38 = vpop.f32.mrf.mxu0 }
 0x543   : > { %v6211_v62 = vpack.c.bf16 %v6094_v12, %v6093_v32  ;;  %v5659_v21 = vadd.f32 %v5658_v38, %v17487_v2  ;;  %v6099_v27 = vmax.f32 %v5667_v46, 0.0 }
 0x544   : > { %v17599_v24 = vpop.f32.mrf.mxu1  ;;  %v14897_v56 = vpop.f32.mrf.mxu0 }
 0x545   : > { %v5670_v6 = vadd.f32 %v14897_v56, %v17489_v47  ;;  %15034 = vmatprep.mubr.bf16.mxu1 %v6211_v62  ;;  %v6097_v45 = vmax.f32 %v5659_v21, 0.0 }
 0x546   : > { %v17604_v49 = vpop.f32.mrf.mxu1  ;;  %v5661_v9 = vpop.f32.mrf.mxu0  ;;  %15035 = vmatmul.mubr.bf16.gmra.mxu1 %v6212_v53 }
 0x547   : > { %v5662_v22 = vadd.f32 %v5661_v9, %v17495_v28  ;;  %v6100_v8 = vmax.f32 %v5670_v6, 0.0 }
 0x548   : > { %v17607_v39 = vpop.f32.mrf.mxu1  ;;  %v14900_v25 = vpop.f32.mrf.mxu0  ;;  %14995 = vmatmul.mubr.msk.bf16.gmra.mxu0 %vm744_vm2, %v20047_v0 }
 0x549   : > { %v6098_v2 = vmax.f32 %v5662_v22, 0.0  ;;  %v6214_v19 = vpack.c.bf16 %v6100_v8, %v6099_v27  ;;  %v5683_v58 = vadd.f32 %v14900_v25, %v17497_v30 }
 0x54a   : > { %v17611_v47 = vpop.f32.mrf.mxu1  ;;  %v5674_v26 = vpop.f32.mrf.mxu0 }
 0x54b   : > { %v6213_v14 = vpack.c.bf16 %v6098_v2, %v6097_v45  ;;  %v5675_v43 = vadd.f32 %v5674_v26, %v17502_v18  ;;  %v6103_v18 = vmax.f32 %v5683_v58, 0.0 }
 0x54c   : > { %v17616_v28 = vpop.f32.mrf.mxu1  ;;  %v14901_v35 = vpop.f32.mrf.mxu0 }
 0x54d   : > { %v5686_v50 = vadd.f32 %v14901_v35, %v17505_v36  ;;  %15038 = vmatprep.mubr.bf16.mxu1 %v6213_v14  ;;  %v6101_v44 = vmax.f32 %v5675_v43, 0.0 }
 0x54e   : > { %v17621_v16 = vpop.f32.mrf.mxu1  ;;  %v5677_v23 = vpop.f32.mrf.mxu0  ;;  %15039 = vmatmul.mubr.bf16.gmra.mxu1 %v6214_v19 }
 0x54f   : > { %v5678_v11 = vadd.f32 %v5677_v23, %v17511_v41  ;;  %v6104_v17 = vmax.f32 %v5686_v50, 0.0 }
 0x550   : > { %v17624_v29 = vpop.f32.mrf.mxu1  ;;  %v14904_v15 = vpop.f32.mrf.mxu0 }
 0x551   : > { %v6102_v48 = vmax.f32 %v5678_v11, 0.0  ;;  %v6216_v34 = vpack.c.bf16 %v6104_v17, %v6103_v18  ;;  %v5699_v41 = vadd.f32 %v14904_v15, %v17513_v37 }
 0x552   : > { %v17626_v32 = vpop.f32.mrf.mxu1  ;;  %v5690_v36 = vpop.f32.mrf.mxu0 }
 0x553   : > { %v6215_v12 = vpack.c.bf16 %v6102_v48, %v6101_v44  ;;  %v5691_v38 = vadd.f32 %v5690_v36, %v17518_v63  ;;  %v15925_v63 = vld [vmem:[%s19835_s11 + $0x30] sm:$0xff]  }
 0x554   : > { %v17628_v30 = vpop.f32.mrf.mxu1  ;;  %v14905_v33 = vpop.f32.mrf.mxu0  ;;  %15288 = vmatprep.subr.bf16.mxu1 %v15925_v63 }
 0x555   : > { %v5702_v62 = vadd.f32 %v14905_v33, %v17521_v31  ;;  %15042 = vmatprep.mubr.bf16.mxu1 %v6215_v12  ;;  %v6105_v22 = vmax.f32 %v5691_v38, 0.0  ;;  %v6107_v31 = vmax.f32 %v5699_v41, 0.0  ;;  %15289 = vmatpush3.bf16.msra.mxu1 %v15925_v63 }
 0x556   : > { %v17633_v53 = vpop.f32.mrf.mxu1  ;;  %v5693_v56 = vpop.f32.mrf.mxu0  ;;  %15043 = vmatmul.mubr.bf16.gmra.mxu1 %v6216_v34 }
 0x557   : > { %v5694_v21 = vadd.f32 %v5693_v56, %v17527_v7  ;;  %v6108_v6 = vmax.f32 %v5702_v62, 0.0 }
 0x558   : > { %v17636_v46 = vpop.f32.mrf.mxu1  ;;  %v14908_v9 = vpop.f32.mrf.mxu0 }
 0x559   : > { %v6106_v8 = vmax.f32 %v5694_v21, 0.0  ;;  %v6218_v45 = vpack.c.bf16 %v6108_v6, %v6107_v31  ;;  %v5715_v14 = vadd.f32 %v14908_v9, %v17529_v5 }
 0x55a   : > { %v17641_v25 = vpop.f32.mrf.mxu1  ;;  %v5706_v37 = vpop.f32.mrf.mxu0 }
 0x55b   : > { %v6217_v0 = vpack.c.bf16 %v6106_v8, %v6105_v22  ;;  %v5707_v27 = vadd.f32 %v5706_v37, %v17534_v42  ;;  %v6111_v17 = vmax.f32 %v5715_v14, 0.0 }
 0x55c   : > { %v17643_v2 = vpop.f32.mrf.mxu1  ;;  %v14909_v7 = vpop.f32.mrf.mxu0 }
 0x55d   : > { %v5718_v26 = vadd.f32 %v14909_v7, %v17537_v51  ;;  %15046 = vmatprep.mubr.bf16.mxu1 %v6217_v0  ;;  %v6109_v23 = vmax.f32 %v5707_v27, 0.0 }
 0x55e   : > { %v17648_v60 = vpop.f32.mrf.mxu1  ;;  %v5709_v19 = vpop.f32.mrf.mxu0  ;;  %15047 = vmatmul.mubr.bf16.gmra.mxu1 %v6218_v45 }
 0x55f   : > { %v5710_v35 = vadd.f32 %v5709_v19, %v17543_v55  ;;  %v6112_v43 = vmax.f32 %v5718_v26, 0.0 }
 0x560   : > { %v17651_v50 = vpop.f32.mrf.mxu1  ;;  %v14912_v58 = vpop.f32.mrf.mxu0 }
 0x561   : > { %v6110_v11 = vmax.f32 %v5710_v35, 0.0  ;;  %v6220_v44 = vpack.c.bf16 %v6112_v43, %v6111_v17  ;;  %v5731_v55 = vadd.f32 %v14912_v58, %v17548_v52 }
 0x562   : > { %v17653_v15 = vpop.f32.mrf.mxu1  ;;  %v5722_v42 = vpop.f32.mrf.mxu0 }
 0x563   : > { %v6219_v51 = vpack.c.bf16 %v6110_v11, %v6109_v23  ;;  %v5723_v18 = vadd.f32 %v5722_v42, %v17553_v4  ;;  %v6115_v6 = vmax.f32 %v5731_v55, 0.0 }
 0x564   : > { %v17655_v48 = vpop.f32.mrf.mxu1  ;;  %v14913_v5 = vpop.f32.mrf.mxu0 }
 0x565   : > { %v5734_v36 = vadd.f32 %v14913_v5, %v17556_v10  ;;  %15050 = vmatprep.mubr.bf16.mxu1 %v6219_v51  ;;  %v6113_v56 = vmax.f32 %v5723_v18, 0.0 }
 0x566   : > { %v17660_v12 = vpop.f32.mrf.mxu1  ;;  %v5725_v34 = vpop.f32.mrf.mxu0  ;;  %15051 = vmatmul.mubr.bf16.gmra.mxu1 %v6220_v44 }
 0x567   : > { %v5726_v33 = vadd.f32 %v5725_v34, %v17562_v13  ;;  %v6116_v38 = vmax.f32 %v5734_v36, 0.0 }
 0x568   : > { %v17663_v62 = vpop.f32.mrf.mxu1  ;;  %v14916_v41 = vpop.f32.mrf.mxu0 }
 0x569   : > { %v6114_v21 = vmax.f32 %v5726_v33, 0.0  ;;  %v6222_v22 = vpack.c.bf16 %v6116_v38, %v6115_v6  ;;  %v5747_v13 = vadd.f32 %v14916_v41, %v17564_v3 }
 0x56a   : > { %v17665_v9 = vpop.f32.mrf.mxu1  ;;  %v5738_v4 = vpop.f32.mrf.mxu0 }
 0x56b   : > { %v6221_v10 = vpack.c.bf16 %v6114_v21, %v6113_v56  ;;  %v5739_v63 = vadd.f32 %v5738_v4, %v17569_v59  ;;  %v6119_v35 = vmax.f32 %v5747_v13, 0.0 }
 0x56c   : > { %v17667_v8 = vpop.f32.mrf.mxu1  ;;  %v14917_v52 = vpop.f32.mrf.mxu0 }
 0x56d   : > { %v5750_v31 = vadd.f32 %v14917_v52, %v17572_v1  ;;  %15054 = vmatprep.mubr.bf16.mxu1 %v6221_v10  ;;  %v6117_v14 = vmax.f32 %v5739_v63, 0.0 }
 0x56e   : > { %v17672_v37 = vpop.f32.mrf.mxu1  ;;  %v5741_v0 = vpop.f32.mrf.mxu0  ;;  %15055 = vmatmul.mubr.bf16.gmra.mxu1 %v6222_v22 }
 0x56f   : > { %v5742_v45 = vadd.f32 %v5741_v0, %v17581_v54  ;;  %v6120_v7 = vmax.f32 %v5750_v31, 0.0 }
 0x570   : > { %v17675_v27 = vpop.f32.mrf.mxu1  ;;  %v14920_v26 = vpop.f32.mrf.mxu0 }
 0x571   : > { %v6118_v19 = vmax.f32 %v5742_v45, 0.0  ;;  %v6224_v58 = vpack.c.bf16 %v6120_v7, %v6119_v35  ;;  %v5763_v54 = vadd.f32 %v14920_v26, %v17583_v40 }
 0x572   : > { %v17677_v43 = vpop.f32.mrf.mxu1  ;;  %v5754_v59 = vpop.f32.mrf.mxu0 }
 0x573   : > { %v6223_v1 = vpack.c.bf16 %v6118_v19, %v6117_v14  ;;  %v5755_v11 = vadd.f32 %v5754_v59, %v17588_v57  ;;  %v15926_v57 = vld [vmem:[%s19835_s11 + $0x28] sm:$0xff]  }
 0x574   : > { %v17679_v23 = vpop.f32.mrf.mxu1  ;;  %v14921_v3 = vpop.f32.mrf.mxu0  ;;  %15290 = vmatprep.subr.bf16.mxu1 %v15926_v57 }
 0x575   : > { %v5766_v17 = vadd.f32 %v14921_v3, %v17591_v20  ;;  %15058 = vmatprep.mubr.bf16.mxu1 %v6223_v1  ;;  %v6121_v55 = vmax.f32 %v5755_v11, 0.0  ;;  %v6123_v20 = vmax.f32 %v5763_v54, 0.0  ;;  %15291 = vmatpush3.bf16.msra.mxu1 %v15926_v57 }
 0x576   : > { %v17684_v42 = vpop.f32.mrf.mxu1  ;;  %v5757_v51 = vpop.f32.mrf.mxu0  ;;  %15059 = vmatmul.mubr.bf16.gmra.mxu1 %v6224_v58 }
 0x577   : > { %v5758_v44 = vadd.f32 %v5757_v51, %v17597_v61  ;;  %v6124_v5 = vmax.f32 %v5766_v17, 0.0 }
 0x578   : > { %v17687_v18 = vpop.f32.mrf.mxu1  ;;  %v14924_v36 = vpop.f32.mrf.mxu0 }
 0x579   : > { %v6122_v34 = vmax.f32 %v5758_v44, 0.0  ;;  %v6226_v41 = vpack.c.bf16 %v6124_v5, %v6123_v20  ;;  %v5779_v4 = vadd.f32 %v14924_v36, %v17599_v24 }
 0x57a   : > { %v17692_v33 = vpop.f32.mrf.mxu1  ;;  %v5770_v40 = vpop.f32.mrf.mxu0 }
 0x57b   : > { %v6225_v38 = vpack.c.bf16 %v6122_v34, %v6121_v55  ;;  %v5771_v21 = vadd.f32 %v5770_v40, %v17604_v49  ;;  %v6127_v7 = vmax.f32 %v5779_v4, 0.0 }
 0x57c   : > { %v17694_v56 = vpop.f32.mrf.mxu1  ;;  %v14925_v61 = vpop.f32.mrf.mxu0 }
 0x57d   : > { %v5782_v6 = vadd.f32 %v14925_v61, %v17607_v39  ;;  %15062 = vmatprep.mubr.bf16.mxu1 %v6225_v38  ;;  %v6125_v0 = vmax.f32 %v5771_v21, 0.0 }
 0x57e   : > { %v17699_v10 = vpop.f32.mrf.mxu1  ;;  %v5773_v22 = vpop.f32.mrf.mxu0  ;;  %15063 = vmatmul.mubr.bf16.gmra.mxu1 %v6226_v41 }
 0x57f   : > { %v5774_v52 = vadd.f32 %v5773_v22, %v17611_v47  ;;  %v6128_v63 = vmax.f32 %v5782_v6, 0.0 }
 0x580   : > { %v17702_v31 = vpop.f32.mrf.mxu1  ;;  %v14928_v13 = vpop.f32.mrf.mxu0 }
 0x581   : > { %v6126_v45 = vmax.f32 %v5774_v52, 0.0  ;;  %v6228_v14 = vpack.c.bf16 %v6128_v63, %v6127_v7  ;;  %v5795_v47 = vadd.f32 %v14928_v13, %v17616_v28 }
 0x582   : > { %v17704_v26 = vpop.f32.mrf.mxu1  ;;  %v5786_v49 = vpop.f32.mrf.mxu0 }
 0x583   : > { %v6227_v39 = vpack.c.bf16 %v6126_v45, %v6125_v0  ;;  %v5787_v35 = vadd.f32 %v5786_v49, %v17621_v16  ;;  %v6131_v5 = vmax.f32 %v5795_v47, 0.0 }
 0x584   : > { %v17706_v19 = vpop.f32.mrf.mxu1  ;;  %v14929_v24 = vpop.f32.mrf.mxu0 }
 0x585   : > { %v5798_v59 = vadd.f32 %v14929_v24, %v17624_v29  ;;  %15066 = vmatprep.mubr.bf16.mxu1 %v6227_v39  ;;  %v6129_v51 = vmax.f32 %v5787_v35, 0.0  ;;  %v15927_v24 = vld [vmem:[%s19835_s11 + $0x20] sm:$0xff]  }
 0x586   : > { %v17711_v1 = vpop.f32.mrf.mxu1  ;;  %v5789_v58 = vpop.f32.mrf.mxu0  ;;  %15067 = vmatmul.mubr.bf16.gmra.mxu1 %v6228_v14  ;;  %15292 = vmatprep.subr.bf16.mxu1 %v15927_v24 }
 0x587   : > { %v5790_v3 = vadd.f32 %v5789_v58, %v17626_v32  ;;  %v6132_v11 = vmax.f32 %v5798_v59, 0.0  ;;  %15293 = vmatpush3.bf16.msra.mxu1 %v15927_v24 }
 0x588   : > { %v17714_v17 = vpop.f32.mrf.mxu1  ;;  %v14932_v54 = vpop.f32.mrf.mxu0 }
 0x589   : > { %v6130_v44 = vmax.f32 %v5790_v3, 0.0  ;;  %v6230_v55 = vpack.c.bf16 %v6132_v11, %v6131_v5  ;;  %v5811_v32 = vadd.f32 %v14932_v54, %v17628_v30 }
 0x58a   : > { %v17716_v36 = vpop.f32.mrf.mxu1  ;;  %v5802_v16 = vpop.f32.mrf.mxu0 }
 0x58b   : > { %v6229_v29 = vpack.c.bf16 %v6130_v44, %v6129_v51  ;;  %v5803_v57 = vadd.f32 %v5802_v16, %v17633_v53  ;;  %v6135_v52 = vmax.f32 %v5811_v32, 0.0 }
 0x58c   : > { %v17718_v34 = vpop.f32.mrf.mxu1  ;;  %v14933_v28 = vpop.f32.mrf.mxu0 }
 0x58d   : > { %v5814_v20 = vadd.f32 %v14933_v28, %v17636_v46  ;;  %15070 = vmatprep.mubr.bf16.mxu1 %v6229_v29  ;;  %v6133_v4 = vmax.f32 %v5803_v57, 0.0 }
 0x58e   : > { %v17723_v40 = vpop.f32.mrf.mxu1  ;;  %v5805_v38 = vpop.f32.mrf.mxu0  ;;  %15071 = vmatmul.mubr.bf16.gmra.mxu1 %v6230_v55 }
 0x58f   : > { %v5806_v41 = vadd.f32 %v5805_v38, %v17641_v25  ;;  %v6136_v61 = vmax.f32 %v5814_v20, 0.0 }
 0x590   : > { %v17726_v21 = vpop.f32.mrf.mxu1  ;;  %v14936_v6 = vpop.f32.mrf.mxu0 }
 0x591   : > { %v6134_v22 = vmax.f32 %v5806_v41, 0.0  ;;  %v6232_v13 = vpack.c.bf16 %v6136_v61, %v6135_v52  ;;  %v5827_v25 = vadd.f32 %v14936_v6, %v17643_v2 }
 0x592   : > { %v17728_v63 = vpop.f32.mrf.mxu1  ;;  %v5818_v53 = vpop.f32.mrf.mxu0 }
 0x593   : > { %v6231_v46 = vpack.c.bf16 %v6134_v22, %v6133_v4  ;;  %v5819_v45 = vadd.f32 %v5818_v53, %v17648_v60 }
 0x594   : > { %v17730_v0 = vpop.f32.mrf.mxu1  ;;  %v14937_v30 = vpop.f32.mrf.mxu0 }
 0x595   : > { %v5830_v7 = vadd.f32 %v14937_v30, %v17651_v50  ;;  %15074 = vmatprep.mubr.bf16.mxu1 %v6231_v46  ;;  %v6137_v60 = vmax.f32 %v5819_v45, 0.0  ;;  %v6139_v50 = vmax.f32 %v5827_v25, 0.0 }
 0x596   : > { %v17735_v49 = vpop.f32.mrf.mxu1  ;;  %v5821_v39 = vpop.f32.mrf.mxu0  ;;  %15075 = vmatmul.mubr.bf16.gmra.mxu1 %v6232_v13 }
 0x597   : > { %v5822_v14 = vadd.f32 %v5821_v39, %v17653_v15  ;;  %v6140_v35 = vmax.f32 %v5830_v7, 0.0 }
 0x598   : > { %v17741_v59 = vpop.f32.mrf.mxu1  ;;  %v14940_v47 = vpop.f32.mrf.mxu0 }
 0x599   : > { %v6138_v58 = vmax.f32 %v5822_v14, 0.0  ;;  %v6234_v54 = vpack.c.bf16 %v6140_v35, %v6139_v50  ;;  %v5843_v16 = vadd.f32 %v14940_v47, %v17655_v48 }
 0x59a   : > { %v17743_v3 = vpop.f32.mrf.mxu1  ;;  %v5834_v2 = vpop.f32.mrf.mxu0 }
 0x59b   : > { %v6233_v11 = vpack.c.bf16 %v6138_v58, %v6137_v60  ;;  %v5835_v44 = vadd.f32 %v5834_v2, %v17660_v12  ;;  %v6143_v61 = vmax.f32 %v5843_v16, 0.0 }
 0x59c   : > { %v17745_v51 = vpop.f32.mrf.mxu1  ;;  %v14941_v15 = vpop.f32.mrf.mxu0 }
 0x59d   : > { %v5846_v5 = vadd.f32 %v14941_v15, %v17663_v62  ;;  %15078 = vmatprep.mubr.bf16.mxu1 %v6233_v11  ;;  %v6141_v38 = vmax.f32 %v5835_v44, 0.0 }
 0x59e   : > { %v17750_v29 = vpop.f32.mrf.mxu1  ;;  %v5837_v55 = vpop.f32.mrf.mxu0  ;;  %15079 = vmatmul.mubr.bf16.gmra.mxu1 %v6234_v54 }
 0x59f   : > { %v5838_v28 = vadd.f32 %v5837_v55, %v17665_v9  ;;  %v6144_v57 = vmax.f32 %v5846_v5, 0.0 }
 0x5a0   : > { %v17753_v20 = vpop.f32.mrf.mxu1  ;;  %v14944_v32 = vpop.f32.mrf.mxu0 }
 0x5a1   : > { %v6142_v41 = vmax.f32 %v5838_v28, 0.0  ;;  %v6236_v4 = vpack.c.bf16 %v6144_v57, %v6143_v61  ;;  %v5859_v9 = vadd.f32 %v14944_v32, %v17667_v8 }
 0x5a2   : > { %v17755_v6 = vpop.f32.mrf.mxu1  ;;  %v5850_v12 = vpop.f32.mrf.mxu0 }
 0x5a3   : > { %v6235_v62 = vpack.c.bf16 %v6142_v41, %v6141_v38  ;;  %v5851_v52 = vadd.f32 %v5850_v12, %v17672_v37  ;;  %v6147_v24 = vmax.f32 %v5859_v9, 0.0 }
 0x5a4   : > { %v17757_v22 = vpop.f32.mrf.mxu1  ;;  %v14945_v48 = vpop.f32.mrf.mxu0 }
 0x5a5   : > { %v5862_v53 = vadd.f32 %v14945_v48, %v17675_v27  ;;  %15082 = vmatprep.mubr.bf16.mxu1 %v6235_v62  ;;  %v6145_v39 = vmax.f32 %v5851_v52, 0.0  ;;  %v15928_v48 = vld [vmem:[%s19835_s11 + $0x18] sm:$0xff]  }
 0x5a6   : > { %v17762_v46 = vpop.f32.mrf.mxu1  ;;  %v5853_v13 = vpop.f32.mrf.mxu0  ;;  %15083 = vmatmul.mubr.bf16.gmra.mxu1 %v6236_v4  ;;  %15294 = vmatprep.subr.bf16.mxu1 %v15928_v48 }
 0x5a7   : > { %v5854_v30 = vadd.f32 %v5853_v13, %v17677_v43  ;;  %v6148_v45 = vmax.f32 %v5862_v53, 0.0  ;;  %15295 = vmatpush3.bf16.msra.mxu1 %v15928_v48 }
 0x5a8   : > { %v17765_v7 = vpop.f32.mrf.mxu1  ;;  %v14948_v25 = vpop.f32.mrf.mxu0 }
 0x5a9   : > { %v6146_v14 = vmax.f32 %v5854_v30, 0.0  ;;  %v6238_v47 = vpack.c.bf16 %v6148_v45, %v6147_v24  ;;  %v5875_v43 = vadd.f32 %v14948_v25, %v17679_v23 }
 0x5aa   : > { %v17767_v35 = vpop.f32.mrf.mxu1  ;;  %v5866_v37 = vpop.f32.mrf.mxu0 }
 0x5ab   : > { %v6237_v27 = vpack.c.bf16 %v6146_v14, %v6145_v39  ;;  %v5867_v58 = vadd.f32 %v5866_v37, %v17684_v42  ;;  %v6151_v28 = vmax.f32 %v5875_v43, 0.0 }
 0x5ac   : > { %v17769_v60 = vpop.f32.mrf.mxu1  ;;  %v14949_v8 = vpop.f32.mrf.mxu0 }
 0x5ad   : > { %v5878_v50 = vadd.f32 %v14949_v8, %v17687_v18  ;;  %15086 = vmatprep.mubr.bf16.mxu1 %v6237_v27  ;;  %v6149_v16 = vmax.f32 %v5867_v58, 0.0 }
 0x5ae   : > { %v17774_v2 = vpop.f32.mrf.mxu1  ;;  %v5869_v11 = vpop.f32.mrf.mxu0  ;;  %15087 = vmatmul.mubr.bf16.gmra.mxu1 %v6238_v47 }
 0x5af   : > { %v5870_v54 = vadd.f32 %v5869_v11, %v17692_v33  ;;  %v6152_v15 = vmax.f32 %v5878_v50, 0.0 }
 0x5b0   : > { %v17777_v44 = vpop.f32.mrf.mxu1  ;;  %v14952_v5 = vpop.f32.mrf.mxu0 }
 0x5b1   : > { %v6150_v55 = vmax.f32 %v5870_v54, 0.0  ;;  %v6240_v32 = vpack.c.bf16 %v6152_v15, %v6151_v28  ;;  %v5891_v33 = vadd.f32 %v14952_v5, %v17694_v56 }
 0x5b2   : > { %v17779_v57 = vpop.f32.mrf.mxu1  ;;  %v5882_v42 = vpop.f32.mrf.mxu0 }
 0x5b3   : > { %v6239_v18 = vpack.c.bf16 %v6150_v55, %v6149_v16  ;;  %v5883_v41 = vadd.f32 %v5882_v42, %v17699_v10 }
 0x5b4   : > { %v17781_v38 = vpop.f32.mrf.mxu1  ;;  %v14953_v23 = vpop.f32.mrf.mxu0 }
 0x5b5   : > { %v5894_v61 = vadd.f32 %v14953_v23, %v17702_v31  ;;  %15090 = vmatprep.mubr.bf16.mxu1 %v6239_v18  ;;  %v6153_v10 = vmax.f32 %v5883_v41, 0.0  ;;  %v6155_v31 = vmax.f32 %v5891_v33, 0.0 }
 0x5b6   : > { %v17786_v12 = vpop.f32.mrf.mxu1  ;;  %v5885_v62 = vpop.f32.mrf.mxu0  ;;  %15091 = vmatmul.mubr.bf16.gmra.mxu1 %v6240_v32 }
 0x5b7   : > { %v5886_v4 = vadd.f32 %v5885_v62, %v17704_v26  ;;  %v6156_v52 = vmax.f32 %v5894_v61, 0.0 }
 0x5b8   : > { %v17792_v53 = vpop.f32.mrf.mxu1  ;;  %v14956_v9 = vpop.f32.mrf.mxu0 }
 0x5b9   : > { %v6154_v13 = vmax.f32 %v5886_v4, 0.0  ;;  %v6242_v25 = vpack.c.bf16 %v6156_v52, %v6155_v31  ;;  %v5907_v37 = vadd.f32 %v14956_v9, %v17706_v19 }
 0x5ba   : > { %v17794_v30 = vpop.f32.mrf.mxu1  ;;  %v5898_v56 = vpop.f32.mrf.mxu0 }
 0x5bb   : > { %v6241_v45 = vpack.c.bf16 %v6154_v13, %v6153_v10  ;;  %v5899_v14 = vadd.f32 %v5898_v56, %v17711_v1  ;;  %v6159_v15 = vmax.f32 %v5907_v37, 0.0 }
 0x5bc   : > { %v17796_v39 = vpop.f32.mrf.mxu1  ;;  %v14957_v26 = vpop.f32.mrf.mxu0 }
 0x5bd   : > { %v5910_v24 = vadd.f32 %v14957_v26, %v17714_v17  ;;  %15094 = vmatprep.mubr.bf16.mxu1 %v6241_v45  ;;  %v6157_v11 = vmax.f32 %v5899_v14, 0.0 }
 0x5be   : > { %v17801_v27 = vpop.f32.mrf.mxu1  ;;  %v5901_v47 = vpop.f32.mrf.mxu0  ;;  %15095 = vmatmul.mubr.bf16.gmra.mxu1 %v6242_v25 }
 0x5bf   : > { %v5902_v8 = vadd.f32 %v5901_v47, %v17716_v36  ;;  %v6160_v58 = vmax.f32 %v5910_v24, 0.0 }
 0x5c0   : > { %v17804_v50 = vpop.f32.mrf.mxu1  ;;  %v14960_v43 = vpop.f32.mrf.mxu0 }
 0x5c1   : > { %v6158_v54 = vmax.f32 %v5902_v8, 0.0  ;;  %v6244_v16 = vpack.c.bf16 %v6160_v58, %v6159_v15  ;;  %v5923_v36 = vadd.f32 %v14960_v43, %v17718_v34 }
 0x5c2   : > { %v17806_v5 = vpop.f32.mrf.mxu1  ;;  %v5914_v1 = vpop.f32.mrf.mxu0 }
 0x5c3   : > { %v6243_v17 = vpack.c.bf16 %v6158_v54, %v6157_v11  ;;  %v5915_v28 = vadd.f32 %v5914_v1, %v17723_v40  ;;  %v6163_v48 = vmax.f32 %v5923_v36, 0.0 }
 0x5c4   : > { %v17808_v55 = vpop.f32.mrf.mxu1  ;;  %v14961_v19 = vpop.f32.mrf.mxu0 }
 0x5c5   : > { %v5926_v42 = vadd.f32 %v14961_v19, %v17726_v21  ;;  %15098 = vmatprep.mubr.bf16.mxu1 %v6243_v17  ;;  %v6161_v62 = vmax.f32 %v5915_v28, 0.0  ;;  %v15929_v19 = vld [vmem:[%s19835_s11 + $0x10] sm:$0xff]  }
 0x5c6   : > { %v17813_v18 = vpop.f32.mrf.mxu1  ;;  %v5917_v32 = vpop.f32.mrf.mxu0  ;;  %15099 = vmatmul.mubr.bf16.gmra.mxu1 %v6244_v16  ;;  %15296 = vmatprep.subr.bf16.mxu1 %v15929_v19 }
 0x5c7   : > { %v5918_v23 = vadd.f32 %v5917_v32, %v17728_v63  ;;  %v6164_v41 = vmax.f32 %v5926_v42, 0.0  ;;  %15297 = vmatpush3.bf16.msra.mxu1 %v15929_v19 }
 0x5c8   : > { %v17816_v61 = vpop.f32.mrf.mxu1  ;;  %v14964_v33 = vpop.f32.mrf.mxu0 }
 0x5c9   : > { %v6162_v4 = vmax.f32 %v5918_v23, 0.0  ;;  %v6246_v9 = vpack.c.bf16 %v6164_v41, %v6163_v48  ;;  %v5939_v63 = vadd.f32 %v14964_v33, %v17730_v0 }
 0x5ca   : > { %v17818_v52 = vpop.f32.mrf.mxu1  ;;  %v5930_v40 = vpop.f32.mrf.mxu0 }
 0x5cb   : > { %v6245_v21 = vpack.c.bf16 %v6162_v4, %v6161_v62  ;;  %v5931_v13 = vadd.f32 %v5930_v40, %v17735_v49  ;;  %v6167_v8 = vmax.f32 %v5939_v63, 0.0 }
 0x5cc   : > { %v17820_v10 = vpop.f32.mrf.mxu1  ;;  %v14965_v34 = vpop.f32.mrf.mxu0 }
 0x5cd   : > { %v5942_v31 = vadd.f32 %v14965_v34, %v17741_v59  ;;  %15102 = vmatprep.mubr.bf16.mxu1 %v6245_v21  ;;  %v6165_v37 = vmax.f32 %v5931_v13, 0.0 }
 0x5ce   : > { %v17825_v56 = vpop.f32.mrf.mxu1  ;;  %v5933_v45 = vpop.f32.mrf.mxu0  ;;  %15103 = vmatmul.mubr.bf16.gmra.mxu1 %v6246_v9 }
 0x5cf   : > { %v5934_v25 = vadd.f32 %v5933_v45, %v17743_v3  ;;  %v6168_v26 = vmax.f32 %v5942_v31, 0.0 }
 0x5d0   : > { %v17828_v14 = vpop.f32.mrf.mxu1  ;;  %v14968_v24 = vpop.f32.mrf.mxu0 }
 0x5d1   : > { %v6166_v47 = vmax.f32 %v5934_v25, 0.0  ;;  %v6248_v43 = vpack.c.bf16 %v6168_v26, %v6167_v8  ;;  %v5955_v3 = vadd.f32 %v14968_v24, %v17745_v51 }
 0x5d2   : > { %v17830_v58 = vpop.f32.mrf.mxu1  ;;  %v5946_v49 = vpop.f32.mrf.mxu0 }
 0x5d3   : > { %v6247_v59 = vpack.c.bf16 %v6166_v47, %v6165_v37  ;;  %v5947_v54 = vadd.f32 %v5946_v49, %v17750_v29 }
 0x5d4   : > { %v17832_v11 = vpop.f32.mrf.mxu1  ;;  %v14969_v0 = vpop.f32.mrf.mxu0 }
 0x5d5   : > { %v5958_v15 = vadd.f32 %v14969_v0, %v17753_v20  ;;  %15106 = vmatprep.mubr.bf16.mxu1 %v6247_v59  ;;  %v6169_v29 = vmax.f32 %v5947_v54, 0.0  ;;  %v6171_v20 = vmax.f32 %v5955_v3, 0.0 }
 0x5d6   : > { %v17837_v1 = vpop.f32.mrf.mxu1  ;;  %v5949_v17 = vpop.f32.mrf.mxu0  ;;  %15107 = vmatmul.mubr.bf16.gmra.mxu1 %v6248_v43 }
 0x5d7   : > { %v5950_v16 = vadd.f32 %v5949_v17, %v17755_v6  ;;  %v6172_v28 = vmax.f32 %v5958_v15, 0.0 }
 0x5d8   : > { %v17843_v42 = vpop.f32.mrf.mxu1  ;;  %v14972_v36 = vpop.f32.mrf.mxu0 }
 0x5d9   : > { %v6170_v32 = vmax.f32 %v5950_v16, 0.0  ;;  %v6250_v41 = vpack.c.bf16 %v6172_v28, %v6171_v20  ;;  %v5971_v48 = vadd.f32 %v14972_v36, %v17757_v22 }
 0x5da   : > { %v5962_v23 = vpop.f32.mrf.mxu0  ;;  %v17845_v33 = vpop.f32.mrf.mxu1 }
 0x5db   : > { %v6249_v51 = vpack.c.bf16 %v6170_v32, %v6169_v29  ;;  %v5963_v6 = vadd.f32 %v5962_v23, %v17762_v46  ;;  %v6175_v25 = vmax.f32 %v5971_v48, 0.0 }
 0x5dc   : > { %v14973_v62 = vpop.f32.mrf.mxu0 }
 0x5dd   : > { %v5974_v4 = vadd.f32 %v14973_v62, %v17765_v7  ;;  %15110 = vmatprep.mubr.bf16.mxu1 %v6249_v51  ;;  %v6173_v63 = vmax.f32 %v5963_v6, 0.0 }
 0x5de   : > { %v5965_v40 = vpop.f32.mrf.mxu0  ;;  %v15016_v21 = vpop.f32.mrf.mxu1  ;;  %15111 = vmatmul.mubr.bf16.gmra.mxu1 %v6250_v41 }
 0x5df   : > { %v5966_v9 = vadd.f32 %v5965_v40, %v17767_v35  ;;  %v6176_v34 = vmax.f32 %v5974_v4, 0.0  ;;  %v6876_v35 = vmax.f32 %v15016_v21, 0.0 }
 0x5e0   : > { %v14976_v13 = vpop.f32.mrf.mxu0  ;;  %v6363_v31 = vpop.f32.mrf.mxu1 }
 0x5e1   : > { %v6174_v45 = vmax.f32 %v5966_v9, 0.0  ;;  %v6252_v46 = vpack.c.bf16 %v6176_v34, %v6175_v25  ;;  %v6874_v49 = vmax.f32 %v6363_v31, 0.0  ;;  %v5987_v0 = vadd.f32 %v14976_v13, %v17769_v60 }
 0x5e2   : > { %v5978_v26 = vpop.f32.mrf.mxu0  ;;  %v15017_v24 = vpop.f32.mrf.mxu1 }
 0x5e3   : > { %v6251_v37 = vpack.c.bf16 %v6174_v45, %v6173_v63  ;;  %v6877_v47 = vmax.f32 %v15017_v24, 0.0  ;;  %v5979_v22 = vadd.f32 %v5978_v26, %v17774_v2  ;;  %v6179_v2 = vmax.f32 %v5987_v0, 0.0 }
 0x5e4   : > { %v14977_v7 = vpop.f32.mrf.mxu0  ;;  %v6366_v8 = vpop.f32.mrf.mxu1 }
 0x5e5   : > { %v5990_v59 = vadd.f32 %v14977_v7, %v17777_v44  ;;  %v6875_v43 = vmax.f32 %v6366_v8, 0.0  ;;  %15114 = vmatprep.mubr.bf16.mxu1 %v6251_v37  ;;  %v7003_v16 = vpack.c.bf16 %v6877_v47, %v6876_v35  ;;  %v6177_v29 = vmax.f32 %v5979_v22, 0.0 }
 0x5e6   : > { %v5981_v54 = vpop.f32.mrf.mxu0  ;;  %v15020_v15 = vpop.f32.mrf.mxu1  ;;  %15115 = vmatmul.mubr.bf16.gmra.mxu1 %v6252_v46 }
 0x5e7   : > { %v7002_v3 = vpack.c.bf16 %v6875_v43, %v6874_v49  ;;  %v5982_v17 = vadd.f32 %v5981_v54, %v17779_v57  ;;  %v6180_v19 = vmax.f32 %v5990_v59, 0.0  ;;  %v6880_v40 = vmax.f32 %v15020_v15, 0.0 }
 0x5e8   : > { %v14980_v28 = vpop.f32.mrf.mxu0  ;;  %v6379_v36 = vpop.f32.mrf.mxu1 }
 0x5e9   : > { %v6178_v32 = vmax.f32 %v5982_v17, 0.0  ;;  %15158 = vmatprep.mubr.bf16.mxu0 %v7002_v3  ;;  %v6254_v51 = vpack.c.bf16 %v6180_v19, %v6179_v2  ;;  %v6878_v6 = vmax.f32 %v6379_v36, 0.0  ;;  %v6003_v21 = vadd.f32 %v14980_v28, %v17781_v38 }
 0x5ea   : > { %v5994_v44 = vpop.f32.mrf.mxu0  ;;  %v15021_v20 = vpop.f32.mrf.mxu1  ;;  %15159 = vmatmul.mubr.bf16.vlgmr.msra.gmra.mxu0 %v7003_v16  ;;  %v15930_v16 = vld [vmem:[%s19835_s11 + $0x8] sm:$0xff]  }
 0x5eb   : > { %v6253_v23 = vpack.c.bf16 %v6178_v32, %v6177_v29  ;;  %v6881_v60 = vmax.f32 %v15021_v20, 0.0  ;;  %v5995_v4 = vadd.f32 %v5994_v44, %v17786_v12  ;;  %v6183_v12 = vmax.f32 %v6003_v21, 0.0  ;;  %15298 = vmatprep.subr.bf16.mxu1 %v15930_v16 }
 0x5ec   : > { %v14981_v41 = vpop.f32.mrf.mxu0  ;;  %v6382_v62 = vpop.f32.mrf.mxu1  ;;  %15299 = vmatpush3.bf16.msra.mxu1 %v15930_v16 }
 0x5ed   : > { %v6006_v57 = vadd.f32 %v14981_v41, %v17792_v53  ;;  %v6879_v48 = vmax.f32 %v6382_v62, 0.0  ;;  %15118 = vmatprep.mubr.bf16.mxu1 %v6253_v23  ;;  %v7005_v63 = vpack.c.bf16 %v6881_v60, %v6880_v40  ;;  %v6181_v24 = vmax.f32 %v5995_v4, 0.0 }
 0x5ee   : > { %v5997_v9 = vpop.f32.mrf.mxu0  ;;  %v15024_v34 = vpop.f32.mrf.mxu1  ;;  %15119 = vmatmul.mubr.bf16.gmra.mxu1 %v6254_v51 }
 0x5ef   : > { %v7004_v13 = vpack.c.bf16 %v6879_v48, %v6878_v6  ;;  %v5998_v31 = vadd.f32 %v5997_v9, %v17794_v30  ;;  %v6184_v45 = vmax.f32 %v6006_v57, 0.0  ;;  %v6884_v35 = vmax.f32 %v15024_v34, 0.0 }
 0x5f0   : > { %v14984_v25 = vpop.f32.mrf.mxu0  ;;  %v6395_v26 = vpop.f32.mrf.mxu1 }
 0x5f1   : > { %v6182_v37 = vmax.f32 %v5998_v31, 0.0  ;;  %15162 = vmatprep.mubr.bf16.mxu0 %v7004_v13  ;;  %v6256_v7 = vpack.c.bf16 %v6184_v45, %v6183_v12  ;;  %v6882_v22 = vmax.f32 %v6395_v26, 0.0  ;;  %v6019_v0 = vadd.f32 %v14984_v25, %v17796_v39 }
 0x5f2   : > { %v6010_v53 = vpop.f32.mrf.mxu0  ;;  %v15025_v46 = vpop.f32.mrf.mxu1  ;;  %15163 = vmatmul.mubr.bf16.gmra.mxu0 %v7005_v63 }
 0x5f3   : > { %v6255_v47 = vpack.c.bf16 %v6182_v37, %v6181_v24  ;;  %v6885_v38 = vmax.f32 %v15025_v46, 0.0  ;;  %v6011_v59 = vadd.f32 %v6010_v53, %v17801_v27  ;;  %v6187_v32 = vmax.f32 %v6019_v0, 0.0 }
 0x5f4   : > { %v14985_v8 = vpop.f32.mrf.mxu0  ;;  %v6398_v49 = vpop.f32.mrf.mxu1 }
 0x5f5   : > { %v6022_v30 = vadd.f32 %v14985_v8, %v17804_v50  ;;  %v6883_v43 = vmax.f32 %v6398_v49, 0.0  ;;  %15122 = vmatprep.mubr.bf16.mxu1 %v6255_v47  ;;  %v7007_v19 = vpack.c.bf16 %v6885_v38, %v6884_v35  ;;  %v6185_v50 = vmax.f32 %v6011_v59, 0.0 }
 0x5f6   : > { %v6013_v54 = vpop.f32.mrf.mxu0  ;;  %v15028_v15 = vpop.f32.mrf.mxu1  ;;  %15123 = vmatmul.mubr.bf16.gmra.mxu1 %v6256_v7 }
 0x5f7   : > { %v7006_v3 = vpack.c.bf16 %v6883_v43, %v6882_v22  ;;  %v6014_v17 = vadd.f32 %v6013_v54, %v17806_v5  ;;  %v6188_v28 = vmax.f32 %v6022_v30, 0.0  ;;  %v6888_v4 = vmax.f32 %v15028_v15, 0.0 }
 0x5f8   : > { %v14988_v27 = vpop.f32.mrf.mxu0  ;;  %v6411_v36 = vpop.f32.mrf.mxu1 }
 0x5f9   : > { %v6186_v29 = vmax.f32 %v6014_v17, 0.0  ;;  %15166 = vmatprep.mubr.bf16.mxu0 %v7006_v3  ;;  %v6258_v20 = vpack.c.bf16 %v6188_v28, %v6187_v32  ;;  %v6886_v60 = vmax.f32 %v6411_v36, 0.0  ;;  %v6035_v57 = vadd.f32 %v14988_v27, %v17808_v55 }
 0x5fa   : > { %v6026_v39 = vpop.f32.mrf.mxu0  ;;  %v15029_v2 = vpop.f32.mrf.mxu1  ;;  %15167 = vmatmul.mubr.bf16.gmra.mxu0 %v7007_v19 }
 0x5fb   : > { %v6257_v44 = vpack.c.bf16 %v6186_v29, %v6185_v50  ;;  %v6889_v5 = vmax.f32 %v15029_v2, 0.0  ;;  %v6027_v41 = vadd.f32 %v6026_v39, %v17813_v18  ;;  %v6191_v18 = vmax.f32 %v6035_v57, 0.0 }
 0x5fc   : > { %v14989_v23 = vpop.f32.mrf.mxu0  ;;  %v6414_v51 = vpop.f32.mrf.mxu1 }
 0x5fd   : > { %v6038_v62 = vadd.f32 %v14989_v23, %v17816_v61  ;;  %v6887_v6 = vmax.f32 %v6414_v51, 0.0  ;;  %15126 = vmatprep.mubr.bf16.mxu1 %v6257_v44  ;;  %v7009_v34 = vpack.c.bf16 %v6889_v5, %v6888_v4  ;;  %v6189_v45 = vmax.f32 %v6027_v41, 0.0 }
 0x5fe   : > { %v6029_v48 = vpop.f32.mrf.mxu0  ;;  %v15032_v40 = vpop.f32.mrf.mxu1  ;;  %15127 = vmatmul.mubr.bf16.gmra.mxu1 %v6258_v20 }
 0x5ff   : > { %v7008_v21 = vpack.c.bf16 %v6887_v6, %v6886_v60  ;;  %v6030_v9 = vadd.f32 %v6029_v48, %v17818_v52  ;;  %v6192_v13 = vmax.f32 %v6038_v62, 0.0  ;;  %v6892_v38 = vmax.f32 %v15032_v40, 0.0 }
 0x600   : > { %v14992_v31 = vpop.f32.mrf.mxu0  ;;  %v6427_v63 = vpop.f32.mrf.mxu1 }
 0x601   : > { %v6190_v25 = vmax.f32 %v6030_v9, 0.0  ;;  %15170 = vmatprep.mubr.bf16.mxu0 %v7008_v21  ;;  %v6260_v37 = vpack.c.bf16 %v6192_v13, %v6191_v18  ;;  %v6890_v46 = vmax.f32 %v6427_v63, 0.0  ;;  %v6051_v8 = vadd.f32 %v14992_v31, %v17820_v10 }
 0x602   : > { %v6042_v61 = vpop.f32.mrf.mxu0  ;;  %v15033_v26 = vpop.f32.mrf.mxu1  ;;  %15171 = vmatmul.mubr.bf16.gmra.mxu0 %v7009_v34 }
 0x603   : > { %v6259_v24 = vpack.c.bf16 %v6190_v25, %v6189_v45  ;;  %v6893_v55 = vmax.f32 %v15033_v26, 0.0  ;;  %v6043_v47 = vadd.f32 %v6042_v61, %v17825_v56  ;;  %v15931_v56 = vld [vmem:[%s19837_s13 + $0x8] sm:$0x3f]   ;;  %v6195_v17 = vmax.f32 %v6051_v8, 0.0  ;;  %v15932_v25 = vld [vmem:[%s19835_s11] sm:$0xff]  }
 0x604   : > { %v14993_v12 = vpop.f32.mrf.mxu0  ;;  %v6430_v53 = vpop.f32.mrf.mxu1  ;;  %15300 = vmatprep.subr.bf16.mxu1 %v15932_v25 }
 0x605   : > { %v6054_v52 = vadd.f32 %v14993_v12, %v17828_v14  ;;  %v6891_v7 = vmax.f32 %v6430_v53, 0.0  ;;  %15130 = vmatprep.mubr.bf16.mxu1 %v6259_v24  ;;  %v7011_v43 = vpack.c.bf16 %v6893_v55, %v6892_v38  ;;  %v20048_v14 = vmov 65535   ;;  %15301 = vmatpush3.bf16.msra.mxu1 %v15932_v25 }
 0x606   : > { %v6045_v49 = vpop.f32.mrf.mxu0  ;;  %v15036_v22 = vpop.f32.mrf.mxu1  ;;  %15131 = vmatmul.mubr.bf16.gmra.mxu1 %v6260_v37  ;;  %v8894_v15 = vsel %vm8892_vm3, 4294967295, %v20048_v14  ;;  %v6193_v3 = vmax.f32 %v6043_v47, 0.0 }
 0x607   : > { %v7010_v59 = vpack.c.bf16 %v6891_v7, %v6890_v46  ;;  %v6046_v30 = vadd.f32 %v6045_v49, %v17830_v58  ;;  %v6196_v35 = vmax.f32 %v6054_v52, 0.0  ;;  %v8895_v28 = vsel %vm8893_vm4, %v8894_v15, 0 }
 0x608   : > { %v14996_v0 = vpop.f32.mrf.mxu0  ;;  %v6443_v54 = vpop.f32.mrf.mxu1  ;;  %v8897_v32 = vand.u32 %v15931_v56, %v8895_v28  ;;  %v6896_v5 = vmax.f32 %v15036_v22, 0.0 }
 0x609   : > { %v6194_v10 = vmax.f32 %v6046_v30, 0.0  ;;  %15174 = vmatprep.mubr.bf16.mxu0 %v7010_v59  ;;  %v6262_v27 = vpack.c.bf16 %v6196_v35, %v6195_v17  ;;  %v6894_v39 = vmax.f32 %v6443_v54, 0.0  ;;  %v6067_v23 = vadd.f32 %v14996_v0, %v17832_v11 }
 0x60a   : > { %v6058_v16 = vpop.f32.mrf.mxu0  ;;  %v15037_v19 = vpop.f32.mrf.mxu1  ;;  %15175 = vmatmul.mubr.bf16.gmra.mxu0 %v7011_v43  ;;  %15430 = vmatprep.subr.bf16.mxu0 %v8897_v32 }
 0x60b   : > { %v6261_v58 = vpack.c.bf16 %v6194_v10, %v6193_v3  ;;  %v6897_v36 = vmax.f32 %v15037_v19, 0.0  ;;  %v6059_v2 = vadd.f32 %v6058_v16, %v17837_v1  ;;  %15431 = vmatpush3.bf16.msra.mxu0 %v8897_v32 }
 0x60c   : > { %v14997_v50 = vpop.f32.mrf.mxu0  ;;  %v6446_v29 = vpop.f32.mrf.mxu1 }
 0x60d   : > { %v6070_v44 = vadd.f32 %v14997_v50, %v17843_v42  ;;  %v6895_v20 = vmax.f32 %v6446_v29, 0.0  ;;  %15134 = vmatprep.mubr.bf16.mxu1 %v6261_v58  ;;  %v7013_v6 = vpack.c.bf16 %v6897_v36, %v6896_v5  ;;  %v6197_v48 = vmax.f32 %v6059_v2, 0.0 }
 0x60e   : > { %v6061_v51 = vpop.f32.mrf.mxu0  ;;  %v15040_v60 = vpop.f32.mrf.mxu1  ;;  %15135 = vmatmul.mubr.bf16.gmra.mxu1 %v6262_v27  ;;  %v6199_v42 = vmax.f32 %v6067_v23, 0.0 }
 0x60f   : > { %v7012_v41 = vpack.c.bf16 %v6895_v20, %v6894_v39  ;;  %v6062_v62 = vadd.f32 %v6061_v51, %v17845_v33  ;;  %v6200_v4 = vmax.f32 %v6070_v44, 0.0  ;;  %v6900_v63 = vmax.f32 %v15040_v60, 0.0  ;;  %v17888_v20 = vld [vmem:[%s19836_s12 + $0x38] sm:$0xff]  }
 0x610   : > { %v6459_v57 = vpop.f32.mrf.mxu1  ;;  %15562 = vmatprep.subr.bf16.mxu1 %v17888_v20 }
 0x611   : > { %v6198_v1 = vmax.f32 %v6062_v62, 0.0  ;;  %15178 = vmatprep.mubr.bf16.mxu0 %v7012_v41  ;;  %v6264_v9 = vpack.c.bf16 %v6200_v4, %v6199_v42  ;;  %v6898_v13 = vmax.f32 %v6459_v57, 0.0 }
 0x612   : > { %v15041_v40 = vpop.f32.mrf.mxu1  ;;  %15179 = vmatmul.mubr.bf16.gmra.mxu0 %v7013_v6 }
 0x613   : > { %v6263_v21 = vpack.c.bf16 %v6198_v1, %v6197_v48  ;;  %v6901_v11 = vmax.f32 %v15041_v40, 0.0 }
 0x614   : > { %v6462_v34 = vpop.f32.mrf.mxu1 }
 0x615   : > { %v6899_v31 = vmax.f32 %v6462_v34, 0.0  ;;  %15138 = vmatprep.mubr.bf16.mxu1 %v6263_v21  ;;  %v7015_v18 = vpack.c.bf16 %v6901_v11, %v6900_v63 }
 0x616   : > { %v15044_v45 = vpop.f32.mrf.mxu1  ;;  %15139 = vmatmul.mubr.bf16.gmra.mxu1 %v6264_v9 }
 0x617   : > { %v7014_v33 = vpack.c.bf16 %v6899_v31, %v6898_v13  ;;  %v6904_v53 = vmax.f32 %v15044_v45, 0.0 }
 0x618   : > { %v6475_v61 = vpop.f32.mrf.mxu1 }
 0x619   : > { %15182 = vmatprep.mubr.bf16.mxu0 %v7014_v33  ;;  %v6902_v55 = vmax.f32 %v6475_v61, 0.0 }
 0x61a   : > { %v15045_v26 = vpop.f32.mrf.mxu1  ;;  %15183 = vmatmul.mubr.bf16.gmra.mxu0 %v7015_v18 }
 0x61b   : > { %v6905_v24 = vmax.f32 %v15045_v26, 0.0 }
 0x61c   : > { %v6478_v37 = vpop.f32.mrf.mxu1 }
 0x61d   : > { %v6903_v12 = vmax.f32 %v6478_v37, 0.0  ;;  %v7017_v52 = vpack.c.bf16 %v6905_v24, %v6904_v53 }
 0x61e   : > { %v15048_v46 = vpop.f32.mrf.mxu1 }
 0x61f   : > { %v7016_v47 = vpack.c.bf16 %v6903_v12, %v6902_v55  ;;  %v6908_v30 = vmax.f32 %v15048_v46, 0.0 }
 0x620   : > { %v6491_v7 = vpop.f32.mrf.mxu1 }
 0x621   : > { %15186 = vmatprep.mubr.bf16.mxu0 %v7016_v47  ;;  %v6906_v22 = vmax.f32 %v6491_v7, 0.0 }
 0x622   : > { %v15049_v38 = vpop.f32.mrf.mxu1  ;;  %15187 = vmatmul.mubr.bf16.gmra.mxu0 %v7017_v52 }
 0x623   : > { %v6909_v8 = vmax.f32 %v15049_v38, 0.0 }
 0x624   : > { %v6494_v49 = vpop.f32.mrf.mxu1 }
 0x625   : > { %v6907_v59 = vmax.f32 %v6494_v49, 0.0  ;;  %v7019_v0 = vpack.c.bf16 %v6909_v8, %v6908_v30 }
 0x626   : > { %v15052_v43 = vpop.f32.mrf.mxu1 }
 0x627   : > { %v7018_v35 = vpack.c.bf16 %v6907_v59, %v6906_v22  ;;  %v6912_v17 = vmax.f32 %v15052_v43, 0.0 }
 0x628   : > { %v6507_v54 = vpop.f32.mrf.mxu1 }
 0x629   : > { %15190 = vmatprep.mubr.bf16.mxu0 %v7018_v35  ;;  %v6910_v3 = vmax.f32 %v6507_v54, 0.0 }
 0x62a   : > { %v15053_v56 = vpop.f32.mrf.mxu1  ;;  %15191 = vmatmul.mubr.bf16.gmra.mxu0 %v7019_v0 }
 0x62b   : > { %v6913_v14 = vmax.f32 %v15053_v56, 0.0 }
 0x62c   : > { %v6510_v15 = vpop.f32.mrf.mxu1 }
 0x62d   : > { %v6911_v10 = vmax.f32 %v6510_v15, 0.0  ;;  %v7021_v28 = vpack.c.bf16 %v6913_v14, %v6912_v17 }
 0x62e   : > { %v15056_v16 = vpop.f32.mrf.mxu1 }
 0x62f   : > { %v7020_v19 = vpack.c.bf16 %v6911_v10, %v6910_v3  ;;  %v6916_v39 = vmax.f32 %v15056_v16, 0.0 }
 0x630   : > { %v6523_v58 = vpop.f32.mrf.mxu1 }
 0x631   : > { %15194 = vmatprep.mubr.bf16.mxu0 %v7020_v19  ;;  %v6914_v29 = vmax.f32 %v6523_v58, 0.0 }
 0x632   : > { %v15057_v27 = vpop.f32.mrf.mxu1  ;;  %15195 = vmatmul.mubr.bf16.gmra.mxu0 %v7021_v28 }
 0x633   : > { %v6917_v36 = vmax.f32 %v15057_v27, 0.0 }
 0x634   : > { %v6526_v50 = vpop.f32.mrf.mxu1 }
 0x635   : > { %v6915_v32 = vmax.f32 %v6526_v50, 0.0  ;;  %v7023_v5 = vpack.c.bf16 %v6917_v36, %v6916_v39 }
 0x636   : > { %v15060_v2 = vpop.f32.mrf.mxu1 }
 0x637   : > { %v7022_v44 = vpack.c.bf16 %v6915_v32, %v6914_v29  ;;  %v6920_v4 = vmax.f32 %v15060_v2, 0.0 }
 0x638   : > { %v6539_v23 = vpop.f32.mrf.mxu1 }
 0x639   : > { %15198 = vmatprep.mubr.bf16.mxu0 %v7022_v44  ;;  %v6918_v62 = vmax.f32 %v6539_v23, 0.0 }
 0x63a   : > { %v15061_v51 = vpop.f32.mrf.mxu1  ;;  %15199 = vmatmul.mubr.bf16.gmra.mxu0 %v7023_v5 }
 0x63b   : > { %v6921_v60 = vmax.f32 %v15061_v51, 0.0 }
 0x63c   : > { %v6542_v41 = vpop.f32.mrf.mxu1 }
 0x63d   : > { %v6919_v6 = vmax.f32 %v6542_v41, 0.0  ;;  %v7025_v1 = vpack.c.bf16 %v6921_v60, %v6920_v4 }
 0x63e   : > { %v15064_v57 = vpop.f32.mrf.mxu1 }
 0x63f   : > { %v7024_v48 = vpack.c.bf16 %v6919_v6, %v6918_v62  ;;  %v6924_v13 = vmax.f32 %v15064_v57, 0.0 }
 0x640   : > { %v6555_v42 = vpop.f32.mrf.mxu1 }
 0x641   : > { %15202 = vmatprep.mubr.bf16.mxu0 %v7024_v48  ;;  %v6922_v11 = vmax.f32 %v6555_v42, 0.0 }
 0x642   : > { %v15065_v40 = vpop.f32.mrf.mxu1  ;;  %15203 = vmatmul.mubr.bf16.gmra.mxu0 %v7025_v1 }
 0x643   : > { %v6925_v21 = vmax.f32 %v15065_v40, 0.0 }
 0x644   : > { %v6558_v9 = vpop.f32.mrf.mxu1 }
 0x645   : > { %v6923_v34 = vmax.f32 %v6558_v9, 0.0  ;;  %v7027_v45 = vpack.c.bf16 %v6925_v21, %v6924_v13 }
 0x646   : > { %v15068_v31 = vpop.f32.mrf.mxu1 }
 0x647   : > { %v7026_v63 = vpack.c.bf16 %v6923_v34, %v6922_v11  ;;  %v6928_v37 = vmax.f32 %v15068_v31, 0.0 }
 0x648   : > { %v6571_v33 = vpop.f32.mrf.mxu1 }
 0x649   : > { %15206 = vmatprep.mubr.bf16.mxu0 %v7026_v63  ;;  %v6926_v26 = vmax.f32 %v6571_v33, 0.0 }
 0x64a   : > { %v15069_v25 = vpop.f32.mrf.mxu1  ;;  %15207 = vmatmul.mubr.bf16.gmra.mxu0 %v7027_v45 }
 0x64b   : > { %v6929_v18 = vmax.f32 %v15069_v25, 0.0 }
 0x64c   : > { %v6574_v61 = vpop.f32.mrf.mxu1 }
 0x64d   : > { %v6927_v24 = vmax.f32 %v6574_v61, 0.0  ;;  %v7029_v53 = vpack.c.bf16 %v6929_v18, %v6928_v37 }
 0x64e   : > { %v15072_v55 = vpop.f32.mrf.mxu1 }
 0x64f   : > { %v7028_v12 = vpack.c.bf16 %v6927_v24, %v6926_v26  ;;  %v6932_v49 = vmax.f32 %v15072_v55, 0.0 }
 0x650   : > { %v6587_v46 = vpop.f32.mrf.mxu1 }
 0x651   : > { %15210 = vmatprep.mubr.bf16.mxu0 %v7028_v12  ;;  %v6930_v38 = vmax.f32 %v6587_v46, 0.0 }
 0x652   : > { %v15073_v47 = vpop.f32.mrf.mxu1  ;;  %15211 = vmatmul.mubr.bf16.gmra.mxu0 %v7029_v53  ;;  %v15936_v53 = vld [vmem:[%s19837_s13] sm:$0xff]  }
 0x653   : > { %v6933_v52 = vmax.f32 %v15073_v47, 0.0  ;;  %15432 = vmatprep.subr.bf16.mxu0 %v15936_v53 }
 0x654   : > { %v6590_v7 = vpop.f32.mrf.mxu1  ;;  %15433 = vmatpush3.bf16.msra.mxu0 %v15936_v53 }
 0x655   : > { %v6931_v8 = vmax.f32 %v6590_v7, 0.0  ;;  %v7031_v30 = vpack.c.bf16 %v6933_v52, %v6932_v49 }
 0x656   : > { %v15076_v22 = vpop.f32.mrf.mxu1 }
 0x657   : > { %v7030_v59 = vpack.c.bf16 %v6931_v8, %v6930_v38  ;;  %v6936_v15 = vmax.f32 %v15076_v22, 0.0 }
 0x658   : > { %v6603_v43 = vpop.f32.mrf.mxu1 }
 0x659   : > { %15214 = vmatprep.mubr.bf16.mxu0 %v7030_v59  ;;  %v6934_v56 = vmax.f32 %v6603_v43, 0.0 }
 0x65a   : > { %v15077_v35 = vpop.f32.mrf.mxu1  ;;  %15215 = vmatmul.mubr.bf16.gmra.mxu0 %v7031_v30 }
 0x65b   : > { %v6937_v0 = vmax.f32 %v15077_v35, 0.0 }
 0x65c   : > { %v6606_v54 = vpop.f32.mrf.mxu1 }
 0x65d   : > { %v6935_v14 = vmax.f32 %v6606_v54, 0.0  ;;  %v7033_v17 = vpack.c.bf16 %v6937_v0, %v6936_v15 }
 0x65e   : > { %v15080_v3 = vpop.f32.mrf.mxu1 }
 0x65f   : > { %v7032_v10 = vpack.c.bf16 %v6935_v14, %v6934_v56  ;;  %v6940_v50 = vmax.f32 %v15080_v3, 0.0 }
 0x660   : > { %v6619_v16 = vpop.f32.mrf.mxu1 }
 0x661   : > { %15218 = vmatprep.mubr.bf16.mxu0 %v7032_v10  ;;  %v6938_v27 = vmax.f32 %v6619_v16, 0.0 }
 0x662   : > { %v15081_v19 = vpop.f32.mrf.mxu1  ;;  %15219 = vmatmul.mubr.bf16.gmra.mxu0 %v7033_v17 }
 0x663   : > { %v6941_v28 = vmax.f32 %v15081_v19, 0.0 }
 0x664   : > { %v6622_v58 = vpop.f32.mrf.mxu1 }
 0x665   : > { %v6939_v36 = vmax.f32 %v6622_v58, 0.0  ;;  %v7035_v39 = vpack.c.bf16 %v6941_v28, %v6940_v50 }
 0x666   : > { %v15084_v29 = vpop.f32.mrf.mxu1 }
 0x667   : > { %v7034_v32 = vpack.c.bf16 %v6939_v36, %v6938_v27  ;;  %v6944_v41 = vmax.f32 %v15084_v29, 0.0 }
 0x668   : > { %v6635_v2 = vpop.f32.mrf.mxu1 }
 0x669   : > { %15222 = vmatprep.mubr.bf16.mxu0 %v7034_v32  ;;  %v6942_v51 = vmax.f32 %v6635_v2, 0.0 }
 0x66a   : > { %v15085_v44 = vpop.f32.mrf.mxu1  ;;  %15223 = vmatmul.mubr.bf16.gmra.mxu0 %v7035_v39 }
 0x66b   : > { %v6945_v5 = vmax.f32 %v15085_v44, 0.0 }
 0x66c   : > { %v6638_v23 = vpop.f32.mrf.mxu1 }
 0x66d   : > { %v6943_v60 = vmax.f32 %v6638_v23, 0.0  ;;  %v7037_v4 = vpack.c.bf16 %v6945_v5, %v6944_v41 }
 0x66e   : > { %v15088_v62 = vpop.f32.mrf.mxu1 }
 0x66f   : > { %v7036_v6 = vpack.c.bf16 %v6943_v60, %v6942_v51  ;;  %v6948_v9 = vmax.f32 %v15088_v62, 0.0 }
 0x670   : > { %v6651_v57 = vpop.f32.mrf.mxu1 }
 0x671   : > { %15226 = vmatprep.mubr.bf16.mxu0 %v7036_v6  ;;  %v6946_v40 = vmax.f32 %v6651_v57, 0.0 }
 0x672   : > { %v15089_v48 = vpop.f32.mrf.mxu1  ;;  %15227 = vmatmul.mubr.bf16.gmra.mxu0 %v7037_v4 }
 0x673   : > { %v6949_v1 = vmax.f32 %v15089_v48, 0.0 }
 0x674   : > { %v6654_v42 = vpop.f32.mrf.mxu1 }
 0x675   : > { %v6947_v21 = vmax.f32 %v6654_v42, 0.0  ;;  %v7039_v13 = vpack.c.bf16 %v6949_v1, %v6948_v9 }
 0x676   : > { %v15092_v11 = vpop.f32.mrf.mxu1 }
 0x677   : > { %v7038_v34 = vpack.c.bf16 %v6947_v21, %v6946_v40  ;;  %v6952_v61 = vmax.f32 %v15092_v11, 0.0 }
 0x678   : > { %v6667_v31 = vpop.f32.mrf.mxu1 }
 0x679   : > { %15230 = vmatprep.mubr.bf16.mxu0 %v7038_v34  ;;  %v6950_v25 = vmax.f32 %v6667_v31, 0.0 }
 0x67a   : > { %v15093_v63 = vpop.f32.mrf.mxu1  ;;  %15231 = vmatmul.mubr.bf16.gmra.mxu0 %v7039_v13 }
 0x67b   : > { %v6953_v45 = vmax.f32 %v15093_v63, 0.0 }
 0x67c   : > { %v6670_v33 = vpop.f32.mrf.mxu1 }
 0x67d   : > { %v6951_v18 = vmax.f32 %v6670_v33, 0.0  ;;  %v7041_v37 = vpack.c.bf16 %v6953_v45, %v6952_v61 }
 0x67e   : > { %v15096_v26 = vpop.f32.mrf.mxu1 }
 0x67f   : > { %v7040_v24 = vpack.c.bf16 %v6951_v18, %v6950_v25  ;;  %v6956_v38 = vmax.f32 %v15096_v26, 0.0 }
 0x680   : > { %v6683_v55 = vpop.f32.mrf.mxu1 }
 0x681   : > { %15234 = vmatprep.mubr.bf16.mxu0 %v7040_v24  ;;  %v6954_v52 = vmax.f32 %v6683_v55, 0.0 }
 0x682   : > { %v15097_v12 = vpop.f32.mrf.mxu1  ;;  %15235 = vmatmul.mubr.bf16.gmra.mxu0 %v7041_v37 }
 0x683   : > { %v6957_v46 = vmax.f32 %v15097_v12, 0.0 }
 0x684   : > { %v6686_v47 = vpop.f32.mrf.mxu1 }
 0x685   : > { %v6955_v7 = vmax.f32 %v6686_v47, 0.0  ;;  %v7043_v22 = vpack.c.bf16 %v6957_v46, %v6956_v38 }
 0x686   : > { %v15100_v8 = vpop.f32.mrf.mxu1 }
 0x687   : > { %v7042_v49 = vpack.c.bf16 %v6955_v7, %v6954_v52  ;;  %v6960_v56 = vmax.f32 %v15100_v8, 0.0 }
 0x688   : > { %v6699_v59 = vpop.f32.mrf.mxu1 }
 0x689   : > { %15238 = vmatprep.mubr.bf16.mxu0 %v7042_v49  ;;  %v6958_v0 = vmax.f32 %v6699_v59, 0.0 }
 0x68a   : > { %v15101_v30 = vpop.f32.mrf.mxu1  ;;  %15239 = vmatmul.mubr.bf16.gmra.mxu0 %v7043_v22 }
 0x68b   : > { %v6961_v43 = vmax.f32 %v15101_v30, 0.0 }
 0x68c   : > { %v6702_v35 = vpop.f32.mrf.mxu1 }
 0x68d   : > { %v6959_v54 = vmax.f32 %v6702_v35, 0.0  ;;  %v7045_v3 = vpack.c.bf16 %v6961_v43, %v6960_v56  ;;  %v15934_v35 = vld [vmem:[%s19836_s12 + $0x30] sm:$0xff]  }
 0x68e   : > { %v15104_v14 = vpop.f32.mrf.mxu1 }
 0x68f   : > { %v7044_v15 = vpack.c.bf16 %v6959_v54, %v6958_v0  ;;  %v6964_v27 = vmax.f32 %v15104_v14, 0.0 }
 0x690   : > { %v6715_v10 = vpop.f32.mrf.mxu1 }
 0x691   : > { %15242 = vmatprep.mubr.bf16.mxu0 %v7044_v15  ;;  %v6962_v28 = vmax.f32 %v6715_v10, 0.0 }
 0x692   : > { %v15105_v17 = vpop.f32.mrf.mxu1  ;;  %15243 = vmatmul.mubr.bf16.gmra.mxu0 %v7045_v3 }
 0x693   : > { %v6965_v16 = vmax.f32 %v15105_v17, 0.0 }
 0x694   : > { %v6718_v19 = vpop.f32.mrf.mxu1 }
 0x695   : > { %v6963_v58 = vmax.f32 %v6718_v19, 0.0  ;;  %v7047_v29 = vpack.c.bf16 %v6965_v16, %v6964_v27 }
 0x696   : > { %v15108_v36 = vpop.f32.mrf.mxu1 }
 0x697   : > { %v7046_v50 = vpack.c.bf16 %v6963_v58, %v6962_v28  ;;  %v6968_v51 = vmax.f32 %v15108_v36, 0.0  ;;  %v15935_v28 = vld [vmem:[%s19836_s12 + $0x28] sm:$0xff]  }
 0x698   : > { %v6731_v32 = vpop.f32.mrf.mxu1 }
 0x699   : > { %15246 = vmatprep.mubr.bf16.mxu0 %v7046_v50  ;;  %v6966_v5 = vmax.f32 %v6731_v32, 0.0 }
 0x69a   : > { %v15109_v39 = vpop.f32.mrf.mxu1  ;;  %15247 = vmatmul.mubr.bf16.gmra.mxu0 %v7047_v29 }
 0x69b   : > { %v6969_v2 = vmax.f32 %v15109_v39, 0.0 }
 0x69c   : > { %v6734_v44 = vpop.f32.mrf.mxu1 }
 0x69d   : > { %v6967_v23 = vmax.f32 %v6734_v44, 0.0  ;;  %v7049_v62 = vpack.c.bf16 %v6969_v2, %v6968_v51 }
 0x69e   : > { %v15112_v60 = vpop.f32.mrf.mxu1 }
 0x69f   : > { %v7048_v41 = vpack.c.bf16 %v6967_v23, %v6966_v5  ;;  %v6972_v40 = vmax.f32 %v15112_v60, 0.0  ;;  %v15937_v5 = vld [vmem:[%s19836_s12 + $0x20] sm:$0xff]  }
 0x6a0   : > { %v6747_v6 = vpop.f32.mrf.mxu1 }
 0x6a1   : > { %15250 = vmatprep.mubr.bf16.mxu0 %v7048_v41  ;;  %v6970_v1 = vmax.f32 %v6747_v6, 0.0 }
 0x6a2   : > { %v15113_v4 = vpop.f32.mrf.mxu1  ;;  %15251 = vmatmul.mubr.bf16.gmra.mxu0 %v7049_v62 }
 0x6a3   : > { %v6973_v57 = vmax.f32 %v15113_v4, 0.0 }
 0x6a4   : > { %v6750_v48 = vpop.f32.mrf.mxu1 }
 0x6a5   : > { %v6971_v42 = vmax.f32 %v6750_v48, 0.0  ;;  %v7051_v11 = vpack.c.bf16 %v6973_v57, %v6972_v40 }
 0x6a6   : > { %v15116_v21 = vpop.f32.mrf.mxu1 }
 0x6a7   : > { %v7050_v9 = vpack.c.bf16 %v6971_v42, %v6970_v1  ;;  %v6976_v61 = vmax.f32 %v15116_v21, 0.0  ;;  %v15938_v42 = vld [vmem:[%s19836_s12 + $0x18] sm:$0xff]  }
 0x6a8   : > { %v6763_v34 = vpop.f32.mrf.mxu1 }
 0x6a9   : > { %15254 = vmatprep.mubr.bf16.mxu0 %v7050_v9  ;;  %v6974_v25 = vmax.f32 %v6763_v34, 0.0 }
 0x6aa   : > { %v15117_v13 = vpop.f32.mrf.mxu1  ;;  %v15160_v31 = vpop.f32.mrf.mxu0  ;;  %15255 = vmatmul.mubr.bf16.gmra.mxu0 %v7051_v11 }
 0x6ab   : > { %v6977_v63 = vmax.f32 %v15117_v13, 0.0  ;;  %v7677_v7 = vmax.f32 %v15160_v31, 0.0 }
 0x6ac   : > { %v6766_v45 = vpop.f32.mrf.mxu1  ;;  %v7164_v33 = vpop.f32.mrf.mxu0 }
 0x6ad   : > { %v6975_v18 = vmax.f32 %v6766_v45, 0.0  ;;  %v7053_v55 = vpack.c.bf16 %v6977_v63, %v6976_v61  ;;  %v7675_v47 = vmax.f32 %v7164_v33, 0.0 }
 0x6ae   : > { %v15120_v26 = vpop.f32.mrf.mxu1  ;;  %v15161_v24 = vpop.f32.mrf.mxu0 }
 0x6af   : > { %v7052_v37 = vpack.c.bf16 %v6975_v18, %v6974_v25  ;;  %v7678_v12 = vmax.f32 %v15161_v24, 0.0  ;;  %v6980_v56 = vmax.f32 %v15120_v26, 0.0 }
 0x6b0   : > { %v6779_v53 = vpop.f32.mrf.mxu1  ;;  %v7167_v46 = vpop.f32.mrf.mxu0 }
 0x6b1   : > { %v7676_v52 = vmax.f32 %v7167_v46, 0.0  ;;  %15258 = vmatprep.mubr.bf16.mxu0 %v7052_v37  ;;  %v17896_v22 = vpack.c.bf16 %v7678_v12, %v7677_v7  ;;  %v6978_v0 = vmax.f32 %v6779_v53, 0.0 }
 0x6b2   : > { %v15121_v38 = vpop.f32.mrf.mxu1  ;;  %v15164_v8 = vpop.f32.mrf.mxu0  ;;  %15259 = vmatmul.mubr.bf16.gmra.mxu0 %v7053_v55 }
 0x6b3   : > { %v17894_v49 = vpack.c.bf16 %v7676_v52, %v7675_v47  ;;  %v6981_v59 = vmax.f32 %v15121_v38, 0.0  ;;  %v7681_v36 = vmax.f32 %v15164_v8, 0.0 }
 0x6b4   : > { %v6782_v30 = vpop.f32.mrf.mxu1  ;;  %v7180_v43 = vpop.f32.mrf.mxu0 }
 0x6b5   : > { %v6979_v54 = vmax.f32 %v6782_v30, 0.0  ;;  %15302 = vmatprep.mubr.bf16.mxu1 %v17894_v49  ;;  %v7055_v10 = vpack.c.bf16 %v6981_v59, %v6980_v56  ;;  %v7679_v58 = vmax.f32 %v7180_v43, 0.0 }
 0x6b6   : > { %v15124_v14 = vpop.f32.mrf.mxu1  ;;  %v15165_v15 = vpop.f32.mrf.mxu0  ;;  %15303 = vmatmul.mubr.bf16.vlgmr.msra.gmra.mxu1 %v17896_v22 }
 0x6b7   : > { %v7054_v3 = vpack.c.bf16 %v6979_v54, %v6978_v0  ;;  %15563 = vmatpush3.bf16.msra.mxu1 %v17888_v20  ;;  %v7682_v17 = vmax.f32 %v15165_v15, 0.0  ;;  %v6984_v60 = vmax.f32 %v15124_v14, 0.0 }
 0x6b8   : > { %v6795_v16 = vpop.f32.mrf.mxu1  ;;  %v7183_v19 = vpop.f32.mrf.mxu0  ;;  %15564 = vmatprep.subr.bf16.mxu1 %v15934_v35 }
 0x6b9   : > { %v7680_v27 = vmax.f32 %v7183_v19, 0.0  ;;  %15262 = vmatprep.mubr.bf16.mxu0 %v7054_v3  ;;  %v17909_v20 = vpack.c.bf16 %v7682_v17, %v7681_v36  ;;  %v6982_v23 = vmax.f32 %v6795_v16, 0.0 }
 0x6ba   : > { %v15125_v50 = vpop.f32.mrf.mxu1  ;;  %v15168_v29 = vpop.f32.mrf.mxu0  ;;  %15263 = vmatmul.mubr.bf16.gmra.mxu0 %v7055_v10 }
 0x6bb   : > { %v17907_v32 = vpack.c.bf16 %v7680_v27, %v7679_v58  ;;  %15565 = vmatpush3.bf16.msra.mxu1 %v15934_v35  ;;  %v6985_v39 = vmax.f32 %v15125_v50, 0.0  ;;  %v7685_v9 = vmax.f32 %v15168_v29, 0.0 }
 0x6bc   : > { %v6798_v2 = vpop.f32.mrf.mxu1  ;;  %v7196_v44 = vpop.f32.mrf.mxu0  ;;  %15566 = vmatprep.subr.bf16.mxu1 %v15935_v28 }
 0x6bd   : > { %v6983_v51 = vmax.f32 %v6798_v2, 0.0  ;;  %15306 = vmatprep.mubr.bf16.mxu1 %v17907_v32  ;;  %v7057_v4 = vpack.c.bf16 %v6985_v39, %v6984_v60  ;;  %v7683_v40 = vmax.f32 %v7196_v44, 0.0 }
 0x6be   : > { %v15128_v41 = vpop.f32.mrf.mxu1  ;;  %v15169_v62 = vpop.f32.mrf.mxu0  ;;  %15307 = vmatmul.mubr.bf16.gmra.mxu1 %v17909_v20 }
 0x6bf   : > { %v7056_v6 = vpack.c.bf16 %v6983_v51, %v6982_v23  ;;  %15567 = vmatpush3.bf16.msra.mxu1 %v15935_v28  ;;  %v7686_v57 = vmax.f32 %v15169_v62, 0.0  ;;  %v6988_v61 = vmax.f32 %v15128_v41, 0.0  ;;  %v15939_v41 = vld [vmem:[%s19836_s12 + $0x10] sm:$0xff]  }
 0x6c0   : > { %v6811_v48 = vpop.f32.mrf.mxu1  ;;  %v7199_v1 = vpop.f32.mrf.mxu0  ;;  %15568 = vmatprep.subr.bf16.mxu1 %v15937_v5 }
 0x6c1   : > { %v7684_v21 = vmax.f32 %v7199_v1, 0.0  ;;  %15266 = vmatprep.mubr.bf16.mxu0 %v7056_v6  ;;  %v17921_v31 = vpack.c.bf16 %v7686_v57, %v7685_v9  ;;  %v6986_v25 = vmax.f32 %v6811_v48, 0.0 }
 0x6c2   : > { %v15129_v11 = vpop.f32.mrf.mxu1  ;;  %v15172_v34 = vpop.f32.mrf.mxu0  ;;  %15267 = vmatmul.mubr.bf16.gmra.mxu0 %v7057_v4 }
 0x6c3   : > { %v17919_v13 = vpack.c.bf16 %v7684_v21, %v7683_v40  ;;  %15569 = vmatpush3.bf16.msra.mxu1 %v15937_v5  ;;  %v6989_v63 = vmax.f32 %v15129_v11, 0.0  ;;  %v7689_v7 = vmax.f32 %v15172_v34, 0.0 }
 0x6c4   : > { %v6814_v45 = vpop.f32.mrf.mxu1  ;;  %v7212_v33 = vpop.f32.mrf.mxu0  ;;  %15570 = vmatprep.subr.bf16.mxu1 %v15938_v42 }
 0x6c5   : > { %v6987_v18 = vmax.f32 %v6814_v45, 0.0  ;;  %15310 = vmatprep.mubr.bf16.mxu1 %v17919_v13  ;;  %v7059_v55 = vpack.c.bf16 %v6989_v63, %v6988_v61  ;;  %v7687_v47 = vmax.f32 %v7212_v33, 0.0 }
 0x6c6   : > { %v15132_v26 = vpop.f32.mrf.mxu1  ;;  %v15173_v24 = vpop.f32.mrf.mxu0  ;;  %15311 = vmatmul.mubr.bf16.gmra.mxu1 %v17921_v31 }
 0x6c7   : > { %v7058_v37 = vpack.c.bf16 %v6987_v18, %v6986_v25  ;;  %15571 = vmatpush3.bf16.msra.mxu1 %v15938_v42  ;;  %v7690_v12 = vmax.f32 %v15173_v24, 0.0  ;;  %v6992_v14 = vmax.f32 %v15132_v26, 0.0 }
 0x6c8   : > { %v6827_v53 = vpop.f32.mrf.mxu1  ;;  %v7215_v46 = vpop.f32.mrf.mxu0  ;;  %15572 = vmatprep.subr.bf16.mxu1 %v15939_v41 }
 0x6c9   : > { %v7688_v52 = vmax.f32 %v7215_v46, 0.0  ;;  %15270 = vmatprep.mubr.bf16.mxu0 %v7058_v37  ;;  %v17927_v30 = vpack.c.bf16 %v7690_v12, %v7689_v7  ;;  %v6990_v54 = vmax.f32 %v6827_v53, 0.0 }
 0x6ca   : > { %v15133_v38 = vpop.f32.mrf.mxu1  ;;  %v15176_v8 = vpop.f32.mrf.mxu0  ;;  %15271 = vmatmul.mubr.bf16.gmra.mxu0 %v7059_v55 }
 0x6cb   : > { %v17925_v59 = vpack.c.bf16 %v7688_v52, %v7687_v47  ;;  %v6993_v43 = vmax.f32 %v15133_v38, 0.0  ;;  %v7693_v36 = vmax.f32 %v15176_v8, 0.0  ;;  %15573 = vmatpush3.bf16.msra.mxu1 %v15939_v41  ;;  %v15940_v41 = vld [vmem:[%s19836_s12 + $0x8] sm:$0xff]  }
 0x6cc   : > { %v6830_v35 = vpop.f32.mrf.mxu1  ;;  %v7228_v0 = vpop.f32.mrf.mxu0  ;;  %15574 = vmatprep.subr.bf16.mxu1 %v15940_v41 }
 0x6cd   : > { %v6991_v56 = vmax.f32 %v6830_v35, 0.0  ;;  %15314 = vmatprep.mubr.bf16.mxu1 %v17925_v59  ;;  %v7061_v17 = vpack.c.bf16 %v6993_v43, %v6992_v14  ;;  %v7691_v58 = vmax.f32 %v7228_v0, 0.0 }
 0x6ce   : > { %v15136_v15 = vpop.f32.mrf.mxu1  ;;  %v15177_v3 = vpop.f32.mrf.mxu0  ;;  %15315 = vmatmul.mubr.bf16.gmra.mxu1 %v17927_v30 }
 0x6cf   : > { %v7060_v10 = vpack.c.bf16 %v6991_v56, %v6990_v54  ;;  %v7694_v16 = vmax.f32 %v15177_v3, 0.0  ;;  %v6996_v62 = vmax.f32 %v15136_v15, 0.0  ;;  %15575 = vmatpush3.bf16.msra.mxu1 %v15940_v41  ;;  %v8487_v41 = vld [vmem:[%s17971_s20 + $0x58] sm:$0xff] }
 0x6d0   : > { %v6843_v19 = vpop.f32.mrf.mxu1  ;;  %v7231_v28 = vpop.f32.mrf.mxu0 }
 0x6d1   : > { %v7692_v27 = vmax.f32 %v7231_v28, 0.0  ;;  %15274 = vmatprep.mubr.bf16.mxu0 %v7060_v10  ;;  %v17933_v2 = vpack.c.bf16 %v7694_v16, %v7693_v36  ;;  %v6994_v51 = vmax.f32 %v6843_v19, 0.0 }
 0x6d2   : > { %v15137_v50 = vpop.f32.mrf.mxu1  ;;  %v15180_v29 = vpop.f32.mrf.mxu0  ;;  %15275 = vmatmul.mubr.bf16.gmra.mxu0 %v7061_v17 }
 0x6d3   : > { %v17931_v39 = vpack.c.bf16 %v7692_v27, %v7691_v58  ;;  %v6997_v44 = vmax.f32 %v15137_v50, 0.0  ;;  %v7697_v11 = vmax.f32 %v15180_v29, 0.0 }
 0x6d4   : > { %v6846_v5 = vpop.f32.mrf.mxu1  ;;  %v7244_v23 = vpop.f32.mrf.mxu0 }
 0x6d5   : > { %v6995_v60 = vmax.f32 %v6846_v5, 0.0  ;;  %15318 = vmatprep.mubr.bf16.mxu1 %v17931_v39  ;;  %v7063_v48 = vpack.c.bf16 %v6997_v44, %v6996_v62  ;;  %v7695_v21 = vmax.f32 %v7244_v23, 0.0 }
 0x6d6   : > { %v15140_v6 = vpop.f32.mrf.mxu1  ;;  %v15181_v4 = vpop.f32.mrf.mxu0  ;;  %15319 = vmatmul.mubr.bf16.gmra.mxu1 %v17933_v2 }
 0x6d7   : > { %v7062_v57 = vpack.c.bf16 %v6995_v60, %v6994_v51  ;;  %v7698_v1 = vmax.f32 %v15181_v4, 0.0  ;;  %v7000_v37 = vmax.f32 %v15140_v6, 0.0 }
 0x6d8   : > { %v6859_v42 = vpop.f32.mrf.mxu1  ;;  %v7247_v40 = vpop.f32.mrf.mxu0 }
 0x6d9   : > { %v7696_v9 = vmax.f32 %v7247_v40, 0.0  ;;  %15278 = vmatprep.mubr.bf16.mxu0 %v7062_v57  ;;  %v17942_v33 = vpack.c.bf16 %v7698_v1, %v7697_v11  ;;  %v6998_v26 = vmax.f32 %v6859_v42, 0.0  ;;  %v8476_v40 = vld [vmem:[%s17971_s20] sm:$0xff] }
 0x6da   : > { %v15141_v34 = vpop.f32.mrf.mxu1  ;;  %v15184_v63 = vpop.f32.mrf.mxu0  ;;  %15279 = vmatmul.mubr.bf16.gmra.mxu0 %v7063_v48 }
 0x6db   : > { %v17940_v45 = vpack.c.bf16 %v7696_v9, %v7695_v21  ;;  %v7001_v25 = vmax.f32 %v15141_v34, 0.0  ;;  %v7701_v38 = vmax.f32 %v15184_v63, 0.0  ;;  %v8477_v21 = vld [vmem:[%s17971_s20 + $0x8] sm:$0xff]  ;;  %v8478_v34 = vld [vmem:[%s17971_s20 + $0x10] sm:$0xff]  ;;  %v8479_v63 = vld [vmem:[%s17971_s20 + $0x18] sm:$0xff] }
 0x6dc   : > { %v6862_v18 = vpop.f32.mrf.mxu1  ;;  %v7260_v61 = vpop.f32.mrf.mxu0  ;;  %v8604_v11 = vpack.c.bf16 %v8477_v21, %v8476_v40 }
 0x6dd   : > { %v6999_v24 = vmax.f32 %v6862_v18, 0.0  ;;  %15322 = vmatprep.mubr.bf16.mxu1 %v17940_v45  ;;  %v7065_v53 = vpack.c.bf16 %v7001_v25, %v7000_v37  ;;  %v7699_v52 = vmax.f32 %v7260_v61, 0.0  ;;  %v8605_v61 = vpack.c.bf16 %v8479_v63, %v8478_v34  ;;  %v8488_v34 = vld [vmem:[%s17971_s20 + $0x60] sm:$0xff]  ;;  %v8489_v63 = vld [vmem:[%s17971_s20 + $0x68] sm:$0xff] }
 0x6de   : > { %v15185_v55 = vpop.f32.mrf.mxu0  ;;  %15323 = vmatmul.mubr.bf16.gmra.mxu1 %v17942_v33 }
 0x6df   : > { %v7064_v12 = vpack.c.bf16 %v6999_v24, %v6998_v26  ;;  %v7702_v46 = vmax.f32 %v15185_v55, 0.0 }
 0x6e0   : > { %v7263_v47 = vpop.f32.mrf.mxu0 }
 0x6e1   : > { %v7700_v7 = vmax.f32 %v7263_v47, 0.0  ;;  %15282 = vmatprep.mubr.bf16.mxu0 %v7064_v12  ;;  %v17948_v35 = vpack.c.bf16 %v7702_v46, %v7701_v38  ;;  %v8480_v47 = vld [vmem:[%s17971_s20 + $0x20] sm:$0xff]  ;;  %v15941_v38 = vld [vmem:[%s19838_s14 + $0x18] sm:$0xff]  }
 0x6e2   : > { %v15188_v8 = vpop.f32.mrf.mxu0  ;;  %15283 = vmatmul.mubr.bf16.gmra.mxu0 %v7065_v53  ;;  %15706 = vmatprep.subr.bf16.mxu0 %v15941_v38 }
 0x6e3   : > { %v17946_v43 = vpack.c.bf16 %v7700_v7, %v7699_v52  ;;  %v7705_v10 = vmax.f32 %v15188_v8, 0.0  ;;  %15434 = vmatprep.mubr.msk.bf16.mxu0 %vm8699_vm5, %v8604_v11  ;;  %v8481_v52 = vld [vmem:[%s17971_s20 + $0x28] sm:$0xff] }
 0x6e4   : > { %v7276_v0 = vpop.f32.mrf.mxu0  ;;  %v8606_v8 = vpack.c.bf16 %v8481_v52, %v8480_v47 }
 0x6e5   : > { %15326 = vmatprep.mubr.bf16.mxu1 %v17946_v43  ;;  %v7703_v15 = vmax.f32 %v7276_v0, 0.0  ;;  %v8482_v0 = vld [vmem:[%s17971_s20 + $0x30] sm:$0xff] }
 0x6e6   : > { %v15189_v54 = vpop.f32.mrf.mxu0  ;;  %15327 = vmatmul.mubr.bf16.gmra.mxu1 %v17948_v35 }
 0x6e7   : > { %v7706_v56 = vmax.f32 %v15189_v54, 0.0  ;;  %v8483_v54 = vld [vmem:[%s17971_s20 + $0x38] sm:$0xff] }
 0x6e8   : > { %v7279_v14 = vpop.f32.mrf.mxu0 }
 0x6e9   : > { %v7704_v3 = vmax.f32 %v7279_v14, 0.0  ;;  %v17954_v19 = vpack.c.bf16 %v7706_v56, %v7705_v10 }
 0x6ea   : > { %v15192_v17 = vpop.f32.mrf.mxu0  ;;  %15435 = vmatmul.mubr.msk.bf16.vlgmr.msra.gmra.mxu0 %vm8699_vm5, %v8605_v61  ;;  %v8610_v61 = vpack.c.bf16 %v8489_v63, %v8488_v34 }
 0x6eb   : > { %v17952_v16 = vpack.c.bf16 %v7704_v3, %v7703_v15  ;;  %v7709_v44 = vmax.f32 %v15192_v17, 0.0  ;;  %v8607_v15 = vpack.c.bf16 %v8483_v54, %v8482_v0  ;;  %15707 = vmatpush3.bf16.msra.mxu0 %v15941_v38  ;;  %15438 = vmatprep.mubr.msk.bf16.mxu0 %vm8699_vm5, %v8606_v8 }
 0x6ec   : > { %v7292_v28 = vpop.f32.mrf.mxu0 }
 0x6ed   : > { %15330 = vmatprep.mubr.bf16.mxu1 %v17952_v16  ;;  %v7707_v50 = vmax.f32 %v7292_v28, 0.0 }
 0x6ee   : > { %v15193_v58 = vpop.f32.mrf.mxu0  ;;  %15331 = vmatmul.mubr.bf16.gmra.mxu1 %v17954_v19 }
 0x6ef   : > { %v7710_v27 = vmax.f32 %v15193_v58, 0.0 }
 0x6f0   : > { %v7295_v36 = vpop.f32.mrf.mxu0 }
 0x6f1   : > { %v7708_v29 = vmax.f32 %v7295_v36, 0.0  ;;  %v17960_v51 = vpack.c.bf16 %v7710_v27, %v7709_v44 }
 0x6f2   : > { %v15196_v5 = vpop.f32.mrf.mxu0  ;;  %15439 = vmatmul.mubr.msk.bf16.gmra.mxu0 %vm8699_vm5, %v8607_v15  ;;  %v8493_v15 = vld [vmem:[%s17971_s20 + $0x88] sm:$0xff] }
 0x6f3   : > { %v17958_v23 = vpack.c.bf16 %v7708_v29, %v7707_v50  ;;  %v7713_v1 = vmax.f32 %v15196_v5, 0.0  ;;  %v8484_v50 = vld [vmem:[%s17971_s20 + $0x40] sm:$0xff]  ;;  %v8485_v29 = vld [vmem:[%s17971_s20 + $0x48] sm:$0xff] }
 0x6f4   : > { %v7308_v60 = vpop.f32.mrf.mxu0  ;;  %v8608_v5 = vpack.c.bf16 %v8485_v29, %v8484_v50 }
 0x6f5   : > { %15334 = vmatprep.mubr.bf16.mxu1 %v17958_v23  ;;  %v7711_v57 = vmax.f32 %v7308_v60, 0.0  ;;  %v8486_v60 = vld [vmem:[%s17971_s20 + $0x50] sm:$0xff] }
 0x6f6   : > { %v15197_v62 = vpop.f32.mrf.mxu0  ;;  %15335 = vmatmul.mubr.bf16.gmra.mxu1 %v17960_v51  ;;  %15442 = vmatprep.mubr.msk.bf16.mxu0 %vm8699_vm5, %v8608_v5 }
 0x6f7   : > { %v7714_v6 = vmax.f32 %v15197_v62, 0.0 }
 0x6f8   : > { %v7311_v4 = vpop.f32.mrf.mxu0 }
 0x6f9   : > { %v7712_v48 = vmax.f32 %v7311_v4, 0.0  ;;  %v17979_v25 = vpack.c.bf16 %v7714_v6, %v7713_v1  ;;  %v8609_v4 = vpack.c.bf16 %v8487_v41, %v8486_v60 }
 0x6fa   : > { %v15200_v42 = vpop.f32.mrf.mxu0 }
 0x6fb   : > { %v17975_v9 = vpack.c.bf16 %v7712_v48, %v7711_v57  ;;  %v7717_v53 = vmax.f32 %v15200_v42, 0.0  ;;  %15443 = vmatmul.mubr.msk.bf16.gmra.mxu0 %vm8699_vm5, %v8609_v4 }
 0x6fc   : > { %v7324_v18 = vpop.f32.mrf.mxu0  ;;  %15446 = vmatprep.mubr.msk.bf16.mxu0 %vm8699_vm5, %v8610_v61 }
 0x6fd   : > { %15338 = vmatprep.mubr.bf16.mxu1 %v17975_v9  ;;  %v7715_v55 = vmax.f32 %v7324_v18, 0.0 }
 0x6fe   : > { %v15201_v26 = vpop.f32.mrf.mxu0  ;;  %15339 = vmatmul.mubr.bf16.gmra.mxu1 %v17979_v25 }
 0x6ff   : > { %v7718_v24 = vmax.f32 %v15201_v26, 0.0  ;;  %v8490_v26 = vld [vmem:[%s17971_s20 + $0x70] sm:$0xff] }
 0x700   : > { %v7327_v37 = vpop.f32.mrf.mxu0 }
 0x701   : > { %v7716_v12 = vmax.f32 %v7327_v37, 0.0  ;;  %v17994_v56 = vpack.c.bf16 %v7718_v24, %v7717_v53  ;;  %v8491_v24 = vld [vmem:[%s17971_s20 + $0x78] sm:$0xff]  ;;  %v15942_v53 = vld [vmem:[%s19836_s12] sm:$0xff]  }
 0x702   : > { %v15204_v46 = vpop.f32.mrf.mxu0  ;;  %15576 = vmatprep.subr.bf16.mxu1 %v15942_v53 }
 0x703   : > { %v17987_v7 = vpack.c.bf16 %v7716_v12, %v7715_v55  ;;  %v7721_v27 = vmax.f32 %v15204_v46, 0.0  ;;  %v8611_v12 = vpack.c.bf16 %v8491_v24, %v8490_v26  ;;  %15577 = vmatpush3.bf16.msra.mxu1 %v15942_v53 }
 0x704   : > { %v7340_v14 = vpop.f32.mrf.mxu0 }
 0x705   : > { %15342 = vmatprep.mubr.bf16.mxu1 %v17987_v7  ;;  %v7719_v28 = vmax.f32 %v7340_v14, 0.0  ;;  %15447 = vmatmul.mubr.msk.bf16.gmra.mxu0 %vm8699_vm5, %v8611_v12  ;;  %v8492_v14 = vld [vmem:[%s17971_s20 + $0x80] sm:$0xff] }
 0x706   : > { %v15205_v3 = vpop.f32.mrf.mxu0  ;;  %15343 = vmatmul.mubr.bf16.gmra.mxu1 %v17994_v56 }
 0x707   : > { %v7722_v10 = vmax.f32 %v15205_v3, 0.0 }
 0x708   : > { %v7343_v17 = vpop.f32.mrf.mxu0 }
 0x709   : > { %v7720_v58 = vmax.f32 %v7343_v17, 0.0  ;;  %v18006_v62 = vpack.c.bf16 %v7722_v10, %v7721_v27  ;;  %v8612_v10 = vpack.c.bf16 %v8493_v15, %v8492_v14  ;;  %v8494_v17 = vld [vmem:[%s17971_s20 + $0x90] sm:$0xff] }
 0x70a   : > { %v15208_v36 = vpop.f32.mrf.mxu0 }
 0x70b   : > { %v18002_v44 = vpack.c.bf16 %v7720_v58, %v7719_v28  ;;  %v7725_v21 = vmax.f32 %v15208_v36, 0.0  ;;  %v8495_v28 = vld [vmem:[%s17971_s20 + $0x98] sm:$0xff]  ;;  %15450 = vmatprep.mubr.msk.bf16.mxu0 %vm8699_vm5, %v8612_v10 }
 0x70c   : > { %v7356_v6 = vpop.f32.mrf.mxu0  ;;  %v8613_v36 = vpack.c.bf16 %v8495_v28, %v8494_v17 }
 0x70d   : > { %15346 = vmatprep.mubr.bf16.mxu1 %v18002_v44  ;;  %v7723_v42 = vmax.f32 %v7356_v6, 0.0 }
 0x70e   : > { %v15209_v57 = vpop.f32.mrf.mxu0  ;;  %15347 = vmatmul.mubr.bf16.gmra.mxu1 %v18006_v62  ;;  %15451 = vmatmul.mubr.msk.bf16.gmra.mxu0 %vm8699_vm5, %v8613_v36 }
 0x70f   : > { %v7726_v48 = vmax.f32 %v15209_v57, 0.0  ;;  %v8496_v57 = vld [vmem:[%s17971_s20 + $0xa0] sm:$0xff] }
 0x710   : > { %v7359_v1 = vpop.f32.mrf.mxu0 }
 0x711   : > { %v7724_v40 = vmax.f32 %v7359_v1, 0.0  ;;  %v18018_v37 = vpack.c.bf16 %v7726_v48, %v7725_v21  ;;  %v8497_v48 = vld [vmem:[%s17971_s20 + $0xa8] sm:$0xff]  ;;  %v8499_v21 = vld [vmem:[%s17971_s20 + $0xb8] sm:$0xff] }
 0x712   : > { %v15212_v11 = vpop.f32.mrf.mxu0 }
 0x713   : > { %v18014_v18 = vpack.c.bf16 %v7724_v40, %v7723_v42  ;;  %v7729_v0 = vmax.f32 %v15212_v11, 0.0  ;;  %v8614_v42 = vpack.c.bf16 %v8497_v48, %v8496_v57  ;;  %v8498_v40 = vld [vmem:[%s17971_s20 + $0xb0] sm:$0xff]  ;;  %v8507_v48 = vld [vmem:[%s17971_s20 + $0xf8] sm:$0xff] }
 0x714   : > { %v7372_v55 = vpop.f32.mrf.mxu0  ;;  %v8615_v63 = vpack.c.bf16 %v8499_v21, %v8498_v40  ;;  %v8506_v57 = vld [vmem:[%s17971_s20 + $0xf0] sm:$0xff] }
 0x715   : > { %15350 = vmatprep.mubr.bf16.mxu1 %v18014_v18  ;;  %v7727_v38 = vmax.f32 %v7372_v55, 0.0  ;;  %15454 = vmatprep.mubr.msk.bf16.mxu0 %vm8699_vm5, %v8614_v42  ;;  %v8619_v21 = vpack.c.bf16 %v8507_v48, %v8506_v57  ;;  %v15943_v57 = vld [vmem:[%s19838_s14 + $0x10] sm:$0xff]  }
 0x716   : > { %v15213_v46 = vpop.f32.mrf.mxu0  ;;  %15351 = vmatmul.mubr.bf16.gmra.mxu1 %v18018_v37  ;;  %15455 = vmatmul.mubr.msk.bf16.gmra.mxu0 %vm8699_vm5, %v8615_v63 }
 0x717   : > { %v7730_v47 = vmax.f32 %v15213_v46, 0.0  ;;  %15708 = vmatprep.subr.bf16.mxu0 %v15943_v57 }
 0x718   : > { %v7375_v52 = vpop.f32.mrf.mxu0  ;;  %15709 = vmatpush3.bf16.msra.mxu0 %v15943_v57 }
 0x719   : > { %v7728_v8 = vmax.f32 %v7375_v52, 0.0  ;;  %v18033_v58 = vpack.c.bf16 %v7730_v47, %v7729_v0  ;;  %v8500_v47 = vld [vmem:[%s17971_s20 + $0xc0] sm:$0xff]  ;;  %v8501_v52 = vld [vmem:[%s17971_s20 + $0xc8] sm:$0xff]  ;;  %v8502_v0 = vld [vmem:[%s17971_s20 + $0xd0] sm:$0xff] }
 0x71a   : > { %v15216_v54 = vpop.f32.mrf.mxu0 }
 0x71b   : > { %v18029_v3 = vpack.c.bf16 %v7728_v8, %v7727_v38  ;;  %v7733_v6 = vmax.f32 %v15216_v54, 0.0  ;;  %v8616_v8 = vpack.c.bf16 %v8501_v52, %v8500_v47  ;;  %v8503_v54 = vld [vmem:[%s17971_s20 + $0xd8] sm:$0xff] }
 0x71c   : > { %v7388_v27 = vpop.f32.mrf.mxu0  ;;  %v8617_v10 = vpack.c.bf16 %v8503_v54, %v8502_v0  ;;  %v8511_v0 = vld [vmem:[%s17971_s20 + $0x118] sm:$0xff] }
 0x71d   : > { %15354 = vmatprep.mubr.bf16.mxu1 %v18029_v3  ;;  %v7731_v60 = vmax.f32 %v7388_v27, 0.0  ;;  %15458 = vmatprep.mubr.msk.bf16.mxu0 %vm8699_vm5, %v8616_v8  ;;  %v8510_v8 = vld [vmem:[%s17971_s20 + $0x110] sm:$0xff] }
 0x71e   : > { %v15217_v50 = vpop.f32.mrf.mxu0  ;;  %15355 = vmatmul.mubr.bf16.gmra.mxu1 %v18033_v58  ;;  %15459 = vmatmul.mubr.msk.bf16.gmra.mxu0 %vm8699_vm5, %v8617_v10  ;;  %v8621_v10 = vpack.c.bf16 %v8511_v0, %v8510_v8  ;;  %v8516_v8 = vld [vmem:[%s17971_s20 + $0x140] sm:$0xff]  ;;  %v8517_v0 = vld [vmem:[%s17971_s20 + $0x148] sm:$0xff] }
 0x71f   : > { %v7734_v29 = vmax.f32 %v15217_v50, 0.0 }
 0x720   : > { %v7391_v5 = vpop.f32.mrf.mxu0 }
 0x721   : > { %v7732_v41 = vmax.f32 %v7391_v5, 0.0  ;;  %v18045_v11 = vpack.c.bf16 %v7734_v29, %v7733_v6 }
 0x722   : > { %v15220_v4 = vpop.f32.mrf.mxu0 }
 0x723   : > { %v18041_v1 = vpack.c.bf16 %v7732_v41, %v7731_v60  ;;  %v7737_v53 = vmax.f32 %v15220_v4, 0.0  ;;  %v8504_v60 = vld [vmem:[%s17971_s20 + $0xe0] sm:$0xff]  ;;  %v8505_v41 = vld [vmem:[%s17971_s20 + $0xe8] sm:$0xff] }
 0x724   : > { %v7404_v34 = vpop.f32.mrf.mxu0  ;;  %v8618_v4 = vpack.c.bf16 %v8505_v41, %v8504_v60  ;;  %v8512_v60 = vld [vmem:[%s17971_s20 + $0x120] sm:$0xff]  ;;  %v8513_v41 = vld [vmem:[%s17971_s20 + $0x128] sm:$0xff] }
 0x725   : > { %15358 = vmatprep.mubr.bf16.mxu1 %v18041_v1  ;;  %v7735_v55 = vmax.f32 %v7404_v34, 0.0  ;;  %v8622_v48 = vpack.c.bf16 %v8513_v41, %v8512_v60 }
 0x726   : > { %v15221_v61 = vpop.f32.mrf.mxu0  ;;  %15359 = vmatmul.mubr.bf16.gmra.mxu1 %v18045_v11  ;;  %15462 = vmatprep.mubr.msk.bf16.mxu0 %vm8699_vm5, %v8618_v4 }
 0x727   : > { %v7738_v26 = vmax.f32 %v15221_v61, 0.0  ;;  %15463 = vmatmul.mubr.msk.bf16.gmra.mxu0 %vm8699_vm5, %v8619_v21  ;;  %v8515_v21 = vld [vmem:[%s17971_s20 + $0x138] sm:$0xff] }
 0x728   : > { %v7407_v24 = vpop.f32.mrf.mxu0 }
 0x729   : > { %v7736_v12 = vmax.f32 %v7407_v24, 0.0  ;;  %v18057_v14 = vpack.c.bf16 %v7738_v26, %v7737_v53  ;;  %v8508_v53 = vld [vmem:[%s17971_s20 + $0x100] sm:$0xff] }
 0x72a   : > { %v15224_v46 = vpop.f32.mrf.mxu0 }
 0x72b   : > { %v18053_v38 = vpack.c.bf16 %v7736_v12, %v7735_v55  ;;  %v7741_v29 = vmax.f32 %v15224_v46, 0.0  ;;  %v8509_v46 = vld [vmem:[%s17971_s20 + $0x108] sm:$0xff] }
 0x72c   : > { %v7420_v15 = vpop.f32.mrf.mxu0  ;;  %v8620_v52 = vpack.c.bf16 %v8509_v46, %v8508_v53 }
 0x72d   : > { %15362 = vmatprep.mubr.bf16.mxu1 %v18053_v38  ;;  %v7739_v36 = vmax.f32 %v7420_v15, 0.0 }
 0x72e   : > { %v15225_v17 = vpop.f32.mrf.mxu0  ;;  %15363 = vmatmul.mubr.bf16.gmra.mxu1 %v18057_v14  ;;  %15466 = vmatprep.mubr.msk.bf16.mxu0 %vm8699_vm5, %v8620_v52 }
 0x72f   : > { %v7742_v28 = vmax.f32 %v15225_v17, 0.0  ;;  %15467 = vmatmul.mubr.msk.bf16.gmra.mxu0 %vm8699_vm5, %v8621_v10  ;;  %v8624_v10 = vpack.c.bf16 %v8517_v0, %v8516_v8 }
 0x730   : > { %v7423_v27 = vpop.f32.mrf.mxu0  ;;  %15470 = vmatprep.mubr.msk.bf16.mxu0 %vm8699_vm5, %v8622_v48 }
 0x731   : > { %v7740_v50 = vmax.f32 %v7423_v27, 0.0  ;;  %v18069_v42 = vpack.c.bf16 %v7742_v28, %v7741_v29 }
 0x732   : > { %v15228_v5 = vpop.f32.mrf.mxu0 }
 0x733   : > { %v18065_v6 = vpack.c.bf16 %v7740_v50, %v7739_v36  ;;  %v7745_v55 = vmax.f32 %v15228_v5, 0.0 }
 0x734   : > { %v7436_v40 = vpop.f32.mrf.mxu0 }
 0x735   : > { %15366 = vmatprep.mubr.bf16.mxu1 %v18065_v6  ;;  %v7743_v26 = vmax.f32 %v7436_v40, 0.0  ;;  %v8514_v40 = vld [vmem:[%s17971_s20 + $0x130] sm:$0xff] }
 0x736   : > { %v15229_v34 = vpop.f32.mrf.mxu0  ;;  %15367 = vmatmul.mubr.bf16.gmra.mxu1 %v18069_v42 }
 0x737   : > { %v7746_v63 = vmax.f32 %v15229_v34, 0.0 }
 0x738   : > { %v7439_v61 = vpop.f32.mrf.mxu0 }
 0x739   : > { %v7744_v24 = vmax.f32 %v7439_v61, 0.0  ;;  %v18081_v54 = vpack.c.bf16 %v7746_v63, %v7745_v55  ;;  %v8623_v61 = vpack.c.bf16 %v8515_v21, %v8514_v40  ;;  %v8520_v21 = vld [vmem:[%s17971_s20 + $0x160] sm:$0xff] }
 0x73a   : > { %v15232_v12 = vpop.f32.mrf.mxu0 }
 0x73b   : > { %v18077_v47 = vpack.c.bf16 %v7744_v24, %v7743_v26  ;;  %v7749_v29 = vmax.f32 %v15232_v12, 0.0  ;;  %15471 = vmatmul.mubr.msk.bf16.gmra.mxu0 %vm8699_vm5, %v8623_v61 }
 0x73c   : > { %v7452_v15 = vpop.f32.mrf.mxu0  ;;  %15474 = vmatprep.mubr.msk.bf16.mxu0 %vm8699_vm5, %v8624_v10 }
 0x73d   : > { %15370 = vmatprep.mubr.bf16.mxu1 %v18077_v47  ;;  %v7747_v36 = vmax.f32 %v7452_v15, 0.0 }
 0x73e   : > { %v15233_v17 = vpop.f32.mrf.mxu0  ;;  %15371 = vmatmul.mubr.bf16.gmra.mxu1 %v18081_v54 }
 0x73f   : > { %v7750_v28 = vmax.f32 %v15233_v17, 0.0  ;;  %v8518_v17 = vld [vmem:[%s17971_s20 + $0x150] sm:$0xff] }
 0x740   : > { %v7455_v27 = vpop.f32.mrf.mxu0 }
 0x741   : > { %v7748_v50 = vmax.f32 %v7455_v27, 0.0  ;;  %v18096_v34 = vpack.c.bf16 %v7750_v28, %v7749_v29  ;;  %v8519_v28 = vld [vmem:[%s17971_s20 + $0x158] sm:$0xff] }
 0x742   : > { %v15236_v5 = vpop.f32.mrf.mxu0 }
 0x743   : > { %v18089_v4 = vpack.c.bf16 %v7748_v50, %v7747_v36  ;;  %v7753_v46 = vmax.f32 %v15236_v5, 0.0  ;;  %v8625_v50 = vpack.c.bf16 %v8519_v28, %v8518_v17 }
 0x744   : > { %v7468_v63 = vpop.f32.mrf.mxu0 }
 0x745   : > { %15374 = vmatprep.mubr.bf16.mxu1 %v18089_v4  ;;  %v7751_v12 = vmax.f32 %v7468_v63, 0.0  ;;  %15475 = vmatmul.mubr.msk.bf16.gmra.mxu0 %vm8699_vm5, %v8625_v50  ;;  %v8521_v63 = vld [vmem:[%s17971_s20 + $0x168] sm:$0xff]  ;;  %v8524_v50 = vld [vmem:[%s17971_s20 + $0x180] sm:$0xff] }
 0x746   : > { %v15237_v26 = vpop.f32.mrf.mxu0  ;;  %15375 = vmatmul.mubr.bf16.gmra.mxu1 %v18096_v34 }
 0x747   : > { %v7754_v24 = vmax.f32 %v15237_v26, 0.0  ;;  %v8626_v26 = vpack.c.bf16 %v8521_v63, %v8520_v21 }
 0x748   : > { %v7471_v55 = vpop.f32.mrf.mxu0 }
 0x749   : > { %v7752_v53 = vmax.f32 %v7471_v55, 0.0  ;;  %v18108_v27 = vpack.c.bf16 %v7754_v24, %v7753_v46  ;;  %v8522_v24 = vld [vmem:[%s17971_s20 + $0x170] sm:$0xff]  ;;  %v8523_v55 = vld [vmem:[%s17971_s20 + $0x178] sm:$0xff]  ;;  %15478 = vmatprep.mubr.msk.bf16.mxu0 %vm8699_vm5, %v8626_v26 }
 0x74a   : > { %v15240_v52 = vpop.f32.mrf.mxu0  ;;  %v8627_v46 = vpack.c.bf16 %v8523_v55, %v8522_v24 }
 0x74b   : > { %v18104_v15 = vpack.c.bf16 %v7752_v53, %v7751_v12  ;;  %v7757_v48 = vmax.f32 %v15240_v52, 0.0 }
 0x74c   : > { %v7484_v36 = vpop.f32.mrf.mxu0 }
 0x74d   : > { %15378 = vmatprep.mubr.bf16.mxu1 %v18104_v15  ;;  %v7755_v41 = vmax.f32 %v7484_v36, 0.0  ;;  %15479 = vmatmul.mubr.msk.bf16.gmra.mxu0 %vm8699_vm5, %v8627_v46 }
 0x74e   : > { %v15241_v29 = vpop.f32.mrf.mxu0  ;;  %15379 = vmatmul.mubr.bf16.gmra.mxu1 %v18108_v27 }
 0x74f   : > { %v7758_v5 = vmax.f32 %v15241_v29, 0.0  ;;  %v8525_v29 = vld [vmem:[%s17971_s20 + $0x188] sm:$0xff] }
 0x750   : > { %v7487_v60 = vpop.f32.mrf.mxu0 }
 0x751   : > { %v7756_v57 = vmax.f32 %v7487_v60, 0.0  ;;  %v18120_v12 = vpack.c.bf16 %v7758_v5, %v7757_v48  ;;  %v8628_v60 = vpack.c.bf16 %v8525_v29, %v8524_v50  ;;  %v8531_v50 = vld [vmem:[%s17971_s20 + $0x1b8] sm:$0xff] }
 0x752   : > { %v15244_v40 = vpop.f32.mrf.mxu0 }
 0x753   : > { %v18116_v61 = vpack.c.bf16 %v7756_v57, %v7755_v41  ;;  %v7761_v28 = vmax.f32 %v15244_v40, 0.0  ;;  %v8526_v41 = vld [vmem:[%s17971_s20 + $0x190] sm:$0xff]  ;;  %v8527_v57 = vld [vmem:[%s17971_s20 + $0x198] sm:$0xff]  ;;  %15482 = vmatprep.mubr.msk.bf16.mxu0 %vm8699_vm5, %v8628_v60 }
 0x754   : > { %v7500_v53 = vpop.f32.mrf.mxu0  ;;  %v8629_v63 = vpack.c.bf16 %v8527_v57, %v8526_v41 }
 0x755   : > { %15382 = vmatprep.mubr.bf16.mxu1 %v18116_v61  ;;  %v7759_v10 = vmax.f32 %v7500_v53, 0.0 }
 0x756   : > { %v15245_v52 = vpop.f32.mrf.mxu0  ;;  %15383 = vmatmul.mubr.bf16.gmra.mxu1 %v18120_v12  ;;  %15483 = vmatmul.mubr.msk.bf16.gmra.mxu0 %vm8699_vm5, %v8629_v63 }
 0x757   : > { %v7762_v8 = vmax.f32 %v15245_v52, 0.0 }
 0x758   : > { %v7503_v0 = vpop.f32.mrf.mxu0 }
 0x759   : > { %v7760_v17 = vmax.f32 %v7503_v0, 0.0  ;;  %v18132_v48 = vpack.c.bf16 %v7762_v8, %v7761_v28  ;;  %v8528_v8 = vld [vmem:[%s17971_s20 + $0x1a0] sm:$0xff]  ;;  %v8529_v0 = vld [vmem:[%s17971_s20 + $0x1a8] sm:$0xff]  ;;  %v8530_v28 = vld [vmem:[%s17971_s20 + $0x1b0] sm:$0xff] }
 0x75a   : > { %v15248_v36 = vpop.f32.mrf.mxu0  ;;  %v8631_v41 = vpack.c.bf16 %v8531_v50, %v8530_v28  ;;  %v8535_v28 = vld [vmem:[%s17971_s20 + $0x1d8] sm:$0xff] }
 0x75b   : > { %v18128_v5 = vpack.c.bf16 %v7760_v17, %v7759_v10  ;;  %v7765_v46 = vmax.f32 %v15248_v36, 0.0  ;;  %v8630_v17 = vpack.c.bf16 %v8529_v0, %v8528_v8  ;;  %v8534_v0 = vld [vmem:[%s17971_s20 + $0x1d0] sm:$0xff] }
 0x75c   : > { %v7516_v21 = vpop.f32.mrf.mxu0 }
 0x75d   : > { %15386 = vmatprep.mubr.bf16.mxu1 %v18128_v5  ;;  %v7763_v55 = vmax.f32 %v7516_v21, 0.0  ;;  %15486 = vmatprep.mubr.msk.bf16.mxu0 %vm8699_vm5, %v8630_v17 }
 0x75e   : > { %v15249_v40 = vpop.f32.mrf.mxu0  ;;  %15387 = vmatmul.mubr.bf16.gmra.mxu1 %v18132_v48  ;;  %15487 = vmatmul.mubr.msk.bf16.gmra.mxu0 %vm8699_vm5, %v8631_v41 }
 0x75f   : > { %v7766_v26 = vmax.f32 %v15249_v40, 0.0 }
 0x760   : > { %v7519_v24 = vpop.f32.mrf.mxu0 }
 0x761   : > { %v7764_v53 = vmax.f32 %v7519_v24, 0.0  ;;  %v18144_v29 = vpack.c.bf16 %v7766_v26, %v7765_v46 }
 0x762   : > { %v15252_v52 = vpop.f32.mrf.mxu0 }
 0x763   : > { %v18140_v10 = vpack.c.bf16 %v7764_v53, %v7763_v55  ;;  %20050 = vst [vmem:[#allocation3_spill] sm:$0xff] %v18144_v29  ;;  %v7769_v24 = vmax.f32 %v15252_v52, 0.0  ;;  %v8532_v55 = vld [vmem:[%s17971_s20 + $0x1c0] sm:$0xff]  ;;  %v8533_v53 = vld [vmem:[%s17971_s20 + $0x1c8] sm:$0xff] }
 0x764   : > { %v7532_v60 = vpop.f32.mrf.mxu0  ;;  %v8632_v8 = vpack.c.bf16 %v8533_v53, %v8532_v55  ;;  %v8537_v55 = vld [vmem:[%s17971_s20 + $0x1e8] sm:$0xff] }
 0x765   : > { %20049 = vst [vmem:[#allocation2_spill] sm:$0xff] %v18140_v10  ;;  %15390 = vmatprep.mubr.bf16.mxu1 %v18140_v10  ;;  %v7767_v63 = vmax.f32 %v7532_v60, 0.0 }
 0x766   : > { %v15253_v36 = vpop.f32.mrf.mxu0  ;;  %15391 = vmatmul.mubr.bf16.gmra.mxu1 %v18144_v29  ;;  %15490 = vmatprep.mubr.msk.bf16.mxu0 %vm8699_vm5, %v8632_v8 }
 0x767   : > { %v7770_v57 = vmax.f32 %v15253_v36, 0.0  ;;  %v8633_v36 = vpack.c.bf16 %v8535_v28, %v8534_v0  ;;  %v8538_v28 = vld [vmem:[%s17971_s20 + $0x1f0] sm:$0xff] }
 0x768   : > { %v7535_v21 = vpop.f32.mrf.mxu0 }
 0x769   : > { %v7768_v40 = vmax.f32 %v7535_v21, 0.0  ;;  %v18156_v17 = vpack.c.bf16 %v7770_v57, %v7769_v24  ;;  %15491 = vmatmul.mubr.msk.bf16.gmra.mxu0 %vm8699_vm5, %v8633_v36  ;;  %v8536_v24 = vld [vmem:[%s17971_s20 + $0x1e0] sm:$0xff] }
 0x76a   : > { %v15256_v26 = vpop.f32.mrf.mxu0  ;;  %v8634_v0 = vpack.c.bf16 %v8537_v55, %v8536_v24  ;;  %v8540_v24 = vld [vmem:[%s17971_s20 + $0x200] sm:$0xff]  ;;  %v8541_v55 = vld [vmem:[%s17971_s20 + $0x208] sm:$0xff] }
 0x76b   : > { %v18152_v46 = vpack.c.bf16 %v7768_v40, %v7767_v63  ;;  %20052 = vst [vmem:[#allocation7_spill] sm:$0xff] %v18156_v17  ;;  %v7773_v40 = vmax.f32 %v15256_v26, 0.0 }
 0x76c   : > { %v7548_v50 = vpop.f32.mrf.mxu0  ;;  %15494 = vmatprep.mubr.msk.bf16.mxu0 %vm8699_vm5, %v8634_v0 }
 0x76d   : > { %20051 = vst [vmem:[#allocation6_spill] sm:$0xff] %v18152_v46  ;;  %15394 = vmatprep.mubr.bf16.mxu1 %v18152_v46  ;;  %v7771_v21 = vmax.f32 %v7548_v50, 0.0  ;;  %v8539_v46 = vld [vmem:[%s17971_s20 + $0x1f8] sm:$0xff] }
 0x76e   : > { %v15257_v52 = vpop.f32.mrf.mxu0  ;;  %15395 = vmatmul.mubr.bf16.gmra.mxu1 %v18156_v17  ;;  %v8635_v10 = vpack.c.bf16 %v8539_v46, %v8538_v28  ;;  %v8636_v28 = vpack.c.bf16 %v8541_v55, %v8540_v24 }
 0x76f   : > { %v7774_v60 = vmax.f32 %v15257_v52, 0.0 }
 0x770   : > { %v7551_v41 = vpop.f32.mrf.mxu0 }
 0x771   : > { %v7772_v63 = vmax.f32 %v7551_v41, 0.0  ;;  %v18168_v29 = vpack.c.bf16 %v7774_v60, %v7773_v40  ;;  %15495 = vmatmul.mubr.msk.bf16.gmra.mxu0 %vm8699_vm5, %v8635_v10 }
 0x772   : > { %v15260_v57 = vpop.f32.mrf.mxu0  ;;  %15498 = vmatprep.mubr.msk.bf16.mxu0 %vm8699_vm5, %v8636_v28  ;;  %v15944_v28 = vld [vmem:[%s19838_s14 + $0x8] sm:$0xff]  }
 0x773   : > { %v18164_v53 = vpack.c.bf16 %v7772_v63, %v7771_v21  ;;  %20054 = vst [vmem:[#allocation12_spill] sm:$0xff] %v18168_v29  ;;  %v7777_v21 = vmax.f32 %v15260_v57, 0.0  ;;  %15710 = vmatprep.subr.bf16.mxu0 %v15944_v28 }
 0x774   : > { %v7564_v8 = vpop.f32.mrf.mxu0  ;;  %15711 = vmatpush3.bf16.msra.mxu0 %v15944_v28 }
 0x775   : > { %20053 = vst [vmem:[#allocation11_spill] sm:$0xff] %v18164_v53  ;;  %15398 = vmatprep.mubr.bf16.mxu1 %v18164_v53  ;;  %v7775_v46 = vmax.f32 %v7564_v8, 0.0 }
 0x776   : > { %v15261_v50 = vpop.f32.mrf.mxu0  ;;  %v15304_v26 = vpop.f32.mrf.mxu1  ;;  %15399 = vmatmul.mubr.bf16.gmra.mxu1 %v18168_v29 }
 0x777   : > { %12028 = vrot.lane.b32.xlu1 %v15304_v26, %s16467_s30  ;;  %v7778_v36 = vmax.f32 %v15261_v50, 0.0  ;;  %v8542_v50 = vld [vmem:[%s17971_s20 + $0x210] sm:$0xff]  ;;  %v8543_v26 = vld [vmem:[%s17971_s20 + $0x218] sm:$0xff] }
 0x778   : > { %v7567_v52 = vpop.f32.mrf.mxu0  ;;  %v7965_v60 = vpop.f32.mrf.mxu1  ;;  %v8637_v8 = vpack.c.bf16 %v8543_v26, %v8542_v50  ;;  %v8544_v50 = vld [vmem:[%s17971_s20 + $0x220] sm:$0xff]  ;;  %v8545_v26 = vld [vmem:[%s17971_s20 + $0x228] sm:$0xff] }
 0x779   : > { %v7776_v41 = vmax.f32 %v7567_v52, 0.0  ;;  %12024 = vrot.lane.b32.xlu0 %v7965_v60, %s16467_s30  ;;  %v18183_v29 = vpack.c.bf16 %v7778_v36, %v7777_v21 }
 0x77a   : > { %v15264_v63 = vpop.f32.mrf.mxu0  ;;  %v15305_v40 = vpop.f32.mrf.mxu1  ;;  %15499 = vmatmul.mubr.msk.bf16.gmra.mxu0 %vm8699_vm5, %v8637_v8 }
 0x77b   : > { %v18178_v0 = vpack.c.bf16 %v7776_v41, %v7775_v46  ;;  %12030 = vrot.lane.b32.xlu1 %v15305_v40, %s16467_s30  ;;  %20056 = vst [vmem:[#allocation16_spill] sm:$0xff] %v18183_v29  ;;  %v7781_v40 = vmax.f32 %v15264_v63, 0.0 }
 0x77c   : > { %v7580_v53 = vpop.f32.mrf.mxu0  ;;  %v7968_v10 = vpop.f32.mrf.mxu1 }
 0x77d   : > { %20055 = vst [vmem:[#allocation15_spill] sm:$0xff] %v18178_v0  ;;  %15402 = vmatprep.mubr.bf16.mxu1 %v18178_v0  ;;  %12026 = vrot.lane.b32.xlu0 %v7968_v10, %s16467_s30  ;;  %v7779_v41 = vmax.f32 %v7580_v53, 0.0  ;;  %v8551_v0 = vld [vmem:[%s17971_s20 + $0x258] sm:$0xff] }
 0x77e   : > { %v15265_v57 = vpop.f32.mrf.mxu0  ;;  %v15308_v52 = vpop.f32.mrf.mxu1  ;;  %15403 = vmatmul.mubr.bf16.gmra.mxu1 %v18183_v29  ;;  %v8547_v29 = vld [vmem:[%s17971_s20 + $0x238] sm:$0xff] }
 0x77f   : > { %v7782_v60 = vmax.f32 %v15265_v57, 0.0  ;;  %v8546_v57 = vld [vmem:[%s17971_s20 + $0x230] sm:$0xff] }
 0x780   : > { %v7583_v36 = vpop.f32.mrf.mxu0  ;;  %v7981_v46 = vpop.f32.mrf.mxu1  ;;  %v8639_v63 = vpack.c.bf16 %v8547_v29, %v8546_v57 }
 0x781   : > { %v7780_v21 = vmax.f32 %v7583_v36, 0.0  ;;  %12036 = vrot.lane.b32.xlu0 %v15308_v52, %s16467_s30  ;;  %v18201_v8 = vpack.c.bf16 %v7782_v60, %v7781_v40  ;;  %v8638_v52 = vpack.c.bf16 %v8545_v26, %v8544_v50 }
 0x782   : > { %v15268_v24 = vpop.f32.mrf.mxu0  ;;  %v15309_v55 = vpop.f32.mrf.mxu1 }
 0x783   : > { %v18193_v10 = vpack.c.bf16 %v7780_v21, %v7779_v41  ;;  %12038 = vrot.lane.b32.xlu1 %v15309_v55, %s16467_s30  ;;  %20058 = vst [vmem:[#allocation20_spill] sm:$0xff] %v18201_v8  ;;  %15502 = vmatprep.mubr.msk.bf16.mxu0 %vm8699_vm5, %v8638_v52  ;;  %v7785_v29 = vmax.f32 %v15268_v24, 0.0 }
 0x784   : > { %v7596_v53 = vpop.f32.mrf.mxu0  ;;  %v7984_v36 = vpop.f32.mrf.mxu1  ;;  %15503 = vmatmul.mubr.msk.bf16.gmra.mxu0 %vm8699_vm5, %v8639_v63 }
 0x785   : > { %20057 = vst [vmem:[#allocation19_spill] sm:$0xff] %v18193_v10  ;;  %15406 = vmatprep.mubr.bf16.mxu1 %v18193_v10  ;;  %12032 = vrot.lane.b32.xlu0 %v7981_v46, %s16467_s30  ;;  %v7783_v50 = vmax.f32 %v7596_v53, 0.0  ;;  %v8549_v10 = vld [vmem:[%s17971_s20 + $0x248] sm:$0xff] }
 0x786   : > { %v15269_v41 = vpop.f32.mrf.mxu0  ;;  %v15312_v21 = vpop.f32.mrf.mxu1  ;;  %15407 = vmatmul.mubr.bf16.gmra.mxu1 %v18201_v8  ;;  %v8548_v8 = vld [vmem:[%s17971_s20 + $0x240] sm:$0xff] }
 0x787   : > { %12034 = vrot.lane.b32.xlu1 %v7984_v36, %s16467_s30  ;;  %v7786_v60 = vmax.f32 %v15269_v41, 0.0  ;;  %v8640_v28 = vpack.c.bf16 %v8549_v10, %v8548_v8  ;;  %v8550_v41 = vld [vmem:[%s17971_s20 + $0x250] sm:$0xff] }
 0x788   : > { %v7599_v40 = vpop.f32.mrf.mxu0  ;;  %v7997_v55 = vpop.f32.mrf.mxu1  ;;  %v8641_v24 = vpack.c.bf16 %v8551_v0, %v8550_v41 }
 0x789   : > { %v7784_v46 = vmax.f32 %v7599_v40, 0.0  ;;  %12044 = vrot.lane.b32.xlu0 %v15312_v21, %s16467_s30  ;;  %v18217_v17 = vpack.c.bf16 %v7786_v60, %v7785_v29  ;;  %15506 = vmatprep.mubr.msk.bf16.mxu0 %vm8699_vm5, %v8640_v28  ;;  %v8552_v29 = vld [vmem:[%s17971_s20 + $0x260] sm:$0xff] }
 0x78a   : > { %v15272_v26 = vpop.f32.mrf.mxu0  ;;  %v15313_v57 = vpop.f32.mrf.mxu1 }
 0x78b   : > { %v18212_v36 = vpack.c.bf16 %v7784_v46, %v7783_v50  ;;  %12046 = vrot.lane.b32.xlu1 %v15313_v57, %s16467_s30  ;;  %20059 = vst [vmem:[#allocation23_spill] sm:$0xff] %v18217_v17  ;;  %v7789_v0 = vmax.f32 %v15272_v26, 0.0  ;;  %v8553_v57 = vld [vmem:[%s17971_s20 + $0x268] sm:$0xff] }
 0x78c   : > { %v7612_v53 = vpop.f32.mrf.mxu0  ;;  %v8000_v52 = vpop.f32.mrf.mxu1  ;;  %15507 = vmatmul.mubr.msk.bf16.gmra.mxu0 %vm8699_vm5, %v8641_v24  ;;  %v8642_v28 = vpack.c.bf16 %v8553_v57, %v8552_v29 }
 0x78d   : > { %15410 = vmatprep.mubr.bf16.mxu1 %v18212_v36  ;;  %12040 = vrot.lane.b32.xlu0 %v7997_v55, %s16467_s30  ;;  %v7787_v40 = vmax.f32 %v7612_v53, 0.0 }
 0x78e   : > { %v15273_v63 = vpop.f32.mrf.mxu0  ;;  %v15316_v21 = vpop.f32.mrf.mxu1  ;;  %15411 = vmatmul.mubr.bf16.gmra.mxu1 %v18217_v17  ;;  %15510 = vmatprep.mubr.msk.bf16.mxu0 %vm8699_vm5, %v8642_v28 }
 0x78f   : > { %12042 = vrot.lane.b32.xlu1 %v8000_v52, %s16467_s30  ;;  %v7790_v10 = vmax.f32 %v15273_v63, 0.0  ;;  %v8554_v52 = vld [vmem:[%s17971_s20 + $0x270] sm:$0xff]  ;;  %v8555_v63 = vld [vmem:[%s17971_s20 + $0x278] sm:$0xff] }
 0x790   : > { %v7615_v8 = vpop.f32.mrf.mxu0  ;;  %v8013_v60 = vpop.f32.mrf.mxu1  ;;  %v8643_v26 = vpack.c.bf16 %v8555_v63, %v8554_v52  ;;  %v8556_v52 = vld [vmem:[%s17971_s20 + $0x280] sm:$0xff]  ;;  %v8557_v63 = vld [vmem:[%s17971_s20 + $0x288] sm:$0xff] }
 0x791   : > { %v7788_v50 = vmax.f32 %v7615_v8, 0.0  ;;  %12052 = vrot.lane.b32.xlu0 %v15316_v21, %s16467_s30  ;;  %v18233_v17 = vpack.c.bf16 %v7790_v10, %v7789_v0  ;;  %v8644_v28 = vpack.c.bf16 %v8557_v63, %v8556_v52 }
 0x792   : > { %v15276_v55 = vpop.f32.mrf.mxu0  ;;  %v15317_v46 = vpop.f32.mrf.mxu1 }
 0x793   : > { %v18228_v41 = vpack.c.bf16 %v7788_v50, %v7787_v40  ;;  %12054 = vrot.lane.b32.xlu1 %v15317_v46, %s16467_s30  ;;  %20061 = vst [vmem:[#allocation27_spill] sm:$0xff] %v18233_v17 }
 0x794   : > { %v7628_v53 = vpop.f32.mrf.mxu0  ;;  %v8016_v8 = vpop.f32.mrf.mxu1  ;;  %15511 = vmatmul.mubr.msk.bf16.gmra.mxu0 %vm8699_vm5, %v8643_v26 }
 0x795   : > { %20060 = vst [vmem:[#allocation24_spill] sm:$0xff] %v18228_v41  ;;  %15414 = vmatprep.mubr.bf16.mxu1 %v18228_v41  ;;  %12048 = vrot.lane.b32.xlu0 %v8013_v60, %s16467_s30  ;;  %v7791_v0 = vmax.f32 %v7628_v53, 0.0  ;;  %v7793_v60 = vmax.f32 %v15276_v55, 0.0 }
 0x796   : > { %v15277_v24 = vpop.f32.mrf.mxu0  ;;  %v15320_v21 = vpop.f32.mrf.mxu1  ;;  %15415 = vmatmul.mubr.bf16.gmra.mxu1 %v18233_v17  ;;  %15514 = vmatprep.mubr.msk.bf16.mxu0 %vm8699_vm5, %v8644_v28 }
 0x797   : > { %12050 = vrot.lane.b32.xlu1 %v8016_v8, %s16467_s30  ;;  %v7794_v10 = vmax.f32 %v15277_v24, 0.0  ;;  %v8558_v8 = vld [vmem:[%s17971_s20 + $0x290] sm:$0xff]  ;;  %v8559_v24 = vld [vmem:[%s17971_s20 + $0x298] sm:$0xff] }
 0x798   : > { %v7631_v40 = vpop.f32.mrf.mxu0  ;;  %v8029_v50 = vpop.f32.mrf.mxu1  ;;  %v8645_v55 = vpack.c.bf16 %v8559_v24, %v8558_v8  ;;  %v8560_v8 = vld [vmem:[%s17971_s20 + $0x2a0] sm:$0xff]  ;;  %v8561_v24 = vld [vmem:[%s17971_s20 + $0x2a8] sm:$0xff] }
 0x799   : > { %v7792_v46 = vmax.f32 %v7631_v40, 0.0  ;;  %12060 = vrot.lane.b32.xlu0 %v15320_v21, %s16467_s30  ;;  %v18249_v41 = vpack.c.bf16 %v7794_v10, %v7793_v60  ;;  %v8646_v28 = vpack.c.bf16 %v8561_v24, %v8560_v8  ;;  %v8564_v24 = vld [vmem:[%s17971_s20 + $0x2c0] sm:$0xff] }
 0x79a   : > { %v15280_v29 = vpop.f32.mrf.mxu0  ;;  %v15321_v57 = vpop.f32.mrf.mxu1 }
 0x79b   : > { %v18244_v17 = vpack.c.bf16 %v7792_v46, %v7791_v0  ;;  %12062 = vrot.lane.b32.xlu1 %v15321_v57, %s16467_s30  ;;  %20063 = vst [vmem:[#allocation31_spill] sm:$0xff] %v18249_v41 }
 0x79c   : > { %v7644_v53 = vpop.f32.mrf.mxu0  ;;  %v8032_v40 = vpop.f32.mrf.mxu1  ;;  %15515 = vmatmul.mubr.msk.bf16.gmra.mxu0 %vm8699_vm5, %v8645_v55 }
 0x79d   : > { %20062 = vst [vmem:[#allocation28_spill] sm:$0xff] %v18244_v17  ;;  %15418 = vmatprep.mubr.bf16.mxu1 %v18244_v17  ;;  %12056 = vrot.lane.b32.xlu0 %v8029_v50, %s16467_s30  ;;  %v7795_v60 = vmax.f32 %v7644_v53, 0.0  ;;  %v7797_v50 = vmax.f32 %v15280_v29, 0.0 }
 0x79e   : > { %v15281_v26 = vpop.f32.mrf.mxu0  ;;  %v15324_v21 = vpop.f32.mrf.mxu1  ;;  %15419 = vmatmul.mubr.bf16.gmra.mxu1 %v18249_v41  ;;  %15518 = vmatprep.mubr.msk.bf16.mxu0 %vm8699_vm5, %v8646_v28 }
 0x79f   : > { %12058 = vrot.lane.b32.xlu1 %v8032_v40, %s16467_s30  ;;  %v7798_v10 = vmax.f32 %v15281_v26, 0.0  ;;  %v8562_v40 = vld [vmem:[%s17971_s20 + $0x2b0] sm:$0xff]  ;;  %v8563_v26 = vld [vmem:[%s17971_s20 + $0x2b8] sm:$0xff] }
 0x7a0   : > { %v7647_v0 = vpop.f32.mrf.mxu0  ;;  %v8045_v46 = vpop.f32.mrf.mxu1  ;;  %v8647_v29 = vpack.c.bf16 %v8563_v26, %v8562_v40  ;;  %v8565_v40 = vld [vmem:[%s17971_s20 + $0x2c8] sm:$0xff] }
 0x7a1   : > { %v7796_v57 = vmax.f32 %v7647_v0, 0.0  ;;  %12068 = vrot.lane.b32.xlu0 %v15324_v21, %s16467_s30  ;;  %v18265_v17 = vpack.c.bf16 %v7798_v10, %v7797_v50  ;;  %v8648_v28 = vpack.c.bf16 %v8565_v40, %v8564_v24 }
 0x7a2   : > { %v15284_v52 = vpop.f32.mrf.mxu0  ;;  %v15325_v63 = vpop.f32.mrf.mxu1 }
 0x7a3   : > { %v18260_v41 = vpack.c.bf16 %v7796_v57, %v7795_v60  ;;  %12070 = vrot.lane.b32.xlu1 %v15325_v63, %s16467_s30  ;;  %20064 = vst [vmem:[#allocation32_spill] sm:$0xff] %v18265_v17 }
 0x7a4   : > { %v7660_v53 = vpop.f32.mrf.mxu0  ;;  %v8048_v0 = vpop.f32.mrf.mxu1  ;;  %15519 = vmatmul.mubr.msk.bf16.gmra.mxu0 %vm8699_vm5, %v8647_v29 }
 0x7a5   : > { %15422 = vmatprep.mubr.bf16.mxu1 %v18260_v41  ;;  %12064 = vrot.lane.b32.xlu0 %v8045_v46, %s16467_s30  ;;  %v7799_v50 = vmax.f32 %v7660_v53, 0.0  ;;  %v7801_v46 = vmax.f32 %v15284_v52, 0.0 }
 0x7a6   : > { %v15285_v55 = vpop.f32.mrf.mxu0  ;;  %v15328_v21 = vpop.f32.mrf.mxu1  ;;  %15423 = vmatmul.mubr.bf16.gmra.mxu1 %v18265_v17  ;;  %15522 = vmatprep.mubr.msk.bf16.mxu0 %vm8699_vm5, %v8648_v28 }
 0x7a7   : > { %12066 = vrot.lane.b32.xlu1 %v8048_v0, %s16467_s30  ;;  %v7802_v10 = vmax.f32 %v15285_v55, 0.0  ;;  %v8566_v0 = vld [vmem:[%s17971_s20 + $0x2d0] sm:$0xff]  ;;  %v8567_v55 = vld [vmem:[%s17971_s20 + $0x2d8] sm:$0xff] }
 0x7a8   : > { %v7663_v60 = vpop.f32.mrf.mxu0  ;;  %v8061_v57 = vpop.f32.mrf.mxu1  ;;  %v8649_v52 = vpack.c.bf16 %v8567_v55, %v8566_v0  ;;  %v8572_v0 = vld [vmem:[%s17971_s20 + $0x300] sm:$0xff]  ;;  %v8573_v55 = vld [vmem:[%s17971_s20 + $0x308] sm:$0xff] }
 0x7a9   : > { %v7800_v63 = vmax.f32 %v7663_v60, 0.0  ;;  %12076 = vrot.lane.b32.xlu0 %v15328_v21, %s16467_s30  ;;  %v18281_v17 = vpack.c.bf16 %v7802_v10, %v7801_v46  ;;  %v8568_v60 = vld [vmem:[%s17971_s20 + $0x2e0] sm:$0xff]  ;;  %v8571_v46 = vld [vmem:[%s17971_s20 + $0x2f8] sm:$0xff] }
 0x7aa   : > { %v15329_v8 = vpop.f32.mrf.mxu1 }
 0x7ab   : > { %v18276_v26 = vpack.c.bf16 %v7800_v63, %v7799_v50  ;;  %12078 = vrot.lane.b32.xlu1 %v15329_v8, %s16467_s30  ;;  %20066 = vst [vmem:[#allocation36_spill] sm:$0xff] %v18281_v17  ;;  %v8570_v63 = vld [vmem:[%s17971_s20 + $0x2f0] sm:$0xff] }
 0x7ac   : > { %v8064_v53 = vpop.f32.mrf.mxu1  ;;  %15523 = vmatmul.mubr.msk.bf16.gmra.mxu0 %vm8699_vm5, %v8649_v52  ;;  %v8574_v52 = vld [vmem:[%s17971_s20 + $0x310] sm:$0xff] }
 0x7ad   : > { %20065 = vst [vmem:[#allocation35_spill] sm:$0xff] %v18276_v26  ;;  %12072 = vrot.lane.b32.xlu0 %v8061_v57, %s16467_s30  ;;  %15426 = vmatprep.mubr.bf16.mxu1 %v18276_v26  ;;  %v8569_v57 = vld [vmem:[%s17971_s20 + $0x2e8] sm:$0xff]  ;;  %v8599_v26 = vld [vmem:[%s17971_s20 + $0x3d8] sm:$0xff] }
 0x7ae   : > { %v15332_v29 = vpop.f32.mrf.mxu1  ;;  %15427 = vmatmul.mubr.bf16.gmra.mxu1 %v18281_v17  ;;  %v8650_v50 = vpack.c.bf16 %v8569_v57, %v8568_v60 }
 0x7af   : > { %12074 = vrot.lane.b32.xlu1 %v8064_v53, %s16467_s30  ;;  %15578 = vmatprep.mubr.bf16.mxu1 %v17894_v49  ;;  %v8651_v49 = vpack.c.bf16 %v8571_v46, %v8570_v63  ;;  %v8652_v53 = vpack.c.bf16 %v8573_v55, %v8572_v0  ;;  %v8576_v46 = vld [vmem:[%s17971_s20 + $0x320] sm:$0xff] }
 0x7b0   : > { %v8077_v21 = vpop.f32.mrf.mxu1  ;;  %15526 = vmatprep.mubr.msk.bf16.mxu0 %vm8699_vm5, %v8650_v50 }
 0x7b1   : > { %12084 = vrot.lane.b32.xlu0 %v15332_v29, %s16467_s30  ;;  %v8575_v29 = vld [vmem:[%s17971_s20 + $0x318] sm:$0xff] }
 0x7b2   : > { %v15333_v10 = vpop.f32.mrf.mxu1 }
 0x7b3   : > { %12086 = vrot.lane.b32.xlu1 %v15333_v10, %s16467_s30  ;;  %v18311_v10 = vpop.f32.mrf.mxu0 }
 0x7b4   : > { %v8080_v8 = vpop.f32.mrf.mxu1  ;;  %15527 = vmatmul.mubr.msk.bf16.gmra.mxu0 %vm8699_vm5, %v8651_v49  ;;  %v8578_v49 = vld [vmem:[%s17971_s20 + $0x330] sm:$0xff] }
 0x7b5   : > { %12080 = vrot.lane.b32.xlu0 %v8077_v21, %s16467_s30  ;;  %15530 = vmatprep.mubr.msk.bf16.mxu0 %vm8699_vm5, %v8652_v53  ;;  %v18315_v57 = vpop.f32.mrf.mxu0 }
 0x7b6   : > { %v15336_v24 = vpop.f32.mrf.mxu1  ;;  %15579 = vmatmul.mubr.bf16.vlgmr.msra.gmra.mxu1 %v17896_v22  ;;  %v8653_v22 = vpack.c.bf16 %v8575_v29, %v8574_v52 }
 0x7b7   : > { %12082 = vrot.lane.b32.xlu1 %v8080_v8, %s16467_s30  ;;  %15582 = vmatprep.mubr.bf16.mxu1 %v17907_v32  ;;  %v18319_v63 = vpop.f32.mrf.mxu0  ;;  %v8577_v8 = vld [vmem:[%s17971_s20 + $0x328] sm:$0xff] }
 0x7b8   : > { %v8093_v40 = vpop.f32.mrf.mxu1 }
 0x7b9   : > { %12092 = vrot.lane.b32.xlu0 %v15336_v24, %s16467_s30 }
 0x7ba   : > { %v15337_v28 = vpop.f32.mrf.mxu1 }
 0x7bb   : > { %12094 = vrot.lane.b32.xlu1 %v15337_v28, %s16467_s30  ;;  %v8654_v28 = vpack.c.bf16 %v8577_v8, %v8576_v46 }
 0x7bc   : > { %v8096_v21 = vpop.f32.mrf.mxu1  ;;  %15531 = vmatmul.mubr.msk.bf16.gmra.mxu0 %vm8699_vm5, %v8653_v22  ;;  %v8580_v22 = vld [vmem:[%s17971_s20 + $0x340] sm:$0xff] }
 0x7bd   : > { %12088 = vrot.lane.b32.xlu0 %v8093_v40, %s16467_s30  ;;  %v18329_v40 = vpop.f32.mrf.mxu0  ;;  %15534 = vmatprep.mubr.msk.bf16.mxu0 %vm8699_vm5, %v8654_v28 }
 0x7be   : > { %v15340_v32 = vpop.f32.mrf.mxu1  ;;  %15583 = vmatmul.mubr.bf16.gmra.mxu1 %v17909_v20  ;;  %v15945_v20 = vld [vmem:[%s19838_s14] sm:$0xff]  }
 0x7bf   : > { %12090 = vrot.lane.b32.xlu1 %v8096_v21, %s16467_s30  ;;  %15586 = vmatprep.mubr.bf16.mxu1 %v17919_v13  ;;  %v8579_v13 = vld [vmem:[%s17971_s20 + $0x338] sm:$0xff]  ;;  %v18336_v52 = vpop.f32.mrf.mxu0 }
 0x7c0   : > { %v8109_v60 = vpop.f32.mrf.mxu1  ;;  %15712 = vmatprep.subr.bf16.mxu0 %v15945_v20  ;;  %v8655_v0 = vpack.c.bf16 %v8579_v13, %v8578_v49 }
 0x7c1   : > { %12100 = vrot.lane.b32.xlu0 %v15340_v32, %s16467_s30  ;;  %15713 = vmatpush3.bf16.msra.mxu0 %v15945_v20  ;;  %v18340_v21 = vpop.f32.mrf.mxu0 }
 0x7c2   : > { %v15341_v50 = vpop.f32.mrf.mxu1 }
 0x7c3   : > { %12102 = vrot.lane.b32.xlu1 %v15341_v50, %s16467_s30  ;;  %v8583_v50 = vld [vmem:[%s17971_s20 + $0x358] sm:$0xff]  ;;  %v18347_v46 = vpop.f32.mrf.mxu0 }
 0x7c4   : > { %v8112_v24 = vpop.f32.mrf.mxu1  ;;  %15535 = vmatmul.mubr.msk.bf16.gmra.mxu0 %vm8699_vm5, %v8655_v0 }
 0x7c5   : > { %12096 = vrot.lane.b32.xlu0 %v8109_v60, %s16467_s30  ;;  %v8582_v60 = vld [vmem:[%s17971_s20 + $0x350] sm:$0xff]  ;;  %v18352_v49 = vpop.f32.mrf.mxu0 }
 0x7c6   : > { %v15344_v55 = vpop.f32.mrf.mxu1  ;;  %15587 = vmatmul.mubr.bf16.gmra.mxu1 %v17921_v31  ;;  %v8581_v31 = vld [vmem:[%s17971_s20 + $0x348] sm:$0xff]  ;;  %v8657_v8 = vpack.c.bf16 %v8583_v50, %v8582_v60 }
 0x7c7   : > { %12098 = vrot.lane.b32.xlu1 %v8112_v24, %s16467_s30  ;;  %15590 = vmatprep.mubr.bf16.mxu1 %v17925_v59  ;;  %v8656_v32 = vpack.c.bf16 %v8581_v31, %v8580_v22  ;;  %v18356_v24 = vpop.f32.mrf.mxu0  ;;  %v8587_v22 = vld [vmem:[%s17971_s20 + $0x378] sm:$0xff] }
 0x7c8   : > { %v8125_v53 = vpop.f32.mrf.mxu1 }
 0x7c9   : > { %12108 = vrot.lane.b32.xlu0 %v15344_v55, %s16467_s30  ;;  %15538 = vmatprep.mubr.msk.bf16.mxu0 %vm8699_vm5, %v8656_v32  ;;  %v18360_v0 = vpop.f32.mrf.mxu0  ;;  %v8584_v55 = vld [vmem:[%s17971_s20 + $0x360] sm:$0xff] }
 0x7ca   : > { %v15345_v29 = vpop.f32.mrf.mxu1 }
 0x7cb   : > { %12110 = vrot.lane.b32.xlu1 %v15345_v29, %s16467_s30  ;;  %v8586_v29 = vld [vmem:[%s17971_s20 + $0x370] sm:$0xff] }
 0x7cc   : > { %v8128_v59 = vpop.f32.mrf.mxu1  ;;  %15539 = vmatmul.mubr.msk.bf16.gmra.mxu0 %vm8699_vm5, %v8657_v8  ;;  %v8659_v32 = vpack.c.bf16 %v8587_v22, %v8586_v29 }
 0x7cd   : > { %12104 = vrot.lane.b32.xlu0 %v8125_v53, %s16467_s30  ;;  %v8585_v53 = vld [vmem:[%s17971_s20 + $0x368] sm:$0xff] }
 0x7ce   : > { %v15348_v20 = vpop.f32.mrf.mxu1  ;;  %15591 = vmatmul.mubr.bf16.gmra.mxu1 %v17927_v30  ;;  %v8658_v30 = vpack.c.bf16 %v8585_v53, %v8584_v55  ;;  %v8589_v55 = vld [vmem:[%s17971_s20 + $0x388] sm:$0xff]  ;;  %v8590_v53 = vld [vmem:[%s17971_s20 + $0x390] sm:$0xff] }
 0x7cf   : > { %12106 = vrot.lane.b32.xlu1 %v8128_v59, %s16467_s30  ;;  %15594 = vmatprep.mubr.bf16.mxu1 %v17931_v39  ;;  %v18367_v39 = vpop.f32.mrf.mxu0 }
 0x7d0   : > { %v8141_v13 = vpop.f32.mrf.mxu1  ;;  %15542 = vmatprep.mubr.msk.bf16.mxu0 %vm8699_vm5, %v8658_v30  ;;  %v8591_v30 = vld [vmem:[%s17971_s20 + $0x398] sm:$0xff] }
 0x7d1   : > { %12116 = vrot.lane.b32.xlu0 %v15348_v20, %s16467_s30  ;;  %v18372_v50 = vpop.f32.mrf.mxu0  ;;  %v8661_v22 = vpack.c.bf16 %v8591_v30, %v8590_v53  ;;  %v8594_v53 = vld [vmem:[%s17971_s20 + $0x3b0] sm:$0xff]  ;;  %v8595_v30 = vld [vmem:[%s17971_s20 + $0x3b8] sm:$0xff] }
 0x7d2   : > { %v15349_v28 = vpop.f32.mrf.mxu1 }
 0x7d3   : > { %12118 = vrot.lane.b32.xlu1 %v15349_v28, %s16467_s30  ;;  %v18376_v8 = vpop.f32.mrf.mxu0  ;;  %v8588_v28 = vld [vmem:[%s17971_s20 + $0x380] sm:$0xff] }
 0x7d4   : > { %v8144_v31 = vpop.f32.mrf.mxu1  ;;  %15543 = vmatmul.mubr.msk.bf16.gmra.mxu0 %vm8699_vm5, %v8659_v32 }
 0x7d5   : > { %12112 = vrot.lane.b32.xlu0 %v8141_v13, %s16467_s30  ;;  %v18380_v13 = vpop.f32.mrf.mxu0 }
 0x7d6   : > { %v15352_v60 = vpop.f32.mrf.mxu1  ;;  %15595 = vmatmul.mubr.bf16.gmra.mxu1 %v17933_v2  ;;  %v8660_v2 = vpack.c.bf16 %v8589_v55, %v8588_v28  ;;  %v8592_v55 = vld [vmem:[%s17971_s20 + $0x3a0] sm:$0xff] }
 0x7d7   : > { %12114 = vrot.lane.b32.xlu1 %v8144_v31, %s16467_s30  ;;  %15598 = vmatprep.mubr.bf16.mxu1 %v17940_v45  ;;  %v18387_v45 = vpop.f32.mrf.mxu0 }
 0x7d8   : > { %v8157_v59 = vpop.f32.mrf.mxu1  ;;  %15546 = vmatprep.mubr.msk.bf16.mxu0 %vm8699_vm5, %v8660_v2  ;;  %v8593_v2 = vld [vmem:[%s17971_s20 + $0x3a8] sm:$0xff] }
 0x7d9   : > { %12124 = vrot.lane.b32.xlu0 %v15352_v60, %s16467_s30  ;;  %v18392_v32 = vpop.f32.mrf.mxu0 }
 0x7da   : > { %v15353_v20 = vpop.f32.mrf.mxu1 }
 0x7db   : > { %12126 = vrot.lane.b32.xlu1 %v15353_v20, %s16467_s30  ;;  %v18396_v20 = vpop.f32.mrf.mxu0 }
 0x7dc   : > { %v8160_v29 = vpop.f32.mrf.mxu1  ;;  %15547 = vmatmul.mubr.msk.bf16.gmra.mxu0 %vm8699_vm5, %v8661_v22  ;;  %v8663_v22 = vpack.c.bf16 %v8595_v30, %v8594_v53  ;;  %v8597_v53 = vld [vmem:[%s17971_s20 + $0x3c8] sm:$0xff]  ;;  %v8598_v30 = vld [vmem:[%s17971_s20 + $0x3d0] sm:$0xff] }
 0x7dd   : > { %12120 = vrot.lane.b32.xlu0 %v8157_v59, %s16467_s30  ;;  %v18400_v28 = vpop.f32.mrf.mxu0 }
 0x7de   : > { %v15356_v31 = vpop.f32.mrf.mxu1  ;;  %15599 = vmatmul.mubr.bf16.gmra.mxu1 %v17942_v33  ;;  %v8662_v33 = vpack.c.bf16 %v8593_v2, %v8592_v55 }
 0x7df   : > { %12122 = vrot.lane.b32.xlu1 %v8160_v29, %s16467_s30  ;;  %15602 = vmatprep.mubr.bf16.mxu1 %v17946_v43  ;;  %v18407_v43 = vpop.f32.mrf.mxu0 }
 0x7e0   : > { %v8173_v60 = vpop.f32.mrf.mxu1  ;;  %15550 = vmatprep.mubr.msk.bf16.mxu0 %vm8699_vm5, %v8662_v33  ;;  %v8596_v33 = vld [vmem:[%s17971_s20 + $0x3c0] sm:$0xff] }
 0x7e1   : > { %12132 = vrot.lane.b32.xlu0 %v15356_v31, %s16467_s30  ;;  %v18412_v17 = vpop.f32.mrf.mxu0 }
 0x7e2   : > { %v15357_v59 = vpop.f32.mrf.mxu1 }
 0x7e3   : > { %12134 = vrot.lane.b32.xlu1 %v15357_v59, %s16467_s30  ;;  %v18416_v55 = vpop.f32.mrf.mxu0 }
 0x7e4   : > { %v8176_v29 = vpop.f32.mrf.mxu1  ;;  %20067 = vst [vmem:[#allocation39_spill] sm:$0xff] %v18416_v55  ;;  %15551 = vmatmul.mubr.msk.bf16.gmra.mxu0 %vm8699_vm5, %v8663_v22  ;;  %v8665_v22 = vpack.c.bf16 %v8599_v26, %v8598_v30  ;;  %v8602_v30 = vld [vmem:[%s17971_s20 + $0x3f0] sm:$0xff] }
 0x7e5   : > { %12128 = vrot.lane.b32.xlu0 %v8173_v60, %s16467_s30  ;;  %v18420_v2 = vpop.f32.mrf.mxu0 }
 0x7e6   : > { %v15360_v31 = vpop.f32.mrf.mxu1  ;;  %15603 = vmatmul.mubr.bf16.gmra.mxu1 %v17948_v35  ;;  %v8664_v35 = vpack.c.bf16 %v8597_v53, %v8596_v33  ;;  %v8600_v53 = vld [vmem:[%s17971_s20 + $0x3e0] sm:$0xff] }
 0x7e7   : > { %12130 = vrot.lane.b32.xlu1 %v8176_v29, %s16467_s30  ;;  %15606 = vmatprep.mubr.bf16.mxu1 %v17952_v16  ;;  %v18427_v16 = vpop.f32.mrf.mxu0 }
 0x7e8   : > { %v8189_v59 = vpop.f32.mrf.mxu1  ;;  %20068 = vst [vmem:[#allocation40_spill] sm:$0xff] %v18427_v16  ;;  %15554 = vmatprep.mubr.msk.bf16.mxu0 %vm8699_vm5, %v8664_v35  ;;  %v8601_v35 = vld [vmem:[%s17971_s20 + $0x3e8] sm:$0xff] }
 0x7e9   : > { %12140 = vrot.lane.b32.xlu0 %v15360_v31, %s16467_s30  ;;  %v18432_v55 = vpop.f32.mrf.mxu0 }
 0x7ea   : > { %v15361_v60 = vpop.f32.mrf.mxu1  ;;  %20069 = vst [vmem:[#allocation43_spill] sm:$0xff] %v18432_v55  ;;  %v8603_v55 = vld [vmem:[%s17971_s20 + $0x3f8] sm:$0xff] }
 0x7eb   : > { %12142 = vrot.lane.b32.xlu1 %v15361_v60, %s16467_s30  ;;  %v18436_v33 = vpop.f32.mrf.mxu0 }
 0x7ec   : > { %v8192_v29 = vpop.f32.mrf.mxu1  ;;  %15555 = vmatmul.mubr.msk.bf16.gmra.mxu0 %vm8699_vm5, %v8665_v22 }
 0x7ed   : > { %12136 = vrot.lane.b32.xlu0 %v8189_v59, %s16467_s30  ;;  %v18440_v26 = vpop.f32.mrf.mxu0 }
 0x7ee   : > { %v15364_v31 = vpop.f32.mrf.mxu1  ;;  %15607 = vmatmul.mubr.bf16.gmra.mxu1 %v17954_v19  ;;  %v8666_v19 = vpack.c.bf16 %v8601_v35, %v8600_v53 }
 0x7ef   : > { %12138 = vrot.lane.b32.xlu1 %v8192_v29, %s16467_s30  ;;  %15610 = vmatprep.mubr.bf16.mxu1 %v17958_v23  ;;  %v18447_v16 = vpop.f32.mrf.mxu0  ;;  %v8667_v23 = vpack.c.bf16 %v8603_v55, %v8602_v30 }
 0x7f0   : > { %v8205_v60 = vpop.f32.mrf.mxu1  ;;  %15558 = vmatprep.mubr.msk.bf16.mxu0 %vm8699_vm5, %v8666_v19 }
 0x7f1   : > { %12148 = vrot.lane.b32.xlu0 %v15364_v31, %s16467_s30  ;;  %v18452_v22 = vpop.f32.mrf.mxu0 }
 0x7f2   : > { %v15365_v59 = vpop.f32.mrf.mxu1 }
 0x7f3   : > { %12150 = vrot.lane.b32.xlu1 %v15365_v59, %s16467_s30  ;;  %v18456_v53 = vpop.f32.mrf.mxu0 }
 0x7f4   : > { %v8208_v29 = vpop.f32.mrf.mxu1  ;;  %15559 = vmatmul.mubr.msk.bf16.gmra.mxu0 %vm8699_vm5, %v8667_v23 }
 0x7f5   : > { %12144 = vrot.lane.b32.xlu0 %v8205_v60, %s16467_s30  ;;  %v18460_v35 = vpop.f32.mrf.mxu0 }
 0x7f6   : > { %v15368_v31 = vpop.f32.mrf.mxu1  ;;  %15611 = vmatmul.mubr.bf16.gmra.mxu1 %v17960_v51 }
 0x7f7   : > { %12146 = vrot.lane.b32.xlu1 %v8208_v29, %s16467_s30  ;;  %15614 = vmatprep.mubr.bf16.mxu1 %v17975_v9  ;;  %v18463_v51 = vpop.f32.mrf.mxu0 }
 0x7f8   : > { %v8221_v59 = vpop.f32.mrf.mxu1 }
 0x7f9   : > { %12156 = vrot.lane.b32.xlu0 %v15368_v31, %s16467_s30  ;;  %v18467_v9 = vpop.f32.mrf.mxu0 }
 0x7fa   : > { %v15369_v60 = vpop.f32.mrf.mxu1 }
 0x7fb   : > { %12158 = vrot.lane.b32.xlu1 %v15369_v60, %s16467_s30  ;;  %v18471_v29 = vpop.f32.mrf.mxu0 }
 0x7fc   : > { %v8224_v55 = vpop.f32.mrf.mxu1  ;;  %20070 = vst [vmem:[#allocation44_spill] sm:$0xff] %v18471_v29 }
 0x7fd   : > { %12152 = vrot.lane.b32.xlu0 %v8221_v59, %s16467_s30  ;;  %v18474_v31 = vpop.f32.mrf.mxu0 }
 0x7fe   : > { %v15372_v19 = vpop.f32.mrf.mxu1  ;;  %15615 = vmatmul.mubr.bf16.gmra.mxu1 %v17979_v25 }
 0x7ff   : > { %12154 = vrot.lane.b32.xlu1 %v8224_v55, %s16467_s30  ;;  %15618 = vmatprep.mubr.bf16.mxu1 %v17987_v7  ;;  %v18477_v60 = vpop.f32.mrf.mxu0 }
 0x800   : > { %v8237_v30 = vpop.f32.mrf.mxu1  ;;  %20071 = vst [vmem:[#allocation47_spill] sm:$0xff] %v18477_v60 }
 0x801   : > { %12164 = vrot.lane.b32.xlu0 %v15372_v19, %s16467_s30  ;;  %v18481_v55 = vpop.f32.mrf.mxu0 }
 0x802   : > { %v15373_v23 = vpop.f32.mrf.mxu1 }
 0x803   : > { %12166 = vrot.lane.b32.xlu1 %v15373_v23, %s16467_s30  ;;  %v18485_v19 = vpop.f32.mrf.mxu0 }
 0x804   : > { %v8240_v59 = vpop.f32.mrf.mxu1  ;;  %20072 = vst [vmem:[#allocation48_spill] sm:$0xff] %v18485_v19 }
 0x805   : > { %12160 = vrot.lane.b32.xlu0 %v8237_v30, %s16467_s30  ;;  %v18488_v29 = vpop.f32.mrf.mxu0 }
 0x806   : > { %v15376_v25 = vpop.f32.mrf.mxu1  ;;  %15619 = vmatmul.mubr.bf16.gmra.mxu1 %v17994_v56 }
 0x807   : > { %12162 = vrot.lane.b32.xlu1 %v8240_v59, %s16467_s30  ;;  %15622 = vmatprep.mubr.bf16.mxu1 %v18002_v44  ;;  %v18491_v60 = vpop.f32.mrf.mxu0 }
 0x808   : > { %v8253_v7 = vpop.f32.mrf.mxu1  ;;  %20073 = vst [vmem:[#allocation51_spill] sm:$0xff] %v18491_v60 }
 0x809   : > { %12172 = vrot.lane.b32.xlu0 %v15376_v25, %s16467_s30  ;;  %v18495_v59 = vpop.f32.mrf.mxu0 }
 0x80a   : > { %v15377_v23 = vpop.f32.mrf.mxu1 }
 0x80b   : > { %12174 = vrot.lane.b32.xlu1 %v15377_v23, %s16467_s30  ;;  %v18499_v25 = vpop.f32.mrf.mxu0 }
 0x80c   : > { %v8256_v30 = vpop.f32.mrf.mxu1  ;;  %20074 = vst [vmem:[#allocation52_spill] sm:$0xff] %v18499_v25 }
 0x80d   : > { %12168 = vrot.lane.b32.xlu0 %v8253_v7, %s16467_s30  ;;  %v18502_v19 = vpop.f32.mrf.mxu0 }
 0x80e   : > { %v15380_v56 = vpop.f32.mrf.mxu1  ;;  %15623 = vmatmul.mubr.bf16.gmra.mxu1 %v18006_v62 }
 0x80f   : > { %12170 = vrot.lane.b32.xlu1 %v8256_v30, %s16467_s30  ;;  %15626 = vmatprep.mubr.bf16.mxu1 %v18014_v18  ;;  %v18505_v60 = vpop.f32.mrf.mxu0 }
 0x810   : > { %v8269_v44 = vpop.f32.mrf.mxu1  ;;  %20075 = vst [vmem:[#allocation55_spill] sm:$0xff] %v18505_v60 }
 0x811   : > { %12180 = vrot.lane.b32.xlu0 %v15380_v56, %s16467_s30  ;;  %v18509_v30 = vpop.f32.mrf.mxu0 }
 0x812   : > { %v15381_v23 = vpop.f32.mrf.mxu1 }
 0x813   : > { %12182 = vrot.lane.b32.xlu1 %v15381_v23, %s16467_s30  ;;  %v18513_v56 = vpop.f32.mrf.mxu0 }
 0x814   : > { %v8272_v7 = vpop.f32.mrf.mxu1  ;;  %20076 = vst [vmem:[#allocation56_spill] sm:$0xff] %v18513_v56  ;;  %v18529_v56 = vpop.permute.xlu0 %12024 }
 0x815   : > { %12176 = vrot.lane.b32.xlu0 %v8269_v44, %s16467_s30  ;;  %v18516_v25 = vpop.f32.mrf.mxu0  ;;  %20079 = vst [vmem:[#allocation63_spill] sm:$0xff] %v18529_v56 }
 0x816   : > { %v15384_v62 = vpop.f32.mrf.mxu1  ;;  %15627 = vmatmul.mubr.bf16.gmra.mxu1 %v18018_v37 }
 0x817   : > { %12178 = vrot.lane.b32.xlu1 %v8272_v7, %s16467_s30  ;;  %15630 = vmatprep.mubr.bf16.mxu1 %v18029_v3  ;;  %v18519_v60 = vpop.f32.mrf.mxu0 }
 0x818   : > { %v8285_v18 = vpop.f32.mrf.mxu1  ;;  %20077 = vst [vmem:[#allocation59_spill] sm:$0xff] %v18519_v60  ;;  %v18543_v56 = vpop.permute.xlu0 %12026 }
 0x819   : > { %12188 = vrot.lane.b32.xlu0 %v15384_v62, %s16467_s30  ;;  %v18523_v7 = vpop.f32.mrf.mxu0  ;;  %20083 = vst [vmem:[#allocation9_spill] sm:$0xff] %v18543_v56 }
 0x81a   : > { %v15385_v23 = vpop.f32.mrf.mxu1 }
 0x81b   : > { %12190 = vrot.lane.b32.xlu1 %v15385_v23, %s16467_s30  ;;  %v18527_v62 = vpop.f32.mrf.mxu0 }
 0x81c   : > { %v8288_v44 = vpop.f32.mrf.mxu1  ;;  %20078 = vst [vmem:[#allocation60_spill] sm:$0xff] %v18527_v62  ;;  %v18541_v62 = vpop.permute.xlu1 %12028 }
 0x81d   : > { %12184 = vrot.lane.b32.xlu0 %v8285_v18, %s16467_s30  ;;  %v18532_v60 = vpop.f32.mrf.mxu0  ;;  %20082 = vst [vmem:[#allocation8_spill] sm:$0xff] %v18541_v62  ;;  %v18557_v56 = vpop.permute.xlu0 %12036 }
 0x81e   : > { %v15388_v37 = vpop.f32.mrf.mxu1  ;;  %15631 = vmatmul.mubr.bf16.gmra.mxu1 %v18033_v58  ;;  %20086 = vst [vmem:[#allocation14_spill] sm:$0xff] %v18557_v56 }
 0x81f   : > { %12186 = vrot.lane.b32.xlu1 %v8288_v44, %s16467_s30  ;;  %15634 = vmatprep.mubr.bf16.mxu1 %v18041_v1  ;;  %v18535_v58 = vpop.f32.mrf.mxu0 }
 0x820   : > { %v8301_v3 = vpop.f32.mrf.mxu1  ;;  %20080 = vst [vmem:[#allocation4_spill] sm:$0xff] %v18535_v58  ;;  %v18555_v62 = vpop.permute.xlu1 %12030 }
 0x821   : > { %12196 = vrot.lane.b32.xlu0 %v15388_v37, %s16467_s30  ;;  %v18539_v1 = vpop.f32.mrf.mxu0  ;;  %20085 = vst [vmem:[#allocation13_spill] sm:$0xff] %v18555_v62 }
 0x822   : > { %v15389_v23 = vpop.f32.mrf.mxu1  ;;  %20081 = vst [vmem:[#allocation5_spill] sm:$0xff] %v18539_v1 }
 0x823   : > { %12198 = vrot.lane.b32.xlu1 %v15389_v23, %s16467_s30  ;;  %v18547_v23 = vpop.f32.mrf.mxu0 }
 0x824   : > { %v8304_v18 = vpop.f32.mrf.mxu1  ;;  %20084 = vst [vmem:[#allocation10_spill] sm:$0xff] %v18547_v23  ;;  %v18567_v23 = vpop.permute.xlu1 %12038 }
 0x825   : > { %12192 = vrot.lane.b32.xlu0 %v8301_v3, %s16467_s30  ;;  %v18550_v3 = vpop.f32.mrf.mxu0  ;;  %20089 = vst [vmem:[#allocation21_spill] sm:$0xff] %v18567_v23 }
 0x826   : > { %v15392_v44 = vpop.f32.mrf.mxu1  ;;  %15635 = vmatmul.mubr.bf16.gmra.mxu1 %v18045_v11 }
 0x827   : > { %12194 = vrot.lane.b32.xlu1 %v8304_v18, %s16467_s30  ;;  %15638 = vmatprep.mubr.bf16.mxu1 %v18053_v38  ;;  %v18553_v1 = vpop.f32.mrf.mxu0 }
 0x828   : > { %v8317_v37 = vpop.f32.mrf.mxu1  ;;  %v18581_v23 = vpop.permute.xlu1 %12034 }
 0x829   : > { %12204 = vrot.lane.b32.xlu0 %v15392_v44, %s16467_s30  ;;  %v18561_v18 = vpop.f32.mrf.mxu0  ;;  %20092 = vst [vmem:[#allocation26_spill] sm:$0xff] %v18581_v23 }
 0x82a   : > { %v15393_v58 = vpop.f32.mrf.mxu1  ;;  %20087 = vst [vmem:[#allocation17_spill] sm:$0xff] %v18561_v18 }
 0x82b   : > { %12206 = vrot.lane.b32.xlu1 %v15393_v58, %s16467_s30  ;;  %v18565_v58 = vpop.f32.mrf.mxu0 }
 0x82c   : > { %v8320_v11 = vpop.f32.mrf.mxu1  ;;  %20088 = vst [vmem:[#allocation18_spill] sm:$0xff] %v18565_v58 }
 0x82d   : > { %12200 = vrot.lane.b32.xlu0 %v8317_v37, %s16467_s30  ;;  %v18570_v56 = vpop.f32.mrf.mxu0  ;;  %v18572_v37 = vpop.permute.xlu0 %12032 }
 0x82e   : > { %v15396_v38 = vpop.f32.mrf.mxu1  ;;  %15639 = vmatmul.mubr.bf16.gmra.mxu1 %v18057_v14  ;;  %20090 = vst [vmem:[#allocation22_spill] sm:$0xff] %v18572_v37 }
 0x82f   : > { %12202 = vrot.lane.b32.xlu1 %v8320_v11, %s16467_s30  ;;  %15642 = vmatprep.mubr.bf16.mxu1 %v18065_v6  ;;  %v18575_v18 = vpop.f32.mrf.mxu0 }
 0x830   : > { %v8333_v44 = vpop.f32.mrf.mxu1 }
 0x831   : > { %12212 = vrot.lane.b32.xlu0 %v15396_v38, %s16467_s30  ;;  %v18579_v11 = vpop.f32.mrf.mxu0 }
 0x832   : > { %v15397_v62 = vpop.f32.mrf.mxu1  ;;  %20091 = vst [vmem:[#allocation25_spill] sm:$0xff] %v18579_v11  ;;  %v18593_v11 = vpop.permute.xlu1 %12046 }
 0x833   : > { %12214 = vrot.lane.b32.xlu1 %v15397_v62, %s16467_s30  ;;  %v18585_v37 = vpop.f32.mrf.mxu0  ;;  %v18587_v62 = vpop.permute.xlu0 %12044  ;;  %20094 = vst [vmem:[#allocation30_spill] sm:$0xff] %v18593_v11 }
 0x834   : > { %v8336_v14 = vpop.f32.mrf.mxu1  ;;  %20093 = vst [vmem:[#allocation29_spill] sm:$0xff] %v18587_v62 }
 0x835   : > { %12208 = vrot.lane.b32.xlu0 %v8333_v44, %s16467_s30  ;;  %v18590_v44 = vpop.f32.mrf.mxu0 }
 0x836   : > { %v15400_v6 = vpop.f32.mrf.mxu1  ;;  %15643 = vmatmul.mubr.bf16.gmra.mxu1 %v18069_v42  ;;  %v18606_v11 = vpop.permute.xlu1 %12042 }
 0x837   : > { %12210 = vrot.lane.b32.xlu1 %v8336_v14, %s16467_s30  ;;  %15646 = vmatprep.mubr.bf16.mxu1 %v18077_v47  ;;  %v18597_v47 = vpop.f32.mrf.mxu0  ;;  %v18599_v23 = vpop.permute.xlu0 %12040  ;;  %20097 = vst [vmem:[#allocation37_spill] sm:$0xff] %v18606_v11 }
 0x838   : > { %v8349_v38 = vpop.f32.mrf.mxu1  ;;  %20095 = vst [vmem:[#allocation33_spill] sm:$0xff] %v18599_v23 }
 0x839   : > { %12220 = vrot.lane.b32.xlu0 %v15400_v6, %s16467_s30  ;;  %v18604_v62 = vpop.f32.mrf.mxu0 }
 0x83a   : > { %v15401_v58 = vpop.f32.mrf.mxu1  ;;  %20096 = vst [vmem:[#allocation34_spill] sm:$0xff] %v18604_v62 }
 0x83b   : > { %12222 = vrot.lane.b32.xlu1 %v15401_v58, %s16467_s30 }
 0x83c   : > { %v8352_v42 = vpop.f32.mrf.mxu1 }
 0x83d   : > { %12216 = vrot.lane.b32.xlu0 %v8349_v38, %s16467_s30 }
 0x83e   : > { %v15404_v14 = vpop.f32.mrf.mxu1  ;;  %15647 = vmatmul.mubr.bf16.gmra.mxu1 %v18081_v54  ;;  %v18609_v54 = vpop.permute.xlu0 %12052 }
 0x83f   : > { %12218 = vrot.lane.b32.xlu1 %v8352_v42, %s16467_s30  ;;  %15650 = vmatprep.mubr.bf16.mxu1 %v18089_v4  ;;  %20098 = vst [vmem:[#allocation38_spill] sm:$0xff] %v18609_v54  ;;  %v18613_v42 = vpop.f32.mrf.mxu0 }
 0x840   : > { %v8365_v6 = vpop.f32.mrf.mxu1  ;;  %20099 = vst [vmem:[#allocation41_spill] sm:$0xff] %v18613_v42 }
 0x841   : > { %12228 = vrot.lane.b32.xlu0 %v15404_v14, %s16467_s30  ;;  %v18617_v14 = vpop.permute.xlu1 %12054  ;;  %v18620_v11 = vpop.f32.mrf.mxu0 }
 0x842   : > { %v15405_v58 = vpop.f32.mrf.mxu1  ;;  %20100 = vst [vmem:[#allocation42_spill] sm:$0xff] %v18617_v14  ;;  %20101 = vst [vmem:[#allocation45_spill] sm:$0xff] %v18620_v11  ;;  %v18622_v54 = vpop.permute.xlu0 %12048  ;;  %v20138_v11 = vld [vmem:[#allocation19_spill] sm:$0xff] }
 0x843   : > { %12230 = vrot.lane.b32.xlu1 %v15405_v58, %s16467_s30  ;;  %20102 = vst [vmem:[#allocation46_spill] sm:$0xff] %v18622_v54 }
 0x844   : > { %v8368_v38 = vpop.f32.mrf.mxu1 }
 0x845   : > { %12224 = vrot.lane.b32.xlu0 %v8365_v6, %s16467_s30 }
 0x846   : > { %v15408_v23 = vpop.f32.mrf.mxu1  ;;  %15651 = vmatmul.mubr.bf16.gmra.mxu1 %v18096_v34  ;;  %v18633_v14 = vpop.permute.xlu0 %12060 }
 0x847   : > { %12226 = vrot.lane.b32.xlu1 %v8368_v38, %s16467_s30  ;;  %15654 = vmatprep.mubr.bf16.mxu1 %v18104_v15  ;;  %v18627_v38 = vpop.f32.mrf.mxu0  ;;  %v18629_v15 = vpop.permute.xlu1 %12050  ;;  %20105 = vst [vmem:[#allocation53_spill] sm:$0xff] %v18633_v14 }
 0x848   : > { %v8381_v4 = vpop.f32.mrf.mxu1  ;;  %20103 = vst [vmem:[#allocation49_spill] sm:$0xff] %v18627_v38  ;;  %20104 = vst [vmem:[#allocation50_spill] sm:$0xff] %v18629_v15 }
 0x849   : > { %12236 = vrot.lane.b32.xlu0 %v15408_v23, %s16467_s30  ;;  %v18636_v54 = vpop.f32.mrf.mxu0 }
 0x84a   : > { %v15409_v58 = vpop.f32.mrf.mxu1  ;;  %20106 = vst [vmem:[#allocation54_spill] sm:$0xff] %v18636_v54 }
 0x84b   : > { %12238 = vrot.lane.b32.xlu1 %v15409_v58, %s16467_s30 }
 0x84c   : > { %v8384_v6 = vpop.f32.mrf.mxu1 }
 0x84d   : > { %12232 = vrot.lane.b32.xlu0 %v8381_v4, %s16467_s30 }
 0x84e   : > { %v15412_v34 = vpop.f32.mrf.mxu1  ;;  %15655 = vmatmul.mubr.bf16.gmra.mxu1 %v18108_v27  ;;  %v18639_v27 = vpop.permute.xlu1 %12062 }
 0x84f   : > { %12234 = vrot.lane.b32.xlu1 %v8384_v6, %s16467_s30  ;;  %15658 = vmatprep.mubr.bf16.mxu1 %v18116_v61  ;;  %20107 = vst [vmem:[#allocation57_spill] sm:$0xff] %v18639_v27  ;;  %v18643_v6 = vpop.f32.mrf.mxu0  ;;  %v18645_v61 = vpop.permute.xlu0 %12056 }
 0x850   : > { %v8397_v23 = vpop.f32.mrf.mxu1  ;;  %20108 = vst [vmem:[#allocation58_spill] sm:$0xff] %v18643_v6  ;;  %20109 = vst [vmem:[#allocation61_spill] sm:$0xff] %v18645_v61 }
 0x851   : > { %12244 = vrot.lane.b32.xlu0 %v15412_v34, %s16467_s30  ;;  %v18650_v14 = vpop.f32.mrf.mxu0 }
 0x852   : > { %v15413_v58 = vpop.f32.mrf.mxu1  ;;  %20110 = vst [vmem:[#allocation62_spill] sm:$0xff] %v18650_v14  ;;  %v18652_v27 = vpop.permute.xlu1 %12058 }
 0x853   : > { %12246 = vrot.lane.b32.xlu1 %v15413_v58, %s16467_s30  ;;  %20111 = vst [vmem:[#allocation64_spill] sm:$0xff] %v18652_v27 }
 0x854   : > { %v8400_v4 = vpop.f32.mrf.mxu1 }
 0x855   : > { %12240 = vrot.lane.b32.xlu0 %v8397_v23, %s16467_s30 }
 0x856   : > { %v15416_v15 = vpop.f32.mrf.mxu1  ;;  %15659 = vmatmul.mubr.bf16.gmra.mxu1 %v18120_v12  ;;  %v18655_v12 = vpop.permute.xlu0 %12068 }
 0x857   : > { %12242 = vrot.lane.b32.xlu1 %v8400_v4, %s16467_s30  ;;  %15662 = vmatprep.mubr.bf16.mxu1 %v18128_v5  ;;  %20112 = vst [vmem:[#allocation65_spill] sm:$0xff] %v18655_v12  ;;  %v18659_v4 = vpop.f32.mrf.mxu0  ;;  %v20114_v5 = vld [vmem:[#allocation2_spill] sm:$0xff]  ;;  %v18663_v6 = vpop.permute.xlu1 %12070 }
 0x858   : > { %v8413_v34 = vpop.f32.mrf.mxu1  ;;  %20113 = vst [vmem:[#allocation66_spill] sm:$0xff] %v18659_v4  ;;  %20115 = vst [vmem:[#allocation2_spill] sm:$0xff] %v18663_v6  ;;  %v20118_v4 = vld [vmem:[#allocation3_spill] sm:$0xff] }
 0x859   : > { %12252 = vrot.lane.b32.xlu0 %v15416_v15, %s16467_s30  ;;  %v18666_v27 = vpop.f32.mrf.mxu0 }
 0x85a   : > { %v15417_v58 = vpop.f32.mrf.mxu1  ;;  %20116 = vst [vmem:[#allocation67_spill] sm:$0xff] %v18666_v27  ;;  %v18668_v12 = vpop.permute.xlu0 %12064 }
 0x85b   : > { %12254 = vrot.lane.b32.xlu1 %v15417_v58, %s16467_s30  ;;  %20117 = vst [vmem:[#allocation68_spill] sm:$0xff] %v18668_v12 }
 0x85c   : > { %v8416_v23 = vpop.f32.mrf.mxu1 }
 0x85d   : > { %12248 = vrot.lane.b32.xlu0 %v8413_v34, %s16467_s30 }
 0x85e   : > { %v15420_v61 = vpop.f32.mrf.mxu1  ;;  %15663 = vmatmul.mubr.bf16.gmra.mxu1 %v18132_v48  ;;  %v18679_v27 = vpop.permute.xlu0 %12076 }
 0x85f   : > { %12250 = vrot.lane.b32.xlu1 %v8416_v23, %s16467_s30  ;;  %15666 = vmatprep.mubr.bf16.mxu1 %v20114_v5  ;;  %v18673_v23 = vpop.f32.mrf.mxu0  ;;  %v18675_v5 = vpop.permute.xlu1 %12066 }
 0x860   : > { %v8429_v15 = vpop.f32.mrf.mxu1  ;;  %20119 = vst [vmem:[#allocation3_spill] sm:$0xff] %v18673_v23  ;;  %20120 = vst [vmem:[#allocation69_spill] sm:$0xff] %v18675_v5  ;;  %v20125_v23 = vld [vmem:[#allocation7_spill] sm:$0xff] }
 0x861   : > { %12260 = vrot.lane.b32.xlu0 %v15420_v61, %s16467_s30  ;;  %v20121_v61 = vld [vmem:[#allocation6_spill] sm:$0xff]  ;;  %v18682_v12 = vpop.f32.mrf.mxu0 }
 0x862   : > { %v15421_v58 = vpop.f32.mrf.mxu1  ;;  %20122 = vst [vmem:[#allocation6_spill] sm:$0xff] %v18679_v27  ;;  %20123 = vst [vmem:[#allocation70_spill] sm:$0xff] %v18682_v12 }
 0x863   : > { %12262 = vrot.lane.b32.xlu1 %v15421_v58, %s16467_s30 }
 0x864   : > { %v8432_v34 = vpop.f32.mrf.mxu1 }
 0x865   : > { %12256 = vrot.lane.b32.xlu0 %v8429_v15, %s16467_s30 }
 0x866   : > { %v15424_v48 = vpop.f32.mrf.mxu1  ;;  %15667 = vmatmul.mubr.bf16.gmra.mxu1 %v20118_v4  ;;  %v18685_v4 = vpop.permute.xlu1 %12078 }
 0x867   : > { %12258 = vrot.lane.b32.xlu1 %v8432_v34, %s16467_s30  ;;  %15670 = vmatprep.mubr.bf16.mxu1 %v20121_v61  ;;  %20124 = vst [vmem:[#allocation71_spill] sm:$0xff] %v18685_v4  ;;  %v18689_v34 = vpop.f32.mrf.mxu0  ;;  %v18691_v61 = vpop.permute.xlu0 %12072 }
 0x868   : > { %v8445_v6 = vpop.f32.mrf.mxu1  ;;  %20126 = vst [vmem:[#allocation7_spill] sm:$0xff] %v18689_v34  ;;  %20127 = vst [vmem:[#allocation72_spill] sm:$0xff] %v18691_v61  ;;  %v20132_v61 = vld [vmem:[#allocation12_spill] sm:$0xff] }
 0x869   : > { %12268 = vrot.lane.b32.xlu0 %v15424_v48, %s16467_s30  ;;  %v20128_v48 = vld [vmem:[#allocation11_spill] sm:$0xff]  ;;  %v18696_v12 = vpop.f32.mrf.mxu0 }
 0x86a   : > { %v15425_v58 = vpop.f32.mrf.mxu1  ;;  %20129 = vst [vmem:[#allocation11_spill] sm:$0xff] %v18696_v12  ;;  %v18698_v4 = vpop.permute.xlu1 %12074 }
 0x86b   : > { %12270 = vrot.lane.b32.xlu1 %v15425_v58, %s16467_s30  ;;  %20130 = vst [vmem:[#allocation73_spill] sm:$0xff] %v18698_v4  ;;  %v18700_v14 = vpop.permute.xlu0 %12084 }
 0x86c   : > { %v8448_v15 = vpop.f32.mrf.mxu1  ;;  %20131 = vst [vmem:[#allocation74_spill] sm:$0xff] %v18700_v14 }
 0x86d   : > { %12264 = vrot.lane.b32.xlu0 %v8445_v6, %s16467_s30 }
 0x86e   : > { %v15428_v5 = vpop.f32.mrf.mxu1  ;;  %15671 = vmatmul.mubr.bf16.gmra.mxu1 %v20125_v23  ;;  %v18708_v34 = vpop.permute.xlu1 %12086 }
 0x86f   : > { %12266 = vrot.lane.b32.xlu1 %v8448_v15, %s16467_s30  ;;  %15674 = vmatprep.mubr.bf16.mxu1 %v20128_v48  ;;  %v18705_v15 = vpop.f32.mrf.mxu0  ;;  %v20134_v48 = vld [vmem:[#allocation15_spill] sm:$0xff] }
 0x870   : > { %v8461_v27 = vpop.f32.mrf.mxu1  ;;  %20133 = vst [vmem:[#allocation12_spill] sm:$0xff] %v18705_v15  ;;  %20135 = vst [vmem:[#allocation15_spill] sm:$0xff] %v18708_v34 }
 0x871   : > { %12272 = vrot.lane.b32.xlu0 %v8461_v27, %s16467_s30  ;;  %v18711_v12 = vpop.f32.mrf.mxu0 }
 0x872   : > { %v15429_v58 = vpop.f32.mrf.mxu1  ;;  %20136 = vst [vmem:[#allocation75_spill] sm:$0xff] %v18711_v12 }
 0x873   : > { %v18718_v38 = vpop.f32.mrf.mxu0 }
 0x874   : > { %v8464_v6 = vpop.f32.mrf.mxu1 }
 0x875   : > { %12276 = vrot.lane.b32.xlu0 %v15428_v5, %s16467_s30  ;;  %12274 = vrot.lane.b32.xlu1 %v8464_v6, %s16467_s30 }
 0x876   : > { %v15580_v23 = vpop.f32.mrf.mxu1  ;;  %15675 = vmatmul.mubr.bf16.gmra.mxu1 %v20132_v61 }
 0x877   : > { %15678 = vmatprep.mubr.bf16.mxu1 %v20134_v48  ;;  %v9535_v6 = vadd.f32 %v15580_v23, %v18311_v10  ;;  %v20137_v48 = vld [vmem:[#allocation16_spill] sm:$0xff]  ;;  %v18721_v10 = vpop.f32.mrf.mxu0 }
 0x878   : > { %v9526_v27 = vpop.f32.mrf.mxu1 }
 0x879   : > { %12278 = vrot.lane.b32.xlu1 %v15429_v58, %s16467_s30  ;;  %v9527_v14 = vadd.f32 %v9526_v27, %v18315_v57  ;;  %v10039_v12 = vmax.f32 %v9535_v6, 0.0 }
 0x87a   : > { %v15581_v4 = vpop.f32.mrf.mxu1 }
 0x87b   : > { %v9538_v5 = vadd.f32 %v15581_v4, %v18319_v63  ;;  %v10037_v34 = vmax.f32 %v9527_v14, 0.0 }
 0x87c   : > { %v9529_v54 = vpop.f32.mrf.mxu1 }
 0x87d   : > { %v9530_v61 = vadd.f32 %v9529_v54, %v18329_v40  ;;  %v10040_v15 = vmax.f32 %v9538_v5, 0.0 }
 0x87e   : > { %v15584_v42 = vpop.f32.mrf.mxu1  ;;  %15679 = vmatmul.mubr.bf16.gmra.mxu1 %v20137_v48 }
 0x87f   : > { %v10038_v58 = vmax.f32 %v9530_v61, 0.0  ;;  %15682 = vmatprep.mubr.bf16.mxu1 %v20138_v11  ;;  %v10166_v63 = vpack.c.bf16 %v10040_v15, %v10039_v12  ;;  %v9551_v23 = vadd.f32 %v15584_v42, %v18336_v52  ;;  %v18730_v12 = vpop.f32.mrf.mxu0 }
 0x880   : > { %v9542_v62 = vpop.f32.mrf.mxu1 }
 0x881   : > { %v10165_v57 = vpack.c.bf16 %v10038_v58, %v10037_v34  ;;  %v9543_v40 = vadd.f32 %v9542_v62, %v18340_v21  ;;  %v20139_v34 = vld [vmem:[#allocation20_spill] sm:$0xff]  ;;  %v10043_v21 = vmax.f32 %v9551_v23, 0.0  ;;  %v18733_v42 = vpop.f32.mrf.mxu0 }
 0x882   : > { %v15585_v4 = vpop.f32.mrf.mxu1 }
 0x883   : > { %v9554_v54 = vadd.f32 %v15585_v4, %v18347_v46  ;;  %15714 = vmatprep.mubr.msk.bf16.mxu0 %vm10261_vm6, %v10165_v57  ;;  %v10041_v15 = vmax.f32 %v9543_v40, 0.0  ;;  %v20140_v40 = vld [vmem:[#allocation23_spill] sm:$0xff] }
 0x884   : > { %v9545_v14 = vpop.f32.mrf.mxu1  ;;  %15715 = vmatmul.mubr.msk.bf16.vlgmr.msra.gmra.mxu0 %vm10261_vm6, %v10166_v63 }
 0x885   : > { %v9546_v11 = vadd.f32 %v9545_v14, %v18352_v49  ;;  %v10044_v27 = vmax.f32 %v9554_v54, 0.0  ;;  %v18742_v54 = vpop.f32.mrf.mxu0 }
 0x886   : > { %v15588_v5 = vpop.f32.mrf.mxu1  ;;  %15683 = vmatmul.mubr.bf16.gmra.mxu1 %v20139_v34 }
 0x887   : > { %v10042_v6 = vmax.f32 %v9546_v11, 0.0  ;;  %15686 = vmatprep.mubr.bf16.mxu1 %v18212_v36  ;;  %v10168_v61 = vpack.c.bf16 %v10044_v27, %v10043_v21  ;;  %v9567_v58 = vadd.f32 %v15588_v5, %v18356_v24  ;;  %v18745_v5 = vpop.f32.mrf.mxu0 }
 0x888   : > { %v9558_v46 = vpop.f32.mrf.mxu1 }
 0x889   : > { %v10167_v62 = vpack.c.bf16 %v10042_v6, %v10041_v15  ;;  %v9559_v48 = vadd.f32 %v9558_v46, %v18360_v0  ;;  %v20141_v0 = vld [vmem:[#allocation24_spill] sm:$0xff] }
 0x88a   : > { %v15589_v52 = vpop.f32.mrf.mxu1 }
 0x88b   : > { %v9570_v49 = vadd.f32 %v15589_v52, %v18367_v39  ;;  %15718 = vmatprep.mubr.msk.bf16.mxu0 %vm10261_vm6, %v10167_v62  ;;  %v10045_v23 = vmax.f32 %v9559_v48, 0.0  ;;  %v10047_v39 = vmax.f32 %v9567_v58, 0.0  ;;  %v20142_v52 = vld [vmem:[#allocation27_spill] sm:$0xff]  ;;  %v18754_v48 = vpop.f32.mrf.mxu0 }
 0x88c   : > { %v9561_v57 = vpop.f32.mrf.mxu1  ;;  %15719 = vmatmul.mubr.msk.bf16.gmra.mxu0 %vm10261_vm6, %v10168_v61 }
 0x88d   : > { %v9562_v36 = vadd.f32 %v9561_v57, %v18372_v50  ;;  %v10048_v63 = vmax.f32 %v9570_v49, 0.0 }
 0x88e   : > { %v15592_v4 = vpop.f32.mrf.mxu1  ;;  %15687 = vmatmul.mubr.bf16.gmra.mxu1 %v20140_v40 }
 0x88f   : > { %v10046_v14 = vmax.f32 %v9562_v36, 0.0  ;;  %15690 = vmatprep.mubr.bf16.mxu1 %v20141_v0  ;;  %v10170_v34 = vpack.c.bf16 %v10048_v63, %v10047_v39  ;;  %v9583_v6 = vadd.f32 %v15592_v4, %v18376_v8  ;;  %v18757_v4 = vpop.f32.mrf.mxu0 }
 0x890   : > { %v9574_v11 = vpop.f32.mrf.mxu1 }
 0x891   : > { %v10169_v27 = vpack.c.bf16 %v10046_v14, %v10045_v23  ;;  %v9575_v15 = vadd.f32 %v9574_v11, %v18380_v13  ;;  %v20143_v13 = vld [vmem:[#allocation28_spill] sm:$0xff] }
 0x892   : > { %v15593_v24 = vpop.f32.mrf.mxu1 }
 0x893   : > { %v9586_v50 = vadd.f32 %v15593_v24, %v18387_v45  ;;  %15722 = vmatprep.mubr.msk.bf16.mxu0 %vm10261_vm6, %v10169_v27  ;;  %v10049_v49 = vmax.f32 %v9575_v15, 0.0  ;;  %v10051_v45 = vmax.f32 %v9583_v6, 0.0  ;;  %v20144_v27 = vld [vmem:[#allocation31_spill] sm:$0xff] }
 0x894   : > { %v9577_v21 = vpop.f32.mrf.mxu1  ;;  %15723 = vmatmul.mubr.msk.bf16.gmra.mxu0 %vm10261_vm6, %v10170_v34  ;;  %v18766_v34 = vpop.f32.mrf.mxu0 }
 0x895   : > { %v9578_v46 = vadd.f32 %v9577_v21, %v18392_v32  ;;  %v10052_v62 = vmax.f32 %v9586_v50, 0.0 }
 0x896   : > { %v15596_v61 = vpop.f32.mrf.mxu1  ;;  %15691 = vmatmul.mubr.bf16.gmra.mxu1 %v20142_v52  ;;  %v18769_v21 = vpop.f32.mrf.mxu0 }
 0x897   : > { %v10050_v58 = vmax.f32 %v9578_v46, 0.0  ;;  %15694 = vmatprep.mubr.bf16.mxu1 %v20143_v13  ;;  %v10172_v63 = vpack.c.bf16 %v10052_v62, %v10051_v45  ;;  %v9599_v23 = vadd.f32 %v15596_v61, %v18396_v20  ;;  %v20146_v61 = vld [vmem:[#allocation39_spill] sm:$0xff] }
 0x898   : > { %v9590_v57 = vpop.f32.mrf.mxu1 }
 0x899   : > { %v10171_v36 = vpack.c.bf16 %v10050_v58, %v10049_v49  ;;  %v9591_v40 = vadd.f32 %v9590_v57, %v18400_v28  ;;  %v10055_v28 = vmax.f32 %v9599_v23, 0.0  ;;  %v20147_v58 = vld [vmem:[#allocation43_spill] sm:$0xff]  ;;  %v20148_v57 = vld [vmem:[#allocation32_spill] sm:$0xff] }
 0x89a   : > { %v15597_v8 = vpop.f32.mrf.mxu1 }
 0x89b   : > { %v9602_v32 = vadd.f32 %v15597_v8, %v18407_v43  ;;  %15726 = vmatprep.mubr.msk.bf16.mxu0 %vm10261_vm6, %v10171_v36  ;;  %v10053_v24 = vmax.f32 %v9591_v40, 0.0  ;;  %v18778_v36 = vpop.f32.mrf.mxu0 }
 0x89c   : > { %v9593_v14 = vpop.f32.mrf.mxu1  ;;  %15727 = vmatmul.mubr.msk.bf16.gmra.mxu0 %vm10261_vm6, %v10172_v63 }
 0x89d   : > { %v9594_v0 = vadd.f32 %v9593_v14, %v18412_v17  ;;  %v10056_v39 = vmax.f32 %v9602_v32, 0.0  ;;  %v20145_v17 = vld [vmem:[#allocation40_spill] sm:$0xff] }
 0x89e   : > { %v15600_v11 = vpop.f32.mrf.mxu1  ;;  %15695 = vmatmul.mubr.bf16.gmra.mxu1 %v20144_v27 }
 0x89f   : > { %v10054_v15 = vmax.f32 %v9594_v0, 0.0  ;;  %15698 = vmatprep.mubr.bf16.mxu1 %v18260_v41  ;;  %v10174_v6 = vpack.c.bf16 %v10056_v39, %v10055_v28  ;;  %v9615_v52 = vadd.f32 %v15600_v11, %v20146_v61  ;;  %v18781_v39 = vpop.f32.mrf.mxu0 }
 0x8a0   : > { %v9606_v43 = vpop.f32.mrf.mxu1 }
 0x8a1   : > { %v10173_v50 = vpack.c.bf16 %v10054_v15, %v10053_v24  ;;  %v9607_v46 = vadd.f32 %v9606_v43, %v18420_v2  ;;  %v20149_v2 = vld [vmem:[#allocation35_spill] sm:$0xff]  ;;  %v10059_v40 = vmax.f32 %v9615_v52, 0.0 }
 0x8a2   : > { %v15601_v20 = vpop.f32.mrf.mxu1 }
 0x8a3   : > { %v9618_v62 = vadd.f32 %v15601_v20, %v20145_v17  ;;  %15730 = vmatprep.mubr.msk.bf16.mxu0 %vm10261_vm6, %v10173_v50  ;;  %v10057_v63 = vmax.f32 %v9607_v46, 0.0  ;;  %v18790_v20 = vpop.f32.mrf.mxu0 }
 0x8a4   : > { %v9609_v49 = vpop.f32.mrf.mxu1  ;;  %15731 = vmatmul.mubr.msk.bf16.gmra.mxu0 %vm10261_vm6, %v10174_v6  ;;  %v20150_v6 = vld [vmem:[#allocation36_spill] sm:$0xff] }
 0x8a5   : > { %v9610_v41 = vadd.f32 %v9609_v49, %v20147_v58  ;;  %v10060_v13 = vmax.f32 %v9618_v62, 0.0  ;;  %v18792_v49 = vpop.f32.mrf.mxu0 }
 0x8a6   : > { %v15604_v45 = vpop.f32.mrf.mxu1  ;;  %15699 = vmatmul.mubr.bf16.gmra.mxu1 %v20148_v57 }
 0x8a7   : > { %v10058_v8 = vmax.f32 %v9610_v41, 0.0  ;;  %15702 = vmatprep.mubr.bf16.mxu1 %v20149_v2  ;;  %v10176_v14 = vpack.c.bf16 %v10060_v13, %v10059_v40  ;;  %v9631_v24 = vadd.f32 %v15604_v45, %v18436_v33 }
 0x8a8   : > { %v9622_v32 = vpop.f32.mrf.mxu1 }
 0x8a9   : > { %v10175_v23 = vpack.c.bf16 %v10058_v8, %v10057_v63  ;;  %v9623_v11 = vadd.f32 %v9622_v32, %v18440_v26  ;;  %v10063_v26 = vmax.f32 %v9631_v24, 0.0  ;;  %v18800_v63 = vpop.f32.mrf.mxu0 }
 0x8aa   : > { %v15605_v0 = vpop.f32.mrf.mxu1 }
 0x8ab   : > { %v9634_v27 = vadd.f32 %v15605_v0, %v18447_v16  ;;  %15734 = vmatprep.mubr.msk.bf16.mxu0 %vm10261_vm6, %v10175_v23  ;;  %v10061_v46 = vmax.f32 %v9623_v11, 0.0  ;;  %v20151_v0 = vld [vmem:[#allocation47_spill] sm:$0xff] }
 0x8ac   : > { %v9625_v15 = vpop.f32.mrf.mxu1  ;;  %15735 = vmatmul.mubr.msk.bf16.gmra.mxu0 %vm10261_vm6, %v10176_v14  ;;  %v18802_v14 = vpop.f32.mrf.mxu0 }
 0x8ad   : > { %v9626_v28 = vadd.f32 %v9625_v15, %v18452_v22  ;;  %v10064_v43 = vmax.f32 %v9634_v27, 0.0 }
 0x8ae   : > { %v15608_v50 = vpop.f32.mrf.mxu1  ;;  %15703 = vmatmul.mubr.bf16.gmra.mxu1 %v20150_v6 }
 0x8af   : > { %v10062_v17 = vmax.f32 %v9626_v28, 0.0  ;;  %v10178_v61 = vpack.c.bf16 %v10064_v43, %v10063_v26  ;;  %v9647_v22 = vadd.f32 %v15608_v50, %v18456_v53  ;;  %v18810_v50 = vpop.f32.mrf.mxu0 }
 0x8b0   : > { %v9638_v62 = vpop.f32.mrf.mxu1 }
 0x8b1   : > { %v10177_v16 = vpack.c.bf16 %v10062_v17, %v10061_v46  ;;  %v9639_v33 = vadd.f32 %v9638_v62, %v18460_v35  ;;  %v10067_v40 = vmax.f32 %v9647_v22, 0.0 }
 0x8b2   : > { %v15609_v52 = vpop.f32.mrf.mxu1 }
 0x8b3   : > { %v9650_v58 = vadd.f32 %v15609_v52, %v18463_v51  ;;  %15738 = vmatprep.mubr.msk.bf16.mxu0 %vm10261_vm6, %v10177_v16  ;;  %v10065_v8 = vmax.f32 %v9639_v33, 0.0  ;;  %v20153_v33 = vld [vmem:[#allocation51_spill] sm:$0xff] }
 0x8b4   : > { %v9641_v41 = vpop.f32.mrf.mxu1  ;;  %15739 = vmatmul.mubr.msk.bf16.gmra.mxu0 %vm10261_vm6, %v10178_v61  ;;  %v18812_v61 = vpop.f32.mrf.mxu0 }
 0x8b5   : > { %v9642_v13 = vadd.f32 %v9641_v41, %v18467_v9  ;;  %v10068_v45 = vmax.f32 %v9650_v58, 0.0  ;;  %v20152_v9 = vld [vmem:[#allocation44_spill] sm:$0xff] }
 0x8b6   : > { %v15612_v57 = vpop.f32.mrf.mxu1 }
 0x8b7   : > { %v10066_v2 = vmax.f32 %v9642_v13, 0.0  ;;  %v10180_v23 = vpack.c.bf16 %v10068_v45, %v10067_v40  ;;  %v9663_v27 = vadd.f32 %v15612_v57, %v20152_v9 }
 0x8b8   : > { %v9654_v32 = vpop.f32.mrf.mxu1 }
 0x8b9   : > { %v10179_v35 = vpack.c.bf16 %v10066_v2, %v10065_v8  ;;  %v9655_v53 = vadd.f32 %v9654_v32, %v18474_v31  ;;  %v10071_v17 = vmax.f32 %v9663_v27, 0.0  ;;  %v18820_v8 = vpop.f32.mrf.mxu0 }
 0x8ba   : > { %v15613_v51 = vpop.f32.mrf.mxu1 }
 0x8bb   : > { %v9666_v11 = vadd.f32 %v15613_v51, %v20151_v0  ;;  %15742 = vmatprep.mubr.msk.bf16.mxu0 %vm10261_vm6, %v10179_v35  ;;  %v10069_v6 = vmax.f32 %v9655_v53, 0.0  ;;  %v18822_v53 = vpop.f32.mrf.mxu0 }
 0x8bc   : > { %v9657_v24 = vpop.f32.mrf.mxu1  ;;  %15743 = vmatmul.mubr.msk.bf16.gmra.mxu0 %vm10261_vm6, %v10180_v23 }
 0x8bd   : > { %v9658_v15 = vadd.f32 %v9657_v24, %v18481_v55  ;;  %v10072_v28 = vmax.f32 %v9666_v11, 0.0  ;;  %v20154_v55 = vld [vmem:[#allocation48_spill] sm:$0xff]  ;;  %v20155_v11 = vld [vmem:[#allocation55_spill] sm:$0xff] }
 0x8be   : > { %v15616_v43 = vpop.f32.mrf.mxu1 }
 0x8bf   : > { %v10070_v46 = vmax.f32 %v9658_v15, 0.0  ;;  %v10182_v62 = vpack.c.bf16 %v10072_v28, %v10071_v17  ;;  %v9679_v22 = vadd.f32 %v15616_v43, %v20154_v55 }
 0x8c0   : > { %v9670_v26 = vpop.f32.mrf.mxu1 }
 0x8c1   : > { %v10181_v31 = vpack.c.bf16 %v10070_v46, %v10069_v6  ;;  %v9671_v52 = vadd.f32 %v9670_v26, %v18488_v29  ;;  %v10075_v32 = vmax.f32 %v9679_v22, 0.0  ;;  %v18830_v6 = vpop.f32.mrf.mxu0 }
 0x8c2   : > { %v15617_v16 = vpop.f32.mrf.mxu1 }
 0x8c3   : > { %v9682_v58 = vadd.f32 %v15617_v16, %v20153_v33  ;;  %15746 = vmatprep.mubr.msk.bf16.mxu0 %vm10261_vm6, %v10181_v31  ;;  %v10073_v2 = vmax.f32 %v9671_v52, 0.0  ;;  %v18832_v52 = vpop.f32.mrf.mxu0 }
 0x8c4   : > { %v9673_v41 = vpop.f32.mrf.mxu1  ;;  %15747 = vmatmul.mubr.msk.bf16.gmra.mxu0 %vm10261_vm6, %v10182_v62 }
 0x8c5   : > { %v9674_v13 = vadd.f32 %v9673_v41, %v18495_v59  ;;  %v10076_v45 = vmax.f32 %v9682_v58, 0.0  ;;  %v20156_v59 = vld [vmem:[#allocation52_spill] sm:$0xff]  ;;  %v20157_v58 = vld [vmem:[#allocation59_spill] sm:$0xff] }
 0x8c6   : > { %v15620_v57 = vpop.f32.mrf.mxu1 }
 0x8c7   : > { %v10074_v40 = vmax.f32 %v9674_v13, 0.0  ;;  %v10184_v23 = vpack.c.bf16 %v10076_v45, %v10075_v32  ;;  %v9695_v27 = vadd.f32 %v15620_v57, %v20156_v59 }
 0x8c8   : > { %v9686_v35 = vpop.f32.mrf.mxu1 }
 0x8c9   : > { %v10183_v29 = vpack.c.bf16 %v10074_v40, %v10073_v2  ;;  %v9687_v0 = vadd.f32 %v9686_v35, %v18502_v19  ;;  %v10079_v26 = vmax.f32 %v9695_v27, 0.0  ;;  %v18840_v2 = vpop.f32.mrf.mxu0 }
 0x8ca   : > { %v15621_v51 = vpop.f32.mrf.mxu1 }
 0x8cb   : > { %v9698_v9 = vadd.f32 %v15621_v51, %v20155_v11  ;;  %15750 = vmatprep.mubr.msk.bf16.mxu0 %vm10261_vm6, %v10183_v29  ;;  %v10077_v46 = vmax.f32 %v9687_v0, 0.0  ;;  %v18842_v0 = vpop.f32.mrf.mxu0 }
 0x8cc   : > { %v9689_v24 = vpop.f32.mrf.mxu1  ;;  %15751 = vmatmul.mubr.msk.bf16.gmra.mxu0 %vm10261_vm6, %v10184_v23 }
 0x8cd   : > { %v9690_v15 = vadd.f32 %v9689_v24, %v18509_v30  ;;  %v10080_v28 = vmax.f32 %v9698_v9, 0.0  ;;  %v20158_v30 = vld [vmem:[#allocation56_spill] sm:$0xff] }
 0x8ce   : > { %v15624_v43 = vpop.f32.mrf.mxu1  ;;  %v20159_v9 = vld [vmem:[#allocation4_spill] sm:$0xff] }
 0x8cf   : > { %v10078_v17 = vmax.f32 %v9690_v15, 0.0  ;;  %v10186_v62 = vpack.c.bf16 %v10080_v28, %v10079_v26  ;;  %v9711_v22 = vadd.f32 %v15624_v43, %v20158_v30  ;;  %v20161_v15 = vld [vmem:[#allocation5_spill] sm:$0xff] }
 0x8d0   : > { %v9702_v31 = vpop.f32.mrf.mxu1 }
 0x8d1   : > { %v10185_v19 = vpack.c.bf16 %v10078_v17, %v10077_v46  ;;  %v9703_v33 = vadd.f32 %v9702_v31, %v18516_v25  ;;  %v10083_v35 = vmax.f32 %v9711_v22, 0.0  ;;  %v18850_v17 = vpop.f32.mrf.mxu0  ;;  %v20162_v22 = vld [vmem:[#allocation10_spill] sm:$0xff] }
 0x8d2   : > { %v15625_v16 = vpop.f32.mrf.mxu1 }
 0x8d3   : > { %v9714_v55 = vadd.f32 %v15625_v16, %v20157_v58  ;;  %15754 = vmatprep.mubr.msk.bf16.mxu0 %vm10261_vm6, %v10185_v19  ;;  %v10081_v40 = vmax.f32 %v9703_v33, 0.0  ;;  %v18852_v58 = vpop.f32.mrf.mxu0 }
 0x8d4   : > { %v9705_v41 = vpop.f32.mrf.mxu1  ;;  %15755 = vmatmul.mubr.msk.bf16.gmra.mxu0 %vm10261_vm6, %v10186_v62 }
 0x8d5   : > { %v9706_v13 = vadd.f32 %v9705_v41, %v18523_v7  ;;  %v10084_v45 = vmax.f32 %v9714_v55, 0.0  ;;  %v20160_v7 = vld [vmem:[#allocation60_spill] sm:$0xff] }
 0x8d6   : > { %v15628_v57 = vpop.f32.mrf.mxu1 }
 0x8d7   : > { %v10082_v32 = vmax.f32 %v9706_v13, 0.0  ;;  %v10188_v23 = vpack.c.bf16 %v10084_v45, %v10083_v35  ;;  %v9727_v27 = vadd.f32 %v15628_v57, %v20160_v7  ;;  %v20163_v45 = vld [vmem:[#allocation17_spill] sm:$0xff]  ;;  %v18860_v35 = vpop.f32.mrf.mxu0 }
 0x8d8   : > { %v9718_v29 = vpop.f32.mrf.mxu1 }
 0x8d9   : > { %v10187_v25 = vpack.c.bf16 %v10082_v32, %v10081_v40  ;;  %v9719_v11 = vadd.f32 %v9718_v29, %v18532_v60  ;;  %v10087_v19 = vmax.f32 %v9727_v27, 0.0  ;;  %v20164_v27 = vld [vmem:[#allocation18_spill] sm:$0xff] }
 0x8da   : > { %v15629_v51 = vpop.f32.mrf.mxu1 }
 0x8db   : > { %v9730_v59 = vadd.f32 %v15629_v51, %v20159_v9  ;;  %15758 = vmatprep.mubr.msk.bf16.mxu0 %vm10261_vm6, %v10187_v25  ;;  %v10085_v26 = vmax.f32 %v9719_v11, 0.0  ;;  %v18862_v9 = vpop.f32.mrf.mxu0 }
 0x8dc   : > { %v9721_v24 = vpop.f32.mrf.mxu1  ;;  %15759 = vmatmul.mubr.msk.bf16.gmra.mxu0 %vm10261_vm6, %v10188_v23 }
 0x8dd   : > { %v9722_v28 = vadd.f32 %v9721_v24, %v20161_v15  ;;  %v10088_v43 = vmax.f32 %v9730_v59, 0.0 }
 0x8de   : > { %v15632_v46 = vpop.f32.mrf.mxu1 }
 0x8df   : > { %v10086_v31 = vmax.f32 %v9722_v28, 0.0  ;;  %v10190_v16 = vpack.c.bf16 %v10088_v43, %v10087_v19  ;;  %v9743_v41 = vadd.f32 %v15632_v46, %v20162_v22  ;;  %v20165_v28 = vld [vmem:[#allocation25_spill] sm:$0xff] }
 0x8e0   : > { %v9734_v62 = vpop.f32.mrf.mxu1 }
 0x8e1   : > { %v10189_v60 = vpack.c.bf16 %v10086_v31, %v10085_v26  ;;  %v9735_v55 = vadd.f32 %v9734_v62, %v18550_v3  ;;  %v10091_v23 = vmax.f32 %v9743_v41, 0.0  ;;  %v18870_v31 = vpop.f32.mrf.mxu0 }
 0x8e2   : > { %v15633_v33 = vpop.f32.mrf.mxu1 }
 0x8e3   : > { %v9746_v30 = vadd.f32 %v15633_v33, %v18553_v1  ;;  %15762 = vmatprep.mubr.msk.bf16.mxu0 %vm10261_vm6, %v10189_v60  ;;  %v10089_v29 = vmax.f32 %v9735_v55, 0.0  ;;  %v18872_v55 = vpop.f32.mrf.mxu0 }
 0x8e4   : > { %v9737_v13 = vpop.f32.mrf.mxu1  ;;  %15763 = vmatmul.mubr.msk.bf16.gmra.mxu0 %vm10261_vm6, %v10190_v16 }
 0x8e5   : > { %v9738_v57 = vadd.f32 %v9737_v13, %v20163_v45  ;;  %v10092_v40 = vmax.f32 %v9746_v30, 0.0  ;;  %v20166_v45 = vld [vmem:[#allocation34_spill] sm:$0xff] }
 0x8e6   : > { %v15636_v32 = vpop.f32.mrf.mxu1 }
 0x8e7   : > { %v10090_v25 = vmax.f32 %v9738_v57, 0.0  ;;  %v10192_v11 = vpack.c.bf16 %v10092_v40, %v10091_v23  ;;  %v9759_v24 = vadd.f32 %v15636_v32, %v20164_v27 }
 0x8e8   : > { %v9750_v51 = vpop.f32.mrf.mxu1 }
 0x8e9   : > { %v10191_v3 = vpack.c.bf16 %v10090_v25, %v10089_v29  ;;  %v9751_v59 = vadd.f32 %v9750_v51, %v18570_v56  ;;  %v10095_v60 = vmax.f32 %v9759_v24, 0.0  ;;  %v18880_v29 = vpop.f32.mrf.mxu0  ;;  %v20169_v24 = vld [vmem:[#allocation41_spill] sm:$0xff] }
 0x8ea   : > { %v15637_v1 = vpop.f32.mrf.mxu1 }
 0x8eb   : > { %v9762_v7 = vadd.f32 %v15637_v1, %v18575_v18  ;;  %15766 = vmatprep.mubr.msk.bf16.mxu0 %vm10261_vm6, %v10191_v3  ;;  %v10093_v19 = vmax.f32 %v9751_v59, 0.0  ;;  %v18882_v1 = vpop.f32.mrf.mxu0  ;;  %v20167_v59 = vld [vmem:[#allocation45_spill] sm:$0xff] }
 0x8ec   : > { %v9753_v15 = vpop.f32.mrf.mxu1  ;;  %15767 = vmatmul.mubr.msk.bf16.gmra.mxu0 %vm10261_vm6, %v10192_v11 }
 0x8ed   : > { %v9754_v43 = vadd.f32 %v9753_v15, %v20165_v28  ;;  %v10096_v46 = vmax.f32 %v9762_v7, 0.0  ;;  %v20168_v7 = vld [vmem:[#allocation49_spill] sm:$0xff] }
 0x8ee   : > { %v15640_v26 = vpop.f32.mrf.mxu1 }
 0x8ef   : > { %v10094_v62 = vmax.f32 %v9754_v43, 0.0  ;;  %v10194_v33 = vpack.c.bf16 %v10096_v46, %v10095_v60  ;;  %v9775_v41 = vadd.f32 %v15640_v26, %v18585_v37  ;;  %v20170_v43 = vld [vmem:[#allocation54_spill] sm:$0xff] }
 0x8f0   : > { %v9766_v16 = vpop.f32.mrf.mxu1 }
 0x8f1   : > { %v10193_v56 = vpack.c.bf16 %v10094_v62, %v10093_v19  ;;  %v9767_v30 = vadd.f32 %v9766_v16, %v18590_v44  ;;  %v10099_v51 = vmax.f32 %v9775_v41, 0.0  ;;  %v18890_v62 = vpop.f32.mrf.mxu0 }
 0x8f2   : > { %v15641_v18 = vpop.f32.mrf.mxu1 }
 0x8f3   : > { %v9778_v22 = vadd.f32 %v15641_v18, %v18597_v47  ;;  %15770 = vmatprep.mubr.msk.bf16.mxu0 %vm10261_vm6, %v10193_v56  ;;  %v10097_v25 = vmax.f32 %v9767_v30, 0.0  ;;  %v18892_v41 = vpop.f32.mrf.mxu0 }
 0x8f4   : > { %v9769_v13 = vpop.f32.mrf.mxu1  ;;  %15771 = vmatmul.mubr.msk.bf16.gmra.mxu0 %vm10261_vm6, %v10194_v33 }
 0x8f5   : > { %v9770_v57 = vadd.f32 %v9769_v13, %v20166_v45  ;;  %v10100_v40 = vmax.f32 %v9778_v22, 0.0  ;;  %v20171_v13 = vld [vmem:[#allocation62_spill] sm:$0xff] }
 0x8f6   : > { %v15644_v32 = vpop.f32.mrf.mxu1 }
 0x8f7   : > { %v10098_v23 = vmax.f32 %v9770_v57, 0.0  ;;  %v10196_v11 = vpack.c.bf16 %v10100_v40, %v10099_v51  ;;  %v9791_v15 = vadd.f32 %v15644_v32, %v20169_v24  ;;  %v20172_v57 = vld [vmem:[#allocation66_spill] sm:$0xff]  ;;  %v20174_v51 = vld [vmem:[#allocation67_spill] sm:$0xff] }
 0x8f8   : > { %v9782_v3 = vpop.f32.mrf.mxu1  ;;  %v20173_v32 = vld [vmem:[#allocation58_spill] sm:$0xff] }
 0x8f9   : > { %v10195_v44 = vpack.c.bf16 %v10098_v23, %v10097_v25  ;;  %v9783_v37 = vadd.f32 %v9782_v3, %v20167_v59  ;;  %v10103_v56 = vmax.f32 %v9791_v15, 0.0 }
 0x8fa   : > { %v15645_v47 = vpop.f32.mrf.mxu1 }
 0x8fb   : > { %v9794_v27 = vadd.f32 %v15645_v47, %v20168_v7  ;;  %15774 = vmatprep.mubr.msk.bf16.mxu0 %vm10261_vm6, %v10195_v44  ;;  %v10101_v60 = vmax.f32 %v9783_v37, 0.0  ;;  %v18900_v47 = vpop.f32.mrf.mxu0 }
 0x8fc   : > { %v9785_v28 = vpop.f32.mrf.mxu1  ;;  %15775 = vmatmul.mubr.msk.bf16.gmra.mxu0 %vm10261_vm6, %v10196_v11 }
 0x8fd   : > { %v9786_v46 = vadd.f32 %v9785_v28, %v20170_v43  ;;  %v10104_v26 = vmax.f32 %v9794_v27, 0.0  ;;  %v18902_v43 = vpop.f32.mrf.mxu0 }
 0x8fe   : > { %v15648_v19 = vpop.f32.mrf.mxu1 }
 0x8ff   : > { %v10102_v16 = vmax.f32 %v9786_v46, 0.0  ;;  %v10198_v30 = vpack.c.bf16 %v10104_v26, %v10103_v56  ;;  %v9807_v25 = vadd.f32 %v15648_v19, %v20173_v32  ;;  %v20175_v46 = vld [vmem:[#allocation70_spill] sm:$0xff]  ;;  %v20176_v19 = vld [vmem:[#allocation7_spill] sm:$0xff] }
 0x900   : > { %v9798_v33 = vpop.f32.mrf.mxu1 }
 0x901   : > { %v10197_v18 = vpack.c.bf16 %v10102_v16, %v10101_v60  ;;  %v9799_v45 = vadd.f32 %v9798_v33, %v20171_v13  ;;  %v10107_v7 = vmax.f32 %v9807_v25, 0.0  ;;  %v20177_v16 = vld [vmem:[#allocation3_spill] sm:$0xff] }
 0x902   : > { %v15649_v22 = vpop.f32.mrf.mxu1 }
 0x903   : > { %v9810_v40 = vadd.f32 %v15649_v22, %v20172_v57  ;;  %15778 = vmatprep.mubr.msk.bf16.mxu0 %vm10261_vm6, %v10197_v18  ;;  %v10105_v59 = vmax.f32 %v9799_v45, 0.0  ;;  %v20178_v18 = vld [vmem:[#allocation11_spill] sm:$0xff]  ;;  %v18910_v45 = vpop.f32.mrf.mxu0 }
 0x904   : > { %v9801_v23 = vpop.f32.mrf.mxu1  ;;  %15779 = vmatmul.mubr.msk.bf16.gmra.mxu0 %vm10261_vm6, %v10198_v30 }
 0x905   : > { %v9802_v3 = vadd.f32 %v9801_v23, %v20174_v51  ;;  %v10108_v44 = vmax.f32 %v9810_v40, 0.0 }
 0x906   : > { %v15652_v11 = vpop.f32.mrf.mxu1 }
 0x907   : > { %v10106_v37 = vmax.f32 %v9802_v3, 0.0  ;;  %v10200_v15 = vpack.c.bf16 %v10108_v44, %v10107_v7  ;;  %v9823_v56 = vadd.f32 %v15652_v11, %v20177_v16  ;;  %v18912_v44 = vpop.f32.mrf.mxu0  ;;  %v20180_v7 = vld [vmem:[#allocation12_spill] sm:$0xff] }
 0x908   : > { %v9814_v27 = vpop.f32.mrf.mxu1 }
 0x909   : > { %v10199_v24 = vpack.c.bf16 %v10106_v37, %v10105_v59  ;;  %v9815_v26 = vadd.f32 %v9814_v27, %v20175_v46  ;;  %v10111_v32 = vmax.f32 %v9823_v56, 0.0  ;;  %v20179_v59 = vld [vmem:[#allocation75_spill] sm:$0xff] }
 0x90a   : > { %v15653_v28 = vpop.f32.mrf.mxu1 }
 0x90b   : > { %v9826_v60 = vadd.f32 %v15653_v28, %v20176_v19  ;;  %15782 = vmatprep.mubr.msk.bf16.mxu0 %vm10261_vm6, %v10199_v24  ;;  %v10109_v57 = vmax.f32 %v9815_v26, 0.0  ;;  %v18920_v26 = vpop.f32.mrf.mxu0 }
 0x90c   : > { %v9817_v33 = vpop.f32.mrf.mxu1  ;;  %15783 = vmatmul.mubr.msk.bf16.gmra.mxu0 %vm10261_vm6, %v10200_v15 }
 0x90d   : > { %v9818_v30 = vadd.f32 %v9817_v33, %v20178_v18  ;;  %v10112_v22 = vmax.f32 %v9826_v60, 0.0 }
 0x90e   : > { %v15656_v13 = vpop.f32.mrf.mxu1 }
 0x90f   : > { %v10110_v40 = vmax.f32 %v9818_v30, 0.0  ;;  %v10202_v51 = vpack.c.bf16 %v10112_v22, %v10111_v32  ;;  %v9839_v27 = vadd.f32 %v15656_v13, %v20180_v7  ;;  %v18922_v30 = vpop.f32.mrf.mxu0 }
 0x910   : > { %v9830_v25 = vpop.f32.mrf.mxu1 }
 0x911   : > { %v10201_v23 = vpack.c.bf16 %v10110_v40, %v10109_v57  ;;  %v9831_v11 = vadd.f32 %v9830_v25, %v20179_v59  ;;  %v10115_v16 = vmax.f32 %v9839_v27, 0.0 }
 0x912   : > { %v15657_v3 = vpop.f32.mrf.mxu1 }
 0x913   : > { %v9842_v37 = vadd.f32 %v15657_v3, %v18718_v38  ;;  %15786 = vmatprep.mubr.msk.bf16.mxu0 %vm10261_vm6, %v10201_v23  ;;  %v10113_v19 = vmax.f32 %v9831_v11, 0.0  ;;  %v18930_v23 = vpop.f32.mrf.mxu0 }
 0x914   : > { %v9833_v24 = vpop.f32.mrf.mxu1  ;;  %15787 = vmatmul.mubr.msk.bf16.gmra.mxu0 %vm10261_vm6, %v10202_v51 }
 0x915   : > { %v9834_v15 = vadd.f32 %v9833_v24, %v18721_v10  ;;  %v10116_v28 = vmax.f32 %v9842_v37, 0.0  ;;  %v18932_v7 = vpop.f32.mrf.mxu0 }
 0x916   : > { %v15660_v46 = vpop.f32.mrf.mxu1 }
 0x917   : > { %v10114_v60 = vmax.f32 %v9834_v15, 0.0  ;;  %v10204_v18 = vpack.c.bf16 %v10116_v28, %v10115_v16  ;;  %v9855_v10 = vadd.f32 %v15660_v46, %v18730_v12 }
 0x918   : > { %v9846_v56 = vpop.f32.mrf.mxu1 }
 0x919   : > { %v10203_v33 = vpack.c.bf16 %v10114_v60, %v10113_v19  ;;  %v9847_v22 = vadd.f32 %v9846_v56, %v18733_v42  ;;  %v10119_v59 = vmax.f32 %v9855_v10, 0.0  ;;  %v18940_v19 = vpop.f32.mrf.mxu0 }
 0x91a   : > { %v15661_v38 = vpop.f32.mrf.mxu1 }
 0x91b   : > { %v9858_v13 = vadd.f32 %v15661_v38, %v18742_v54  ;;  %15790 = vmatprep.mubr.msk.bf16.mxu0 %vm10261_vm6, %v10203_v33  ;;  %v10117_v51 = vmax.f32 %v9847_v22, 0.0  ;;  %v18942_v38 = vpop.f32.mrf.mxu0 }
 0x91c   : > { %v9849_v57 = vpop.f32.mrf.mxu1  ;;  %15791 = vmatmul.mubr.msk.bf16.gmra.mxu0 %vm10261_vm6, %v10204_v18 }
 0x91d   : > { %v9850_v40 = vadd.f32 %v9849_v57, %v18745_v5  ;;  %v10120_v32 = vmax.f32 %v9858_v13, 0.0 }
 0x91e   : > { %v15664_v25 = vpop.f32.mrf.mxu1 }
 0x91f   : > { %v10118_v3 = vmax.f32 %v9850_v40, 0.0  ;;  %v10206_v37 = vpack.c.bf16 %v10120_v32, %v10119_v59  ;;  %v9871_v5 = vadd.f32 %v15664_v25, %v18754_v48  ;;  %v18950_v32 = vpop.f32.mrf.mxu0 }
 0x920   : > { %v9862_v11 = vpop.f32.mrf.mxu1 }
 0x921   : > { %v10205_v42 = vpack.c.bf16 %v10118_v3, %v10117_v51  ;;  %v9863_v12 = vadd.f32 %v9862_v11, %v18757_v4  ;;  %v10123_v56 = vmax.f32 %v9871_v5, 0.0 }
 0x922   : > { %v15665_v54 = vpop.f32.mrf.mxu1 }
 0x923   : > { %v9874_v27 = vadd.f32 %v15665_v54, %v18766_v34  ;;  %15794 = vmatprep.mubr.msk.bf16.mxu0 %vm10261_vm6, %v10205_v42  ;;  %v10121_v60 = vmax.f32 %v9863_v12, 0.0  ;;  %v18952_v42 = vpop.f32.mrf.mxu0 }
 0x924   : > { %v9865_v24 = vpop.f32.mrf.mxu1  ;;  %15795 = vmatmul.mubr.msk.bf16.gmra.mxu0 %vm10261_vm6, %v10206_v37 }
 0x925   : > { %v9866_v15 = vadd.f32 %v9865_v24, %v18769_v21  ;;  %v10124_v28 = vmax.f32 %v9874_v27, 0.0  ;;  %v18960_v5 = vpop.f32.mrf.mxu0 }
 0x926   : > { %v15668_v46 = vpop.f32.mrf.mxu1 }
 0x927   : > { %v10122_v16 = vmax.f32 %v9866_v15, 0.0  ;;  %v10208_v18 = vpack.c.bf16 %v10124_v28, %v10123_v56  ;;  %v9887_v21 = vadd.f32 %v15668_v46, %v18778_v36 }
 0x928   : > { %v9878_v33 = vpop.f32.mrf.mxu1 }
 0x929   : > { %v10207_v4 = vpack.c.bf16 %v10122_v16, %v10121_v60  ;;  %v9879_v48 = vadd.f32 %v9878_v33, %v18781_v39  ;;  %v10127_v3 = vmax.f32 %v9887_v21, 0.0  ;;  %v18972_v21 = vpop.permute.xlu0 %12080 }
 0x92a   : > { %v15669_v34 = vpop.f32.mrf.mxu1 }
 0x92b   : > { %v9890_v22 = vadd.f32 %v15669_v34, %v18790_v20  ;;  %15798 = vmatprep.mubr.msk.bf16.mxu0 %vm10261_vm6, %v10207_v4  ;;  %v10125_v25 = vmax.f32 %v9879_v48, 0.0 }
 0x92c   : > { %v9881_v13 = vpop.f32.mrf.mxu1  ;;  %15799 = vmatmul.mubr.msk.bf16.gmra.mxu0 %vm10261_vm6, %v10208_v18 }
 0x92d   : > { %v9882_v10 = vadd.f32 %v9881_v13, %v18792_v49  ;;  %v10128_v57 = vmax.f32 %v9890_v22, 0.0 }
 0x92e   : > { %v15672_v40 = vpop.f32.mrf.mxu1 }
 0x92f   : > { %v10126_v51 = vmax.f32 %v9882_v10, 0.0  ;;  %v10210_v11 = vpack.c.bf16 %v10128_v57, %v10127_v3  ;;  %v9903_v49 = vadd.f32 %v15672_v40, %v18800_v63 }
 0x930   : > { %v9894_v59 = vpop.f32.mrf.mxu1 }
 0x931   : > { %v10209_v39 = vpack.c.bf16 %v10126_v51, %v10125_v25  ;;  %v9895_v36 = vadd.f32 %v9894_v59, %v18802_v14  ;;  %v10131_v46 = vmax.f32 %v9903_v49, 0.0 }
 0x932   : > { %v15673_v20 = vpop.f32.mrf.mxu1 }
 0x933   : > { %v9906_v37 = vadd.f32 %v15673_v20, %v18810_v50  ;;  %15802 = vmatprep.mubr.msk.bf16.mxu0 %vm10261_vm6, %v10209_v39  ;;  %v10129_v15 = vmax.f32 %v9895_v36, 0.0  ;;  %v18962_v50 = vpop.f32.mrf.mxu0  ;;  %v18983_v20 = vpop.permute.xlu0 %12092 }
 0x934   : > { %v9897_v54 = vpop.f32.mrf.mxu1  ;;  %15803 = vmatmul.mubr.msk.bf16.gmra.mxu0 %vm10261_vm6, %v10210_v11  ;;  %v18981_v11 = vpop.permute.xlu1 %12082 }
 0x935   : > { %v9898_v12 = vadd.f32 %v9897_v54, %v18812_v61  ;;  %v10132_v27 = vmax.f32 %v9906_v37, 0.0  ;;  %v18970_v34 = vpop.f32.mrf.mxu0 }
 0x936   : > { %v15676_v24 = vpop.f32.mrf.mxu1 }
 0x937   : > { %v10130_v28 = vmax.f32 %v9898_v12, 0.0  ;;  %v10212_v16 = vpack.c.bf16 %v10132_v27, %v10131_v46  ;;  %v9919_v61 = vadd.f32 %v15676_v24, %v18820_v8  ;;  %v18974_v25 = vpop.f32.mrf.mxu0 }
 0x938   : > { %v9910_v60 = vpop.f32.mrf.mxu1 }
 0x939   : > { %v10211_v14 = vpack.c.bf16 %v10130_v28, %v10129_v15  ;;  %v9911_v63 = vadd.f32 %v9910_v60, %v18822_v53  ;;  %v10135_v53 = vmax.f32 %v9919_v61, 0.0 }
 0x93a   : > { %v15677_v56 = vpop.f32.mrf.mxu1 }
 0x93b   : > { %v9922_v33 = vadd.f32 %v15677_v56, %v18830_v6  ;;  %15806 = vmatprep.mubr.msk.bf16.mxu0 %vm10261_vm6, %v10211_v14  ;;  %v10133_v13 = vmax.f32 %v9911_v63, 0.0  ;;  %v18986_v56 = vpop.permute.xlu1 %12094 }
 0x93c   : > { %v9913_v4 = vpop.f32.mrf.mxu1  ;;  %15807 = vmatmul.mubr.msk.bf16.gmra.mxu0 %vm10261_vm6, %v10212_v16 }
 0x93d   : > { %v9914_v18 = vadd.f32 %v9913_v4, %v18832_v52  ;;  %v10136_v48 = vmax.f32 %v9922_v33, 0.0 }
 0x93e   : > { %v15680_v22 = vpop.f32.mrf.mxu1 }
 0x93f   : > { %v10134_v10 = vmax.f32 %v9914_v18, 0.0  ;;  %v10214_v40 = vpack.c.bf16 %v10136_v48, %v10135_v53  ;;  %v9935_v52 = vadd.f32 %v15680_v22, %v18840_v2 }
 0x940   : > { %v9926_v57 = vpop.f32.mrf.mxu1 }
 0x941   : > { %v10213_v6 = vpack.c.bf16 %v10134_v10, %v10133_v13  ;;  %v9927_v51 = vadd.f32 %v9926_v57, %v18842_v0  ;;  %v10139_v27 = vmax.f32 %v9935_v52, 0.0 }
 0x942   : > { %v15681_v8 = vpop.f32.mrf.mxu1 }
 0x943   : > { %v9938_v3 = vadd.f32 %v15681_v8, %v18850_v17  ;;  %15810 = vmatprep.mubr.msk.bf16.mxu0 %vm10261_vm6, %v10213_v6  ;;  %v10137_v12 = vmax.f32 %v9927_v51, 0.0 }
 0x944   : > { %v9929_v59 = vpop.f32.mrf.mxu1  ;;  %v15716_v39 = vpop.f32.mrf.mxu0  ;;  %15811 = vmatmul.mubr.msk.bf16.gmra.mxu0 %vm10261_vm6, %v10214_v40 }
 0x945   : > { %v9930_v36 = vadd.f32 %v9929_v59, %v18852_v58  ;;  %v12960_v37 = vmul.f32 -1.442695, %v15716_v39  ;;  %v10140_v49 = vmax.f32 %v9938_v3, 0.0  ;;  %v18988_v58 = vpop.permute.xlu0 %12088  ;;  %v18996_v3 = vpop.permute.xlu1 %12090 }
 0x946   : > { %v15684_v54 = vpop.f32.mrf.mxu1  ;;  %v10488_v0 = vpop.f32.mrf.mxu0 }
 0x947   : > { %v10138_v17 = vmax.f32 %v9930_v36, 0.0  ;;  %15946 = vpow2.f32 %v12960_v37  ;;  %v12958_v24 = vmul.f32 -1.442695, %v10488_v0  ;;  %v10216_v60 = vpack.c.bf16 %v10140_v49, %v10139_v27 }
 0x948   : > { %v9942_v2 = vpop.f32.mrf.mxu1  ;;  %v15717_v15 = vpop.f32.mrf.mxu0  ;;  %v9951_v4 = vadd.f32 %v15684_v54, %v18860_v35 }
 0x949   : > { %v10215_v28 = vpack.c.bf16 %v10138_v17, %v10137_v12  ;;  %v12961_v46 = vmul.f32 -1.442695, %v15717_v15  ;;  %15948 = vpow2.f32 %v12958_v24  ;;  %v9943_v63 = vadd.f32 %v9942_v2, %v18862_v9  ;;  %v18998_v35 = vpop.permute.xlu0 %12100 }
 0x94a   : > { %v15685_v14 = vpop.f32.mrf.mxu1  ;;  %v10491_v16 = vpop.f32.mrf.mxu0 }
 0x94b   : > { %15950 = vpow2.f32 %v12961_v46  ;;  %v9954_v33 = vadd.f32 %v15685_v14, %v18870_v31  ;;  %v12959_v61 = vmul.f32 -1.442695, %v10491_v16  ;;  %15814 = vmatprep.mubr.msk.bf16.mxu0 %vm10261_vm6, %v10215_v28  ;;  %v10141_v9 = vmax.f32 %v9943_v63, 0.0 }
 0x94c   : > { %v9945_v18 = vpop.f32.mrf.mxu1  ;;  %v15720_v48 = vpop.f32.mrf.mxu0  ;;  %15815 = vmatmul.mubr.msk.bf16.gmra.mxu0 %vm10261_vm6, %v10216_v60  ;;  %v10143_v31 = vmax.f32 %v9951_v4, 0.0 }
 0x94d   : > { %15952 = vpow2.f32 %v12959_v61  ;;  %v9946_v22 = vadd.f32 %v9945_v18, %v18872_v55  ;;  %v12964_v13 = vmul.f32 -1.442695, %v15720_v48  ;;  %v10144_v10 = vmax.f32 %v9954_v33, 0.0  ;;  %v19008_v14 = vpop.permute.xlu0 %12096 }
 0x94e   : > { %v15688_v53 = vpop.f32.mrf.mxu1  ;;  %v10504_v57 = vpop.f32.mrf.mxu0 }
 0x94f   : > { %v10142_v6 = vmax.f32 %v9946_v22, 0.0  ;;  %15954 = vpow2.f32 %v12964_v13  ;;  %v12962_v40 = vmul.f32 -1.442695, %v10504_v57  ;;  %v10218_v39 = vpack.c.bf16 %v10144_v10, %v10143_v31 }
 0x950   : > { %v9958_v8 = vpop.f32.mrf.mxu1  ;;  %v15721_v51 = vpop.f32.mrf.mxu0  ;;  %v9967_v12 = vadd.f32 %v15688_v53, %v18880_v29 }
 0x951   : > { %v10217_v52 = vpack.c.bf16 %v10142_v6, %v10141_v9  ;;  %v12965_v59 = vmul.f32 -1.442695, %v15721_v51  ;;  %15956 = vpow2.f32 %v12962_v40  ;;  %v9959_v37 = vadd.f32 %v9958_v8, %v18882_v1 }
 0x952   : > { %v15689_v55 = vpop.f32.mrf.mxu1  ;;  %v10507_v36 = vpop.f32.mrf.mxu0  ;;  %v10147_v61 = vmax.f32 %v9967_v12, 0.0 }
 0x953   : > { %15958 = vpow2.f32 %v12965_v59  ;;  %v9970_v49 = vadd.f32 %v15689_v55, %v18890_v62  ;;  %v12963_v54 = vmul.f32 -1.442695, %v10507_v36  ;;  %15818 = vmatprep.mubr.msk.bf16.mxu0 %vm10261_vm6, %v10217_v52  ;;  %v19006_v62 = vpop.permute.xlu1 %12102  ;;  %v10145_v16 = vmax.f32 %v9959_v37, 0.0  ;;  %v19017_v36 = vpop.permute.xlu0 %12108 }
 0x954   : > { %v15947_v0 = vpop.eup %15946  ;;  %v9961_v17 = vpop.f32.mrf.mxu1  ;;  %15819 = vmatmul.mubr.msk.bf16.gmra.mxu0 %vm10261_vm6, %v10218_v39 }
 0x955   : > { %v15724_v27 = vpop.f32.mrf.mxu0  ;;  %v11385_v24 = vadd.f32 1.0, %v15947_v0  ;;  %15960 = vpow2.f32 %v12963_v54  ;;  %v9962_v2 = vadd.f32 %v9961_v17, %v18892_v41  ;;  %v10148_v15 = vmax.f32 %v9970_v49, 0.0 }
 0x956   : > { %v12968_v28 = vmul.f32 -1.442695, %v15724_v27  ;;  %v15692_v1 = vpop.f32.mrf.mxu1  ;;  %v15949_v60 = vpop.eup %15948 }
 0x957   : > { %v10520_v46 = vpop.f32.mrf.mxu0  ;;  %15962 = vrcp.f32 %v11385_v24  ;;  %v10146_v29 = vmax.f32 %v9962_v2, 0.0  ;;  %v11383_v33 = vadd.f32 1.0, %v15949_v60  ;;  %v10220_v10 = vpack.c.bf16 %v10148_v15, %v10147_v61  ;;  %v19015_v55 = vpop.permute.xlu1 %12098 }
 0x958   : > { %v15951_v63 = vpop.eup %15950  ;;  %15964 = vpow2.f32 %v12968_v28  ;;  %v12966_v4 = vmul.f32 -1.442695, %v10520_v46  ;;  %v9974_v18 = vpop.f32.mrf.mxu1  ;;  %v9983_v51 = vadd.f32 %v15692_v1, %v18900_v47 }
 0x959   : > { %v15725_v48 = vpop.f32.mrf.mxu0  ;;  %v11386_v41 = vadd.f32 1.0, %v15951_v63  ;;  %v10219_v22 = vpack.c.bf16 %v10146_v29, %v10145_v16  ;;  %15966 = vrcp.f32 %v11383_v33  ;;  %v9975_v31 = vadd.f32 %v9974_v18, %v18902_v43  ;;  %v19029_v18 = vpop.permute.xlu0 %12104 }
 0x95a   : > { %v15953_v13 = vpop.eup %15952  ;;  %v12969_v53 = vmul.f32 -1.442695, %v15725_v48  ;;  %v15693_v57 = vpop.f32.mrf.mxu1  ;;  %v10151_v2 = vmax.f32 %v9983_v51, 0.0 }
 0x95b   : > { %v10523_v9 = vpop.f32.mrf.mxu0  ;;  %15968 = vrcp.f32 %v11386_v41  ;;  %v11384_v6 = vadd.f32 1.0, %v15953_v13  ;;  %v9986_v40 = vadd.f32 %v15693_v57, %v18910_v45  ;;  %15822 = vmatprep.mubr.msk.bf16.mxu0 %vm10261_vm6, %v10219_v22  ;;  %v10149_v12 = vmax.f32 %v9975_v31, 0.0 }
 0x95c   : > { %v15955_v8 = vpop.eup %15954  ;;  %15970 = vpow2.f32 %v12966_v4  ;;  %v12967_v52 = vmul.f32 -1.442695, %v10523_v9  ;;  %v9977_v59 = vpop.f32.mrf.mxu1  ;;  %15823 = vmatmul.mubr.msk.bf16.gmra.mxu0 %vm10261_vm6, %v10220_v10 }
 0x95d   : > { %v15728_v39 = vpop.f32.mrf.mxu0  ;;  %15972 = vrcp.f32 %v11384_v6  ;;  %v11389_v37 = vadd.f32 1.0, %v15955_v8  ;;  %v9978_v43 = vadd.f32 %v9977_v59, %v18912_v44  ;;  %v10152_v45 = vmax.f32 %v9986_v40, 0.0  ;;  %v19027_v4 = vpop.permute.xlu1 %12110 }
 0x95e   : > { %15974 = vpow2.f32 %v12969_v53  ;;  %v12972_v49 = vmul.f32 -1.442695, %v15728_v39  ;;  %v15696_v54 = vpop.f32.mrf.mxu1  ;;  %v15957_v47 = vpop.eup %15956 }
 0x95f   : > { %v10536_v0 = vpop.f32.mrf.mxu0  ;;  %15976 = vrcp.f32 %v11389_v37  ;;  %v10150_v17 = vmax.f32 %v9978_v43, 0.0  ;;  %v11387_v24 = vadd.f32 1.0, %v15957_v47  ;;  %v10222_v16 = vpack.c.bf16 %v10152_v45, %v10151_v2  ;;  %v20182_v47 = vld [vmem:[#allocation63_spill] sm:$0xff] }
 0x960   : > { %v15959_v27 = vpop.eup %15958  ;;  %15978 = vpow2.f32 %v12967_v52  ;;  %v12970_v15 = vmul.f32 -1.442695, %v10536_v0  ;;  %v9990_v28 = vpop.f32.mrf.mxu1  ;;  %v9999_v10 = vadd.f32 %v15696_v54, %v18920_v26 }
 0x961   : > { %v15729_v1 = vpop.f32.mrf.mxu0  ;;  %v11390_v44 = vadd.f32 1.0, %v15959_v27  ;;  %v10221_v46 = vpack.c.bf16 %v10150_v17, %v10149_v12  ;;  %15980 = vpow2.f32 %v12972_v49  ;;  %v9991_v29 = vadd.f32 %v9990_v28, %v18922_v30  ;;  %v19043_v54 = vpop.permute.xlu1 %12106  ;;  %v20183_v27 = vld [vmem:[#allocation13_spill] sm:$0xff] }
 0x962   : > { %v15961_v60 = vpop.eup %15960  ;;  %15982 = vrcp.f32 %v11387_v24  ;;  %v12973_v63 = vmul.f32 -1.442695, %v15729_v1  ;;  %v15697_v33 = vpop.f32.mrf.mxu1 }
 0x963   : > { %v10539_v61 = vpop.f32.mrf.mxu0  ;;  %15984 = vrcp.f32 %v11390_v44  ;;  %v11388_v48 = vadd.f32 1.0, %v15961_v60  ;;  %v10002_v41 = vadd.f32 %v15697_v33, %v18930_v23  ;;  %15826 = vmatprep.mubr.msk.bf16.mxu0 %vm10261_vm6, %v10221_v46  ;;  %v20181_v23 = vld [vmem:[#allocation8_spill] sm:$0xff]  ;;  %v10153_v52 = vmax.f32 %v9991_v29, 0.0  ;;  %v19045_v0 = vpop.permute.xlu0 %12116 }
 0x964   : > { %v12971_v22 = vmul.f32 -1.442695, %v10539_v61  ;;  %v15963_v13 = vpop.eup %15962  ;;  %15986 = vpow2.f32 %v12970_v15  ;;  %v9993_v30 = vpop.f32.mrf.mxu1  ;;  %15827 = vmatmul.mubr.msk.bf16.gmra.mxu0 %vm10261_vm6, %v10222_v16 }
 0x965   : > { %v15732_v53 = vpop.f32.mrf.mxu0  ;;  %v15965_v57 = vpop.eup %15964  ;;  %11770 = vst.msk [vmem:[%s19024_s21 + $0x10] sm:$0xff] %vm11767_vm7, %v15963_v13  ;;  %15988 = vrcp.f32 %v11388_v48  ;;  %v9994_v9 = vadd.f32 %v9993_v30, %v18932_v7  ;;  %v10156_v40 = vmax.f32 %v10002_v41, 0.0  ;;  %v10155_v7 = vmax.f32 %v9999_v10, 0.0  ;;  %v20185_v13 = vld [vmem:[#allocation14_spill] sm:$0xff] }
 0x966   : > { %v12976_v6 = vmul.f32 -1.442695, %v15732_v53  ;;  %12411 = vst.msk [vmem:[%s19024_s21 + $0x10] sm:$0xff] %vm12408_vm8, %v20181_v23  ;;  %v11393_v31 = vadd.f32 1.0, %v15965_v57  ;;  %15990 = vpow2.f32 %v12973_v63  ;;  %v15700_v26 = vpop.f32.mrf.mxu1  ;;  %v15967_v51 = vpop.eup %15966  ;;  %v20184_v63 = vld [vmem:[#allocation9_spill] sm:$0xff] }
 0x967   : > { %v10552_v8 = vpop.f32.mrf.mxu0  ;;  %15992 = vpow2.f32 %v12971_v22  ;;  %v10154_v59 = vmax.f32 %v9994_v9, 0.0  ;;  %11768 = vst.msk [vmem:[%s19024_s21] sm:$0xff] %vm11767_vm7, %v15967_v51  ;;  %v10224_v2 = vpack.c.bf16 %v10156_v40, %v10155_v7  ;;  %v10015_v61 = vadd.f32 %v15700_v26, %v18940_v19  ;;  %v19073_v23 = vpop.permute.xlu0 %12112  ;;  %v20186_v7 = vld [vmem:[#allocation22_spill] sm:$0xff] }
 0x968   : > { %v15969_v39 = vpop.eup %15968  ;;  %15994 = vrcp.f32 %v11393_v31  ;;  %v12974_v37 = vmul.f32 -1.442695, %v10552_v8  ;;  %v10006_v43 = vpop.f32.mrf.mxu1  ;;  %12409 = vst.msk [vmem:[%s19024_s21] sm:$0xff] %vm12408_vm8, %v20182_v47 }
 0x969   : > { %v15733_v45 = vpop.f32.mrf.mxu0  ;;  %v15971_v49 = vpop.eup %15970  ;;  %11771 = vst.msk [vmem:[%s19024_s21 + $0x18] sm:$0xff] %vm11767_vm7, %v15969_v39  ;;  %v10223_v12 = vpack.c.bf16 %v10154_v59, %v10153_v52  ;;  %15996 = vpow2.f32 %v12976_v6  ;;  %v10007_v46 = vadd.f32 %v10006_v43, %v18942_v38  ;;  %v10159_v8 = vmax.f32 %v10015_v61, 0.0 }
 0x96a   : > { %v15973_v17 = vpop.eup %15972  ;;  %12412 = vst.msk [vmem:[%s19024_s21 + $0x18] sm:$0xff] %vm12408_vm8, %v20183_v27  ;;  %v11391_v24 = vadd.f32 1.0, %v15971_v49  ;;  %15998 = vpow2.f32 %v12974_v37  ;;  %v12977_v15 = vmul.f32 -1.442695, %v15733_v45  ;;  %v15701_v28 = vpop.f32.mrf.mxu1  ;;  %v20187_v49 = vld [vmem:[#allocation21_spill] sm:$0xff] }
 0x96b   : > { %v10555_v1 = vpop.f32.mrf.mxu0  ;;  %v15975_v44 = vpop.eup %15974  ;;  %11769 = vst.msk [vmem:[%s19024_s21 + $0x8] sm:$0xff] %vm11767_vm7, %v15973_v17  ;;  %v10018_v60 = vadd.f32 %v15701_v28, %v18950_v32  ;;  %15830 = vmatprep.mubr.msk.bf16.mxu0 %vm10261_vm6, %v10223_v12 }
 0x96c   : > { %v12975_v16 = vmul.f32 -1.442695, %v10555_v1  ;;  %v15977_v29 = vpop.eup %15976  ;;  %12410 = vst.msk [vmem:[%s19024_s21 + $0x8] sm:$0xff] %vm12408_vm8, %v20184_v63  ;;  %16000 = vrcp.f32 %v11391_v24  ;;  %v11394_v33 = vadd.f32 1.0, %v15975_v44  ;;  %v10009_v48 = vpop.f32.mrf.mxu1  ;;  %15831 = vmatmul.mubr.msk.bf16.gmra.mxu0 %vm10261_vm6, %v10224_v2  ;;  %v20188_v1 = vld [vmem:[#allocation26_spill] sm:$0xff] }
 0x96d   : > { %v15736_v41 = vpop.f32.mrf.mxu0  ;;  %v15979_v22 = vpop.eup %15978  ;;  %11774 = vst.msk [vmem:[%s19024_s21 + $0x30] sm:$0xff] %vm11767_vm7, %v15977_v29  ;;  %16002 = vpow2.f32 %v12977_v15  ;;  %v10010_v38 = vadd.f32 %v10009_v48, %v18952_v42  ;;  %v10160_v30 = vmax.f32 %v10018_v60, 0.0  ;;  %v10157_v42 = vmax.f32 %v10007_v46, 0.0 }
 0x96e   : > { %v15981_v32 = vpop.eup %15980  ;;  %12415 = vst.msk [vmem:[%s19024_s21 + $0x30] sm:$0xff] %vm12408_vm8, %v20185_v13  ;;  %16004 = vrcp.f32 %v11394_v33  ;;  %v11392_v10 = vadd.f32 1.0, %v15979_v22  ;;  %v12980_v53 = vmul.f32 -1.442695, %v15736_v41  ;;  %v15704_v19 = vpop.f32.mrf.mxu1 }
 0x96f   : > { %v10568_v57 = vpop.f32.mrf.mxu0  ;;  %v15983_v9 = vpop.eup %15982  ;;  %v11397_v31 = vadd.f32 1.0, %v15981_v32  ;;  %16006 = vpow2.f32 %v12975_v16  ;;  %v10158_v40 = vmax.f32 %v10010_v38, 0.0  ;;  %v10226_v12 = vpack.c.bf16 %v10160_v30, %v10159_v8  ;;  %v20189_v32 = vld [vmem:[#allocation29_spill] sm:$0xff] }
 0x970   : > { %v19071_v6 = vpop.permute.xlu1 %12118  ;;  %v15985_v26 = vpop.eup %15984  ;;  %11772 = vst.msk [vmem:[%s19024_s21 + $0x20] sm:$0xff] %vm11767_vm7, %v15983_v9  ;;  %16008 = vrcp.f32 %v11392_v10  ;;  %v12978_v51 = vmul.f32 -1.442695, %v10568_v57  ;;  %v10031_v46 = vadd.f32 %v15704_v19, %v18960_v5 }
 0x971   : > { %v10022_v52 = vpop.f32.mrf.mxu1  ;;  %v15737_v59 = vpop.f32.mrf.mxu0  ;;  %12413 = vst.msk [vmem:[%s19024_s21 + $0x20] sm:$0xff] %vm12408_vm8, %v20186_v7  ;;  %16010 = vrcp.f32 %v11397_v31  ;;  %v10225_v37 = vpack.c.bf16 %v10158_v40, %v10157_v42 }
 0x972   : > { %v15987_v39 = vpop.eup %15986  ;;  %11775 = vst.msk [vmem:[%s19024_s21 + $0x38] sm:$0xff] %vm11767_vm7, %v15985_v26  ;;  %v12981_v43 = vmul.f32 -1.442695, %v15737_v59  ;;  %16012 = vpow2.f32 %v12980_v53  ;;  %v10023_v17 = vadd.f32 %v10022_v52, %v18962_v50  ;;  %v19095_v63 = vpop.permute.xlu0 %12124  ;;  %v20190_v59 = vld [vmem:[#allocation33_spill] sm:$0xff] }
 0x973   : > { %v15989_v45 = vpop.eup %15988  ;;  %12416 = vst.msk [vmem:[%s19024_s21 + $0x38] sm:$0xff] %vm12408_vm8, %v20187_v49  ;;  %v11395_v47 = vadd.f32 1.0, %v15987_v39  ;;  %v15705_v27 = vpop.f32.mrf.mxu1  ;;  %16014 = vpow2.f32 %v12978_v51  ;;  %15834 = vmatprep.mubr.msk.bf16.mxu0 %vm10261_vm6, %v10225_v37 }
 0x974   : > { %v10571_v24 = vpop.f32.mrf.mxu0  ;;  %v15991_v2 = vpop.eup %15990  ;;  %11773 = vst.msk [vmem:[%s19024_s21 + $0x28] sm:$0xff] %vm11767_vm7, %v15989_v45  ;;  %v10034_v15 = vadd.f32 %v15705_v27, %v18970_v34  ;;  %15835 = vmatmul.mubr.msk.bf16.gmra.mxu0 %vm10261_vm6, %v10226_v12  ;;  %v10161_v5 = vmax.f32 %v10023_v17, 0.0 }
 0x975   : > { %v15993_v28 = vpop.eup %15992  ;;  %12414 = vst.msk [vmem:[%s19024_s21 + $0x28] sm:$0xff] %vm12408_vm8, %v20188_v1  ;;  %16016 = vrcp.f32 %v11395_v47  ;;  %v11398_v44 = vadd.f32 1.0, %v15991_v2  ;;  %v12979_v50 = vmul.f32 -1.442695, %v10571_v24  ;;  %v10025_v60 = vpop.f32.mrf.mxu1  ;;  %v20191_v47 = vld [vmem:[#allocation30_spill] sm:$0xff] }
 0x976   : > { %v15740_v16 = vpop.f32.mrf.mxu0  ;;  %v15995_v29 = vpop.eup %15994  ;;  %v11396_v34 = vadd.f32 1.0, %v15993_v28  ;;  %16018 = vpow2.f32 %v12981_v43  ;;  %v10026_v33 = vadd.f32 %v10025_v60, %v18974_v25  ;;  %v10164_v41 = vmax.f32 %v10034_v15, 0.0  ;;  %v20192_v15 = vld [vmem:[#allocation37_spill] sm:$0xff]  ;;  %v20193_v1 = vld [vmem:[#allocation38_spill] sm:$0xff] }
 0x977   : > { %v15997_v61 = vpop.eup %15996  ;;  %v19098_v48 = vpop.permute.xlu1 %12114  ;;  %11778 = vst.msk [vmem:[%s19024_s21 + $0x50] sm:$0xff] %vm11767_vm7, %v15995_v29  ;;  %16020 = vrcp.f32 %v11398_v44  ;;  %v12984_v30 = vmul.f32 -1.442695, %v15740_v16  ;;  %v10163_v25 = vmax.f32 %v10031_v46, 0.0 }
 0x978   : > { %v10584_v22 = vpop.f32.mrf.mxu0  ;;  %v15999_v38 = vpop.eup %15998  ;;  %12419 = vst.msk [vmem:[%s19024_s21 + $0x50] sm:$0xff] %vm12408_vm8, %v20189_v32  ;;  %16022 = vrcp.f32 %v11396_v34  ;;  %v11401_v13 = vadd.f32 1.0, %v15997_v61  ;;  %v10162_v10 = vmax.f32 %v10026_v33, 0.0 }
 0x979   : > { %v11399_v53 = vadd.f32 1.0, %v15999_v38  ;;  %16024 = vpow2.f32 %v12979_v50  ;;  %v12982_v19 = vmul.f32 -1.442695, %v10584_v22  ;;  %v16001_v9 = vpop.eup %16000  ;;  %v10228_v40 = vpack.c.bf16 %v10164_v41, %v10163_v25  ;;  %v19107_v52 = vpop.permute.xlu0 %12120  ;;  %v20194_v22 = vld [vmem:[#allocation46_spill] sm:$0xff] }
 0x97a   : > { %v15741_v57 = vpop.f32.mrf.mxu0  ;;  %16026 = vrcp.f32 %v11401_v13  ;;  %v10227_v31 = vpack.c.bf16 %v10162_v10, %v10161_v5  ;;  %v16003_v42 = vpop.eup %16002  ;;  %11776 = vst.msk [vmem:[%s19024_s21 + $0x40] sm:$0xff] %vm11767_vm7, %v16001_v9 }
 0x97b   : > { %16028 = vrcp.f32 %v11399_v53  ;;  %v12985_v26 = vmul.f32 -1.442695, %v15741_v57  ;;  %v16005_v51 = vpop.eup %16004  ;;  %12417 = vst.msk [vmem:[%s19024_s21 + $0x40] sm:$0xff] %vm12408_vm8, %v20190_v59  ;;  %v11402_v39 = vadd.f32 1.0, %v16003_v42  ;;  %v19113_v37 = vpop.permute.xlu1 %12126  ;;  %v20195_v53 = vld [vmem:[#allocation42_spill] sm:$0xff]  ;;  %v20197_v59 = vld [vmem:[#allocation53_spill] sm:$0xff] }
 0x97c   : > { %v10587_v8 = vpop.f32.mrf.mxu0  ;;  %16030 = vpow2.f32 %v12984_v30  ;;  %15838 = vmatprep.mubr.msk.bf16.mxu0 %vm10261_vm6, %v10227_v31  ;;  %v16007_v7 = vpop.eup %16006  ;;  %11779 = vst.msk [vmem:[%s19024_s21 + $0x58] sm:$0xff] %vm11767_vm7, %v16005_v51  ;;  %v20196_v57 = vld [vmem:[#allocation50_spill] sm:$0xff] }
 0x97d   : > { %16032 = vpow2.f32 %v12982_v19  ;;  %v12983_v43 = vmul.f32 -1.442695, %v10587_v8  ;;  %15839 = vmatmul.mubr.msk.bf16.gmra.mxu0 %vm10261_vm6, %v10228_v40  ;;  %v16009_v49 = vpop.eup %16008  ;;  %12420 = vst.msk [vmem:[%s19024_s21 + $0x58] sm:$0xff] %vm12408_vm8, %v20191_v47  ;;  %v11400_v12 = vadd.f32 1.0, %v16007_v7  ;;  %v19131_v16 = vpop.permute.xlu0 %12132 }
 0x97e   : > { %v15744_v45 = vpop.f32.mrf.mxu0  ;;  %16034 = vrcp.f32 %v11402_v39  ;;  %v16011_v27 = vpop.eup %16010  ;;  %11777 = vst.msk [vmem:[%s19024_s21 + $0x48] sm:$0xff] %vm11767_vm7, %v16009_v49 }
 0x97f   : > { %v12988_v17 = vmul.f32 -1.442695, %v15744_v45  ;;  %16036 = vpow2.f32 %v12985_v26  ;;  %v16013_v2 = vpop.eup %16012  ;;  %12418 = vst.msk [vmem:[%s19024_s21 + $0x48] sm:$0xff] %vm12408_vm8, %v20192_v15  ;;  %v19133_v33 = vpop.permute.xlu1 %12122  ;;  %v20199_v15 = vld [vmem:[#allocation57_spill] sm:$0xff] }
 0x980   : > { %v10600_v24 = vpop.f32.mrf.mxu0  ;;  %11782 = vst.msk [vmem:[%s19024_s21 + $0x70] sm:$0xff] %vm11767_vm7, %v16011_v27  ;;  %16038 = vrcp.f32 %v11400_v12  ;;  %v16015_v28 = vpop.eup %16014  ;;  %v11405_v44 = vadd.f32 1.0, %v16013_v2 }
 0x981   : > { %12423 = vst.msk [vmem:[%s19024_s21 + $0x70] sm:$0xff] %vm12408_vm8, %v20193_v1  ;;  %16040 = vpow2.f32 %v12983_v43  ;;  %v12986_v46 = vmul.f32 -1.442695, %v10600_v24  ;;  %v11403_v29 = vadd.f32 1.0, %v16015_v28  ;;  %v19150_v40 = vpop.permute.xlu0 %12128  ;;  %v20198_v43 = vld [vmem:[#allocation61_spill] sm:$0xff] }
 0x982   : > { %v15745_v50 = vpop.f32.mrf.mxu0  ;;  %v16017_v60 = vpop.eup %16016  ;;  %16042 = vpow2.f32 %v12988_v17 }
 0x983   : > { %v16019_v34 = vpop.eup %16018  ;;  %11780 = vst.msk [vmem:[%s19024_s21 + $0x60] sm:$0xff] %vm11767_vm7, %v16017_v60  ;;  %16044 = vrcp.f32 %v11405_v44  ;;  %v12989_v61 = vmul.f32 -1.442695, %v15745_v50  ;;  %v19154_v51 = vpop.permute.xlu1 %12134 }
 0x984   : > { %v10603_v5 = vpop.f32.mrf.mxu0  ;;  %v16021_v41 = vpop.eup %16020  ;;  %12421 = vst.msk [vmem:[%s19024_s21 + $0x60] sm:$0xff] %vm12408_vm8, %v20194_v22  ;;  %16046 = vrcp.f32 %v11403_v29  ;;  %v11406_v38 = vadd.f32 1.0, %v16019_v34  ;;  %v20200_v29 = vld [vmem:[#allocation64_spill] sm:$0xff] }
 0x985   : > { %v12987_v32 = vmul.f32 -1.442695, %v10603_v5  ;;  %v16023_v13 = vpop.eup %16022  ;;  %11783 = vst.msk [vmem:[%s19024_s21 + $0x78] sm:$0xff] %vm11767_vm7, %v16021_v41  ;;  %16048 = vpow2.f32 %v12986_v46  ;;  %v19169_v46 = vpop.permute.xlu0 %12140 }
 0x986   : > { %v15748_v10 = vpop.f32.mrf.mxu0  ;;  %v16025_v30 = vpop.eup %16024  ;;  %12424 = vst.msk [vmem:[%s19024_s21 + $0x78] sm:$0xff] %vm12408_vm8, %v20195_v53  ;;  %16050 = vrcp.f32 %v11406_v38 }
 0x987   : > { %11781 = vst.msk [vmem:[%s19024_s21 + $0x68] sm:$0xff] %vm11767_vm7, %v16023_v13  ;;  %v12992_v25 = vmul.f32 -1.442695, %v15748_v10  ;;  %v16027_v19 = vpop.eup %16026  ;;  %v11404_v9 = vadd.f32 1.0, %v16025_v30  ;;  %16052 = vpow2.f32 %v12989_v61  ;;  %v19173_v60 = vpop.permute.xlu1 %12130  ;;  %v20201_v30 = vld [vmem:[#allocation65_spill] sm:$0xff] }
 0x988   : > { %12422 = vst.msk [vmem:[%s19024_s21 + $0x68] sm:$0xff] %vm12408_vm8, %v20196_v57  ;;  %v10616_v31 = vpop.f32.mrf.mxu0  ;;  %v16029_v42 = vpop.eup %16028  ;;  %16054 = vpow2.f32 %v12987_v32 }
 0x989   : > { %11786 = vst.msk [vmem:[%s19024_s21 + $0x90] sm:$0xff] %vm11767_vm7, %v16027_v19  ;;  %v12990_v26 = vmul.f32 -1.442695, %v10616_v31  ;;  %v16031_v8 = vpop.eup %16030  ;;  %11784 = vst.msk [vmem:[%s19024_s21 + $0x80] sm:$0xff] %vm11767_vm7, %v16029_v42  ;;  %16056 = vrcp.f32 %v11404_v9  ;;  %v20202_v19 = vld [vmem:[#allocation68_spill] sm:$0xff]  ;;  %v19188_v42 = vpop.permute.xlu0 %12136 }
 0x98a   : > { %12427 = vst.msk [vmem:[%s19024_s21 + $0x90] sm:$0xff] %vm12408_vm8, %v20197_v59  ;;  %v15749_v39 = vpop.f32.mrf.mxu0  ;;  %v16033_v7 = vpop.eup %16032  ;;  %12425 = vst.msk [vmem:[%s19024_s21 + $0x80] sm:$0xff] %vm12408_vm8, %v20198_v43  ;;  %v11409_v45 = vadd.f32 1.0, %v16031_v8  ;;  %16058 = vpow2.f32 %v12992_v25  ;;  %v20203_v59 = vld [vmem:[#allocation2_spill] sm:$0xff] }
 0x98b   : > { %v12993_v49 = vmul.f32 -1.442695, %v15749_v39  ;;  %v16035_v47 = vpop.eup %16034  ;;  %v11407_v12 = vadd.f32 1.0, %v16033_v7  ;;  %16060 = vpow2.f32 %v12990_v26  ;;  %v19192_v8 = vpop.permute.xlu1 %12142 }
 0x98c   : > { %v10619_v17 = vpop.f32.mrf.mxu0  ;;  %v16037_v27 = vpop.eup %16036  ;;  %11787 = vst.msk [vmem:[%s19024_s21 + $0x98] sm:$0xff] %vm11767_vm7, %v16035_v47  ;;  %16062 = vrcp.f32 %v11409_v45 }
 0x98d   : > { %v12991_v24 = vmul.f32 -1.442695, %v10619_v17  ;;  %v16039_v2 = vpop.eup %16038  ;;  %12428 = vst.msk [vmem:[%s19024_s21 + $0x98] sm:$0xff] %vm12408_vm8, %v20199_v15  ;;  %16064 = vrcp.f32 %v11407_v12  ;;  %v11410_v28 = vadd.f32 1.0, %v16037_v27  ;;  %v20204_v27 = vld [vmem:[#allocation69_spill] sm:$0xff] }
 0x98e   : > { %v15752_v1 = vpop.f32.mrf.mxu0  ;;  %v16041_v44 = vpop.eup %16040  ;;  %11785 = vst.msk [vmem:[%s19024_s21 + $0x88] sm:$0xff] %vm11767_vm7, %v16039_v2  ;;  %16066 = vpow2.f32 %v12993_v49 }
 0x98f   : > { %v16043_v50 = vpop.eup %16042  ;;  %12426 = vst.msk [vmem:[%s19024_s21 + $0x88] sm:$0xff] %vm12408_vm8, %v20200_v29  ;;  %16068 = vrcp.f32 %v11410_v28  ;;  %v11408_v34 = vadd.f32 1.0, %v16041_v44  ;;  %v12996_v61 = vmul.f32 -1.442695, %v15752_v1  ;;  %v19202_v29 = vpop.permute.xlu0 %12148 }
 0x990   : > { %v10632_v5 = vpop.f32.mrf.mxu0  ;;  %v16045_v41 = vpop.eup %16044  ;;  %v11413_v22 = vadd.f32 1.0, %v16043_v50  ;;  %16070 = vpow2.f32 %v12991_v24 }
 0x991   : > { %v12994_v38 = vmul.f32 -1.442695, %v10632_v5  ;;  %v16047_v32 = vpop.eup %16046  ;;  %11790 = vst.msk [vmem:[%s19024_s21 + $0xb0] sm:$0xff] %vm11767_vm7, %v16045_v41  ;;  %16072 = vrcp.f32 %v11408_v34  ;;  %v20205_v5 = vld [vmem:[#allocation6_spill] sm:$0xff] }
 0x992   : > { %v15753_v13 = vpop.f32.mrf.mxu0  ;;  %v16049_v10 = vpop.eup %16048  ;;  %12431 = vst.msk [vmem:[%s19024_s21 + $0xb0] sm:$0xff] %vm12408_vm8, %v20201_v30  ;;  %16074 = vrcp.f32 %v11413_v22 }
 0x993   : > { %11788 = vst.msk [vmem:[%s19024_s21 + $0xa0] sm:$0xff] %vm11767_vm7, %v16047_v32  ;;  %v12997_v53 = vmul.f32 -1.442695, %v15753_v13  ;;  %v16051_v25 = vpop.eup %16050  ;;  %v11411_v57 = vadd.f32 1.0, %v16049_v10  ;;  %16076 = vpow2.f32 %v12996_v61  ;;  %v19206_v61 = vpop.permute.xlu1 %12138  ;;  %v20206_v32 = vld [vmem:[#allocation72_spill] sm:$0xff] }
 0x994   : > { %12429 = vst.msk [vmem:[%s19024_s21 + $0xa0] sm:$0xff] %vm12408_vm8, %v20202_v19  ;;  %v10635_v9 = vpop.f32.mrf.mxu0  ;;  %v16053_v31 = vpop.eup %16052  ;;  %16078 = vpow2.f32 %v12994_v38  ;;  %v20207_v19 = vld [vmem:[#allocation71_spill] sm:$0xff] }
 0x995   : > { %11791 = vst.msk [vmem:[%s19024_s21 + $0xb8] sm:$0xff] %vm11767_vm7, %v16051_v25  ;;  %v16055_v26 = vpop.eup %16054  ;;  %16080 = vrcp.f32 %v11411_v57  ;;  %v11414_v39 = vadd.f32 1.0, %v16053_v31  ;;  %v12995_v7 = vmul.f32 -1.442695, %v10635_v9 }
 0x996   : > { %12432 = vst.msk [vmem:[%s19024_s21 + $0xb8] sm:$0xff] %vm12408_vm8, %v20203_v59  ;;  %v15756_v43 = vpop.f32.mrf.mxu0  ;;  %v16057_v45 = vpop.eup %16056  ;;  %v11412_v49 = vadd.f32 1.0, %v16055_v26  ;;  %16082 = vpow2.f32 %v12997_v53 }
 0x997   : > { %v16059_v47 = vpop.eup %16058  ;;  %11789 = vst.msk [vmem:[%s19024_s21 + $0xa8] sm:$0xff] %vm11767_vm7, %v16057_v45  ;;  %16084 = vrcp.f32 %v11414_v39  ;;  %v13000_v2 = vmul.f32 -1.442695, %v15756_v43  ;;  %v19223_v39 = vpop.permute.xlu0 %12144 }
 0x998   : > { %v10648_v12 = vpop.f32.mrf.mxu0  ;;  %v16061_v17 = vpop.eup %16060  ;;  %12430 = vst.msk [vmem:[%s19024_s21 + $0xa8] sm:$0xff] %vm12408_vm8, %v20204_v27  ;;  %16086 = vrcp.f32 %v11412_v49  ;;  %v11417_v24 = vadd.f32 1.0, %v16059_v47  ;;  %v20209_v49 = vld [vmem:[#allocation74_spill] sm:$0xff] }
 0x999   : > { %v16063_v15 = vpop.eup %16062  ;;  %v11415_v28 = vadd.f32 1.0, %v16061_v17  ;;  %16088 = vpow2.f32 %v12995_v7  ;;  %v12998_v1 = vmul.f32 -1.442695, %v10648_v12  ;;  %v20208_v7 = vld [vmem:[#allocation73_spill] sm:$0xff]  ;;  %v19230_v45 = vpop.permute.xlu1 %12150 }
 0x99a   : > { %v15757_v44 = vpop.f32.mrf.mxu0  ;;  %v16065_v50 = vpop.eup %16064  ;;  %11794 = vst.msk [vmem:[%s19024_s21 + $0xd0] sm:$0xff] %vm11767_vm7, %v16063_v15  ;;  %16090 = vrcp.f32 %v11417_v24 }
 0x99b   : > { %v16067_v34 = vpop.eup %16066  ;;  %12435 = vst.msk [vmem:[%s19024_s21 + $0xd0] sm:$0xff] %vm12408_vm8, %v20205_v5  ;;  %16092 = vrcp.f32 %v11415_v28  ;;  %v13001_v41 = vmul.f32 -1.442695, %v15757_v44 }
 0x99c   : > { %11792 = vst.msk [vmem:[%s19024_s21 + $0xc0] sm:$0xff] %vm11767_vm7, %v16065_v50  ;;  %v10651_v22 = vpop.f32.mrf.mxu0  ;;  %v16069_v38 = vpop.eup %16068  ;;  %v11418_v13 = vadd.f32 1.0, %v16067_v34  ;;  %16094 = vpow2.f32 %v13000_v2 }
 0x99d   : > { %12433 = vst.msk [vmem:[%s19024_s21 + $0xc0] sm:$0xff] %vm12408_vm8, %v20206_v32  ;;  %v16071_v10 = vpop.eup %16070  ;;  %16096 = vpow2.f32 %v12998_v1  ;;  %v12999_v30 = vmul.f32 -1.442695, %v10651_v22  ;;  %v19242_v22 = vpop.permute.xlu0 %12156 }
 0x99e   : > { %11795 = vst.msk [vmem:[%s19024_s21 + $0xd8] sm:$0xff] %vm11767_vm7, %v16069_v38  ;;  %v15760_v53 = vpop.f32.mrf.mxu0  ;;  %v16073_v25 = vpop.eup %16072  ;;  %16098 = vrcp.f32 %v11418_v13  ;;  %v11416_v57 = vadd.f32 1.0, %v16071_v10  ;;  %v20210_v38 = vld [vmem:[#allocation15_spill] sm:$0xff] }
 0x99f   : > { %12436 = vst.msk [vmem:[%s19024_s21 + $0xd8] sm:$0xff] %vm12408_vm8, %v20207_v19  ;;  %v13004_v9 = vmul.f32 -1.442695, %v15760_v53  ;;  %v16075_v31 = vpop.eup %16074  ;;  %16100 = vpow2.f32 %v13001_v41  ;;  %v19249_v13 = vpop.permute.xlu1 %12146 }
 0x9a0   : > { %11793 = vst.msk [vmem:[%s19024_s21 + $0xc8] sm:$0xff] %vm11767_vm7, %v16073_v25  ;;  %v10664_v26 = vpop.f32.mrf.mxu0  ;;  %v16077_v59 = vpop.eup %16076  ;;  %11798 = vst.msk [vmem:[%s19024_s21 + $0xf0] sm:$0xff] %vm11767_vm7, %v16075_v31  ;;  %16102 = vrcp.f32 %v11416_v57 }
 0x9a1   : > { %12434 = vst.msk [vmem:[%s19024_s21 + $0xc8] sm:$0xff] %vm12408_vm8, %v20208_v7  ;;  %v16079_v43 = vpop.eup %16078  ;;  %12439 = vst.msk [vmem:[%s19024_s21 + $0xf0] sm:$0xff] %vm12408_vm8, %v20209_v49  ;;  %v11421_v47 = vadd.f32 1.0, %v16077_v59  ;;  %16104 = vpow2.f32 %v12999_v30  ;;  %v13002_v12 = vmul.f32 -1.442695, %v10664_v26 }
 0x9a2   : > { %v15761_v17 = vpop.f32.mrf.mxu0  ;;  %v16081_v27 = vpop.eup %16080  ;;  %v11419_v24 = vadd.f32 1.0, %v16079_v43  ;;  %16106 = vpow2.f32 %v13004_v9 }
 0x9a3   : > { %v16083_v2 = vpop.eup %16082  ;;  %11796 = vst.msk [vmem:[%s19024_s21 + $0xe0] sm:$0xff] %vm11767_vm7, %v16081_v27  ;;  %16108 = vrcp.f32 %v11421_v47  ;;  %v13005_v15 = vmul.f32 -1.442695, %v15761_v17 }
 0x9a4   : > { %v10667_v28 = vpop.f32.mrf.mxu0  ;;  %v16085_v1 = vpop.eup %16084  ;;  %12437 = vst.msk [vmem:[%s19024_s21 + $0xe0] sm:$0xff] %vm12408_vm8, %v18972_v21  ;;  %16110 = vrcp.f32 %v11419_v24  ;;  %v11422_v44 = vadd.f32 1.0, %v16083_v2 }
 0x9a5   : > { %v13003_v50 = vmul.f32 -1.442695, %v10667_v28  ;;  %v16087_v34 = vpop.eup %16086  ;;  %11799 = vst.msk [vmem:[%s19024_s21 + $0xf8] sm:$0xff] %vm11767_vm7, %v16085_v1  ;;  %16112 = vpow2.f32 %v13002_v12  ;;  %v19268_v12 = vpop.permute.xlu1 %12158 }
 0x9a6   : > { %v15764_v5 = vpop.f32.mrf.mxu0  ;;  %v16089_v41 = vpop.eup %16088  ;;  %12440 = vst.msk [vmem:[%s19024_s21 + $0xf8] sm:$0xff] %vm12408_vm8, %v20210_v38  ;;  %16114 = vrcp.f32 %v11422_v44 }
 0x9a7   : > { %11797 = vst.msk [vmem:[%s19024_s21 + $0xe8] sm:$0xff] %vm11767_vm7, %v16087_v34  ;;  %v13008_v21 = vmul.f32 -1.442695, %v15764_v5  ;;  %v16091_v32 = vpop.eup %16090  ;;  %v11420_v10 = vadd.f32 1.0, %v16089_v41  ;;  %16116 = vpow2.f32 %v13005_v15 }
 0x9a8   : > { %12438 = vst.msk [vmem:[%s19024_s21 + $0xe8] sm:$0xff] %vm12408_vm8, %v18981_v11  ;;  %v10680_v30 = vpop.f32.mrf.mxu0  ;;  %v16093_v53 = vpop.eup %16092  ;;  %16118 = vpow2.f32 %v13003_v50 }
 0x9a9   : > { %11802 = vst.msk [vmem:[%s19024_s21 + $0x110] sm:$0xff] %vm11767_vm7, %v16091_v32  ;;  %v13006_v25 = vmul.f32 -1.442695, %v10680_v30  ;;  %v16095_v19 = vpop.eup %16094  ;;  %11800 = vst.msk [vmem:[%s19024_s21 + $0x100] sm:$0xff] %vm11767_vm7, %v16093_v53  ;;  %16120 = vrcp.f32 %v11420_v10 }
 0x9aa   : > { %12443 = vst.msk [vmem:[%s19024_s21 + $0x110] sm:$0xff] %vm12408_vm8, %v18983_v20  ;;  %v15765_v57 = vpop.f32.mrf.mxu0  ;;  %v16097_v9 = vpop.eup %16096  ;;  %12441 = vst.msk [vmem:[%s19024_s21 + $0x100] sm:$0xff] %vm12408_vm8, %v18988_v58  ;;  %v11425_v11 = vadd.f32 1.0, %v16095_v19  ;;  %16122 = vpow2.f32 %v13008_v21 }
 0x9ab   : > { %v13009_v31 = vmul.f32 -1.442695, %v15765_v57  ;;  %v16099_v26 = vpop.eup %16098  ;;  %v11423_v59 = vadd.f32 1.0, %v16097_v9  ;;  %16124 = vpow2.f32 %v13006_v25  ;;  %v19264_v20 = vpop.permute.xlu0 %12152 }
 0x9ac   : > { %v10683_v7 = vpop.f32.mrf.mxu0  ;;  %v16101_v43 = vpop.eup %16100  ;;  %11803 = vst.msk [vmem:[%s19024_s21 + $0x118] sm:$0xff] %vm11767_vm7, %v16099_v26  ;;  %16126 = vrcp.f32 %v11425_v11 }
 0x9ad   : > { %v13007_v49 = vmul.f32 -1.442695, %v10683_v7  ;;  %v16103_v47 = vpop.eup %16102  ;;  %12444 = vst.msk [vmem:[%s19024_s21 + $0x118] sm:$0xff] %vm12408_vm8, %v18986_v56  ;;  %16128 = vrcp.f32 %v11423_v59  ;;  %v11426_v58 = vadd.f32 1.0, %v16101_v43  ;;  %v19287_v21 = vpop.permute.xlu1 %12154 }
 0x9ae   : > { %v15768_v17 = vpop.f32.mrf.mxu0  ;;  %v16105_v27 = vpop.eup %16104  ;;  %11801 = vst.msk [vmem:[%s19024_s21 + $0x108] sm:$0xff] %vm11767_vm7, %v16103_v47  ;;  %16130 = vpow2.f32 %v13009_v31 }
 0x9af   : > { %v16107_v24 = vpop.eup %16106  ;;  %12442 = vst.msk [vmem:[%s19024_s21 + $0x108] sm:$0xff] %vm12408_vm8, %v18996_v3  ;;  %16132 = vrcp.f32 %v11426_v58  ;;  %v11424_v2 = vadd.f32 1.0, %v16105_v27  ;;  %v13012_v15 = vmul.f32 -1.442695, %v15768_v17  ;;  %v19280_v41 = vpop.permute.xlu0 %12164 }
 0x9b0   : > { %v10696_v28 = vpop.f32.mrf.mxu0  ;;  %v16109_v1 = vpop.eup %16108  ;;  %v11429_v56 = vadd.f32 1.0, %v16107_v24  ;;  %16134 = vpow2.f32 %v13007_v49 }
 0x9b1   : > { %v13010_v44 = vmul.f32 -1.442695, %v10696_v28  ;;  %v16111_v50 = vpop.eup %16110  ;;  %11806 = vst.msk [vmem:[%s19024_s21 + $0x130] sm:$0xff] %vm11767_vm7, %v16109_v1  ;;  %16136 = vrcp.f32 %v11424_v2  ;;  %v19304_v43 = vpop.permute.xlu1 %12166 }
 0x9b2   : > { %v15769_v34 = vpop.f32.mrf.mxu0  ;;  %v16113_v5 = vpop.eup %16112  ;;  %12447 = vst.msk [vmem:[%s19024_s21 + $0x130] sm:$0xff] %vm12408_vm8, %v18998_v35  ;;  %16138 = vrcp.f32 %v11429_v56 }
 0x9b3   : > { %11804 = vst.msk [vmem:[%s19024_s21 + $0x120] sm:$0xff] %vm11767_vm7, %v16111_v50  ;;  %v13013_v3 = vmul.f32 -1.442695, %v15769_v34  ;;  %v16115_v38 = vpop.eup %16114  ;;  %v11427_v32 = vadd.f32 1.0, %v16113_v5  ;;  %16140 = vpow2.f32 %v13012_v15  ;;  %v19299_v26 = vpop.permute.xlu0 %12160 }
 0x9b4   : > { %12445 = vst.msk [vmem:[%s19024_s21 + $0x120] sm:$0xff] %vm12408_vm8, %v19008_v14  ;;  %v10699_v10 = vpop.f32.mrf.mxu0  ;;  %v16117_v30 = vpop.eup %16116  ;;  %16142 = vpow2.f32 %v13010_v44 }
 0x9b5   : > { %11807 = vst.msk [vmem:[%s19024_s21 + $0x138] sm:$0xff] %vm11767_vm7, %v16115_v38  ;;  %v16119_v35 = vpop.eup %16118  ;;  %16144 = vrcp.f32 %v11427_v32  ;;  %v11430_v53 = vadd.f32 1.0, %v16117_v30  ;;  %v13011_v25 = vmul.f32 -1.442695, %v10699_v10  ;;  %v19323_v5 = vpop.permute.xlu1 %12162 }
 0x9b6   : > { %12448 = vst.msk [vmem:[%s19024_s21 + $0x138] sm:$0xff] %vm12408_vm8, %v19006_v62  ;;  %v15772_v19 = vpop.f32.mrf.mxu0  ;;  %v16121_v57 = vpop.eup %16120  ;;  %v11428_v9 = vadd.f32 1.0, %v16119_v35  ;;  %16146 = vpow2.f32 %v13013_v3 }
 0x9b7   : > { %v16123_v14 = vpop.eup %16122  ;;  %11805 = vst.msk [vmem:[%s19024_s21 + $0x128] sm:$0xff] %vm11767_vm7, %v16121_v57  ;;  %16148 = vrcp.f32 %v11430_v53  ;;  %v13016_v59 = vmul.f32 -1.442695, %v15772_v19  ;;  %v19318_v44 = vpop.permute.xlu0 %12172 }
 0x9b8   : > { %v10712_v11 = vpop.f32.mrf.mxu0  ;;  %v16125_v31 = vpop.eup %16124  ;;  %12446 = vst.msk [vmem:[%s19024_s21 + $0x128] sm:$0xff] %vm12408_vm8, %v19015_v55  ;;  %16150 = vrcp.f32 %v11428_v9  ;;  %v11433_v62 = vadd.f32 1.0, %v16123_v14 }
 0x9b9   : > { %v16127_v7 = vpop.eup %16126  ;;  %v11431_v49 = vadd.f32 1.0, %v16125_v31  ;;  %16152 = vpow2.f32 %v13011_v25  ;;  %v13014_v47 = vmul.f32 -1.442695, %v10712_v11  ;;  %v19342_v31 = vpop.permute.xlu1 %12174 }
 0x9ba   : > { %v15773_v58 = vpop.f32.mrf.mxu0  ;;  %v16129_v17 = vpop.eup %16128  ;;  %11810 = vst.msk [vmem:[%s19024_s21 + $0x150] sm:$0xff] %vm11767_vm7, %v16127_v7  ;;  %16154 = vrcp.f32 %v11433_v62 }
 0x9bb   : > { %v16131_v27 = vpop.eup %16130  ;;  %12451 = vst.msk [vmem:[%s19024_s21 + $0x150] sm:$0xff] %vm12408_vm8, %v19017_v36  ;;  %16156 = vrcp.f32 %v11431_v49  ;;  %v13017_v55 = vmul.f32 -1.442695, %v15773_v58  ;;  %v19337_v9 = vpop.permute.xlu0 %12168 }
 0x9bc   : > { %11808 = vst.msk [vmem:[%s19024_s21 + $0x140] sm:$0xff] %vm11767_vm7, %v16129_v17  ;;  %v10715_v24 = vpop.f32.mrf.mxu0  ;;  %v16133_v2 = vpop.eup %16132  ;;  %v11434_v15 = vadd.f32 1.0, %v16131_v27  ;;  %16158 = vpow2.f32 %v13016_v59 }
 0x9bd   : > { %12449 = vst.msk [vmem:[%s19024_s21 + $0x140] sm:$0xff] %vm12408_vm8, %v19029_v18  ;;  %v16135_v28 = vpop.eup %16134  ;;  %16160 = vpow2.f32 %v13014_v47  ;;  %v13015_v36 = vmul.f32 -1.442695, %v10715_v24 }
 0x9be   : > { %11811 = vst.msk [vmem:[%s19024_s21 + $0x158] sm:$0xff] %vm11767_vm7, %v16133_v2  ;;  %v15776_v1 = vpop.f32.mrf.mxu0  ;;  %v16137_v56 = vpop.eup %16136  ;;  %16162 = vrcp.f32 %v11434_v15  ;;  %v11432_v18 = vadd.f32 1.0, %v16135_v28 }
 0x9bf   : > { %12452 = vst.msk [vmem:[%s19024_s21 + $0x158] sm:$0xff] %vm12408_vm8, %v19027_v4  ;;  %v13020_v50 = vmul.f32 -1.442695, %v15776_v1  ;;  %v16139_v34 = vpop.eup %16138  ;;  %16164 = vpow2.f32 %v13017_v55  ;;  %v19366_v28 = vpop.permute.xlu1 %12170 }
 0x9c0   : > { %11809 = vst.msk [vmem:[%s19024_s21 + $0x148] sm:$0xff] %vm11767_vm7, %v16137_v56  ;;  %v10728_v3 = vpop.f32.mrf.mxu0  ;;  %v16141_v38 = vpop.eup %16140  ;;  %11814 = vst.msk [vmem:[%s19024_s21 + $0x170] sm:$0xff] %vm11767_vm7, %v16139_v34  ;;  %16166 = vrcp.f32 %v11432_v18 }
 0x9c1   : > { %12450 = vst.msk [vmem:[%s19024_s21 + $0x148] sm:$0xff] %vm12408_vm8, %v19043_v54  ;;  %v16143_v32 = vpop.eup %16142  ;;  %12455 = vst.msk [vmem:[%s19024_s21 + $0x170] sm:$0xff] %vm12408_vm8, %v19045_v0  ;;  %v11437_v4 = vadd.f32 1.0, %v16141_v38  ;;  %16168 = vpow2.f32 %v13015_v36  ;;  %v13018_v10 = vmul.f32 -1.442695, %v10728_v3 }
 0x9c2   : > { %v15777_v30 = vpop.f32.mrf.mxu0  ;;  %v16145_v35 = vpop.eup %16144  ;;  %v11435_v53 = vadd.f32 1.0, %v16143_v32  ;;  %16170 = vpow2.f32 %v13020_v50 }
 0x9c3   : > { %v16147_v25 = vpop.eup %16146  ;;  %11812 = vst.msk [vmem:[%s19024_s21 + $0x160] sm:$0xff] %vm11767_vm7, %v16145_v35  ;;  %16172 = vrcp.f32 %v11437_v4  ;;  %v13021_v54 = vmul.f32 -1.442695, %v15777_v30 }
 0x9c4   : > { %v10731_v19 = vpop.f32.mrf.mxu0  ;;  %v16149_v57 = vpop.eup %16148  ;;  %12453 = vst.msk [vmem:[%s19024_s21 + $0x160] sm:$0xff] %vm12408_vm8, %v19073_v23  ;;  %16174 = vrcp.f32 %v11435_v53  ;;  %v11438_v0 = vadd.f32 1.0, %v16147_v25 }
 0x9c5   : > { %v13019_v14 = vmul.f32 -1.442695, %v10731_v19  ;;  %v16151_v11 = vpop.eup %16150  ;;  %11815 = vst.msk [vmem:[%s19024_s21 + $0x178] sm:$0xff] %vm11767_vm7, %v16149_v57  ;;  %16176 = vpow2.f32 %v13018_v10  ;;  %v19380_v25 = vpop.permute.xlu1 %12182 }
 0x9c6   : > { %v15780_v62 = vpop.f32.mrf.mxu0  ;;  %v16153_v59 = vpop.eup %16152  ;;  %12456 = vst.msk [vmem:[%s19024_s21 + $0x178] sm:$0xff] %vm12408_vm8, %v19071_v6  ;;  %16178 = vrcp.f32 %v11438_v0 }
 0x9c7   : > { %11813 = vst.msk [vmem:[%s19024_s21 + $0x168] sm:$0xff] %vm11767_vm7, %v16151_v11  ;;  %v13024_v23 = vmul.f32 -1.442695, %v15780_v62  ;;  %v16155_v7 = vpop.eup %16154  ;;  %v11436_v49 = vadd.f32 1.0, %v16153_v59  ;;  %16180 = vpow2.f32 %v13021_v54 }
 0x9c8   : > { %12454 = vst.msk [vmem:[%s19024_s21 + $0x168] sm:$0xff] %vm12408_vm8, %v19098_v48  ;;  %v10744_v47 = vpop.f32.mrf.mxu0  ;;  %v16157_v58 = vpop.eup %16156  ;;  %16182 = vpow2.f32 %v13019_v14 }
 0x9c9   : > { %11818 = vst.msk [vmem:[%s19024_s21 + $0x190] sm:$0xff] %vm11767_vm7, %v16155_v7  ;;  %v13022_v17 = vmul.f32 -1.442695, %v10744_v47  ;;  %v16159_v27 = vpop.eup %16158  ;;  %11816 = vst.msk [vmem:[%s19024_s21 + $0x180] sm:$0xff] %vm11767_vm7, %v16157_v58  ;;  %16184 = vrcp.f32 %v11436_v49  ;;  %v19361_v48 = vpop.permute.xlu0 %12180 }
 0x9ca   : > { %12459 = vst.msk [vmem:[%s19024_s21 + $0x190] sm:$0xff] %vm12408_vm8, %v19095_v63  ;;  %v15781_v6 = vpop.f32.mrf.mxu0  ;;  %v16161_v55 = vpop.eup %16160  ;;  %12457 = vst.msk [vmem:[%s19024_s21 + $0x180] sm:$0xff] %vm12408_vm8, %v19107_v52  ;;  %v11441_v24 = vadd.f32 1.0, %v16159_v27  ;;  %16186 = vpow2.f32 %v13024_v23 }
 0x9cb   : > { %v13025_v2 = vmul.f32 -1.442695, %v15781_v6  ;;  %v16163_v15 = vpop.eup %16162  ;;  %v11439_v63 = vadd.f32 1.0, %v16161_v55  ;;  %16188 = vpow2.f32 %v13022_v17  ;;  %v19399_v58 = vpop.permute.xlu1 %12178 }
 0x9cc   : > { %v10747_v36 = vpop.f32.mrf.mxu0  ;;  %v16165_v1 = vpop.eup %16164  ;;  %11819 = vst.msk [vmem:[%s19024_s21 + $0x198] sm:$0xff] %vm11767_vm7, %v16163_v15  ;;  %16190 = vrcp.f32 %v11441_v24 }
 0x9cd   : > { %v13023_v56 = vmul.f32 -1.442695, %v10747_v36  ;;  %v16167_v18 = vpop.eup %16166  ;;  %12460 = vst.msk [vmem:[%s19024_s21 + $0x198] sm:$0xff] %vm12408_vm8, %v19113_v37  ;;  %16192 = vrcp.f32 %v11439_v63  ;;  %v11442_v52 = vadd.f32 1.0, %v16165_v1  ;;  %v19378_v37 = vpop.permute.xlu0 %12176 }
 0x9ce   : > { %v15784_v50 = vpop.f32.mrf.mxu0  ;;  %v16169_v34 = vpop.eup %16168  ;;  %11817 = vst.msk [vmem:[%s19024_s21 + $0x188] sm:$0xff] %vm11767_vm7, %v16167_v18  ;;  %16194 = vpow2.f32 %v13025_v2 }
 0x9cf   : > { %v16171_v3 = vpop.eup %16170  ;;  %12458 = vst.msk [vmem:[%s19024_s21 + $0x188] sm:$0xff] %vm12408_vm8, %v19133_v33  ;;  %16196 = vrcp.f32 %v11442_v52  ;;  %v11440_v38 = vadd.f32 1.0, %v16169_v34  ;;  %v13028_v32 = vmul.f32 -1.442695, %v15784_v50  ;;  %v19418_v34 = vpop.permute.xlu1 %12190 }
 0x9d0   : > { %v10760_v4 = vpop.f32.mrf.mxu0  ;;  %v16173_v10 = vpop.eup %16172  ;;  %v11445_v30 = vadd.f32 1.0, %v16171_v3  ;;  %16198 = vpow2.f32 %v13023_v56 }
 0x9d1   : > { %v13026_v35 = vmul.f32 -1.442695, %v10760_v4  ;;  %v16175_v53 = vpop.eup %16174  ;;  %11822 = vst.msk [vmem:[%s19024_s21 + $0x1b0] sm:$0xff] %vm11767_vm7, %v16173_v10  ;;  %16200 = vrcp.f32 %v11440_v38  ;;  %v19397_v49 = vpop.permute.xlu0 %12188 }
 0x9d2   : > { %v15785_v33 = vpop.f32.mrf.mxu0  ;;  %v16177_v54 = vpop.eup %16176  ;;  %12463 = vst.msk [vmem:[%s19024_s21 + $0x1b0] sm:$0xff] %vm12408_vm8, %v19131_v16  ;;  %16202 = vrcp.f32 %v11445_v30 }
 0x9d3   : > { %11820 = vst.msk [vmem:[%s19024_s21 + $0x1a0] sm:$0xff] %vm11767_vm7, %v16175_v53  ;;  %v13029_v19 = vmul.f32 -1.442695, %v15785_v33  ;;  %v16179_v57 = vpop.eup %16178  ;;  %v11443_v0 = vadd.f32 1.0, %v16177_v54  ;;  %16204 = vpow2.f32 %v13028_v32 }
 0x9d4   : > { %12461 = vst.msk [vmem:[%s19024_s21 + $0x1a0] sm:$0xff] %vm12408_vm8, %v19150_v40  ;;  %v10763_v14 = vpop.f32.mrf.mxu0  ;;  %v16181_v11 = vpop.eup %16180  ;;  %16206 = vpow2.f32 %v13026_v35 }
 0x9d5   : > { %11823 = vst.msk [vmem:[%s19024_s21 + $0x1b8] sm:$0xff] %vm11767_vm7, %v16179_v57  ;;  %v16183_v62 = vpop.eup %16182  ;;  %16208 = vrcp.f32 %v11443_v0  ;;  %v11446_v16 = vadd.f32 1.0, %v16181_v11  ;;  %v13027_v59 = vmul.f32 -1.442695, %v10763_v14  ;;  %v19413_v18 = vpop.permute.xlu0 %12184 }
 0x9d6   : > { %12464 = vst.msk [vmem:[%s19024_s21 + $0x1b8] sm:$0xff] %vm12408_vm8, %v19154_v51  ;;  %v15788_v23 = vpop.f32.mrf.mxu0  ;;  %v16185_v7 = vpop.eup %16184  ;;  %v11444_v40 = vadd.f32 1.0, %v16183_v62  ;;  %16210 = vpow2.f32 %v13029_v19 }
 0x9d7   : > { %v16187_v47 = vpop.eup %16186  ;;  %11821 = vst.msk [vmem:[%s19024_s21 + $0x1a8] sm:$0xff] %vm11767_vm7, %v16185_v7  ;;  %16212 = vrcp.f32 %v11446_v16  ;;  %v13032_v6 = vmul.f32 -1.442695, %v15788_v23 }
 0x9d8   : > { %v10776_v17 = vpop.f32.mrf.mxu0  ;;  %v16189_v51 = vpop.eup %16188  ;;  %12462 = vst.msk [vmem:[%s19024_s21 + $0x1a8] sm:$0xff] %vm12408_vm8, %v19173_v60  ;;  %16214 = vrcp.f32 %v11444_v40  ;;  %v11449_v27 = vadd.f32 1.0, %v16187_v47 }
 0x9d9   : > { %v16191_v55 = vpop.eup %16190  ;;  %v11447_v24 = vadd.f32 1.0, %v16189_v51  ;;  %16216 = vpow2.f32 %v13027_v59  ;;  %v13030_v2 = vmul.f32 -1.442695, %v10776_v17  ;;  %v19435_v19 = vpop.permute.xlu0 %12196 }
 0x9da   : > { %v15789_v15 = vpop.f32.mrf.mxu0  ;;  %v16193_v63 = vpop.eup %16192  ;;  %11826 = vst.msk [vmem:[%s19024_s21 + $0x1d0] sm:$0xff] %vm11767_vm7, %v16191_v55  ;;  %16218 = vrcp.f32 %v11449_v27 }
 0x9db   : > { %v16195_v36 = vpop.eup %16194  ;;  %12467 = vst.msk [vmem:[%s19024_s21 + $0x1d0] sm:$0xff] %vm12408_vm8, %v19169_v46  ;;  %16220 = vrcp.f32 %v11447_v24  ;;  %v13033_v60 = vmul.f32 -1.442695, %v15789_v15 }
 0x9dc   : > { %11824 = vst.msk [vmem:[%s19024_s21 + $0x1c0] sm:$0xff] %vm11767_vm7, %v16193_v63  ;;  %v10779_v1 = vpop.f32.mrf.mxu0  ;;  %v16197_v56 = vpop.eup %16196  ;;  %v11450_v52 = vadd.f32 1.0, %v16195_v36  ;;  %16222 = vpow2.f32 %v13032_v6 }
 0x9dd   : > { %12465 = vst.msk [vmem:[%s19024_s21 + $0x1c0] sm:$0xff] %vm12408_vm8, %v19188_v42  ;;  %v16199_v50 = vpop.eup %16198  ;;  %16224 = vpow2.f32 %v13030_v2  ;;  %v13031_v46 = vmul.f32 -1.442695, %v10779_v1  ;;  %v19454_v27 = vpop.permute.xlu0 %12192 }
 0x9de   : > { %11827 = vst.msk [vmem:[%s19024_s21 + $0x1d8] sm:$0xff] %vm11767_vm7, %v16197_v56  ;;  %v15792_v3 = vpop.f32.mrf.mxu0  ;;  %v16201_v38 = vpop.eup %16200  ;;  %16226 = vrcp.f32 %v11450_v52  ;;  %v11448_v32 = vadd.f32 1.0, %v16199_v50 }
 0x9df   : > { %12468 = vst.msk [vmem:[%s19024_s21 + $0x1d8] sm:$0xff] %vm12408_vm8, %v19192_v8  ;;  %v13036_v42 = vmul.f32 -1.442695, %v15792_v3  ;;  %v16203_v4 = vpop.eup %16202  ;;  %16228 = vpow2.f32 %v13033_v60 }
 0x9e0   : > { %11825 = vst.msk [vmem:[%s19024_s21 + $0x1c8] sm:$0xff] %vm11767_vm7, %v16201_v38  ;;  %v10792_v10 = vpop.f32.mrf.mxu0  ;;  %v16205_v30 = vpop.eup %16204  ;;  %11830 = vst.msk [vmem:[%s19024_s21 + $0x1f0] sm:$0xff] %vm11767_vm7, %v16203_v4  ;;  %16230 = vrcp.f32 %v11448_v32 }
 0x9e1   : > { %12466 = vst.msk [vmem:[%s19024_s21 + $0x1c8] sm:$0xff] %vm12408_vm8, %v19206_v61  ;;  %v16207_v35 = vpop.eup %16206  ;;  %12471 = vst.msk [vmem:[%s19024_s21 + $0x1f0] sm:$0xff] %vm12408_vm8, %v19202_v29  ;;  %v11453_v8 = vadd.f32 1.0, %v16205_v30  ;;  %16232 = vpow2.f32 %v13031_v46  ;;  %v13034_v53 = vmul.f32 -1.442695, %v10792_v10  ;;  %v19437_v61 = vpop.permute.xlu1 %12186 }
 0x9e2   : > { %v15793_v33 = vpop.f32.mrf.mxu0  ;;  %v16209_v54 = vpop.eup %16208  ;;  %v11451_v57 = vadd.f32 1.0, %v16207_v35  ;;  %16234 = vpow2.f32 %v13036_v42 }
 0x9e3   : > { %v16211_v0 = vpop.eup %16210  ;;  %11828 = vst.msk [vmem:[%s19024_s21 + $0x1e0] sm:$0xff] %vm11767_vm7, %v16209_v54  ;;  %16236 = vrcp.f32 %v11453_v8  ;;  %v13037_v29 = vmul.f32 -1.442695, %v15793_v33  ;;  %v19473_v46 = vpop.permute.xlu0 %12204 }
 0x9e4   : > { %v10795_v14 = vpop.f32.mrf.mxu0  ;;  %v16213_v11 = vpop.eup %16212  ;;  %12469 = vst.msk [vmem:[%s19024_s21 + $0x1e0] sm:$0xff] %vm12408_vm8, %v19223_v39  ;;  %16238 = vrcp.f32 %v11451_v57  ;;  %v11454_v62 = vadd.f32 1.0, %v16211_v0 }
 0x9e5   : > { %v13035_v16 = vmul.f32 -1.442695, %v10795_v14  ;;  %v16215_v59 = vpop.eup %16214  ;;  %11831 = vst.msk [vmem:[%s19024_s21 + $0x1f8] sm:$0xff] %vm11767_vm7, %v16213_v11  ;;  %16240 = vpow2.f32 %v13034_v53  ;;  %v19458_v55 = vpop.permute.xlu1 %12198 }
 0x9e6   : > { %v15796_v23 = vpop.f32.mrf.mxu0  ;;  %v16217_v7 = vpop.eup %16216  ;;  %12472 = vst.msk [vmem:[%s19024_s21 + $0x1f8] sm:$0xff] %vm12408_vm8, %v19230_v45  ;;  %16242 = vrcp.f32 %v11454_v62 }
 0x9e7   : > { %11829 = vst.msk [vmem:[%s19024_s21 + $0x1e8] sm:$0xff] %vm11767_vm7, %v16215_v59  ;;  %v13040_v40 = vmul.f32 -1.442695, %v15796_v23  ;;  %v16219_v39 = vpop.eup %16218  ;;  %v11452_v47 = vadd.f32 1.0, %v16217_v7  ;;  %16244 = vpow2.f32 %v13037_v29  ;;  %v19492_v29 = vpop.permute.xlu0 %12200 }
 0x9e8   : > { %12470 = vst.msk [vmem:[%s19024_s21 + $0x1e8] sm:$0xff] %vm12408_vm8, %v19249_v13  ;;  %v10808_v17 = vpop.f32.mrf.mxu0  ;;  %v16221_v51 = vpop.eup %16220  ;;  %16246 = vpow2.f32 %v13035_v16 }
 0x9e9   : > { %11834 = vst.msk [vmem:[%s19024_s21 + $0x210] sm:$0xff] %vm11767_vm7, %v16219_v39  ;;  %v13038_v45 = vmul.f32 -1.442695, %v10808_v17  ;;  %v16223_v6 = vpop.eup %16222  ;;  %11832 = vst.msk [vmem:[%s19024_s21 + $0x200] sm:$0xff] %vm11767_vm7, %v16221_v51  ;;  %16248 = vrcp.f32 %v11452_v47  ;;  %v19477_v38 = vpop.permute.xlu1 %12194 }
 0x9ea   : > { %12475 = vst.msk [vmem:[%s19024_s21 + $0x210] sm:$0xff] %vm12408_vm8, %v19242_v22  ;;  %v15797_v13 = vpop.f32.mrf.mxu0  ;;  %v16225_v24 = vpop.eup %16224  ;;  %12473 = vst.msk [vmem:[%s19024_s21 + $0x200] sm:$0xff] %vm12408_vm8, %v19264_v20  ;;  %v11457_v2 = vadd.f32 1.0, %v16223_v6  ;;  %16250 = vpow2.f32 %v13040_v40 }
 0x9eb   : > { %v13041_v15 = vmul.f32 -1.442695, %v15797_v13  ;;  %v16227_v63 = vpop.eup %16226  ;;  %v11455_v36 = vadd.f32 1.0, %v16225_v24  ;;  %16252 = vpow2.f32 %v13038_v45  ;;  %v19506_v13 = vpop.permute.xlu0 %12212 }
 0x9ec   : > { %v10811_v60 = vpop.f32.mrf.mxu0  ;;  %v16229_v1 = vpop.eup %16228  ;;  %11835 = vst.msk [vmem:[%s19024_s21 + $0x218] sm:$0xff] %vm11767_vm7, %v16227_v63  ;;  %16254 = vrcp.f32 %v11457_v2 }
 0x9ed   : > { %v13039_v22 = vmul.f32 -1.442695, %v10811_v60  ;;  %v16231_v56 = vpop.eup %16230  ;;  %12476 = vst.msk [vmem:[%s19024_s21 + $0x218] sm:$0xff] %vm12408_vm8, %v19268_v12  ;;  %16256 = vrcp.f32 %v11455_v36  ;;  %v11458_v20 = vadd.f32 1.0, %v16229_v1  ;;  %v19496_v14 = vpop.permute.xlu1 %12206 }
 0x9ee   : > { %v15800_v52 = vpop.f32.mrf.mxu0  ;;  %v16233_v50 = vpop.eup %16232  ;;  %11833 = vst.msk [vmem:[%s19024_s21 + $0x208] sm:$0xff] %vm11767_vm7, %v16231_v56  ;;  %16258 = vpow2.f32 %v13041_v15 }
 0x9ef   : > { %v16235_v3 = vpop.eup %16234  ;;  %12474 = vst.msk [vmem:[%s19024_s21 + $0x208] sm:$0xff] %vm12408_vm8, %v19287_v21  ;;  %16260 = vrcp.f32 %v11458_v20  ;;  %v11456_v12 = vadd.f32 1.0, %v16233_v50  ;;  %v13044_v32 = vmul.f32 -1.442695, %v15800_v52 }
 0x9f0   : > { %v10824_v42 = vpop.f32.mrf.mxu0  ;;  %v16237_v4 = vpop.eup %16236  ;;  %v11461_v10 = vadd.f32 1.0, %v16235_v3  ;;  %16262 = vpow2.f32 %v13039_v22 }
 0x9f1   : > { %v13042_v30 = vmul.f32 -1.442695, %v10824_v42  ;;  %v16239_v35 = vpop.eup %16238  ;;  %11838 = vst.msk [vmem:[%s19024_s21 + $0x230] sm:$0xff] %vm11767_vm7, %v16237_v4  ;;  %16264 = vrcp.f32 %v11456_v12  ;;  %v19510_v2 = vpop.permute.xlu1 %12202 }
 0x9f2   : > { %v15801_v8 = vpop.f32.mrf.mxu0  ;;  %v16241_v53 = vpop.eup %16240  ;;  %12479 = vst.msk [vmem:[%s19024_s21 + $0x230] sm:$0xff] %vm12408_vm8, %v19280_v41  ;;  %16266 = vrcp.f32 %v11461_v10 }
 0x9f3   : > { %11836 = vst.msk [vmem:[%s19024_s21 + $0x220] sm:$0xff] %vm11767_vm7, %v16239_v35  ;;  %v13045_v21 = vmul.f32 -1.442695, %v15801_v8  ;;  %v16243_v33 = vpop.eup %16242  ;;  %v11459_v54 = vadd.f32 1.0, %v16241_v53  ;;  %16268 = vpow2.f32 %v13044_v32  ;;  %v19527_v3 = vpop.permute.xlu0 %12208 }
 0x9f4   : > { %12477 = vst.msk [vmem:[%s19024_s21 + $0x220] sm:$0xff] %vm12408_vm8, %v19299_v26  ;;  %v10827_v57 = vpop.f32.mrf.mxu0  ;;  %v16245_v0 = vpop.eup %16244  ;;  %16270 = vpow2.f32 %v13042_v30 }
 0x9f5   : > { %11839 = vst.msk [vmem:[%s19024_s21 + $0x238] sm:$0xff] %vm11767_vm7, %v16243_v33  ;;  %v16247_v41 = vpop.eup %16246  ;;  %16272 = vrcp.f32 %v11459_v54  ;;  %v11462_v11 = vadd.f32 1.0, %v16245_v0  ;;  %v13043_v26 = vmul.f32 -1.442695, %v10827_v57 }
 0x9f6   : > { %12480 = vst.msk [vmem:[%s19024_s21 + $0x238] sm:$0xff] %vm12408_vm8, %v19304_v43  ;;  %v15804_v62 = vpop.f32.mrf.mxu0  ;;  %v16249_v16 = vpop.eup %16248  ;;  %v11460_v59 = vadd.f32 1.0, %v16247_v41  ;;  %16274 = vpow2.f32 %v13045_v21 }
 0x9f7   : > { %v16251_v23 = vpop.eup %16250  ;;  %11837 = vst.msk [vmem:[%s19024_s21 + $0x228] sm:$0xff] %vm11767_vm7, %v16249_v16  ;;  %16276 = vrcp.f32 %v11462_v11  ;;  %v13048_v39 = vmul.f32 -1.442695, %v15804_v62  ;;  %v19546_v0 = vpop.permute.xlu0 %12220 }
 0x9f8   : > { %v10840_v7 = vpop.f32.mrf.mxu0  ;;  %v16253_v40 = vpop.eup %16252  ;;  %12478 = vst.msk [vmem:[%s19024_s21 + $0x228] sm:$0xff] %vm12408_vm8, %v19323_v5  ;;  %16278 = vrcp.f32 %v11460_v59  ;;  %v11465_v43 = vadd.f32 1.0, %v16251_v23 }
 0x9f9   : > { %v16255_v47 = vpop.eup %16254  ;;  %v11463_v17 = vadd.f32 1.0, %v16253_v40  ;;  %16280 = vpow2.f32 %v13043_v26  ;;  %v13046_v51 = vmul.f32 -1.442695, %v10840_v7 }
 0x9fa   : > { %v15805_v45 = vpop.f32.mrf.mxu0  ;;  %v16257_v6 = vpop.eup %16256  ;;  %11842 = vst.msk [vmem:[%s19024_s21 + $0x250] sm:$0xff] %vm11767_vm7, %v16255_v47  ;;  %16282 = vrcp.f32 %v11465_v43 }
 0x9fb   : > { %v16259_v24 = vpop.eup %16258  ;;  %12483 = vst.msk [vmem:[%s19024_s21 + $0x250] sm:$0xff] %vm12408_vm8, %v19318_v44  ;;  %16284 = vrcp.f32 %v11463_v17  ;;  %v13049_v5 = vmul.f32 -1.442695, %v15805_v45 }
 0x9fc   : > { %11840 = vst.msk [vmem:[%s19024_s21 + $0x240] sm:$0xff] %vm11767_vm7, %v16257_v6  ;;  %v10843_v15 = vpop.f32.mrf.mxu0  ;;  %v16261_v63 = vpop.eup %16260  ;;  %v11466_v36 = vadd.f32 1.0, %v16259_v24  ;;  %16286 = vpow2.f32 %v13048_v39 }
 0x9fd   : > { %12481 = vst.msk [vmem:[%s19024_s21 + $0x240] sm:$0xff] %vm12408_vm8, %v19337_v9  ;;  %v16263_v60 = vpop.eup %16262  ;;  %16288 = vpow2.f32 %v13046_v51  ;;  %v13047_v1 = vmul.f32 -1.442695, %v10843_v15 }
 0x9fe   : > { %11843 = vst.msk [vmem:[%s19024_s21 + $0x258] sm:$0xff] %vm11767_vm7, %v16261_v63  ;;  %v15808_v44 = vpop.f32.mrf.mxu0  ;;  %v16265_v22 = vpop.eup %16264  ;;  %16290 = vrcp.f32 %v11466_v36  ;;  %v11464_v56 = vadd.f32 1.0, %v16263_v60 }
 0x9ff   : > { %12484 = vst.msk [vmem:[%s19024_s21 + $0x258] sm:$0xff] %vm12408_vm8, %v19342_v31  ;;  %v13052_v20 = vmul.f32 -1.442695, %v15808_v44  ;;  %v16267_v52 = vpop.eup %16266  ;;  %16292 = vpow2.f32 %v13049_v5  ;;  %v19534_v31 = vpop.permute.xlu1 %12214 }
 0xa00   : > { %11841 = vst.msk [vmem:[%s19024_s21 + $0x248] sm:$0xff] %vm11767_vm7, %v16265_v22  ;;  %v10856_v9 = vpop.f32.mrf.mxu0  ;;  %v16269_v50 = vpop.eup %16268  ;;  %11846 = vst.msk [vmem:[%s19024_s21 + $0x270] sm:$0xff] %vm11767_vm7, %v16267_v52  ;;  %16294 = vrcp.f32 %v11464_v56 }
 0xa01   : > { %12482 = vst.msk [vmem:[%s19024_s21 + $0x248] sm:$0xff] %vm12408_vm8, %v19366_v28  ;;  %v16271_v12 = vpop.eup %16270  ;;  %12487 = vst.msk [vmem:[%s19024_s21 + $0x270] sm:$0xff] %vm12408_vm8, %v19361_v48  ;;  %v11469_v32 = vadd.f32 1.0, %v16269_v50  ;;  %16296 = vpow2.f32 %v13047_v1  ;;  %v13050_v42 = vmul.f32 -1.442695, %v10856_v9 }
 0xa02   : > { %v15809_v4 = vpop.f32.mrf.mxu0  ;;  %v16273_v10 = vpop.eup %16272  ;;  %v11467_v30 = vadd.f32 1.0, %v16271_v12  ;;  %16298 = vpow2.f32 %v13052_v20 }
 0xa03   : > { %v16275_v35 = vpop.eup %16274  ;;  %11844 = vst.msk [vmem:[%s19024_s21 + $0x260] sm:$0xff] %vm11767_vm7, %v16273_v10  ;;  %16300 = vrcp.f32 %v11469_v32  ;;  %v13053_v28 = vmul.f32 -1.442695, %v15809_v4  ;;  %v19553_v11 = vpop.permute.xlu1 %12210 }
 0xa04   : > { %v10859_v8 = vpop.f32.mrf.mxu0  ;;  %v16277_v53 = vpop.eup %16276  ;;  %12485 = vst.msk [vmem:[%s19024_s21 + $0x260] sm:$0xff] %vm12408_vm8, %v19378_v37  ;;  %16302 = vrcp.f32 %v11467_v30  ;;  %v11470_v48 = vadd.f32 1.0, %v16275_v35 }
 0xa05   : > { %v13051_v21 = vmul.f32 -1.442695, %v10859_v8  ;;  %v16279_v33 = vpop.eup %16278  ;;  %11847 = vst.msk [vmem:[%s19024_s21 + $0x278] sm:$0xff] %vm11767_vm7, %v16277_v53  ;;  %16304 = vpow2.f32 %v13050_v42 }
 0xa06   : > { %v15812_v54 = vpop.f32.mrf.mxu0  ;;  %v16281_v57 = vpop.eup %16280  ;;  %12488 = vst.msk [vmem:[%s19024_s21 + $0x278] sm:$0xff] %vm12408_vm8, %v19380_v25  ;;  %16306 = vrcp.f32 %v11470_v48 }
 0xa07   : > { %11845 = vst.msk [vmem:[%s19024_s21 + $0x268] sm:$0xff] %vm11767_vm7, %v16279_v33  ;;  %v13056_v37 = vmul.f32 -1.442695, %v15812_v54  ;;  %v16283_v41 = vpop.eup %16282  ;;  %v11468_v26 = vadd.f32 1.0, %v16281_v57  ;;  %16308 = vpow2.f32 %v13053_v28  ;;  %v19572_v6 = vpop.permute.xlu1 %12222 }
 0xa08   : > { %12486 = vst.msk [vmem:[%s19024_s21 + $0x268] sm:$0xff] %vm12408_vm8, %v19399_v58  ;;  %v10872_v62 = vpop.f32.mrf.mxu0  ;;  %v16285_v16 = vpop.eup %16284  ;;  %16310 = vpow2.f32 %v13051_v21 }
 0xa09   : > { %11850 = vst.msk [vmem:[%s19024_s21 + $0x290] sm:$0xff] %vm11767_vm7, %v16283_v41  ;;  %v13054_v25 = vmul.f32 -1.442695, %v10872_v62  ;;  %v16287_v59 = vpop.eup %16286  ;;  %11848 = vst.msk [vmem:[%s19024_s21 + $0x280] sm:$0xff] %vm11767_vm7, %v16285_v16  ;;  %16312 = vrcp.f32 %v11468_v26 }
 0xa0a   : > { %12491 = vst.msk [vmem:[%s19024_s21 + $0x290] sm:$0xff] %vm12408_vm8, %v19397_v49  ;;  %v15813_v23 = vpop.f32.mrf.mxu0  ;;  %v16289_v7 = vpop.eup %16288  ;;  %12489 = vst.msk [vmem:[%s19024_s21 + $0x280] sm:$0xff] %vm12408_vm8, %v19413_v18  ;;  %v11473_v58 = vadd.f32 1.0, %v16287_v59  ;;  %16314 = vpow2.f32 %v13056_v37 }
 0xa0b   : > { %v13057_v40 = vmul.f32 -1.442695, %v15813_v23  ;;  %v16291_v43 = vpop.eup %16290  ;;  %v11471_v39 = vadd.f32 1.0, %v16289_v7  ;;  %16316 = vpow2.f32 %v13054_v25  ;;  %v19568_v49 = vpop.permute.xlu0 %12216 }
 0xa0c   : > { %v10875_v47 = vpop.f32.mrf.mxu0  ;;  %v16293_v17 = vpop.eup %16292  ;;  %11851 = vst.msk [vmem:[%s19024_s21 + $0x298] sm:$0xff] %vm11767_vm7, %v16291_v43  ;;  %16318 = vrcp.f32 %v11473_v58 }
 0xa0d   : > { %v13055_v51 = vmul.f32 -1.442695, %v10875_v47  ;;  %v16295_v45 = vpop.eup %16294  ;;  %12492 = vst.msk [vmem:[%s19024_s21 + $0x298] sm:$0xff] %vm12408_vm8, %v19418_v34  ;;  %16320 = vrcp.f32 %v11471_v39  ;;  %v11474_v18 = vadd.f32 1.0, %v16293_v17  ;;  %v19591_v50 = vpop.permute.xlu1 %12218 }
 0xa0e   : > { %v15816_v24 = vpop.f32.mrf.mxu0  ;;  %v16297_v5 = vpop.eup %16296  ;;  %11849 = vst.msk [vmem:[%s19024_s21 + $0x288] sm:$0xff] %vm11767_vm7, %v16295_v45  ;;  %16322 = vpow2.f32 %v13057_v40 }
 0xa0f   : > { %v16299_v15 = vpop.eup %16298  ;;  %12490 = vst.msk [vmem:[%s19024_s21 + $0x288] sm:$0xff] %vm12408_vm8, %v19437_v61  ;;  %16324 = vrcp.f32 %v11474_v18  ;;  %v11472_v63 = vadd.f32 1.0, %v16297_v5  ;;  %v13060_v36 = vmul.f32 -1.442695, %v15816_v24  ;;  %v19584_v52 = vpop.permute.xlu0 %12228 }
 0xa10   : > { %v10888_v60 = vpop.f32.mrf.mxu0  ;;  %v16301_v1 = vpop.eup %16300  ;;  %v11477_v34 = vadd.f32 1.0, %v16299_v15  ;;  %16326 = vpow2.f32 %v13055_v51 }
 0xa11   : > { %v13058_v44 = vmul.f32 -1.442695, %v10888_v60  ;;  %v16303_v22 = vpop.eup %16302  ;;  %11854 = vst.msk [vmem:[%s19024_s21 + $0x2b0] sm:$0xff] %vm11767_vm7, %v16301_v1  ;;  %16328 = vrcp.f32 %v11472_v63  ;;  %v19608_v54 = vpop.permute.xlu1 %12230 }
 0xa12   : > { %v15817_v56 = vpop.f32.mrf.mxu0  ;;  %v16305_v20 = vpop.eup %16304  ;;  %12495 = vst.msk [vmem:[%s19024_s21 + $0x2b0] sm:$0xff] %vm12408_vm8, %v19435_v19  ;;  %16330 = vrcp.f32 %v11477_v34 }
 0xa13   : > { %11852 = vst.msk [vmem:[%s19024_s21 + $0x2a0] sm:$0xff] %vm11767_vm7, %v16303_v22  ;;  %v13061_v61 = vmul.f32 -1.442695, %v15817_v56  ;;  %v16307_v9 = vpop.eup %16306  ;;  %v11475_v12 = vadd.f32 1.0, %v16305_v20  ;;  %16332 = vpow2.f32 %v13060_v36  ;;  %v19603_v48 = vpop.permute.xlu0 %12224 }
 0xa14   : > { %12493 = vst.msk [vmem:[%s19024_s21 + $0x2a0] sm:$0xff] %vm12408_vm8, %v19454_v27  ;;  %v10891_v32 = vpop.f32.mrf.mxu0  ;;  %v16309_v42 = vpop.eup %16308  ;;  %16334 = vpow2.f32 %v13058_v44 }
 0xa15   : > { %11855 = vst.msk [vmem:[%s19024_s21 + $0x2b8] sm:$0xff] %vm11767_vm7, %v16307_v9  ;;  %v16311_v19 = vpop.eup %16310  ;;  %16336 = vrcp.f32 %v11475_v12  ;;  %v11478_v4 = vadd.f32 1.0, %v16309_v42  ;;  %v13059_v10 = vmul.f32 -1.442695, %v10891_v32  ;;  %v19627_v47 = vpop.permute.xlu1 %12226 }
 0xa16   : > { %12496 = vst.msk [vmem:[%s19024_s21 + $0x2b8] sm:$0xff] %vm12408_vm8, %v19458_v55  ;;  %v15820_v30 = vpop.f32.mrf.mxu0  ;;  %v16313_v35 = vpop.eup %16312  ;;  %v11476_v28 = vadd.f32 1.0, %v16311_v19  ;;  %16338 = vpow2.f32 %v13061_v61 }
 0xa17   : > { %v16315_v27 = vpop.eup %16314  ;;  %11853 = vst.msk [vmem:[%s19024_s21 + $0x2a8] sm:$0xff] %vm11767_vm7, %v16313_v35  ;;  %16340 = vrcp.f32 %v11478_v4  ;;  %v13064_v21 = vmul.f32 -1.442695, %v15820_v30  ;;  %v19622_v40 = vpop.permute.xlu0 %12236 }
 0xa18   : > { %v10904_v8 = vpop.f32.mrf.mxu0  ;;  %v16317_v53 = vpop.eup %16316  ;;  %12494 = vst.msk [vmem:[%s19024_s21 + $0x2a8] sm:$0xff] %vm12408_vm8, %v19477_v38  ;;  %16342 = vrcp.f32 %v11476_v28  ;;  %v11481_v55 = vadd.f32 1.0, %v16315_v27 }
 0xa19   : > { %v16319_v33 = vpop.eup %16318  ;;  %v11479_v57 = vadd.f32 1.0, %v16317_v53  ;;  %16344 = vpow2.f32 %v13059_v10  ;;  %v13062_v37 = vmul.f32 -1.442695, %v10904_v8  ;;  %v19646_v22 = vpop.permute.xlu1 %12238 }
 0xa1a   : > { %v15821_v41 = vpop.f32.mrf.mxu0  ;;  %v16321_v26 = vpop.eup %16320  ;;  %11858 = vst.msk [vmem:[%s19024_s21 + $0x2d0] sm:$0xff] %vm11767_vm7, %v16319_v33  ;;  %16346 = vrcp.f32 %v11481_v55 }
 0xa1b   : > { %v16323_v62 = vpop.eup %16322  ;;  %12499 = vst.msk [vmem:[%s19024_s21 + $0x2d0] sm:$0xff] %vm12408_vm8, %v19473_v46  ;;  %16348 = vrcp.f32 %v11479_v57  ;;  %v13065_v38 = vmul.f32 -1.442695, %v15821_v41  ;;  %v19641_v1 = vpop.permute.xlu0 %12232 }
 0xa1c   : > { %11856 = vst.msk [vmem:[%s19024_s21 + $0x2c0] sm:$0xff] %vm11767_vm7, %v16321_v26  ;;  %v10907_v16 = vpop.f32.mrf.mxu0  ;;  %v16325_v25 = vpop.eup %16324  ;;  %v11482_v59 = vadd.f32 1.0, %v16323_v62  ;;  %16350 = vpow2.f32 %v13064_v21 }
 0xa1d   : > { %12497 = vst.msk [vmem:[%s19024_s21 + $0x2c0] sm:$0xff] %vm12408_vm8, %v19492_v29  ;;  %v16327_v23 = vpop.eup %16326  ;;  %16352 = vpow2.f32 %v13062_v37  ;;  %v13063_v46 = vmul.f32 -1.442695, %v10907_v16  ;;  %v19670_v28 = vpop.permute.xlu1 %12234 }
 0xa1e   : > { %11859 = vst.msk [vmem:[%s19024_s21 + $0x2d8] sm:$0xff] %vm11767_vm7, %v16325_v25  ;;  %v15824_v7 = vpop.f32.mrf.mxu0  ;;  %v16329_v58 = vpop.eup %16328  ;;  %16354 = vrcp.f32 %v11482_v59  ;;  %v11480_v29 = vadd.f32 1.0, %v16327_v23 }
 0xa1f   : > { %12500 = vst.msk [vmem:[%s19024_s21 + $0x2d8] sm:$0xff] %vm12408_vm8, %v19496_v14  ;;  %v13068_v43 = vmul.f32 -1.442695, %v15824_v7  ;;  %v16331_v39 = vpop.eup %16330  ;;  %16356 = vpow2.f32 %v13065_v38 }
 0xa20   : > { %11857 = vst.msk [vmem:[%s19024_s21 + $0x2c8] sm:$0xff] %vm11767_vm7, %v16329_v58  ;;  %v10920_v17 = vpop.f32.mrf.mxu0  ;;  %v16333_v51 = vpop.eup %16332  ;;  %11862 = vst.msk [vmem:[%s19024_s21 + $0x2f0] sm:$0xff] %vm11767_vm7, %v16331_v39  ;;  %16358 = vrcp.f32 %v11480_v29 }
 0xa21   : > { %12498 = vst.msk [vmem:[%s19024_s21 + $0x2c8] sm:$0xff] %vm12408_vm8, %v19510_v2  ;;  %v16335_v45 = vpop.eup %16334  ;;  %12503 = vst.msk [vmem:[%s19024_s21 + $0x2f0] sm:$0xff] %vm12408_vm8, %v19506_v13  ;;  %v11485_v14 = vadd.f32 1.0, %v16333_v51  ;;  %16360 = vpow2.f32 %v13063_v46  ;;  %v13066_v18 = vmul.f32 -1.442695, %v10920_v17  ;;  %v19684_v59 = vpop.permute.xlu1 %12246 }
 0xa22   : > { %v15825_v24 = vpop.f32.mrf.mxu0  ;;  %v16337_v5 = vpop.eup %16336  ;;  %v11483_v15 = vadd.f32 1.0, %v16335_v45  ;;  %16362 = vpow2.f32 %v13068_v43 }
 0xa23   : > { %v16339_v63 = vpop.eup %16338  ;;  %11860 = vst.msk [vmem:[%s19024_s21 + $0x2e0] sm:$0xff] %vm11767_vm7, %v16337_v5  ;;  %16364 = vrcp.f32 %v11485_v14  ;;  %v13069_v2 = vmul.f32 -1.442695, %v15825_v24 }
 0xa24   : > { %v10923_v36 = vpop.f32.mrf.mxu0  ;;  %v16341_v60 = vpop.eup %16340  ;;  %12501 = vst.msk [vmem:[%s19024_s21 + $0x2e0] sm:$0xff] %vm12408_vm8, %v19527_v3  ;;  %16366 = vrcp.f32 %v11483_v15  ;;  %v11486_v13 = vadd.f32 1.0, %v16339_v63 }
 0xa25   : > { %v13067_v34 = vmul.f32 -1.442695, %v10923_v36  ;;  %v16343_v44 = vpop.eup %16342  ;;  %11863 = vst.msk [vmem:[%s19024_s21 + $0x2f8] sm:$0xff] %vm11767_vm7, %v16341_v60  ;;  %16368 = vpow2.f32 %v13066_v18  ;;  %v19703_v24 = vpop.permute.xlu1 %12242 }
 0xa26   : > { %v15828_v56 = vpop.f32.mrf.mxu0  ;;  %v16345_v20 = vpop.eup %16344  ;;  %12504 = vst.msk [vmem:[%s19024_s21 + $0x2f8] sm:$0xff] %vm12408_vm8, %v19534_v31  ;;  %16370 = vrcp.f32 %v11486_v13 }
 0xa27   : > { %11861 = vst.msk [vmem:[%s19024_s21 + $0x2e8] sm:$0xff] %vm11767_vm7, %v16343_v44  ;;  %v13072_v3 = vmul.f32 -1.442695, %v15828_v56  ;;  %v16347_v61 = vpop.eup %16346  ;;  %v11484_v9 = vadd.f32 1.0, %v16345_v20  ;;  %16372 = vpow2.f32 %v13069_v2 }
 0xa28   : > { %12502 = vst.msk [vmem:[%s19024_s21 + $0x2e8] sm:$0xff] %vm12408_vm8, %v19553_v11  ;;  %v10936_v12 = vpop.f32.mrf.mxu0  ;;  %v16349_v32 = vpop.eup %16348  ;;  %16374 = vpow2.f32 %v13067_v34 }
 0xa29   : > { %11866 = vst.msk [vmem:[%s19024_s21 + $0x310] sm:$0xff] %vm11767_vm7, %v16347_v61  ;;  %v13070_v42 = vmul.f32 -1.442695, %v10936_v12  ;;  %v16351_v19 = vpop.eup %16350  ;;  %11864 = vst.msk [vmem:[%s19024_s21 + $0x300] sm:$0xff] %vm11767_vm7, %v16349_v32  ;;  %16376 = vrcp.f32 %v11484_v9  ;;  %v19665_v11 = vpop.permute.xlu0 %12244 }
 0xa2a   : > { %12507 = vst.msk [vmem:[%s19024_s21 + $0x310] sm:$0xff] %vm12408_vm8, %v19546_v0  ;;  %v15829_v31 = vpop.f32.mrf.mxu0  ;;  %v16353_v4 = vpop.eup %16352  ;;  %12505 = vst.msk [vmem:[%s19024_s21 + $0x300] sm:$0xff] %vm12408_vm8, %v19568_v49  ;;  %v11489_v10 = vadd.f32 1.0, %v16351_v19  ;;  %16378 = vpow2.f32 %v13072_v3 }
 0xa2b   : > { %v13073_v30 = vmul.f32 -1.442695, %v15829_v31  ;;  %v16355_v35 = vpop.eup %16354  ;;  %v11487_v0 = vadd.f32 1.0, %v16353_v4  ;;  %16380 = vpow2.f32 %v13070_v42  ;;  %v19722_v12 = vpop.permute.xlu1 %12254 }
 0xa2c   : > { %v10939_v27 = vpop.f32.mrf.mxu0  ;;  %v16357_v8 = vpop.eup %16356  ;;  %11867 = vst.msk [vmem:[%s19024_s21 + $0x318] sm:$0xff] %vm11767_vm7, %v16355_v35  ;;  %16382 = vrcp.f32 %v11489_v10 }
 0xa2d   : > { %v13071_v53 = vmul.f32 -1.442695, %v10939_v27  ;;  %v16359_v55 = vpop.eup %16358  ;;  %12508 = vst.msk [vmem:[%s19024_s21 + $0x318] sm:$0xff] %vm12408_vm8, %v19572_v6  ;;  %16384 = vrcp.f32 %v11487_v0  ;;  %v11490_v49 = vadd.f32 1.0, %v16357_v8  ;;  %v19682_v6 = vpop.permute.xlu0 %12240 }
 0xa2e   : > { %v15832_v21 = vpop.f32.mrf.mxu0  ;;  %v16361_v33 = vpop.eup %16360  ;;  %11865 = vst.msk [vmem:[%s19024_s21 + $0x308] sm:$0xff] %vm11767_vm7, %v16359_v55  ;;  %16386 = vpow2.f32 %v13073_v30 }
 0xa2f   : > { %v16363_v57 = vpop.eup %16362  ;;  %12506 = vst.msk [vmem:[%s19024_s21 + $0x308] sm:$0xff] %vm12408_vm8, %v19591_v50  ;;  %16388 = vrcp.f32 %v11490_v49  ;;  %v11488_v37 = vadd.f32 1.0, %v16361_v33  ;;  %v13076_v41 = vmul.f32 -1.442695, %v15832_v21 }
 0xa30   : > { %v10952_v26 = vpop.f32.mrf.mxu0  ;;  %v16365_v62 = vpop.eup %16364  ;;  %v11493_v38 = vadd.f32 1.0, %v16363_v57  ;;  %16390 = vpow2.f32 %v13071_v53 }
 0xa31   : > { %v13074_v16 = vmul.f32 -1.442695, %v10952_v26  ;;  %v16367_v25 = vpop.eup %16366  ;;  %11870 = vst.msk [vmem:[%s19024_s21 + $0x330] sm:$0xff] %vm11767_vm7, %v16365_v62  ;;  %16392 = vrcp.f32 %v11488_v37  ;;  %v19701_v14 = vpop.permute.xlu0 %12252 }
 0xa32   : > { %v15833_v50 = vpop.f32.mrf.mxu0  ;;  %v16369_v23 = vpop.eup %16368  ;;  %12511 = vst.msk [vmem:[%s19024_s21 + $0x330] sm:$0xff] %vm12408_vm8, %v19584_v52  ;;  %16394 = vrcp.f32 %v11493_v38 }
 0xa33   : > { %11868 = vst.msk [vmem:[%s19024_s21 + $0x320] sm:$0xff] %vm11767_vm7, %v16367_v25  ;;  %v13077_v46 = vmul.f32 -1.442695, %v15833_v50  ;;  %v16371_v7 = vpop.eup %16370  ;;  %v11491_v58 = vadd.f32 1.0, %v16369_v23  ;;  %16396 = vpow2.f32 %v13076_v41 }
 0xa34   : > { %12509 = vst.msk [vmem:[%s19024_s21 + $0x320] sm:$0xff] %vm12408_vm8, %v19603_v48  ;;  %v10955_v29 = vpop.f32.mrf.mxu0  ;;  %v16373_v43 = vpop.eup %16372  ;;  %16398 = vpow2.f32 %v13074_v16 }
 0xa35   : > { %11871 = vst.msk [vmem:[%s19024_s21 + $0x338] sm:$0xff] %vm11767_vm7, %v16371_v7  ;;  %v16375_v39 = vpop.eup %16374  ;;  %16400 = vrcp.f32 %v11491_v58  ;;  %v11494_v52 = vadd.f32 1.0, %v16373_v43  ;;  %v13075_v17 = vmul.f32 -1.442695, %v10955_v29  ;;  %v19717_v3 = vpop.permute.xlu0 %12248 }
 0xa36   : > { %12512 = vst.msk [vmem:[%s19024_s21 + $0x338] sm:$0xff] %vm12408_vm8, %v19608_v54  ;;  %v15836_v51 = vpop.f32.mrf.mxu0  ;;  %v16377_v45 = vpop.eup %16376  ;;  %v11492_v48 = vadd.f32 1.0, %v16375_v39  ;;  %16402 = vpow2.f32 %v13077_v46 }
 0xa37   : > { %v16379_v18 = vpop.eup %16378  ;;  %11869 = vst.msk [vmem:[%s19024_s21 + $0x328] sm:$0xff] %vm11767_vm7, %v16377_v45  ;;  %16404 = vrcp.f32 %v11494_v52  ;;  %v13080_v63 = vmul.f32 -1.442695, %v15836_v51 }
 0xa38   : > { %v10968_v5 = vpop.f32.mrf.mxu0  ;;  %v16381_v54 = vpop.eup %16380  ;;  %12510 = vst.msk [vmem:[%s19024_s21 + $0x328] sm:$0xff] %vm12408_vm8, %v19627_v47  ;;  %16406 = vrcp.f32 %v11492_v48  ;;  %v11497_v15 = vadd.f32 1.0, %v16379_v18 }
 0xa39   : > { %v16383_v2 = vpop.eup %16382  ;;  %v11495_v36 = vadd.f32 1.0, %v16381_v54  ;;  %16408 = vpow2.f32 %v13075_v17  ;;  %v13078_v60 = vmul.f32 -1.442695, %v10968_v5  ;;  %v12261_v8 = vpop.permute.xlu0 %12260 }
 0xa3a   : > { %v15837_v13 = vpop.f32.mrf.mxu0  ;;  %v16385_v34 = vpop.eup %16384  ;;  %11874 = vst.msk [vmem:[%s19024_s21 + $0x350] sm:$0xff] %vm11767_vm7, %v16383_v2  ;;  %16410 = vrcp.f32 %v11497_v15 }
 0xa3b   : > { %v16387_v44 = vpop.eup %16386  ;;  %12515 = vst.msk [vmem:[%s19024_s21 + $0x350] sm:$0xff] %vm12408_vm8, %v19622_v40  ;;  %16412 = vrcp.f32 %v11495_v36  ;;  %v13081_v47 = vmul.f32 -1.442695, %v15837_v13 }
 0xa3c   : > { %11872 = vst.msk [vmem:[%s19024_s21 + $0x340] sm:$0xff] %vm11767_vm7, %v16385_v34  ;;  %v10971_v56 = vpop.f32.mrf.mxu0  ;;  %v16389_v20 = vpop.eup %16388  ;;  %v11498_v61 = vadd.f32 1.0, %v16387_v44  ;;  %16414 = vpow2.f32 %v13080_v63 }
 0xa3d   : > { %12513 = vst.msk [vmem:[%s19024_s21 + $0x340] sm:$0xff] %vm12408_vm8, %v19641_v1  ;;  %v16391_v9 = vpop.eup %16390  ;;  %16416 = vpow2.f32 %v13078_v60  ;;  %v13079_v40 = vmul.f32 -1.442695, %v10971_v56  ;;  %v12257_v38 = vpop.permute.xlu0 %12256 }
 0xa3e   : > { %11875 = vst.msk [vmem:[%s19024_s21 + $0x358] sm:$0xff] %vm11767_vm7, %v16389_v20  ;;  %v15840_v32 = vpop.f32.mrf.mxu0  ;;  %v16393_v42 = vpop.eup %16392  ;;  %16418 = vrcp.f32 %v11498_v61  ;;  %v11496_v19 = vadd.f32 1.0, %v16391_v9 }
 0xa3f   : > { %12516 = vst.msk [vmem:[%s19024_s21 + $0x358] sm:$0xff] %vm12408_vm8, %v19646_v22  ;;  %v13084_v1 = vmul.f32 -1.442695, %v15840_v32  ;;  %v16395_v31 = vpop.eup %16394  ;;  %16420 = vpow2.f32 %v13081_v47 }
 0xa40   : > { %11873 = vst.msk [vmem:[%s19024_s21 + $0x348] sm:$0xff] %vm11767_vm7, %v16393_v42  ;;  %v10984_v4 = vpop.f32.mrf.mxu0  ;;  %v16397_v10 = vpop.eup %16396  ;;  %11878 = vst.msk [vmem:[%s19024_s21 + $0x370] sm:$0xff] %vm11767_vm7, %v16395_v31  ;;  %16422 = vrcp.f32 %v11496_v19 }
 0xa41   : > { %12514 = vst.msk [vmem:[%s19024_s21 + $0x348] sm:$0xff] %vm12408_vm8, %v19670_v28  ;;  %v16399_v30 = vpop.eup %16398  ;;  %12519 = vst.msk [vmem:[%s19024_s21 + $0x370] sm:$0xff] %vm12408_vm8, %v19665_v11  ;;  %v11501_v22 = vadd.f32 1.0, %v16397_v10  ;;  %16424 = vpow2.f32 %v13079_v40  ;;  %v13082_v35 = vmul.f32 -1.442695, %v10984_v4  ;;  %v12251_v28 = vpop.permute.xlu1 %12250 }
 0xa42   : > { %v15841_v0 = vpop.f32.mrf.mxu0  ;;  %v16401_v27 = vpop.eup %16400  ;;  %v11499_v53 = vadd.f32 1.0, %v16399_v30  ;;  %16426 = vpow2.f32 %v13084_v1 }
 0xa43   : > { %v16403_v55 = vpop.eup %16402  ;;  %11876 = vst.msk [vmem:[%s19024_s21 + $0x360] sm:$0xff] %vm11767_vm7, %v16401_v27  ;;  %16428 = vrcp.f32 %v11501_v22  ;;  %v13085_v49 = vmul.f32 -1.442695, %v15841_v0  ;;  %v12269_v39 = vpop.permute.xlu0 %12268 }
 0xa44   : > { %v10987_v11 = vpop.f32.mrf.mxu0  ;;  %v16405_v21 = vpop.eup %16404  ;;  %12517 = vst.msk [vmem:[%s19024_s21 + $0x360] sm:$0xff] %vm12408_vm8, %v19682_v6  ;;  %16430 = vrcp.f32 %v11499_v53  ;;  %v11502_v33 = vadd.f32 1.0, %v16403_v55 }
 0xa45   : > { %v13083_v57 = vmul.f32 -1.442695, %v10987_v11  ;;  %v16407_v37 = vpop.eup %16406  ;;  %11879 = vst.msk [vmem:[%s19024_s21 + $0x378] sm:$0xff] %vm11767_vm7, %v16405_v21  ;;  %16432 = vpow2.f32 %v13082_v35  ;;  %v12263_v25 = vpop.permute.xlu1 %12262 }
 0xa46   : > { %v16409_v41 = vpop.eup %16408  ;;  %12520 = vst.msk [vmem:[%s19024_s21 + $0x378] sm:$0xff] %vm12408_vm8, %v19684_v59  ;;  %16434 = vrcp.f32 %v11502_v33 }
 0xa47   : > { %11877 = vst.msk [vmem:[%s19024_s21 + $0x368] sm:$0xff] %vm11767_vm7, %v16407_v37  ;;  %v16411_v26 = vpop.eup %16410  ;;  %v11500_v62 = vadd.f32 1.0, %v16409_v41  ;;  %16436 = vpow2.f32 %v13085_v49  ;;  %v12265_v15 = vpop.permute.xlu0 %12264 }
 0xa48   : > { %12518 = vst.msk [vmem:[%s19024_s21 + $0x368] sm:$0xff] %vm12408_vm8, %v19703_v24  ;;  %v16413_v6 = vpop.eup %16412  ;;  %16438 = vpow2.f32 %v13083_v57 }
 0xa49   : > { %11882 = vst.msk [vmem:[%s19024_s21 + $0x390] sm:$0xff] %vm11767_vm7, %v16411_v26  ;;  %v16415_v16 = vpop.eup %16414  ;;  %11880 = vst.msk [vmem:[%s19024_s21 + $0x380] sm:$0xff] %vm11767_vm7, %v16413_v6  ;;  %16440 = vrcp.f32 %v11500_v62  ;;  %v12259_v17 = vpop.permute.xlu1 %12258 }
 0xa4a   : > { %12523 = vst.msk [vmem:[%s19024_s21 + $0x390] sm:$0xff] %vm12408_vm8, %v19701_v14  ;;  %v16417_v59 = vpop.eup %16416  ;;  %12521 = vst.msk [vmem:[%s19024_s21 + $0x380] sm:$0xff] %vm12408_vm8, %v19717_v3  ;;  %v11505_v50 = vadd.f32 1.0, %v16415_v16 }
 0xa4b   : > { %v16419_v23 = vpop.eup %16418  ;;  %v11503_v46 = vadd.f32 1.0, %v16417_v59  ;;  %v12273_v47 = vpop.permute.xlu0 %12272 }
 0xa4c   : > { %v16421_v7 = vpop.eup %16420  ;;  %11883 = vst.msk [vmem:[%s19024_s21 + $0x398] sm:$0xff] %vm11767_vm7, %v16419_v23  ;;  %16442 = vrcp.f32 %v11505_v50 }
 0xa4d   : > { %v16423_v58 = vpop.eup %16422  ;;  %12524 = vst.msk [vmem:[%s19024_s21 + $0x398] sm:$0xff] %vm12408_vm8, %v19722_v12  ;;  %16444 = vrcp.f32 %v11503_v46  ;;  %v11506_v29 = vadd.f32 1.0, %v16421_v7  ;;  %v12271_v2 = vpop.permute.xlu1 %12270 }
 0xa4e   : > { %v16425_v43 = vpop.eup %16424  ;;  %11881 = vst.msk [vmem:[%s19024_s21 + $0x388] sm:$0xff] %vm11767_vm7, %v16423_v58 }
 0xa4f   : > { %v16427_v52 = vpop.eup %16426  ;;  %12522 = vst.msk [vmem:[%s19024_s21 + $0x388] sm:$0xff] %vm12408_vm8, %v12251_v28  ;;  %16446 = vrcp.f32 %v11506_v29  ;;  %v11504_v51 = vadd.f32 1.0, %v16425_v43  ;;  %v12277_v12 = vpop.permute.xlu0 %12276 }
 0xa50   : > { %v16429_v45 = vpop.eup %16428  ;;  %v11509_v14 = vadd.f32 1.0, %v16427_v52 }
 0xa51   : > { %v16431_v48 = vpop.eup %16430  ;;  %11886 = vst.msk [vmem:[%s19024_s21 + $0x3b0] sm:$0xff] %vm11767_vm7, %v16429_v45  ;;  %16448 = vrcp.f32 %v11504_v51  ;;  %v12267_v56 = vpop.permute.xlu1 %12266 }
 0xa52   : > { %v16433_v18 = vpop.eup %16432  ;;  %12527 = vst.msk [vmem:[%s19024_s21 + $0x3b0] sm:$0xff] %vm12408_vm8, %v12261_v8  ;;  %16450 = vrcp.f32 %v11509_v14 }
 0xa53   : > { %11884 = vst.msk [vmem:[%s19024_s21 + $0x3a0] sm:$0xff] %vm11767_vm7, %v16431_v48  ;;  %v16435_v24 = vpop.eup %16434  ;;  %v11507_v5 = vadd.f32 1.0, %v16433_v18 }
 0xa54   : > { %12525 = vst.msk [vmem:[%s19024_s21 + $0x3a0] sm:$0xff] %vm12408_vm8, %v12257_v38  ;;  %v16437_v54 = vpop.eup %16436 }
 0xa55   : > { %11887 = vst.msk [vmem:[%s19024_s21 + $0x3b8] sm:$0xff] %vm11767_vm7, %v16435_v24  ;;  %v16439_v63 = vpop.eup %16438  ;;  %16452 = vrcp.f32 %v11507_v5  ;;  %v11510_v36 = vadd.f32 1.0, %v16437_v54  ;;  %v12275_v9 = vpop.permute.xlu1 %12274 }
 0xa56   : > { %12528 = vst.msk [vmem:[%s19024_s21 + $0x3b8] sm:$0xff] %vm12408_vm8, %v12263_v25  ;;  %v16441_v60 = vpop.eup %16440  ;;  %v11508_v13 = vadd.f32 1.0, %v16439_v63 }
 0xa57   : > { %11885 = vst.msk [vmem:[%s19024_s21 + $0x3a8] sm:$0xff] %vm11767_vm7, %v16441_v60  ;;  %16454 = vrcp.f32 %v11510_v36 }
 0xa58   : > { %12526 = vst.msk [vmem:[%s19024_s21 + $0x3a8] sm:$0xff] %vm12408_vm8, %v12259_v17  ;;  %16456 = vrcp.f32 %v11508_v13 }
 0xa59   : > { %v16443_v34 = vpop.eup %16442  ;;  %v12279_v19 = vpop.permute.xlu1 %12278 }
 0xa5a   : > { %v16445_v44 = vpop.eup %16444  ;;  %11890 = vst.msk [vmem:[%s19024_s21 + $0x3d0] sm:$0xff] %vm11767_vm7, %v16443_v34 }
 0xa5b   : > { %12531 = vst.msk [vmem:[%s19024_s21 + $0x3d0] sm:$0xff] %vm12408_vm8, %v12269_v39 }
 0xa5c   : > { %11888 = vst.msk [vmem:[%s19024_s21 + $0x3c0] sm:$0xff] %vm11767_vm7, %v16445_v44  ;;  %v16447_v20 = vpop.eup %16446 }
 0xa5d   : > { %12529 = vst.msk [vmem:[%s19024_s21 + $0x3c0] sm:$0xff] %vm12408_vm8, %v12265_v15 }
 0xa5e   : > { %11891 = vst.msk [vmem:[%s19024_s21 + $0x3d8] sm:$0xff] %vm11767_vm7, %v16447_v20  ;;  %v16449_v3 = vpop.eup %16448 }
 0xa5f   : > { %12532 = vst.msk [vmem:[%s19024_s21 + $0x3d8] sm:$0xff] %vm12408_vm8, %v12271_v2  ;;  %v16451_v61 = vpop.eup %16450 }
 0xa60   : > { %11889 = vst.msk [vmem:[%s19024_s21 + $0x3c8] sm:$0xff] %vm11767_vm7, %v16449_v3  ;;  %11894 = vst.msk [vmem:[%s19024_s21 + $0x3f0] sm:$0xff] %vm11767_vm7, %v16451_v61 }
 0xa61   : > { %12530 = vst.msk [vmem:[%s19024_s21 + $0x3c8] sm:$0xff] %vm12408_vm8, %v12267_v56  ;;  %12535 = vst.msk [vmem:[%s19024_s21 + $0x3f0] sm:$0xff] %vm12408_vm8, %v12277_v12 }
 0xa62   : > { %v16453_v40 = vpop.eup %16452 }
 0xa63   : > { %11892 = vst.msk [vmem:[%s19024_s21 + $0x3e0] sm:$0xff] %vm11767_vm7, %v16453_v40 }
 0xa64   : > { %v16455_v32 = vpop.eup %16454  ;;  %12533 = vst.msk [vmem:[%s19024_s21 + $0x3e0] sm:$0xff] %vm12408_vm8, %v12273_v47 }
 0xa65   : > { %v16457_v42 = vpop.eup %16456  ;;  %11895 = vst.msk [vmem:[%s19024_s21 + $0x3f8] sm:$0xff] %vm11767_vm7, %v16455_v32 }
 0xa66   : > { %12536 = vst.msk [vmem:[%s19024_s21 + $0x3f8] sm:$0xff] %vm12408_vm8, %v12279_v19 }
 0xa67   : > { %11893 = vst.msk [vmem:[%s19024_s21 + $0x3e8] sm:$0xff] %vm11767_vm7, %v16457_v42 }
 0xa68   : > { %12534 = vst.msk [vmem:[%s19024_s21 + $0x3e8] sm:$0xff] %vm12408_vm8, %v12275_v9 }
 0xa69 PF: > { %s25_s18 = sadd.s32 1, %s16464_s18  }
 0xa6a   : > { %p22_p4 = scmp.ge.s32.totalorder %s25_s18, 4  }
 0xa6c   :  { %24 = sbr.rel (!%p22_p4) target bundleno = 1 (0x1), region = 113 }

</bundles_post_ra>
